<compile_context>
chip_gen: v6e
topology: v6e:2x2x1
jax: 0.10.0
libtpu: 0.0.40
codegen_flags: <defaults>
</compile_context>

<pallas_src>
import functools

import jax
import jax.numpy as jnp
from jax.experimental import pallas as pl
from jax.experimental.pallas import tpu as pltpu

COMPUTE_DTYPE = jnp.bfloat16          # MXU input dtype (f32 accumulation)
VMEM_LIMIT = 32 * 1024 * 1024         # explicit scoped-VMEM budget (fits all gens)
CONV_ROW_TILE = 1024                  # target rows per conv grid step
FC_ROW_TILE = 512                     # target rows per fc grid step


# ----------------------------------------------------------------------------
# helpers
# ----------------------------------------------------------------------------
def _choose_row_tile(m, target):
    """Largest ~even row tile <= target, rounded up to a multiple of 8."""
    nblocks = max(1, pl.cdiv(m, target))
    tm = pl.cdiv(m, nblocks)
    return pl.cdiv(tm, 8) * 8


def _pad_rows(x, rows_padded, axis):
    pad = [(0, 0)] * x.ndim
    pad[axis] = (0, rows_padded - x.shape[axis])
    return jnp.pad(x, pad) if rows_padded != x.shape[axis] else x


# ----------------------------------------------------------------------------
# Pallas kernels
# ----------------------------------------------------------------------------
def _conv_pool_kernel(p_ref, w_ref, b_ref, o_ref, *, compute_dtype):
    """Fused conv-as-matmul + bias + ReLU + 2x2 max-pool.

    p_ref: (4, TM, 9*Cin)  im2col patches, leading axis = pool-window offset
    w_ref: (9*Cin, Cout)   b_ref: (1, Cout)   o_ref: (TM, Cout)
    """
    w = w_ref[...].astype(compute_dtype)
    z = jnp.dot(p_ref[0].astype(compute_dtype), w,
                preferred_element_type=jnp.float32)
    for k in range(1, 4):                       # static unroll over the window
        zk = jnp.dot(p_ref[k].astype(compute_dtype), w,
                     preferred_element_type=jnp.float32)
        z = jnp.maximum(z, zk)                  # max-pool before bias/ReLU (equiv.)
    z = z + b_ref[...]
    o_ref[...] = jnp.maximum(z, 0.0).astype(o_ref.dtype)


def _mlp_kernel(x_ref, w1_ref, b1_ref, w2_ref, b2_ref, o_ref, *, compute_dtype):
    """Fused fc1 (+ReLU) + fc2: the (TM,128) hidden never leaves VMEM."""
    x = x_ref[...].astype(compute_dtype)
    h = jnp.dot(x, w1_ref[...].astype(compute_dtype),
                preferred_element_type=jnp.float32)
    h = jnp.maximum(h + b1_ref[...], 0.0)
    y = jnp.dot(h.astype(compute_dtype), w2_ref[...].astype(compute_dtype),
                preferred_element_type=jnp.float32)
    o_ref[...] = (y + b2_ref[...]).astype(o_ref.dtype)


# ----------------------------------------------------------------------------
# conv stage = pool-grouped im2col (XLA glue) + fused Pallas kernel
# ----------------------------------------------------------------------------
def _pool_grouped_im2col(x_nhwc, k=3, pad=1):
    """Patches grouped by 2x2 pool-window offset: (4, B*H2*W2, 9*C)."""
    B, H, W, C = x_nhwc.shape
    H2, W2 = H // 2, W // 2
    xp = jnp.pad(x_nhwc, ((0, 0), (pad, pad), (pad, pad), (0, 0)))
    groups = []
    for di in range(2):
        for dj in range(2):
            cols = []
            for kh in range(k):
                for kw in range(k):
                    cols.append(xp[:, di + kh:di + kh + H:2,
                                      dj + kw:dj + kw + W:2, :])   # (B,H2,W2,C)
            g = jnp.concatenate(cols, axis=-1)                     # (B,H2,W2,9C)
            groups.append(g.reshape(B * H2 * W2, k * k * C))
    return jnp.stack(groups, axis=0)                               # (4,M,9C)


def conv3x3_relu_pool(x_nhwc, w_mat, b_row):
    """nn.Conv2d(Cin,Cout,3,padding=1) + ReLU + MaxPool2d(2,2), one pallas_call."""
    B, H, W, Cin = x_nhwc.shape
    H2, W2 = H // 2, W // 2
    K, Cout = w_mat.shape
    M = B * H2 * W2

    patches = _pool_grouped_im2col(x_nhwc)                         # (4, M, K)
    tm = _choose_row_tile(M, CONV_ROW_TILE)
    Mp = pl.cdiv(M, tm) * tm
    patches = _pad_rows(patches, Mp, axis=1)

    out = pl.pallas_call(
        functools.partial(_conv_pool_kernel, compute_dtype=COMPUTE_DTYPE),
        out_shape=jax.ShapeDtypeStruct((Mp, Cout), jnp.float32),
        grid=(Mp // tm,),
        in_specs=[
            pl.BlockSpec((4, tm, K), lambda i: (0, i, 0)),
            pl.BlockSpec((K, Cout), lambda i: (0, 0)),   # weights stay resident
            pl.BlockSpec((1, Cout), lambda i: (0, 0)),
        ],
        out_specs=pl.BlockSpec((tm, Cout), lambda i: (i, 0)),
        compiler_params=pltpu.CompilerParams(
            dimension_semantics=("parallel",),
            vmem_limit_bytes=VMEM_LIMIT),
    )(patches, w_mat, b_row)

    if Mp != M:
        out = out[:M]
    return out.reshape(B, H2, W2, Cout)


# ----------------------------------------------------------------------------
# fused fc1 + fc2 head
# ----------------------------------------------------------------------------
def mlp_head(xf, wf1, bf1, wf2, bf2):
    B, K1 = xf.shape
    Hdim = wf1.shape[1]
    Odim = wf2.shape[1]
    tm = _choose_row_tile(B, FC_ROW_TILE)
    Bp = pl.cdiv(B, tm) * tm
    xf = _pad_rows(xf, Bp, axis=0)

    out = pl.pallas_call(
        functools.partial(_mlp_kernel, compute_dtype=COMPUTE_DTYPE),
        out_shape=jax.ShapeDtypeStruct((Bp, Odim), jnp.float32),
        grid=(Bp // tm,),
        in_specs=[
            pl.BlockSpec((tm, K1), lambda i: (i, 0)),
            pl.BlockSpec((K1, Hdim), lambda i: (0, 0)),
            pl.BlockSpec((1, Hdim), lambda i: (0, 0)),
            pl.BlockSpec((Hdim, Odim), lambda i: (0, 0)),
            pl.BlockSpec((1, Odim), lambda i: (0, 0)),
        ],
        out_specs=pl.BlockSpec((tm, Odim), lambda i: (i, 0)),
        compiler_params=pltpu.CompilerParams(
            dimension_semantics=("parallel",),
            vmem_limit_bytes=VMEM_LIMIT),
    )(xf, wf1, bf1, wf2, bf2)

    return out[:B] if Bp != B else out


# ----------------------------------------------------------------------------
# parameters
# ----------------------------------------------------------------------------
def init_params(key):
    ks = jax.random.split(key, 8)

    def u(k, shape, fan_in):   # PyTorch-style uniform(-1/sqrt(fan_in), ...)
        bound = 1.0 / jnp.sqrt(jnp.float32(fan_in))
        return jax.random.uniform(k, shape, jnp.float32, -bound, bound)

    return {
        "w1": u(ks[0], (16, 1, 3, 3), 1 * 9),
        "b1": u(ks[1], (16,), 1 * 9),
        "w2": u(ks[2], (32, 16, 3, 3), 16 * 9),
        "b2": u(ks[3], (32,), 16 * 9),
        "wf1": u(ks[4], (128, 32 * 7 * 7), 32 * 7 * 7),
        "bf1": u(ks[5], (128,), 32 * 7 * 7),
        "wf2": u(ks[6], (10, 128), 128),
        "bf2": u(ks[7], (10,), 128),
    }


def prepare_params(p):
    """One-time repacking so the jitted forward does zero weight transposes.

    - conv weights OIHW -> (9*Cin, Cout) matmul layout (column order = (kh,kw,c))
    - fc1 columns permuted from NCHW-flatten order to NHWC-flatten order so the
      pooled NHWC activation can be fed with a plain reshape (exactly matches
      torch's x.view(-1, 32*7*7)).
    """
    return {
        "w1": p["w1"].transpose(2, 3, 1, 0).reshape(9 * 1, 16),
        "b1": p["b1"].reshape(1, 16),
        "w2": p["w2"].transpose(2, 3, 1, 0).reshape(9 * 16, 32),
        "b2": p["b2"].reshape(1, 32),
        "wf1": p["wf1"].reshape(128, 32, 7, 7).transpose(2, 3, 1, 0)
                       .reshape(7 * 7 * 32, 128),
        "bf1": p["bf1"].reshape(1, 128),
        "wf2": p["wf2"].T,
        "bf2": p["bf2"].reshape(1, 10),
    }


# ----------------------------------------------------------------------------
# model forward (Pallas path)
# ----------------------------------------------------------------------------
def simple_cnn_forward(prep, x_nchw):
    x = jnp.transpose(x_nchw, (0, 2, 3, 1))                     # NCHW -> NHWC
    x = conv3x3_relu_pool(x, prep["w1"], prep["b1"])            # (B,14,14,16)
    x = conv3x3_relu_pool(x, prep["w2"], prep["b2"])            # (B, 7, 7,32)
    xf = x.reshape(x.shape[0], 7 * 7 * 32)                      # NHWC flatten
    return mlp_head(xf, prep["wf1"], prep["bf1"],
                    prep["wf2"], prep["bf2"])                   # (B, 10)


# ----------------------------------------------------------------------------
# pure-JAX reference (uses the raw PyTorch-layout params)
# ----------------------------------------------------------------------------
def reference_forward(params, x):
    def conv(x, w, b):
        y = jax.lax.conv_general_dilated(
            x, w, window_strides=(1, 1), padding=[(1, 1), (1, 1)],
            dimension_numbers=("NCHW", "OIHW", "NCHW"))
        return jax.nn.relu(y + b.reshape(1, -1, 1, 1))

    def pool(x):
        return jax.lax.reduce_window(x, -jnp.inf, jax.lax.max,
                                     (1, 1, 2, 2), (1, 1, 2, 2), "VALID")

    x = pool(conv(x, params["w1"], params["b1"]))
    x = pool(conv(x, params["w2"], params["b2"]))
    x = x.reshape(x.shape[0], 32 * 7 * 7)
    x = jax.nn.relu(x @ params["wf1"].T + params["bf1"])
    return x @ params["wf2"].T + params["bf2"]


if __name__ == "__main__":
    key = jax.random.PRNGKey(0)
    pkey, xkey = jax.random.split(key)
    params = init_params(pkey)
    prep = prepare_params(params)

    # fc1 = Linear(32*7*7, 128) forces 28x28 spatial input after two 2x2 pools.
    # B=8 keeps things small but exercises the multi-block row-tiled path.
    B = 8
    x = jax.random.normal(xkey, (B, 1, 28, 28), jnp.float32)

    fwd = jax.jit(simple_cnn_forward)
    out = jax.block_until_ready(fwd(prep, x))

    ref = reference_forward(params, x)
    assert out.shape == (B, 10), out.shape
    # bf16 MXU inputs (f32 accumulate) -> compare against the f32 reference
    # with a tolerance that covers bf16 rounding but still catches any
    # indexing/layout bug (those produce O(1) errors).
    tol = 2e-2 if COMPUTE_DTYPE == jnp.bfloat16 else 1e-3
    if not jnp.allclose(out, ref, atol=tol, rtol=tol):
        raise AssertionError(
            f"Pallas output mismatch, max abs err = {jnp.max(jnp.abs(out - ref))}")
    print("KERNEL_OK")
</pallas_src>

<mosaic_0001>
module attributes {stable_mosaic.version = 11 : i64} {
  func.func @_conv_pool_kernel(%arg0: i32, %arg1: memref<4x784x9xf32, #tpu.memory_space<vmem>>, %arg2: memref<9x16xf32, #tpu.memory_space<vmem>>, %arg3: memref<1x16xf32, #tpu.memory_space<vmem>>, %arg4: memref<784x16xf32, #tpu.memory_space<vmem>>) attributes {dimension_semantics = [#tpu.dimension_semantics<parallel>], iteration_bounds = array<i64: 2>, scalar_prefetch = 0 : i64, scratch_operands = 0 : i64, tpu.core_type = #tpu.core_type<tc>, window_params = [{transform_indices = @transform_0, window_bounds = array<i64: 4, 784, 9>}, {pipeline_mode = #tpu.pipeline_mode<synchronous>, transform_indices = @transform_1, window_bounds = array<i64: 9, 16>}, {pipeline_mode = #tpu.pipeline_mode<synchronous>, transform_indices = @transform_2, window_bounds = array<i64: 1, 16>}, {transform_indices = @transform_3, window_bounds = array<i64: 784, 16>}]} {
    %c0 = arith.constant 0 : index
    %c0_0 = arith.constant 0 : index
    %0 = vector.load %arg2[%c0, %c0_0] : memref<9x16xf32, #tpu.memory_space<vmem>>, vector<9x16xf32>
    %1 = arith.truncf %0 : vector<9x16xf32> to vector<9x16xbf16>
    %c0_1 = arith.constant 0 : index
    %c0_2 = arith.constant 0 : index
    %c0_3 = arith.constant 0 : index
    %2 = vector.load %arg1[%c0_1, %c0_2, %c0_3] : memref<4x784x9xf32, #tpu.memory_space<vmem>>, vector<1x784x9xf32>
    %3 = vector.shape_cast %2 : vector<1x784x9xf32> to vector<784x9xf32>
    %4 = arith.truncf %3 : vector<784x9xf32> to vector<784x9xbf16>
    %cst = arith.constant dense<0.000000e+00> : vector<784x16xf32>
    %5 = tpu.matmul %4, %1, %cst {dimension_numbers = #tpu.dot_dimension_numbers<[1], [0], [0], [1], [0, 0, 1, 1], [], []>} : vector<784x9xbf16>, vector<9x16xbf16>, vector<784x16xf32> -> vector<784x16xf32>
    %c1 = arith.constant 1 : index
    %c0_4 = arith.constant 0 : index
    %c0_5 = arith.constant 0 : index
    %6 = vector.load %arg1[%c1, %c0_4, %c0_5] : memref<4x784x9xf32, #tpu.memory_space<vmem>>, vector<1x784x9xf32>
    %7 = vector.shape_cast %6 : vector<1x784x9xf32> to vector<784x9xf32>
    %8 = arith.truncf %7 : vector<784x9xf32> to vector<784x9xbf16>
    %cst_6 = arith.constant dense<0.000000e+00> : vector<784x16xf32>
    %9 = tpu.matmul %8, %1, %cst_6 {dimension_numbers = #tpu.dot_dimension_numbers<[1], [0], [0], [1], [0, 0, 1, 1], [], []>} : vector<784x9xbf16>, vector<9x16xbf16>, vector<784x16xf32> -> vector<784x16xf32>
    %10 = arith.maximumf %5, %9 : vector<784x16xf32>
    %c2 = arith.constant 2 : index
    %c0_7 = arith.constant 0 : index
    %c0_8 = arith.constant 0 : index
    %11 = vector.load %arg1[%c2, %c0_7, %c0_8] : memref<4x784x9xf32, #tpu.memory_space<vmem>>, vector<1x784x9xf32>
    %12 = vector.shape_cast %11 : vector<1x784x9xf32> to vector<784x9xf32>
    %13 = arith.truncf %12 : vector<784x9xf32> to vector<784x9xbf16>
    %cst_9 = arith.constant dense<0.000000e+00> : vector<784x16xf32>
    %14 = tpu.matmul %13, %1, %cst_9 {dimension_numbers = #tpu.dot_dimension_numbers<[1], [0], [0], [1], [0, 0, 1, 1], [], []>} : vector<784x9xbf16>, vector<9x16xbf16>, vector<784x16xf32> -> vector<784x16xf32>
    %15 = arith.maximumf %10, %14 : vector<784x16xf32>
    %c3 = arith.constant 3 : index
    %c0_10 = arith.constant 0 : index
    %c0_11 = arith.constant 0 : index
    %16 = vector.load %arg1[%c3, %c0_10, %c0_11] : memref<4x784x9xf32, #tpu.memory_space<vmem>>, vector<1x784x9xf32>
    %17 = vector.shape_cast %16 : vector<1x784x9xf32> to vector<784x9xf32>
    %18 = arith.truncf %17 : vector<784x9xf32> to vector<784x9xbf16>
    %cst_12 = arith.constant dense<0.000000e+00> : vector<784x16xf32>
    %19 = tpu.matmul %18, %1, %cst_12 {dimension_numbers = #tpu.dot_dimension_numbers<[1], [0], [0], [1], [0, 0, 1, 1], [], []>} : vector<784x9xbf16>, vector<9x16xbf16>, vector<784x16xf32> -> vector<784x16xf32>
    %20 = arith.maximumf %15, %19 : vector<784x16xf32>
    %c0_13 = arith.constant 0 : index
    %c0_14 = arith.constant 0 : index
    %21 = vector.load %arg3[%c0_13, %c0_14] : memref<1x16xf32, #tpu.memory_space<vmem>>, vector<1x16xf32>
    %22 = vector.broadcast %21 : vector<1x16xf32> to vector<784x16xf32>
    %23 = arith.addf %20, %22 : vector<784x16xf32>
    %cst_15 = arith.constant 0.000000e+00 : f32
    %24 = vector.broadcast %cst_15 : f32 to vector<784x16xf32>
    %25 = arith.maximumf %23, %24 : vector<784x16xf32>
    %c0_16 = arith.constant 0 : index
    %c0_17 = arith.constant 0 : index
    %26 = vector.load %arg4[%c0_16, %c0_17] : memref<784x16xf32, #tpu.memory_space<vmem>>, vector<784x16xf32>
    tpu.vector_store %arg4[%c0_16, %c0_17], %25 {strides = array<i32>} : memref<784x16xf32, #tpu.memory_space<vmem>>, vector<784x16xf32>,
    return
  }
  func.func @transform_0(%arg0: i32) -> (i32, i32, i32) {
    %c0_i32 = arith.constant 0 : i32
    %c0_i32_0 = arith.constant 0 : i32
    %c0_i32_1 = arith.constant 0 : i32
    return %c0_i32, %arg0, %c0_i32_0 : i32, i32, i32
  }
  func.func @transform_1(%arg0: i32) -> (i32, i32) {
    %c0_i32 = arith.constant 0 : i32
    %c0_i32_0 = arith.constant 0 : i32
    %c0_i32_1 = arith.constant 0 : i32
    return %c0_i32, %c0_i32_0 : i32, i32
  }
  func.func @transform_2(%arg0: i32) -> (i32, i32) {
    %c0_i32 = arith.constant 0 : i32
    %c0_i32_0 = arith.constant 0 : i32
    %c0_i32_1 = arith.constant 0 : i32
    return %c0_i32, %c0_i32_0 : i32, i32
  }
  func.func @transform_3(%arg0: i32) -> (i32, i32) {
    %c0_i32 = arith.constant 0 : i32
    %c0_i32_0 = arith.constant 0 : i32
    return %arg0, %c0_i32 : i32, i32
  }
}

module attributes {stable_mosaic.version = 11 : i64} {
  func.func @_conv_pool_kernel(%arg0: i32, %arg1: memref<4x392x144xf32, #tpu.memory_space<vmem>>, %arg2: memref<144x32xf32, #tpu.memory_space<vmem>>, %arg3: memref<1x32xf32, #tpu.memory_space<vmem>>, %arg4: memref<392x32xf32, #tpu.memory_space<vmem>>) attributes {dimension_semantics = [#tpu.dimension_semantics<parallel>], iteration_bounds = array<i64: 1>, scalar_prefetch = 0 : i64, scratch_operands = 0 : i64, tpu.core_type = #tpu.core_type<tc>, window_params = [{transform_indices = @transform_0, window_bounds = array<i64: 4, 392, 144>}, {pipeline_mode = #tpu.pipeline_mode<synchronous>, transform_indices = @transform_1, window_bounds = array<i64: 144, 32>}, {pipeline_mode = #tpu.pipeline_mode<synchronous>, transform_indices = @transform_2, window_bounds = array<i64: 1, 32>}, {transform_indices = @transform_3, window_bounds = array<i64: 392, 32>}]} {
    %c0 = arith.constant 0 : index
    %c0_0 = arith.constant 0 : index
    %0 = vector.load %arg2[%c0, %c0_0] : memref<144x32xf32, #tpu.memory_space<vmem>>, vector<144x32xf32>
    %1 = arith.truncf %0 : vector<144x32xf32> to vector<144x32xbf16>
    %c0_1 = arith.constant 0 : index
    %c0_2 = arith.constant 0 : index
    %c0_3 = arith.constant 0 : index
    %2 = vector.load %arg1[%c0_1, %c0_2, %c0_3] : memref<4x392x144xf32, #tpu.memory_space<vmem>>, vector<1x392x144xf32>
    %3 = vector.shape_cast %2 : vector<1x392x144xf32> to vector<392x144xf32>
    %4 = arith.truncf %3 : vector<392x144xf32> to vector<392x144xbf16>
    %cst = arith.constant dense<0.000000e+00> : vector<392x32xf32>
    %5 = tpu.matmul %4, %1, %cst {dimension_numbers = #tpu.dot_dimension_numbers<[1], [0], [0], [1], [0, 0, 1, 1], [], []>} : vector<392x144xbf16>, vector<144x32xbf16>, vector<392x32xf32> -> vector<392x32xf32>
    %c1 = arith.constant 1 : index
    %c0_4 = arith.constant 0 : index
    %c0_5 = arith.constant 0 : index
    %6 = vector.load %arg1[%c1, %c0_4, %c0_5] : memref<4x392x144xf32, #tpu.memory_space<vmem>>, vector<1x392x144xf32>
    %7 = vector.shape_cast %6 : vector<1x392x144xf32> to vector<392x144xf32>
    %8 = arith.truncf %7 : vector<392x144xf32> to vector<392x144xbf16>
    %cst_6 = arith.constant dense<0.000000e+00> : vector<392x32xf32>
    %9 = tpu.matmul %8, %1, %cst_6 {dimension_numbers = #tpu.dot_dimension_numbers<[1], [0], [0], [1], [0, 0, 1, 1], [], []>} : vector<392x144xbf16>, vector<144x32xbf16>, vector<392x32xf32> -> vector<392x32xf32>
    %10 = arith.maximumf %5, %9 : vector<392x32xf32>
    %c2 = arith.constant 2 : index
    %c0_7 = arith.constant 0 : index
    %c0_8 = arith.constant 0 : index
    %11 = vector.load %arg1[%c2, %c0_7, %c0_8] : memref<4x392x144xf32, #tpu.memory_space<vmem>>, vector<1x392x144xf32>
    %12 = vector.shape_cast %11 : vector<1x392x144xf32> to vector<392x144xf32>
    %13 = arith.truncf %12 : vector<392x144xf32> to vector<392x144xbf16>
    %cst_9 = arith.constant dense<0.000000e+00> : vector<392x32xf32>
    %14 = tpu.matmul %13, %1, %cst_9 {dimension_numbers = #tpu.dot_dimension_numbers<[1], [0], [0], [1], [0, 0, 1, 1], [], []>} : vector<392x144xbf16>, vector<144x32xbf16>, vector<392x32xf32> -> vector<392x32xf32>
    %15 = arith.maximumf %10, %14 : vector<392x32xf32>
    %c3 = arith.constant 3 : index
    %c0_10 = arith.constant 0 : index
    %c0_11 = arith.constant 0 : index
    %16 = vector.load %arg1[%c3, %c0_10, %c0_11] : memref<4x392x144xf32, #tpu.memory_space<vmem>>, vector<1x392x144xf32>
    %17 = vector.shape_cast %16 : vector<1x392x144xf32> to vector<392x144xf32>
    %18 = arith.truncf %17 : vector<392x144xf32> to vector<392x144xbf16>
    %cst_12 = arith.constant dense<0.000000e+00> : vector<392x32xf32>
    %19 = tpu.matmul %18, %1, %cst_12 {dimension_numbers = #tpu.dot_dimension_numbers<[1], [0], [0], [1], [0, 0, 1, 1], [], []>} : vector<392x144xbf16>, vector<144x32xbf16>, vector<392x32xf32> -> vector<392x32xf32>
    %20 = arith.maximumf %15, %19 : vector<392x32xf32>
    %c0_13 = arith.constant 0 : index
    %c0_14 = arith.constant 0 : index
    %21 = vector.load %arg3[%c0_13, %c0_14] : memref<1x32xf32, #tpu.memory_space<vmem>>, vector<1x32xf32>
    %22 = vector.broadcast %21 : vector<1x32xf32> to vector<392x32xf32>
    %23 = arith.addf %20, %22 : vector<392x32xf32>
    %cst_15 = arith.constant 0.000000e+00 : f32
    %24 = vector.broadcast %cst_15 : f32 to vector<392x32xf32>
    %25 = arith.maximumf %23, %24 : vector<392x32xf32>
    %c0_16 = arith.constant 0 : index
    %c0_17 = arith.constant 0 : index
    %26 = vector.load %arg4[%c0_16, %c0_17] : memref<392x32xf32, #tpu.memory_space<vmem>>, vector<392x32xf32>
    tpu.vector_store %arg4[%c0_16, %c0_17], %25 {strides = array<i32>} : memref<392x32xf32, #tpu.memory_space<vmem>>, vector<392x32xf32>,
    return
  }
  func.func @transform_0(%arg0: i32) -> (i32, i32, i32) {
    %c0_i32 = arith.constant 0 : i32
    %c0_i32_0 = arith.constant 0 : i32
    %c0_i32_1 = arith.constant 0 : i32
    return %c0_i32, %arg0, %c0_i32_0 : i32, i32, i32
  }
  func.func @transform_1(%arg0: i32) -> (i32, i32) {
    %c0_i32 = arith.constant 0 : i32
    %c0_i32_0 = arith.constant 0 : i32
    %c0_i32_1 = arith.constant 0 : i32
    return %c0_i32, %c0_i32_0 : i32, i32
  }
  func.func @transform_2(%arg0: i32) -> (i32, i32) {
    %c0_i32 = arith.constant 0 : i32
    %c0_i32_0 = arith.constant 0 : i32
    %c0_i32_1 = arith.constant 0 : i32
    return %c0_i32, %c0_i32_0 : i32, i32
  }
  func.func @transform_3(%arg0: i32) -> (i32, i32) {
    %c0_i32 = arith.constant 0 : i32
    %c0_i32_0 = arith.constant 0 : i32
    return %arg0, %c0_i32 : i32, i32
  }
}

module attributes {stable_mosaic.version = 11 : i64} {
  func.func @_mlp_kernel(%arg0: i32, %arg1: memref<8x1568xf32, #tpu.memory_space<vmem>>, %arg2: memref<1568x128xf32, #tpu.memory_space<vmem>>, %arg3: memref<1x128xf32, #tpu.memory_space<vmem>>, %arg4: memref<128x10xf32, #tpu.memory_space<vmem>>, %arg5: memref<1x10xf32, #tpu.memory_space<vmem>>, %arg6: memref<8x10xf32, #tpu.memory_space<vmem>>) attributes {dimension_semantics = [#tpu.dimension_semantics<parallel>], iteration_bounds = array<i64: 1>, scalar_prefetch = 0 : i64, scratch_operands = 0 : i64, tpu.core_type = #tpu.core_type<tc>, window_params = [{transform_indices = @transform_0, window_bounds = array<i64: 8, 1568>}, {pipeline_mode = #tpu.pipeline_mode<synchronous>, transform_indices = @transform_1, window_bounds = array<i64: 1568, 128>}, {pipeline_mode = #tpu.pipeline_mode<synchronous>, transform_indices = @transform_2, window_bounds = array<i64: 1, 128>}, {pipeline_mode = #tpu.pipeline_mode<synchronous>, transform_indices = @transform_3, window_bounds = array<i64: 128, 10>}, {pipeline_mode = #tpu.pipeline_mode<synchronous>, transform_indices = @transform_4, window_bounds = array<i64: 1, 10>}, {transform_indices = @transform_5, window_bounds = array<i64: 8, 10>}]} {
    %c0 = arith.constant 0 : index
    %c0_0 = arith.constant 0 : index
    %0 = vector.load %arg1[%c0, %c0_0] : memref<8x1568xf32, #tpu.memory_space<vmem>>, vector<8x1568xf32>
    %1 = arith.truncf %0 : vector<8x1568xf32> to vector<8x1568xbf16>
    %c0_1 = arith.constant 0 : index
    %c0_2 = arith.constant 0 : index
    %2 = vector.load %arg2[%c0_1, %c0_2] : memref<1568x128xf32, #tpu.memory_space<vmem>>, vector<1568x128xf32>
    %3 = arith.truncf %2 : vector<1568x128xf32> to vector<1568x128xbf16>
    %cst = arith.constant dense<0.000000e+00> : vector<8x128xf32>
    %4 = tpu.matmul %1, %3, %cst {dimension_numbers = #tpu.dot_dimension_numbers<[1], [0], [0], [1], [0, 0, 1, 1], [], []>} : vector<8x1568xbf16>, vector<1568x128xbf16>, vector<8x128xf32> -> vector<8x128xf32>
    %c0_3 = arith.constant 0 : index
    %c0_4 = arith.constant 0 : index
    %5 = vector.load %arg3[%c0_3, %c0_4] : memref<1x128xf32, #tpu.memory_space<vmem>>, vector<1x128xf32>
    %6 = vector.broadcast %5 : vector<1x128xf32> to vector<8x128xf32>
    %7 = arith.addf %4, %6 : vector<8x128xf32>
    %cst_5 = arith.constant 0.000000e+00 : f32
    %8 = vector.broadcast %cst_5 : f32 to vector<8x128xf32>
    %9 = arith.maximumf %7, %8 : vector<8x128xf32>
    %10 = arith.truncf %9 : vector<8x128xf32> to vector<8x128xbf16>
    %c0_6 = arith.constant 0 : index
    %c0_7 = arith.constant 0 : index
    %11 = vector.load %arg4[%c0_6, %c0_7] : memref<128x10xf32, #tpu.memory_space<vmem>>, vector<128x10xf32>
    %12 = arith.truncf %11 : vector<128x10xf32> to vector<128x10xbf16>
    %cst_8 = arith.constant dense<0.000000e+00> : vector<8x10xf32>
    %13 = tpu.matmul %10, %12, %cst_8 {dimension_numbers = #tpu.dot_dimension_numbers<[1], [0], [0], [1], [0, 0, 1, 1], [], []>} : vector<8x128xbf16>, vector<128x10xbf16>, vector<8x10xf32> -> vector<8x10xf32>
    %c0_9 = arith.constant 0 : index
    %c0_10 = arith.constant 0 : index
    %14 = vector.load %arg5[%c0_9, %c0_10] : memref<1x10xf32, #tpu.memory_space<vmem>>, vector<1x10xf32>
    %15 = vector.broadcast %14 : vector<1x10xf32> to vector<8x10xf32>
    %16 = arith.addf %13, %15 : vector<8x10xf32>
    %c0_11 = arith.constant 0 : index
    %c0_12 = arith.constant 0 : index
    %17 = vector.load %arg6[%c0_11, %c0_12] : memref<8x10xf32, #tpu.memory_space<vmem>>, vector<8x10xf32>
    tpu.vector_store %arg6[%c0_11, %c0_12], %16 {strides = array<i32>} : memref<8x10xf32, #tpu.memory_space<vmem>>, vector<8x10xf32>,
    return
  }
  func.func @transform_0(%arg0: i32) -> (i32, i32) {
    %c0_i32 = arith.constant 0 : i32
    %c0_i32_0 = arith.constant 0 : i32
    return %arg0, %c0_i32 : i32, i32
  }
  func.func @transform_1(%arg0: i32) -> (i32, i32) {
    %c0_i32 = arith.constant 0 : i32
    %c0_i32_0 = arith.constant 0 : i32
    %c0_i32_1 = arith.constant 0 : i32
    return %c0_i32, %c0_i32_0 : i32, i32
  }
  func.func @transform_2(%arg0: i32) -> (i32, i32) {
    %c0_i32 = arith.constant 0 : i32
    %c0_i32_0 = arith.constant 0 : i32
    %c0_i32_1 = arith.constant 0 : i32
    return %c0_i32, %c0_i32_0 : i32, i32
  }
  func.func @transform_3(%arg0: i32) -> (i32, i32) {
    %c0_i32 = arith.constant 0 : i32
    %c0_i32_0 = arith.constant 0 : i32
    %c0_i32_1 = arith.constant 0 : i32
    return %c0_i32, %c0_i32_0 : i32, i32
  }
  func.func @transform_4(%arg0: i32) -> (i32, i32) {
    %c0_i32 = arith.constant 0 : i32
    %c0_i32_0 = arith.constant 0 : i32
    %c0_i32_1 = arith.constant 0 : i32
    return %c0_i32, %c0_i32_0 : i32, i32
  }
  func.func @transform_5(%arg0: i32) -> (i32, i32) {
    %c0_i32 = arith.constant 0 : i32
    %c0_i32_0 = arith.constant 0 : i32
    return %arg0, %c0_i32 : i32, i32
  }
}

</mosaic_0001>

<bundles_post_ra>
// kernel: simple_cnn_forward.3
= control target key start
LH: loop header
LB: loop body
LE: loop exit
PB: predicated region body
PF: predicated region fallthrough
CT: control target
= control target key end

     0   :  { %s6893_s12 = smov 0   ;;  %s6895_s13 = smov 0   ;;  %s9918_s0 = inlined_call_operand.vmem [shape: f32[4,1568,9], index: 0, kind: input, shape index: {}]   ;;  %s9919_s1 = inlined_call_operand.vmem [shape: f32[9,16], index: 1, kind: input, shape index: {}]   ;;  %s9920_s2 = inlined_call_operand.vmem [shape: f32[1,16], index: 2, kind: input, shape index: {}]   ;;  %s9921_s3 = inlined_call_operand.vmem [shape: f32[1568,16], index: 3, kind: output, shape index: {}]  }
   0x1   :  { %s6897_s14 = smov 0  }
   0x2 LB: > { %s5322_s15 = sadd.s32 4294967295, %s6868_s14   ;;  %s6910_s16 = sadd.s32 1, %s6868_s14   ;;  %s6868_s14 = sphi %s6897_s14, %s10469_s14   ;;  %s6864_s13 = sphi %s6895_s13, %s10468_s13   ;;  %s6860_s12 = sphi %s6893_s12, %s10467_s12  }
   0x3   : > { %s17_s17 = ssub.s32 %s6868_s14, %s6910_s16  ;;  %s20_s18 = sadd.s32 1, %s6864_s13 }
   0x4   : > { %p18_p0 = scmp.eq.s32.totalorder %s17_s17, 0  ;;  %p27_p1 = scmp.ne.s32.totalorder %s6864_s13, %s6860_s12 }
   0x5   : > { %p28_p2 = scmp.eq.s32.totalorder %s6868_s14, 0  ;;  %p5325_p4 = scmp.ge.s32.totalorder %s6868_s14, 2 }
   0x6   : > { %s6919_s19 = scalar_select %p18_p0, %s6864_s13, %s20_s18  }
   0x7   : > { %p29_p3 = por %p28_p2, %p27_p1  ;;  %127 = sbr.rel (%p5325_p4) target bundleno = 213 (0xd5), region = 24 }
   0xc   : > { %130 = sbr.rel (!%p29_p3) target bundleno = 213 (0xd5), region = 28  ;;  %s132_s20 = sand.u32 (%p29_p3), 1, %s6864_s13  }
   0xd   : > { %s5822_s21 = smul.u32 (%p29_p3), 784, %s6868_s14 }
   0xe   : > { %s6815_s22 = smul.u32 (%p29_p3), 3136, %s132_s20 }
   0xf   : > { %s6927_s25 = scalar_lea.vmem (%p29_p3), %s9918_s0, %s5822_s21 }
  0x10   : > { %v948_v0 = vld [vmem:[%s6927_s25] sm:$0xff] (%p29_p3)  ;;  %v950_v1 = vld [vmem:[%s6927_s25 + $0x8] sm:$0xff] (%p29_p3)  ;;  %v952_v2 = vld [vmem:[%s6927_s25 + $0x10] sm:$0xff] (%p29_p3)  ;;  %s6932_s26 = scalar_lea.vmem (%p29_p3), [#allocation2], %s6815_s22 }
  0x11   : > { %949 = vst [vmem:[%s6932_s26] sm:$0xff] %v948_v0  ;;  %951 = vst [vmem:[%s6932_s26 + $0x8] sm:$0xff] %v950_v1  ;;  %v954_v3 = vld [vmem:[%s6927_s25 + $0x18] sm:$0xff]  ;;  %v956_v4 = vld [vmem:[%s6927_s25 + $0x20] sm:$0xff] }
  0x12   : > { %953 = vst [vmem:[%s6932_s26 + $0x10] sm:$0xff] %v952_v2  ;;  %v958_v5 = vld [vmem:[%s6927_s25 + $0x28] sm:$0xff]  ;;  %955 = vst [vmem:[%s6932_s26 + $0x18] sm:$0xff] %v954_v3  ;;  %v960_v6 = vld [vmem:[%s6927_s25 + $0x30] sm:$0xff] }
  0x13   : > { %957 = vst [vmem:[%s6932_s26 + $0x20] sm:$0xff] %v956_v4  ;;  %959 = vst [vmem:[%s6932_s26 + $0x28] sm:$0xff] %v958_v5  ;;  %v962_v7 = vld [vmem:[%s6927_s25 + $0x38] sm:$0xff]  ;;  %v964_v8 = vld [vmem:[%s6927_s25 + $0x40] sm:$0xff] }
  0x14   : > { %961 = vst [vmem:[%s6932_s26 + $0x30] sm:$0xff] %v960_v6  ;;  %963 = vst [vmem:[%s6932_s26 + $0x38] sm:$0xff] %v962_v7  ;;  %v966_v9 = vld [vmem:[%s6927_s25 + $0x48] sm:$0xff]  ;;  %v968_v10 = vld [vmem:[%s6927_s25 + $0x50] sm:$0xff] }
  0x15   : > { %965 = vst [vmem:[%s6932_s26 + $0x40] sm:$0xff] %v964_v8  ;;  %v970_v11 = vld [vmem:[%s6927_s25 + $0x58] sm:$0xff]  ;;  %967 = vst [vmem:[%s6932_s26 + $0x48] sm:$0xff] %v966_v9  ;;  %v972_v12 = vld [vmem:[%s6927_s25 + $0x60] sm:$0xff] }
  0x16   : > { %969 = vst [vmem:[%s6932_s26 + $0x50] sm:$0xff] %v968_v10  ;;  %971 = vst [vmem:[%s6932_s26 + $0x58] sm:$0xff] %v970_v11  ;;  %v974_v13 = vld [vmem:[%s6927_s25 + $0x68] sm:$0xff]  ;;  %v976_v14 = vld [vmem:[%s6927_s25 + $0x70] sm:$0xff] }
  0x17   : > { %973 = vst [vmem:[%s6932_s26 + $0x60] sm:$0xff] %v972_v12  ;;  %975 = vst [vmem:[%s6932_s26 + $0x68] sm:$0xff] %v974_v13  ;;  %v978_v15 = vld [vmem:[%s6927_s25 + $0x78] sm:$0xff]  ;;  %v980_v16 = vld [vmem:[%s6927_s25 + $0x80] sm:$0xff] }
  0x18   : > { %977 = vst [vmem:[%s6932_s26 + $0x70] sm:$0xff] %v976_v14  ;;  %v982_v17 = vld [vmem:[%s6927_s25 + $0x88] sm:$0xff]  ;;  %979 = vst [vmem:[%s6932_s26 + $0x78] sm:$0xff] %v978_v15  ;;  %v984_v18 = vld [vmem:[%s6927_s25 + $0x90] sm:$0xff] }
  0x19   : > { %981 = vst [vmem:[%s6932_s26 + $0x80] sm:$0xff] %v980_v16  ;;  %983 = vst [vmem:[%s6932_s26 + $0x88] sm:$0xff] %v982_v17  ;;  %v986_v19 = vld [vmem:[%s6927_s25 + $0x98] sm:$0xff]  ;;  %v988_v20 = vld [vmem:[%s6927_s25 + $0xa0] sm:$0xff] }
  0x1a   : > { %985 = vst [vmem:[%s6932_s26 + $0x90] sm:$0xff] %v984_v18  ;;  %987 = vst [vmem:[%s6932_s26 + $0x98] sm:$0xff] %v986_v19  ;;  %v990_v21 = vld [vmem:[%s6927_s25 + $0xa8] sm:$0xff]  ;;  %v992_v22 = vld [vmem:[%s6927_s25 + $0xb0] sm:$0xff] }
  0x1b   : > { %989 = vst [vmem:[%s6932_s26 + $0xa0] sm:$0xff] %v988_v20  ;;  %v994_v23 = vld [vmem:[%s6927_s25 + $0xb8] sm:$0xff]  ;;  %991 = vst [vmem:[%s6932_s26 + $0xa8] sm:$0xff] %v990_v21  ;;  %v996_v24 = vld [vmem:[%s6927_s25 + $0xc0] sm:$0xff] }
  0x1c   : > { %993 = vst [vmem:[%s6932_s26 + $0xb0] sm:$0xff] %v992_v22  ;;  %995 = vst [vmem:[%s6932_s26 + $0xb8] sm:$0xff] %v994_v23  ;;  %v998_v25 = vld [vmem:[%s6927_s25 + $0xc8] sm:$0xff]  ;;  %v1000_v26 = vld [vmem:[%s6927_s25 + $0xd0] sm:$0xff] }
  0x1d   : > { %997 = vst [vmem:[%s6932_s26 + $0xc0] sm:$0xff] %v996_v24  ;;  %999 = vst [vmem:[%s6932_s26 + $0xc8] sm:$0xff] %v998_v25  ;;  %v1002_v27 = vld [vmem:[%s6927_s25 + $0xd8] sm:$0xff]  ;;  %v1004_v28 = vld [vmem:[%s6927_s25 + $0xe0] sm:$0xff] }
  0x1e   : > { %1001 = vst [vmem:[%s6932_s26 + $0xd0] sm:$0xff] %v1000_v26  ;;  %v1006_v29 = vld [vmem:[%s6927_s25 + $0xe8] sm:$0xff]  ;;  %1003 = vst [vmem:[%s6932_s26 + $0xd8] sm:$0xff] %v1002_v27  ;;  %v1008_v30 = vld [vmem:[%s6927_s25 + $0xf0] sm:$0xff] }
  0x1f   : > { %1005 = vst [vmem:[%s6932_s26 + $0xe0] sm:$0xff] %v1004_v28  ;;  %1007 = vst [vmem:[%s6932_s26 + $0xe8] sm:$0xff] %v1006_v29  ;;  %v1010_v31 = vld [vmem:[%s6927_s25 + $0xf8] sm:$0xff]  ;;  %v1012_v32 = vld [vmem:[%s6927_s25 + $0x100] sm:$0xff] }
  0x20   : > { %1009 = vst [vmem:[%s6932_s26 + $0xf0] sm:$0xff] %v1008_v30  ;;  %1011 = vst [vmem:[%s6932_s26 + $0xf8] sm:$0xff] %v1010_v31  ;;  %v1014_v33 = vld [vmem:[%s6927_s25 + $0x108] sm:$0xff]  ;;  %v1016_v34 = vld [vmem:[%s6927_s25 + $0x110] sm:$0xff] }
  0x21   : > { %1013 = vst [vmem:[%s6932_s26 + $0x100] sm:$0xff] %v1012_v32  ;;  %v1018_v35 = vld [vmem:[%s6927_s25 + $0x118] sm:$0xff]  ;;  %1015 = vst [vmem:[%s6932_s26 + $0x108] sm:$0xff] %v1014_v33  ;;  %v1020_v36 = vld [vmem:[%s6927_s25 + $0x120] sm:$0xff] }
  0x22   : > { %1017 = vst [vmem:[%s6932_s26 + $0x110] sm:$0xff] %v1016_v34  ;;  %1019 = vst [vmem:[%s6932_s26 + $0x118] sm:$0xff] %v1018_v35  ;;  %v1022_v37 = vld [vmem:[%s6927_s25 + $0x128] sm:$0xff]  ;;  %v1024_v38 = vld [vmem:[%s6927_s25 + $0x130] sm:$0xff] }
  0x23   : > { %1021 = vst [vmem:[%s6932_s26 + $0x120] sm:$0xff] %v1020_v36  ;;  %1023 = vst [vmem:[%s6932_s26 + $0x128] sm:$0xff] %v1022_v37  ;;  %v1026_v39 = vld [vmem:[%s6927_s25 + $0x138] sm:$0xff]  ;;  %v1028_v40 = vld [vmem:[%s6927_s25 + $0x140] sm:$0xff] }
  0x24   : > { %1025 = vst [vmem:[%s6932_s26 + $0x130] sm:$0xff] %v1024_v38  ;;  %v1030_v41 = vld [vmem:[%s6927_s25 + $0x148] sm:$0xff]  ;;  %1027 = vst [vmem:[%s6932_s26 + $0x138] sm:$0xff] %v1026_v39  ;;  %v1032_v42 = vld [vmem:[%s6927_s25 + $0x150] sm:$0xff] }
  0x25   : > { %1029 = vst [vmem:[%s6932_s26 + $0x140] sm:$0xff] %v1028_v40  ;;  %1031 = vst [vmem:[%s6932_s26 + $0x148] sm:$0xff] %v1030_v41  ;;  %v1034_v43 = vld [vmem:[%s6927_s25 + $0x158] sm:$0xff]  ;;  %v1036_v44 = vld [vmem:[%s6927_s25 + $0x160] sm:$0xff] }
  0x26   : > { %1033 = vst [vmem:[%s6932_s26 + $0x150] sm:$0xff] %v1032_v42  ;;  %1035 = vst [vmem:[%s6932_s26 + $0x158] sm:$0xff] %v1034_v43  ;;  %v1038_v45 = vld [vmem:[%s6927_s25 + $0x168] sm:$0xff]  ;;  %v1040_v46 = vld [vmem:[%s6927_s25 + $0x170] sm:$0xff] }
  0x27   : > { %1037 = vst [vmem:[%s6932_s26 + $0x160] sm:$0xff] %v1036_v44  ;;  %v1042_v47 = vld [vmem:[%s6927_s25 + $0x178] sm:$0xff]  ;;  %1039 = vst [vmem:[%s6932_s26 + $0x168] sm:$0xff] %v1038_v45  ;;  %v1044_v48 = vld [vmem:[%s6927_s25 + $0x180] sm:$0xff] }
  0x28   : > { %1041 = vst [vmem:[%s6932_s26 + $0x170] sm:$0xff] %v1040_v46  ;;  %1043 = vst [vmem:[%s6932_s26 + $0x178] sm:$0xff] %v1042_v47  ;;  %v1046_v49 = vld [vmem:[%s6927_s25 + $0x188] sm:$0xff]  ;;  %v1048_v50 = vld [vmem:[%s6927_s25 + $0x190] sm:$0xff] }
  0x29   : > { %1045 = vst [vmem:[%s6932_s26 + $0x180] sm:$0xff] %v1044_v48  ;;  %1047 = vst [vmem:[%s6932_s26 + $0x188] sm:$0xff] %v1046_v49  ;;  %v1050_v51 = vld [vmem:[%s6927_s25 + $0x198] sm:$0xff]  ;;  %v1052_v52 = vld [vmem:[%s6927_s25 + $0x1a0] sm:$0xff] }
  0x2a   : > { %1049 = vst [vmem:[%s6932_s26 + $0x190] sm:$0xff] %v1048_v50  ;;  %v1054_v53 = vld [vmem:[%s6927_s25 + $0x1a8] sm:$0xff]  ;;  %1051 = vst [vmem:[%s6932_s26 + $0x198] sm:$0xff] %v1050_v51  ;;  %v1056_v54 = vld [vmem:[%s6927_s25 + $0x1b0] sm:$0xff] }
  0x2b   : > { %1053 = vst [vmem:[%s6932_s26 + $0x1a0] sm:$0xff] %v1052_v52  ;;  %1055 = vst [vmem:[%s6932_s26 + $0x1a8] sm:$0xff] %v1054_v53  ;;  %v1058_v55 = vld [vmem:[%s6927_s25 + $0x1b8] sm:$0xff]  ;;  %v1060_v56 = vld [vmem:[%s6927_s25 + $0x1c0] sm:$0xff] }
  0x2c   : > { %1057 = vst [vmem:[%s6932_s26 + $0x1b0] sm:$0xff] %v1056_v54  ;;  %1059 = vst [vmem:[%s6932_s26 + $0x1b8] sm:$0xff] %v1058_v55  ;;  %v1062_v57 = vld [vmem:[%s6927_s25 + $0x1c8] sm:$0xff]  ;;  %v1064_v58 = vld [vmem:[%s6927_s25 + $0x1d0] sm:$0xff] }
  0x2d   : > { %1061 = vst [vmem:[%s6932_s26 + $0x1c0] sm:$0xff] %v1060_v56  ;;  %v1066_v59 = vld [vmem:[%s6927_s25 + $0x1d8] sm:$0xff]  ;;  %1063 = vst [vmem:[%s6932_s26 + $0x1c8] sm:$0xff] %v1062_v57  ;;  %v1068_v60 = vld [vmem:[%s6927_s25 + $0x1e0] sm:$0xff] }
  0x2e   : > { %1065 = vst [vmem:[%s6932_s26 + $0x1d0] sm:$0xff] %v1064_v58  ;;  %1067 = vst [vmem:[%s6932_s26 + $0x1d8] sm:$0xff] %v1066_v59  ;;  %v1070_v61 = vld [vmem:[%s6927_s25 + $0x1e8] sm:$0xff]  ;;  %v1072_v62 = vld [vmem:[%s6927_s25 + $0x1f0] sm:$0xff] }
  0x2f   : > { %1069 = vst [vmem:[%s6932_s26 + $0x1e0] sm:$0xff] %v1068_v60  ;;  %1071 = vst [vmem:[%s6932_s26 + $0x1e8] sm:$0xff] %v1070_v61  ;;  %v1074_v63 = vld [vmem:[%s6927_s25 + $0x1f8] sm:$0xff]  ;;  %v1076_v0 = vld [vmem:[%s6927_s25 + $0x200] sm:$0xff] }
  0x30   : > { %1073 = vst [vmem:[%s6932_s26 + $0x1f0] sm:$0xff] %v1072_v62  ;;  %v1078_v1 = vld [vmem:[%s6927_s25 + $0x208] sm:$0xff]  ;;  %1075 = vst [vmem:[%s6932_s26 + $0x1f8] sm:$0xff] %v1074_v63  ;;  %v1080_v2 = vld [vmem:[%s6927_s25 + $0x210] sm:$0xff] }
  0x31   : > { %1077 = vst [vmem:[%s6932_s26 + $0x200] sm:$0xff] %v1076_v0  ;;  %1079 = vst [vmem:[%s6932_s26 + $0x208] sm:$0xff] %v1078_v1  ;;  %v1082_v3 = vld [vmem:[%s6927_s25 + $0x218] sm:$0xff]  ;;  %v1084_v4 = vld [vmem:[%s6927_s25 + $0x220] sm:$0xff] }
  0x32   : > { %1081 = vst [vmem:[%s6932_s26 + $0x210] sm:$0xff] %v1080_v2  ;;  %1083 = vst [vmem:[%s6932_s26 + $0x218] sm:$0xff] %v1082_v3  ;;  %v1086_v5 = vld [vmem:[%s6927_s25 + $0x228] sm:$0xff]  ;;  %v1088_v6 = vld [vmem:[%s6927_s25 + $0x230] sm:$0xff] }
  0x33   : > { %1085 = vst [vmem:[%s6932_s26 + $0x220] sm:$0xff] %v1084_v4  ;;  %v1090_v7 = vld [vmem:[%s6927_s25 + $0x238] sm:$0xff]  ;;  %1087 = vst [vmem:[%s6932_s26 + $0x228] sm:$0xff] %v1086_v5  ;;  %v1092_v8 = vld [vmem:[%s6927_s25 + $0x240] sm:$0xff] }
  0x34   : > { %1089 = vst [vmem:[%s6932_s26 + $0x230] sm:$0xff] %v1088_v6  ;;  %1091 = vst [vmem:[%s6932_s26 + $0x238] sm:$0xff] %v1090_v7  ;;  %v1094_v9 = vld [vmem:[%s6927_s25 + $0x248] sm:$0xff]  ;;  %v1096_v10 = vld [vmem:[%s6927_s25 + $0x250] sm:$0xff] }
  0x35   : > { %1093 = vst [vmem:[%s6932_s26 + $0x240] sm:$0xff] %v1092_v8  ;;  %1095 = vst [vmem:[%s6932_s26 + $0x248] sm:$0xff] %v1094_v9  ;;  %v1098_v11 = vld [vmem:[%s6927_s25 + $0x258] sm:$0xff]  ;;  %v1100_v12 = vld [vmem:[%s6927_s25 + $0x260] sm:$0xff] }
  0x36   : > { %1097 = vst [vmem:[%s6932_s26 + $0x250] sm:$0xff] %v1096_v10  ;;  %v1102_v13 = vld [vmem:[%s6927_s25 + $0x268] sm:$0xff]  ;;  %1099 = vst [vmem:[%s6932_s26 + $0x258] sm:$0xff] %v1098_v11  ;;  %v1104_v14 = vld [vmem:[%s6927_s25 + $0x270] sm:$0xff] }
  0x37   : > { %1101 = vst [vmem:[%s6932_s26 + $0x260] sm:$0xff] %v1100_v12  ;;  %1103 = vst [vmem:[%s6932_s26 + $0x268] sm:$0xff] %v1102_v13  ;;  %v1106_v15 = vld [vmem:[%s6927_s25 + $0x278] sm:$0xff]  ;;  %v1108_v16 = vld [vmem:[%s6927_s25 + $0x280] sm:$0xff] }
  0x38   : > { %1105 = vst [vmem:[%s6932_s26 + $0x270] sm:$0xff] %v1104_v14  ;;  %1107 = vst [vmem:[%s6932_s26 + $0x278] sm:$0xff] %v1106_v15  ;;  %v1110_v17 = vld [vmem:[%s6927_s25 + $0x288] sm:$0xff]  ;;  %v1112_v18 = vld [vmem:[%s6927_s25 + $0x290] sm:$0xff] }
  0x39   : > { %1109 = vst [vmem:[%s6932_s26 + $0x280] sm:$0xff] %v1108_v16  ;;  %v1114_v19 = vld [vmem:[%s6927_s25 + $0x298] sm:$0xff]  ;;  %1111 = vst [vmem:[%s6932_s26 + $0x288] sm:$0xff] %v1110_v17  ;;  %v1116_v20 = vld [vmem:[%s6927_s25 + $0x2a0] sm:$0xff] }
  0x3a   : > { %1113 = vst [vmem:[%s6932_s26 + $0x290] sm:$0xff] %v1112_v18  ;;  %1115 = vst [vmem:[%s6932_s26 + $0x298] sm:$0xff] %v1114_v19  ;;  %v1118_v21 = vld [vmem:[%s6927_s25 + $0x2a8] sm:$0xff]  ;;  %v1120_v22 = vld [vmem:[%s6927_s25 + $0x2b0] sm:$0xff] }
  0x3b   : > { %1117 = vst [vmem:[%s6932_s26 + $0x2a0] sm:$0xff] %v1116_v20  ;;  %1119 = vst [vmem:[%s6932_s26 + $0x2a8] sm:$0xff] %v1118_v21  ;;  %v1122_v23 = vld [vmem:[%s6927_s25 + $0x2b8] sm:$0xff]  ;;  %v1124_v24 = vld [vmem:[%s6927_s25 + $0x2c0] sm:$0xff] }
  0x3c   : > { %1121 = vst [vmem:[%s6932_s26 + $0x2b0] sm:$0xff] %v1120_v22  ;;  %v1126_v25 = vld [vmem:[%s6927_s25 + $0x2c8] sm:$0xff]  ;;  %1123 = vst [vmem:[%s6932_s26 + $0x2b8] sm:$0xff] %v1122_v23  ;;  %v1128_v26 = vld [vmem:[%s6927_s25 + $0x2d0] sm:$0xff] }
  0x3d   : > { %1125 = vst [vmem:[%s6932_s26 + $0x2c0] sm:$0xff] %v1124_v24  ;;  %1127 = vst [vmem:[%s6932_s26 + $0x2c8] sm:$0xff] %v1126_v25  ;;  %v1130_v27 = vld [vmem:[%s6927_s25 + $0x2d8] sm:$0xff]  ;;  %v1132_v28 = vld [vmem:[%s6927_s25 + $0x2e0] sm:$0xff] }
  0x3e   : > { %1129 = vst [vmem:[%s6932_s26 + $0x2d0] sm:$0xff] %v1128_v26  ;;  %1131 = vst [vmem:[%s6932_s26 + $0x2d8] sm:$0xff] %v1130_v27  ;;  %v1134_v29 = vld [vmem:[%s6927_s25 + $0x2e8] sm:$0xff]  ;;  %v1136_v30 = vld [vmem:[%s6927_s25 + $0x2f0] sm:$0xff] }
  0x3f   : > { %1133 = vst [vmem:[%s6932_s26 + $0x2e0] sm:$0xff] %v1132_v28  ;;  %v1138_v31 = vld [vmem:[%s6927_s25 + $0x2f8] sm:$0xff]  ;;  %1135 = vst [vmem:[%s6932_s26 + $0x2e8] sm:$0xff] %v1134_v29  ;;  %v1140_v32 = vld [vmem:[%s6927_s25 + $0x300] sm:$0xff] }
  0x40   : > { %1137 = vst [vmem:[%s6932_s26 + $0x2f0] sm:$0xff] %v1136_v30  ;;  %1139 = vst [vmem:[%s6932_s26 + $0x2f8] sm:$0xff] %v1138_v31  ;;  %v1142_v33 = vld [vmem:[%s6927_s25 + $0x308] sm:$0xff]  ;;  %v1144_v34 = vld [vmem:[%s6927_s25 + $0x620] sm:$0xff] }
  0x41   : > { %1141 = vst [vmem:[%s6932_s26 + $0x300] sm:$0xff] %v1140_v32  ;;  %1143 = vst [vmem:[%s6932_s26 + $0x308] sm:$0xff] %v1142_v33  ;;  %v1146_v35 = vld [vmem:[%s6927_s25 + $0x628] sm:$0xff]  ;;  %v1148_v36 = vld [vmem:[%s6927_s25 + $0x630] sm:$0xff] }
  0x42   : > { %1145 = vst [vmem:[%s6932_s26 + $0x310] sm:$0xff] %v1144_v34  ;;  %v1150_v37 = vld [vmem:[%s6927_s25 + $0x638] sm:$0xff]  ;;  %1147 = vst [vmem:[%s6932_s26 + $0x318] sm:$0xff] %v1146_v35  ;;  %v1152_v38 = vld [vmem:[%s6927_s25 + $0x640] sm:$0xff] }
  0x43   : > { %1149 = vst [vmem:[%s6932_s26 + $0x320] sm:$0xff] %v1148_v36  ;;  %1151 = vst [vmem:[%s6932_s26 + $0x328] sm:$0xff] %v1150_v37  ;;  %v1154_v39 = vld [vmem:[%s6927_s25 + $0x648] sm:$0xff]  ;;  %v1156_v40 = vld [vmem:[%s6927_s25 + $0x650] sm:$0xff] }
  0x44   : > { %1153 = vst [vmem:[%s6932_s26 + $0x330] sm:$0xff] %v1152_v38  ;;  %1155 = vst [vmem:[%s6932_s26 + $0x338] sm:$0xff] %v1154_v39  ;;  %v1158_v41 = vld [vmem:[%s6927_s25 + $0x658] sm:$0xff]  ;;  %v1160_v42 = vld [vmem:[%s6927_s25 + $0x660] sm:$0xff] }
  0x45   : > { %1157 = vst [vmem:[%s6932_s26 + $0x340] sm:$0xff] %v1156_v40  ;;  %v1162_v43 = vld [vmem:[%s6927_s25 + $0x668] sm:$0xff]  ;;  %1159 = vst [vmem:[%s6932_s26 + $0x348] sm:$0xff] %v1158_v41  ;;  %v1164_v44 = vld [vmem:[%s6927_s25 + $0x670] sm:$0xff] }
  0x46   : > { %1161 = vst [vmem:[%s6932_s26 + $0x350] sm:$0xff] %v1160_v42  ;;  %1163 = vst [vmem:[%s6932_s26 + $0x358] sm:$0xff] %v1162_v43  ;;  %v1166_v45 = vld [vmem:[%s6927_s25 + $0x678] sm:$0xff]  ;;  %v1168_v46 = vld [vmem:[%s6927_s25 + $0x680] sm:$0xff] }
  0x47   : > { %1165 = vst [vmem:[%s6932_s26 + $0x360] sm:$0xff] %v1164_v44  ;;  %1167 = vst [vmem:[%s6932_s26 + $0x368] sm:$0xff] %v1166_v45  ;;  %v1170_v47 = vld [vmem:[%s6927_s25 + $0x688] sm:$0xff]  ;;  %v1172_v48 = vld [vmem:[%s6927_s25 + $0x690] sm:$0xff] }
  0x48   : > { %1169 = vst [vmem:[%s6932_s26 + $0x370] sm:$0xff] %v1168_v46  ;;  %v1174_v49 = vld [vmem:[%s6927_s25 + $0x698] sm:$0xff]  ;;  %1171 = vst [vmem:[%s6932_s26 + $0x378] sm:$0xff] %v1170_v47  ;;  %v1176_v50 = vld [vmem:[%s6927_s25 + $0x6a0] sm:$0xff] }
  0x49   : > { %1173 = vst [vmem:[%s6932_s26 + $0x380] sm:$0xff] %v1172_v48  ;;  %1175 = vst [vmem:[%s6932_s26 + $0x388] sm:$0xff] %v1174_v49  ;;  %v1178_v51 = vld [vmem:[%s6927_s25 + $0x6a8] sm:$0xff]  ;;  %v1180_v52 = vld [vmem:[%s6927_s25 + $0x6b0] sm:$0xff] }
  0x4a   : > { %1177 = vst [vmem:[%s6932_s26 + $0x390] sm:$0xff] %v1176_v50  ;;  %1179 = vst [vmem:[%s6932_s26 + $0x398] sm:$0xff] %v1178_v51  ;;  %v1182_v53 = vld [vmem:[%s6927_s25 + $0x6b8] sm:$0xff]  ;;  %v1184_v54 = vld [vmem:[%s6927_s25 + $0x6c0] sm:$0xff] }
  0x4b   : > { %1181 = vst [vmem:[%s6932_s26 + $0x3a0] sm:$0xff] %v1180_v52  ;;  %v1186_v55 = vld [vmem:[%s6927_s25 + $0x6c8] sm:$0xff]  ;;  %1183 = vst [vmem:[%s6932_s26 + $0x3a8] sm:$0xff] %v1182_v53  ;;  %v1188_v56 = vld [vmem:[%s6927_s25 + $0x6d0] sm:$0xff] }
  0x4c   : > { %1185 = vst [vmem:[%s6932_s26 + $0x3b0] sm:$0xff] %v1184_v54  ;;  %1187 = vst [vmem:[%s6932_s26 + $0x3b8] sm:$0xff] %v1186_v55  ;;  %v1190_v57 = vld [vmem:[%s6927_s25 + $0x6d8] sm:$0xff]  ;;  %v1192_v58 = vld [vmem:[%s6927_s25 + $0x6e0] sm:$0xff] }
  0x4d   : > { %1189 = vst [vmem:[%s6932_s26 + $0x3c0] sm:$0xff] %v1188_v56  ;;  %1191 = vst [vmem:[%s6932_s26 + $0x3c8] sm:$0xff] %v1190_v57  ;;  %v1194_v59 = vld [vmem:[%s6927_s25 + $0x6e8] sm:$0xff]  ;;  %v1196_v60 = vld [vmem:[%s6927_s25 + $0x6f0] sm:$0xff] }
  0x4e   : > { %1193 = vst [vmem:[%s6932_s26 + $0x3d0] sm:$0xff] %v1192_v58  ;;  %v1198_v61 = vld [vmem:[%s6927_s25 + $0x6f8] sm:$0xff]  ;;  %1195 = vst [vmem:[%s6932_s26 + $0x3d8] sm:$0xff] %v1194_v59  ;;  %v1200_v62 = vld [vmem:[%s6927_s25 + $0x700] sm:$0xff] }
  0x4f   : > { %1197 = vst [vmem:[%s6932_s26 + $0x3e0] sm:$0xff] %v1196_v60  ;;  %1199 = vst [vmem:[%s6932_s26 + $0x3e8] sm:$0xff] %v1198_v61  ;;  %v1202_v63 = vld [vmem:[%s6927_s25 + $0x708] sm:$0xff]  ;;  %v1204_v0 = vld [vmem:[%s6927_s25 + $0x710] sm:$0xff] }
  0x50   : > { %1201 = vst [vmem:[%s6932_s26 + $0x3f0] sm:$0xff] %v1200_v62  ;;  %1203 = vst [vmem:[%s6932_s26 + $0x3f8] sm:$0xff] %v1202_v63  ;;  %v1206_v1 = vld [vmem:[%s6927_s25 + $0x718] sm:$0xff]  ;;  %v1208_v2 = vld [vmem:[%s6927_s25 + $0x720] sm:$0xff] }
  0x51   : > { %1205 = vst [vmem:[%s6932_s26 + $0x400] sm:$0xff] %v1204_v0  ;;  %v1210_v3 = vld [vmem:[%s6927_s25 + $0x728] sm:$0xff]  ;;  %1207 = vst [vmem:[%s6932_s26 + $0x408] sm:$0xff] %v1206_v1  ;;  %v1212_v4 = vld [vmem:[%s6927_s25 + $0x730] sm:$0xff] }
  0x52   : > { %1209 = vst [vmem:[%s6932_s26 + $0x410] sm:$0xff] %v1208_v2  ;;  %1211 = vst [vmem:[%s6932_s26 + $0x418] sm:$0xff] %v1210_v3  ;;  %v1214_v5 = vld [vmem:[%s6927_s25 + $0x738] sm:$0xff]  ;;  %v1216_v6 = vld [vmem:[%s6927_s25 + $0x740] sm:$0xff] }
  0x53   : > { %1213 = vst [vmem:[%s6932_s26 + $0x420] sm:$0xff] %v1212_v4  ;;  %1215 = vst [vmem:[%s6932_s26 + $0x428] sm:$0xff] %v1214_v5  ;;  %v1218_v7 = vld [vmem:[%s6927_s25 + $0x748] sm:$0xff]  ;;  %v1220_v8 = vld [vmem:[%s6927_s25 + $0x750] sm:$0xff] }
  0x54   : > { %1217 = vst [vmem:[%s6932_s26 + $0x430] sm:$0xff] %v1216_v6  ;;  %v1222_v9 = vld [vmem:[%s6927_s25 + $0x758] sm:$0xff]  ;;  %1219 = vst [vmem:[%s6932_s26 + $0x438] sm:$0xff] %v1218_v7  ;;  %v1224_v10 = vld [vmem:[%s6927_s25 + $0x760] sm:$0xff] }
  0x55   : > { %1221 = vst [vmem:[%s6932_s26 + $0x440] sm:$0xff] %v1220_v8  ;;  %1223 = vst [vmem:[%s6932_s26 + $0x448] sm:$0xff] %v1222_v9  ;;  %v1226_v11 = vld [vmem:[%s6927_s25 + $0x768] sm:$0xff]  ;;  %v1228_v12 = vld [vmem:[%s6927_s25 + $0x770] sm:$0xff] }
  0x56   : > { %1225 = vst [vmem:[%s6932_s26 + $0x450] sm:$0xff] %v1224_v10  ;;  %1227 = vst [vmem:[%s6932_s26 + $0x458] sm:$0xff] %v1226_v11  ;;  %v1230_v13 = vld [vmem:[%s6927_s25 + $0x778] sm:$0xff]  ;;  %v1232_v14 = vld [vmem:[%s6927_s25 + $0x780] sm:$0xff] }
  0x57   : > { %1229 = vst [vmem:[%s6932_s26 + $0x460] sm:$0xff] %v1228_v12  ;;  %v1234_v15 = vld [vmem:[%s6927_s25 + $0x788] sm:$0xff]  ;;  %1231 = vst [vmem:[%s6932_s26 + $0x468] sm:$0xff] %v1230_v13  ;;  %v1236_v16 = vld [vmem:[%s6927_s25 + $0x790] sm:$0xff] }
  0x58   : > { %1233 = vst [vmem:[%s6932_s26 + $0x470] sm:$0xff] %v1232_v14  ;;  %1235 = vst [vmem:[%s6932_s26 + $0x478] sm:$0xff] %v1234_v15  ;;  %v1238_v17 = vld [vmem:[%s6927_s25 + $0x798] sm:$0xff]  ;;  %v1240_v18 = vld [vmem:[%s6927_s25 + $0x7a0] sm:$0xff] }
  0x59   : > { %1237 = vst [vmem:[%s6932_s26 + $0x480] sm:$0xff] %v1236_v16  ;;  %1239 = vst [vmem:[%s6932_s26 + $0x488] sm:$0xff] %v1238_v17  ;;  %v1242_v19 = vld [vmem:[%s6927_s25 + $0x7a8] sm:$0xff]  ;;  %v1244_v20 = vld [vmem:[%s6927_s25 + $0x7b0] sm:$0xff] }
  0x5a   : > { %1241 = vst [vmem:[%s6932_s26 + $0x490] sm:$0xff] %v1240_v18  ;;  %v1246_v21 = vld [vmem:[%s6927_s25 + $0x7b8] sm:$0xff]  ;;  %1243 = vst [vmem:[%s6932_s26 + $0x498] sm:$0xff] %v1242_v19  ;;  %v1248_v22 = vld [vmem:[%s6927_s25 + $0x7c0] sm:$0xff] }
  0x5b   : > { %1245 = vst [vmem:[%s6932_s26 + $0x4a0] sm:$0xff] %v1244_v20  ;;  %1247 = vst [vmem:[%s6932_s26 + $0x4a8] sm:$0xff] %v1246_v21  ;;  %v1250_v23 = vld [vmem:[%s6927_s25 + $0x7c8] sm:$0xff]  ;;  %v1252_v24 = vld [vmem:[%s6927_s25 + $0x7d0] sm:$0xff] }
  0x5c   : > { %1249 = vst [vmem:[%s6932_s26 + $0x4b0] sm:$0xff] %v1248_v22  ;;  %1251 = vst [vmem:[%s6932_s26 + $0x4b8] sm:$0xff] %v1250_v23  ;;  %v1254_v25 = vld [vmem:[%s6927_s25 + $0x7d8] sm:$0xff]  ;;  %v1256_v26 = vld [vmem:[%s6927_s25 + $0x7e0] sm:$0xff] }
  0x5d   : > { %1253 = vst [vmem:[%s6932_s26 + $0x4c0] sm:$0xff] %v1252_v24  ;;  %v1258_v27 = vld [vmem:[%s6927_s25 + $0x7e8] sm:$0xff]  ;;  %1255 = vst [vmem:[%s6932_s26 + $0x4c8] sm:$0xff] %v1254_v25  ;;  %v1260_v28 = vld [vmem:[%s6927_s25 + $0x7f0] sm:$0xff] }
  0x5e   : > { %1257 = vst [vmem:[%s6932_s26 + $0x4d0] sm:$0xff] %v1256_v26  ;;  %1259 = vst [vmem:[%s6932_s26 + $0x4d8] sm:$0xff] %v1258_v27  ;;  %v1262_v29 = vld [vmem:[%s6927_s25 + $0x7f8] sm:$0xff]  ;;  %v1264_v30 = vld [vmem:[%s6927_s25 + $0x800] sm:$0xff] }
  0x5f   : > { %1261 = vst [vmem:[%s6932_s26 + $0x4e0] sm:$0xff] %v1260_v28  ;;  %1263 = vst [vmem:[%s6932_s26 + $0x4e8] sm:$0xff] %v1262_v29  ;;  %v1266_v31 = vld [vmem:[%s6927_s25 + $0x808] sm:$0xff]  ;;  %v1268_v32 = vld [vmem:[%s6927_s25 + $0x810] sm:$0xff] }
  0x60   : > { %1265 = vst [vmem:[%s6932_s26 + $0x4f0] sm:$0xff] %v1264_v30  ;;  %v1270_v33 = vld [vmem:[%s6927_s25 + $0x818] sm:$0xff]  ;;  %1267 = vst [vmem:[%s6932_s26 + $0x4f8] sm:$0xff] %v1266_v31  ;;  %v1272_v34 = vld [vmem:[%s6927_s25 + $0x820] sm:$0xff] }
  0x61   : > { %1269 = vst [vmem:[%s6932_s26 + $0x500] sm:$0xff] %v1268_v32  ;;  %1271 = vst [vmem:[%s6932_s26 + $0x508] sm:$0xff] %v1270_v33  ;;  %v1274_v35 = vld [vmem:[%s6927_s25 + $0x828] sm:$0xff]  ;;  %v1276_v36 = vld [vmem:[%s6927_s25 + $0x830] sm:$0xff] }
  0x62   : > { %1273 = vst [vmem:[%s6932_s26 + $0x510] sm:$0xff] %v1272_v34  ;;  %1275 = vst [vmem:[%s6932_s26 + $0x518] sm:$0xff] %v1274_v35  ;;  %v1278_v37 = vld [vmem:[%s6927_s25 + $0x838] sm:$0xff]  ;;  %v1280_v38 = vld [vmem:[%s6927_s25 + $0x840] sm:$0xff] }
  0x63   : > { %1277 = vst [vmem:[%s6932_s26 + $0x520] sm:$0xff] %v1276_v36  ;;  %v1282_v39 = vld [vmem:[%s6927_s25 + $0x848] sm:$0xff]  ;;  %1279 = vst [vmem:[%s6932_s26 + $0x528] sm:$0xff] %v1278_v37  ;;  %v1284_v40 = vld [vmem:[%s6927_s25 + $0x850] sm:$0xff] }
  0x64   : > { %1281 = vst [vmem:[%s6932_s26 + $0x530] sm:$0xff] %v1280_v38  ;;  %1283 = vst [vmem:[%s6932_s26 + $0x538] sm:$0xff] %v1282_v39  ;;  %v1286_v41 = vld [vmem:[%s6927_s25 + $0x858] sm:$0xff]  ;;  %v1288_v42 = vld [vmem:[%s6927_s25 + $0x860] sm:$0xff] }
  0x65   : > { %1285 = vst [vmem:[%s6932_s26 + $0x540] sm:$0xff] %v1284_v40  ;;  %1287 = vst [vmem:[%s6932_s26 + $0x548] sm:$0xff] %v1286_v41  ;;  %v1290_v43 = vld [vmem:[%s6927_s25 + $0x868] sm:$0xff]  ;;  %v1292_v44 = vld [vmem:[%s6927_s25 + $0x870] sm:$0xff] }
  0x66   : > { %1289 = vst [vmem:[%s6932_s26 + $0x550] sm:$0xff] %v1288_v42  ;;  %v1294_v45 = vld [vmem:[%s6927_s25 + $0x878] sm:$0xff]  ;;  %1291 = vst [vmem:[%s6932_s26 + $0x558] sm:$0xff] %v1290_v43  ;;  %v1296_v46 = vld [vmem:[%s6927_s25 + $0x880] sm:$0xff] }
  0x67   : > { %1293 = vst [vmem:[%s6932_s26 + $0x560] sm:$0xff] %v1292_v44  ;;  %1295 = vst [vmem:[%s6932_s26 + $0x568] sm:$0xff] %v1294_v45  ;;  %v1298_v47 = vld [vmem:[%s6927_s25 + $0x888] sm:$0xff]  ;;  %v1300_v48 = vld [vmem:[%s6927_s25 + $0x890] sm:$0xff] }
  0x68   : > { %1297 = vst [vmem:[%s6932_s26 + $0x570] sm:$0xff] %v1296_v46  ;;  %1299 = vst [vmem:[%s6932_s26 + $0x578] sm:$0xff] %v1298_v47  ;;  %v1302_v49 = vld [vmem:[%s6927_s25 + $0x898] sm:$0xff]  ;;  %v1304_v50 = vld [vmem:[%s6927_s25 + $0x8a0] sm:$0xff] }
  0x69   : > { %1301 = vst [vmem:[%s6932_s26 + $0x580] sm:$0xff] %v1300_v48  ;;  %v1306_v51 = vld [vmem:[%s6927_s25 + $0x8a8] sm:$0xff]  ;;  %1303 = vst [vmem:[%s6932_s26 + $0x588] sm:$0xff] %v1302_v49  ;;  %v1308_v52 = vld [vmem:[%s6927_s25 + $0x8b0] sm:$0xff] }
  0x6a   : > { %1305 = vst [vmem:[%s6932_s26 + $0x590] sm:$0xff] %v1304_v50  ;;  %1307 = vst [vmem:[%s6932_s26 + $0x598] sm:$0xff] %v1306_v51  ;;  %v1310_v53 = vld [vmem:[%s6927_s25 + $0x8b8] sm:$0xff]  ;;  %v1312_v54 = vld [vmem:[%s6927_s25 + $0x8c0] sm:$0xff] }
  0x6b   : > { %1309 = vst [vmem:[%s6932_s26 + $0x5a0] sm:$0xff] %v1308_v52  ;;  %1311 = vst [vmem:[%s6932_s26 + $0x5a8] sm:$0xff] %v1310_v53  ;;  %v1314_v55 = vld [vmem:[%s6927_s25 + $0x8c8] sm:$0xff]  ;;  %v1316_v56 = vld [vmem:[%s6927_s25 + $0x8d0] sm:$0xff] }
  0x6c   : > { %1313 = vst [vmem:[%s6932_s26 + $0x5b0] sm:$0xff] %v1312_v54  ;;  %v1318_v57 = vld [vmem:[%s6927_s25 + $0x8d8] sm:$0xff]  ;;  %1315 = vst [vmem:[%s6932_s26 + $0x5b8] sm:$0xff] %v1314_v55  ;;  %v1320_v58 = vld [vmem:[%s6927_s25 + $0x8e0] sm:$0xff] }
  0x6d   : > { %1317 = vst [vmem:[%s6932_s26 + $0x5c0] sm:$0xff] %v1316_v56  ;;  %1319 = vst [vmem:[%s6932_s26 + $0x5c8] sm:$0xff] %v1318_v57  ;;  %v1322_v59 = vld [vmem:[%s6927_s25 + $0x8e8] sm:$0xff]  ;;  %v1324_v60 = vld [vmem:[%s6927_s25 + $0x8f0] sm:$0xff] }
  0x6e   : > { %1321 = vst [vmem:[%s6932_s26 + $0x5d0] sm:$0xff] %v1320_v58  ;;  %1323 = vst [vmem:[%s6932_s26 + $0x5d8] sm:$0xff] %v1322_v59  ;;  %v1326_v61 = vld [vmem:[%s6927_s25 + $0x8f8] sm:$0xff]  ;;  %v1328_v62 = vld [vmem:[%s6927_s25 + $0x900] sm:$0xff] }
  0x6f   : > { %1325 = vst [vmem:[%s6932_s26 + $0x5e0] sm:$0xff] %v1324_v60  ;;  %v1330_v63 = vld [vmem:[%s6927_s25 + $0x908] sm:$0xff]  ;;  %1327 = vst [vmem:[%s6932_s26 + $0x5e8] sm:$0xff] %v1326_v61  ;;  %v1332_v0 = vld [vmem:[%s6927_s25 + $0x910] sm:$0xff] }
  0x70   : > { %1329 = vst [vmem:[%s6932_s26 + $0x5f0] sm:$0xff] %v1328_v62  ;;  %1331 = vst [vmem:[%s6932_s26 + $0x5f8] sm:$0xff] %v1330_v63  ;;  %v1334_v1 = vld [vmem:[%s6927_s25 + $0x918] sm:$0xff]  ;;  %v1336_v2 = vld [vmem:[%s6927_s25 + $0x920] sm:$0xff] }
  0x71   : > { %1333 = vst [vmem:[%s6932_s26 + $0x600] sm:$0xff] %v1332_v0  ;;  %1335 = vst [vmem:[%s6932_s26 + $0x608] sm:$0xff] %v1334_v1  ;;  %v1338_v3 = vld [vmem:[%s6927_s25 + $0x928] sm:$0xff]  ;;  %v1340_v4 = vld [vmem:[%s6927_s25 + $0xc40] sm:$0xff] }
  0x72   : > { %1337 = vst [vmem:[%s6932_s26 + $0x610] sm:$0xff] %v1336_v2  ;;  %v1342_v5 = vld [vmem:[%s6927_s25 + $0xc48] sm:$0xff]  ;;  %1339 = vst [vmem:[%s6932_s26 + $0x618] sm:$0xff] %v1338_v3  ;;  %v1344_v6 = vld [vmem:[%s6927_s25 + $0xc50] sm:$0xff] }
  0x73   : > { %1341 = vst [vmem:[%s6932_s26 + $0x620] sm:$0xff] %v1340_v4  ;;  %1343 = vst [vmem:[%s6932_s26 + $0x628] sm:$0xff] %v1342_v5  ;;  %v1346_v7 = vld [vmem:[%s6927_s25 + $0xc58] sm:$0xff]  ;;  %v1348_v8 = vld [vmem:[%s6927_s25 + $0xc60] sm:$0xff] }
  0x74   : > { %1345 = vst [vmem:[%s6932_s26 + $0x630] sm:$0xff] %v1344_v6  ;;  %1347 = vst [vmem:[%s6932_s26 + $0x638] sm:$0xff] %v1346_v7  ;;  %v1350_v9 = vld [vmem:[%s6927_s25 + $0xc68] sm:$0xff]  ;;  %v1352_v10 = vld [vmem:[%s6927_s25 + $0xc70] sm:$0xff] }
  0x75   : > { %1349 = vst [vmem:[%s6932_s26 + $0x640] sm:$0xff] %v1348_v8  ;;  %v1354_v11 = vld [vmem:[%s6927_s25 + $0xc78] sm:$0xff]  ;;  %1351 = vst [vmem:[%s6932_s26 + $0x648] sm:$0xff] %v1350_v9  ;;  %v1356_v12 = vld [vmem:[%s6927_s25 + $0xc80] sm:$0xff] }
  0x76   : > { %1353 = vst [vmem:[%s6932_s26 + $0x650] sm:$0xff] %v1352_v10  ;;  %1355 = vst [vmem:[%s6932_s26 + $0x658] sm:$0xff] %v1354_v11  ;;  %v1358_v13 = vld [vmem:[%s6927_s25 + $0xc88] sm:$0xff]  ;;  %v1360_v14 = vld [vmem:[%s6927_s25 + $0xc90] sm:$0xff] }
  0x77   : > { %1357 = vst [vmem:[%s6932_s26 + $0x660] sm:$0xff] %v1356_v12  ;;  %1359 = vst [vmem:[%s6932_s26 + $0x668] sm:$0xff] %v1358_v13  ;;  %v1362_v15 = vld [vmem:[%s6927_s25 + $0xc98] sm:$0xff]  ;;  %v1364_v16 = vld [vmem:[%s6927_s25 + $0xca0] sm:$0xff] }
  0x78   : > { %1361 = vst [vmem:[%s6932_s26 + $0x670] sm:$0xff] %v1360_v14  ;;  %v1366_v17 = vld [vmem:[%s6927_s25 + $0xca8] sm:$0xff]  ;;  %1363 = vst [vmem:[%s6932_s26 + $0x678] sm:$0xff] %v1362_v15  ;;  %v1368_v18 = vld [vmem:[%s6927_s25 + $0xcb0] sm:$0xff] }
  0x79   : > { %1365 = vst [vmem:[%s6932_s26 + $0x680] sm:$0xff] %v1364_v16  ;;  %1367 = vst [vmem:[%s6932_s26 + $0x688] sm:$0xff] %v1366_v17  ;;  %v1370_v19 = vld [vmem:[%s6927_s25 + $0xcb8] sm:$0xff]  ;;  %v1372_v20 = vld [vmem:[%s6927_s25 + $0xcc0] sm:$0xff] }
  0x7a   : > { %1369 = vst [vmem:[%s6932_s26 + $0x690] sm:$0xff] %v1368_v18  ;;  %1371 = vst [vmem:[%s6932_s26 + $0x698] sm:$0xff] %v1370_v19  ;;  %v1374_v21 = vld [vmem:[%s6927_s25 + $0xcc8] sm:$0xff]  ;;  %v1376_v22 = vld [vmem:[%s6927_s25 + $0xcd0] sm:$0xff] }
  0x7b   : > { %1373 = vst [vmem:[%s6932_s26 + $0x6a0] sm:$0xff] %v1372_v20  ;;  %v1378_v23 = vld [vmem:[%s6927_s25 + $0xcd8] sm:$0xff]  ;;  %1375 = vst [vmem:[%s6932_s26 + $0x6a8] sm:$0xff] %v1374_v21  ;;  %v1380_v24 = vld [vmem:[%s6927_s25 + $0xce0] sm:$0xff] }
  0x7c   : > { %1377 = vst [vmem:[%s6932_s26 + $0x6b0] sm:$0xff] %v1376_v22  ;;  %1379 = vst [vmem:[%s6932_s26 + $0x6b8] sm:$0xff] %v1378_v23  ;;  %v1382_v25 = vld [vmem:[%s6927_s25 + $0xce8] sm:$0xff]  ;;  %v1384_v26 = vld [vmem:[%s6927_s25 + $0xcf0] sm:$0xff] }
  0x7d   : > { %1381 = vst [vmem:[%s6932_s26 + $0x6c0] sm:$0xff] %v1380_v24  ;;  %1383 = vst [vmem:[%s6932_s26 + $0x6c8] sm:$0xff] %v1382_v25  ;;  %v1386_v27 = vld [vmem:[%s6927_s25 + $0xcf8] sm:$0xff]  ;;  %v1388_v28 = vld [vmem:[%s6927_s25 + $0xd00] sm:$0xff] }
  0x7e   : > { %1385 = vst [vmem:[%s6932_s26 + $0x6d0] sm:$0xff] %v1384_v26  ;;  %v1390_v29 = vld [vmem:[%s6927_s25 + $0xd08] sm:$0xff]  ;;  %1387 = vst [vmem:[%s6932_s26 + $0x6d8] sm:$0xff] %v1386_v27  ;;  %v1392_v30 = vld [vmem:[%s6927_s25 + $0xd10] sm:$0xff] }
  0x7f   : > { %1389 = vst [vmem:[%s6932_s26 + $0x6e0] sm:$0xff] %v1388_v28  ;;  %1391 = vst [vmem:[%s6932_s26 + $0x6e8] sm:$0xff] %v1390_v29  ;;  %v1394_v31 = vld [vmem:[%s6927_s25 + $0xd18] sm:$0xff]  ;;  %v1396_v32 = vld [vmem:[%s6927_s25 + $0xd20] sm:$0xff] }
  0x80   : > { %1393 = vst [vmem:[%s6932_s26 + $0x6f0] sm:$0xff] %v1392_v30  ;;  %1395 = vst [vmem:[%s6932_s26 + $0x6f8] sm:$0xff] %v1394_v31  ;;  %v1398_v33 = vld [vmem:[%s6927_s25 + $0xd28] sm:$0xff]  ;;  %v1400_v34 = vld [vmem:[%s6927_s25 + $0xd30] sm:$0xff] }
  0x81   : > { %1397 = vst [vmem:[%s6932_s26 + $0x700] sm:$0xff] %v1396_v32  ;;  %v1402_v35 = vld [vmem:[%s6927_s25 + $0xd38] sm:$0xff]  ;;  %1399 = vst [vmem:[%s6932_s26 + $0x708] sm:$0xff] %v1398_v33  ;;  %v1404_v36 = vld [vmem:[%s6927_s25 + $0xd40] sm:$0xff] }
  0x82   : > { %1401 = vst [vmem:[%s6932_s26 + $0x710] sm:$0xff] %v1400_v34  ;;  %1403 = vst [vmem:[%s6932_s26 + $0x718] sm:$0xff] %v1402_v35  ;;  %v1406_v37 = vld [vmem:[%s6927_s25 + $0xd48] sm:$0xff]  ;;  %v1408_v38 = vld [vmem:[%s6927_s25 + $0xd50] sm:$0xff] }
  0x83   : > { %1405 = vst [vmem:[%s6932_s26 + $0x720] sm:$0xff] %v1404_v36  ;;  %1407 = vst [vmem:[%s6932_s26 + $0x728] sm:$0xff] %v1406_v37  ;;  %v1410_v39 = vld [vmem:[%s6927_s25 + $0xd58] sm:$0xff]  ;;  %v1412_v40 = vld [vmem:[%s6927_s25 + $0xd60] sm:$0xff] }
  0x84   : > { %1409 = vst [vmem:[%s6932_s26 + $0x730] sm:$0xff] %v1408_v38  ;;  %v1414_v41 = vld [vmem:[%s6927_s25 + $0xd68] sm:$0xff]  ;;  %1411 = vst [vmem:[%s6932_s26 + $0x738] sm:$0xff] %v1410_v39  ;;  %v1416_v42 = vld [vmem:[%s6927_s25 + $0xd70] sm:$0xff] }
  0x85   : > { %1413 = vst [vmem:[%s6932_s26 + $0x740] sm:$0xff] %v1412_v40  ;;  %1415 = vst [vmem:[%s6932_s26 + $0x748] sm:$0xff] %v1414_v41  ;;  %v1418_v43 = vld [vmem:[%s6927_s25 + $0xd78] sm:$0xff]  ;;  %v1420_v44 = vld [vmem:[%s6927_s25 + $0xd80] sm:$0xff] }
  0x86   : > { %1417 = vst [vmem:[%s6932_s26 + $0x750] sm:$0xff] %v1416_v42  ;;  %1419 = vst [vmem:[%s6932_s26 + $0x758] sm:$0xff] %v1418_v43  ;;  %v1422_v45 = vld [vmem:[%s6927_s25 + $0xd88] sm:$0xff]  ;;  %v1424_v46 = vld [vmem:[%s6927_s25 + $0xd90] sm:$0xff] }
  0x87   : > { %1421 = vst [vmem:[%s6932_s26 + $0x760] sm:$0xff] %v1420_v44  ;;  %v1426_v47 = vld [vmem:[%s6927_s25 + $0xd98] sm:$0xff]  ;;  %1423 = vst [vmem:[%s6932_s26 + $0x768] sm:$0xff] %v1422_v45  ;;  %v1428_v48 = vld [vmem:[%s6927_s25 + $0xda0] sm:$0xff] }
  0x88   : > { %1425 = vst [vmem:[%s6932_s26 + $0x770] sm:$0xff] %v1424_v46  ;;  %1427 = vst [vmem:[%s6932_s26 + $0x778] sm:$0xff] %v1426_v47  ;;  %v1430_v49 = vld [vmem:[%s6927_s25 + $0xda8] sm:$0xff]  ;;  %v1432_v50 = vld [vmem:[%s6927_s25 + $0xdb0] sm:$0xff] }
  0x89   : > { %1429 = vst [vmem:[%s6932_s26 + $0x780] sm:$0xff] %v1428_v48  ;;  %1431 = vst [vmem:[%s6932_s26 + $0x788] sm:$0xff] %v1430_v49  ;;  %v1434_v51 = vld [vmem:[%s6927_s25 + $0xdb8] sm:$0xff]  ;;  %v1436_v52 = vld [vmem:[%s6927_s25 + $0xdc0] sm:$0xff] }
  0x8a   : > { %1433 = vst [vmem:[%s6932_s26 + $0x790] sm:$0xff] %v1432_v50  ;;  %v1438_v53 = vld [vmem:[%s6927_s25 + $0xdc8] sm:$0xff]  ;;  %1435 = vst [vmem:[%s6932_s26 + $0x798] sm:$0xff] %v1434_v51  ;;  %v1440_v54 = vld [vmem:[%s6927_s25 + $0xdd0] sm:$0xff] }
  0x8b   : > { %1437 = vst [vmem:[%s6932_s26 + $0x7a0] sm:$0xff] %v1436_v52  ;;  %1439 = vst [vmem:[%s6932_s26 + $0x7a8] sm:$0xff] %v1438_v53  ;;  %v1442_v55 = vld [vmem:[%s6927_s25 + $0xdd8] sm:$0xff]  ;;  %v1444_v56 = vld [vmem:[%s6927_s25 + $0xde0] sm:$0xff] }
  0x8c   : > { %1441 = vst [vmem:[%s6932_s26 + $0x7b0] sm:$0xff] %v1440_v54  ;;  %1443 = vst [vmem:[%s6932_s26 + $0x7b8] sm:$0xff] %v1442_v55  ;;  %v1446_v57 = vld [vmem:[%s6927_s25 + $0xde8] sm:$0xff]  ;;  %v1448_v58 = vld [vmem:[%s6927_s25 + $0xdf0] sm:$0xff] }
  0x8d   : > { %1445 = vst [vmem:[%s6932_s26 + $0x7c0] sm:$0xff] %v1444_v56  ;;  %v1450_v59 = vld [vmem:[%s6927_s25 + $0xdf8] sm:$0xff]  ;;  %1447 = vst [vmem:[%s6932_s26 + $0x7c8] sm:$0xff] %v1446_v57  ;;  %v1452_v60 = vld [vmem:[%s6927_s25 + $0xe00] sm:$0xff] }
  0x8e   : > { %1449 = vst [vmem:[%s6932_s26 + $0x7d0] sm:$0xff] %v1448_v58  ;;  %1451 = vst [vmem:[%s6932_s26 + $0x7d8] sm:$0xff] %v1450_v59  ;;  %v1454_v61 = vld [vmem:[%s6927_s25 + $0xe08] sm:$0xff]  ;;  %v1456_v62 = vld [vmem:[%s6927_s25 + $0xe10] sm:$0xff] }
  0x8f   : > { %1453 = vst [vmem:[%s6932_s26 + $0x7e0] sm:$0xff] %v1452_v60  ;;  %1455 = vst [vmem:[%s6932_s26 + $0x7e8] sm:$0xff] %v1454_v61  ;;  %v1458_v63 = vld [vmem:[%s6927_s25 + $0xe18] sm:$0xff]  ;;  %v1460_v0 = vld [vmem:[%s6927_s25 + $0xe20] sm:$0xff] }
  0x90   : > { %1457 = vst [vmem:[%s6932_s26 + $0x7f0] sm:$0xff] %v1456_v62  ;;  %v1462_v1 = vld [vmem:[%s6927_s25 + $0xe28] sm:$0xff]  ;;  %1459 = vst [vmem:[%s6932_s26 + $0x7f8] sm:$0xff] %v1458_v63  ;;  %v1464_v2 = vld [vmem:[%s6927_s25 + $0xe30] sm:$0xff] }
  0x91   : > { %1461 = vst [vmem:[%s6932_s26 + $0x800] sm:$0xff] %v1460_v0  ;;  %1463 = vst [vmem:[%s6932_s26 + $0x808] sm:$0xff] %v1462_v1  ;;  %v1466_v3 = vld [vmem:[%s6927_s25 + $0xe38] sm:$0xff]  ;;  %v1468_v4 = vld [vmem:[%s6927_s25 + $0xe40] sm:$0xff] }
  0x92   : > { %1465 = vst [vmem:[%s6932_s26 + $0x810] sm:$0xff] %v1464_v2  ;;  %1467 = vst [vmem:[%s6932_s26 + $0x818] sm:$0xff] %v1466_v3  ;;  %v1470_v5 = vld [vmem:[%s6927_s25 + $0xe48] sm:$0xff]  ;;  %v1472_v6 = vld [vmem:[%s6927_s25 + $0xe50] sm:$0xff] }
  0x93   : > { %1469 = vst [vmem:[%s6932_s26 + $0x820] sm:$0xff] %v1468_v4  ;;  %v1474_v7 = vld [vmem:[%s6927_s25 + $0xe58] sm:$0xff]  ;;  %1471 = vst [vmem:[%s6932_s26 + $0x828] sm:$0xff] %v1470_v5  ;;  %v1476_v8 = vld [vmem:[%s6927_s25 + $0xe60] sm:$0xff] }
  0x94   : > { %1473 = vst [vmem:[%s6932_s26 + $0x830] sm:$0xff] %v1472_v6  ;;  %1475 = vst [vmem:[%s6932_s26 + $0x838] sm:$0xff] %v1474_v7  ;;  %v1478_v9 = vld [vmem:[%s6927_s25 + $0xe68] sm:$0xff]  ;;  %v1480_v10 = vld [vmem:[%s6927_s25 + $0xe70] sm:$0xff] }
  0x95   : > { %1477 = vst [vmem:[%s6932_s26 + $0x840] sm:$0xff] %v1476_v8  ;;  %1479 = vst [vmem:[%s6932_s26 + $0x848] sm:$0xff] %v1478_v9  ;;  %v1482_v11 = vld [vmem:[%s6927_s25 + $0xe78] sm:$0xff]  ;;  %v1484_v12 = vld [vmem:[%s6927_s25 + $0xe80] sm:$0xff] }
  0x96   : > { %1481 = vst [vmem:[%s6932_s26 + $0x850] sm:$0xff] %v1480_v10  ;;  %v1486_v13 = vld [vmem:[%s6927_s25 + $0xe88] sm:$0xff]  ;;  %1483 = vst [vmem:[%s6932_s26 + $0x858] sm:$0xff] %v1482_v11  ;;  %v1488_v14 = vld [vmem:[%s6927_s25 + $0xe90] sm:$0xff] }
  0x97   : > { %1485 = vst [vmem:[%s6932_s26 + $0x860] sm:$0xff] %v1484_v12  ;;  %1487 = vst [vmem:[%s6932_s26 + $0x868] sm:$0xff] %v1486_v13  ;;  %v1490_v15 = vld [vmem:[%s6927_s25 + $0xe98] sm:$0xff]  ;;  %v1492_v16 = vld [vmem:[%s6927_s25 + $0xea0] sm:$0xff] }
  0x98   : > { %1489 = vst [vmem:[%s6932_s26 + $0x870] sm:$0xff] %v1488_v14  ;;  %1491 = vst [vmem:[%s6932_s26 + $0x878] sm:$0xff] %v1490_v15  ;;  %v1494_v17 = vld [vmem:[%s6927_s25 + $0xea8] sm:$0xff]  ;;  %v1496_v18 = vld [vmem:[%s6927_s25 + $0xeb0] sm:$0xff] }
  0x99   : > { %1493 = vst [vmem:[%s6932_s26 + $0x880] sm:$0xff] %v1492_v16  ;;  %v1498_v19 = vld [vmem:[%s6927_s25 + $0xeb8] sm:$0xff]  ;;  %1495 = vst [vmem:[%s6932_s26 + $0x888] sm:$0xff] %v1494_v17  ;;  %v1500_v20 = vld [vmem:[%s6927_s25 + $0xec0] sm:$0xff] }
  0x9a   : > { %1497 = vst [vmem:[%s6932_s26 + $0x890] sm:$0xff] %v1496_v18  ;;  %1499 = vst [vmem:[%s6932_s26 + $0x898] sm:$0xff] %v1498_v19  ;;  %v1502_v21 = vld [vmem:[%s6927_s25 + $0xec8] sm:$0xff]  ;;  %v1504_v22 = vld [vmem:[%s6927_s25 + $0xed0] sm:$0xff] }
  0x9b   : > { %1501 = vst [vmem:[%s6932_s26 + $0x8a0] sm:$0xff] %v1500_v20  ;;  %1503 = vst [vmem:[%s6932_s26 + $0x8a8] sm:$0xff] %v1502_v21  ;;  %v1506_v23 = vld [vmem:[%s6927_s25 + $0xed8] sm:$0xff]  ;;  %v1508_v24 = vld [vmem:[%s6927_s25 + $0xee0] sm:$0xff] }
  0x9c   : > { %1505 = vst [vmem:[%s6932_s26 + $0x8b0] sm:$0xff] %v1504_v22  ;;  %v1510_v25 = vld [vmem:[%s6927_s25 + $0xee8] sm:$0xff]  ;;  %1507 = vst [vmem:[%s6932_s26 + $0x8b8] sm:$0xff] %v1506_v23  ;;  %v1512_v26 = vld [vmem:[%s6927_s25 + $0xef0] sm:$0xff] }
  0x9d   : > { %1509 = vst [vmem:[%s6932_s26 + $0x8c0] sm:$0xff] %v1508_v24  ;;  %1511 = vst [vmem:[%s6932_s26 + $0x8c8] sm:$0xff] %v1510_v25  ;;  %v1514_v27 = vld [vmem:[%s6927_s25 + $0xef8] sm:$0xff]  ;;  %v1516_v28 = vld [vmem:[%s6927_s25 + $0xf00] sm:$0xff] }
  0x9e   : > { %1513 = vst [vmem:[%s6932_s26 + $0x8d0] sm:$0xff] %v1512_v26  ;;  %1515 = vst [vmem:[%s6932_s26 + $0x8d8] sm:$0xff] %v1514_v27  ;;  %v1518_v29 = vld [vmem:[%s6927_s25 + $0xf08] sm:$0xff]  ;;  %v1520_v30 = vld [vmem:[%s6927_s25 + $0xf10] sm:$0xff] }
  0x9f   : > { %1517 = vst [vmem:[%s6932_s26 + $0x8e0] sm:$0xff] %v1516_v28  ;;  %v1522_v31 = vld [vmem:[%s6927_s25 + $0xf18] sm:$0xff]  ;;  %1519 = vst [vmem:[%s6932_s26 + $0x8e8] sm:$0xff] %v1518_v29  ;;  %v1524_v32 = vld [vmem:[%s6927_s25 + $0xf20] sm:$0xff] }
  0xa0   : > { %1521 = vst [vmem:[%s6932_s26 + $0x8f0] sm:$0xff] %v1520_v30  ;;  %1523 = vst [vmem:[%s6932_s26 + $0x8f8] sm:$0xff] %v1522_v31  ;;  %v1526_v33 = vld [vmem:[%s6927_s25 + $0xf28] sm:$0xff]  ;;  %v1528_v34 = vld [vmem:[%s6927_s25 + $0xf30] sm:$0xff] }
  0xa1   : > { %1525 = vst [vmem:[%s6932_s26 + $0x900] sm:$0xff] %v1524_v32  ;;  %1527 = vst [vmem:[%s6932_s26 + $0x908] sm:$0xff] %v1526_v33  ;;  %v1530_v35 = vld [vmem:[%s6927_s25 + $0xf38] sm:$0xff]  ;;  %v1532_v36 = vld [vmem:[%s6927_s25 + $0xf40] sm:$0xff] }
  0xa2   : > { %1529 = vst [vmem:[%s6932_s26 + $0x910] sm:$0xff] %v1528_v34  ;;  %v1534_v37 = vld [vmem:[%s6927_s25 + $0xf48] sm:$0xff]  ;;  %1531 = vst [vmem:[%s6932_s26 + $0x918] sm:$0xff] %v1530_v35  ;;  %v1536_v38 = vld [vmem:[%s6927_s25 + $0x1260] sm:$0xff] }
  0xa3   : > { %1533 = vst [vmem:[%s6932_s26 + $0x920] sm:$0xff] %v1532_v36  ;;  %1535 = vst [vmem:[%s6932_s26 + $0x928] sm:$0xff] %v1534_v37  ;;  %v1538_v39 = vld [vmem:[%s6927_s25 + $0x1268] sm:$0xff]  ;;  %v1540_v40 = vld [vmem:[%s6927_s25 + $0x1270] sm:$0xff] }
  0xa4   : > { %1537 = vst [vmem:[%s6932_s26 + $0x930] sm:$0xff] %v1536_v38  ;;  %1539 = vst [vmem:[%s6932_s26 + $0x938] sm:$0xff] %v1538_v39  ;;  %v1542_v41 = vld [vmem:[%s6927_s25 + $0x1278] sm:$0xff]  ;;  %v1544_v42 = vld [vmem:[%s6927_s25 + $0x1280] sm:$0xff] }
  0xa5   : > { %1541 = vst [vmem:[%s6932_s26 + $0x940] sm:$0xff] %v1540_v40  ;;  %v1546_v43 = vld [vmem:[%s6927_s25 + $0x1288] sm:$0xff]  ;;  %1543 = vst [vmem:[%s6932_s26 + $0x948] sm:$0xff] %v1542_v41  ;;  %v1548_v44 = vld [vmem:[%s6927_s25 + $0x1290] sm:$0xff] }
  0xa6   : > { %1545 = vst [vmem:[%s6932_s26 + $0x950] sm:$0xff] %v1544_v42  ;;  %1547 = vst [vmem:[%s6932_s26 + $0x958] sm:$0xff] %v1546_v43  ;;  %v1550_v45 = vld [vmem:[%s6927_s25 + $0x1298] sm:$0xff]  ;;  %v1552_v46 = vld [vmem:[%s6927_s25 + $0x12a0] sm:$0xff] }
  0xa7   : > { %1549 = vst [vmem:[%s6932_s26 + $0x960] sm:$0xff] %v1548_v44  ;;  %1551 = vst [vmem:[%s6932_s26 + $0x968] sm:$0xff] %v1550_v45  ;;  %v1554_v47 = vld [vmem:[%s6927_s25 + $0x12a8] sm:$0xff]  ;;  %v1556_v48 = vld [vmem:[%s6927_s25 + $0x12b0] sm:$0xff] }
  0xa8   : > { %1553 = vst [vmem:[%s6932_s26 + $0x970] sm:$0xff] %v1552_v46  ;;  %v1558_v49 = vld [vmem:[%s6927_s25 + $0x12b8] sm:$0xff]  ;;  %1555 = vst [vmem:[%s6932_s26 + $0x978] sm:$0xff] %v1554_v47  ;;  %v1560_v50 = vld [vmem:[%s6927_s25 + $0x12c0] sm:$0xff] }
  0xa9   : > { %1557 = vst [vmem:[%s6932_s26 + $0x980] sm:$0xff] %v1556_v48  ;;  %1559 = vst [vmem:[%s6932_s26 + $0x988] sm:$0xff] %v1558_v49  ;;  %v1562_v51 = vld [vmem:[%s6927_s25 + $0x12c8] sm:$0xff]  ;;  %v1564_v52 = vld [vmem:[%s6927_s25 + $0x12d0] sm:$0xff] }
  0xaa   : > { %1561 = vst [vmem:[%s6932_s26 + $0x990] sm:$0xff] %v1560_v50  ;;  %1563 = vst [vmem:[%s6932_s26 + $0x998] sm:$0xff] %v1562_v51  ;;  %v1566_v53 = vld [vmem:[%s6927_s25 + $0x12d8] sm:$0xff]  ;;  %v1568_v54 = vld [vmem:[%s6927_s25 + $0x12e0] sm:$0xff] }
  0xab   : > { %1565 = vst [vmem:[%s6932_s26 + $0x9a0] sm:$0xff] %v1564_v52  ;;  %v1570_v55 = vld [vmem:[%s6927_s25 + $0x12e8] sm:$0xff]  ;;  %1567 = vst [vmem:[%s6932_s26 + $0x9a8] sm:$0xff] %v1566_v53  ;;  %v1572_v56 = vld [vmem:[%s6927_s25 + $0x12f0] sm:$0xff] }
  0xac   : > { %1569 = vst [vmem:[%s6932_s26 + $0x9b0] sm:$0xff] %v1568_v54  ;;  %1571 = vst [vmem:[%s6932_s26 + $0x9b8] sm:$0xff] %v1570_v55  ;;  %v1574_v57 = vld [vmem:[%s6927_s25 + $0x12f8] sm:$0xff]  ;;  %v1576_v58 = vld [vmem:[%s6927_s25 + $0x1300] sm:$0xff] }
  0xad   : > { %1573 = vst [vmem:[%s6932_s26 + $0x9c0] sm:$0xff] %v1572_v56  ;;  %1575 = vst [vmem:[%s6932_s26 + $0x9c8] sm:$0xff] %v1574_v57  ;;  %v1578_v59 = vld [vmem:[%s6927_s25 + $0x1308] sm:$0xff]  ;;  %v1580_v60 = vld [vmem:[%s6927_s25 + $0x1310] sm:$0xff] }
  0xae   : > { %1577 = vst [vmem:[%s6932_s26 + $0x9d0] sm:$0xff] %v1576_v58  ;;  %v1582_v61 = vld [vmem:[%s6927_s25 + $0x1318] sm:$0xff]  ;;  %1579 = vst [vmem:[%s6932_s26 + $0x9d8] sm:$0xff] %v1578_v59  ;;  %v1584_v62 = vld [vmem:[%s6927_s25 + $0x1320] sm:$0xff] }
  0xaf   : > { %1581 = vst [vmem:[%s6932_s26 + $0x9e0] sm:$0xff] %v1580_v60  ;;  %1583 = vst [vmem:[%s6932_s26 + $0x9e8] sm:$0xff] %v1582_v61  ;;  %v1586_v63 = vld [vmem:[%s6927_s25 + $0x1328] sm:$0xff]  ;;  %v1588_v0 = vld [vmem:[%s6927_s25 + $0x1330] sm:$0xff] }
  0xb0   : > { %1585 = vst [vmem:[%s6932_s26 + $0x9f0] sm:$0xff] %v1584_v62  ;;  %1587 = vst [vmem:[%s6932_s26 + $0x9f8] sm:$0xff] %v1586_v63  ;;  %v1590_v1 = vld [vmem:[%s6927_s25 + $0x1338] sm:$0xff]  ;;  %v1592_v2 = vld [vmem:[%s6927_s25 + $0x1340] sm:$0xff] }
  0xb1   : > { %1589 = vst [vmem:[%s6932_s26 + $0xa00] sm:$0xff] %v1588_v0  ;;  %v1594_v3 = vld [vmem:[%s6927_s25 + $0x1348] sm:$0xff]  ;;  %1591 = vst [vmem:[%s6932_s26 + $0xa08] sm:$0xff] %v1590_v1  ;;  %v1596_v4 = vld [vmem:[%s6927_s25 + $0x1350] sm:$0xff] }
  0xb2   : > { %1593 = vst [vmem:[%s6932_s26 + $0xa10] sm:$0xff] %v1592_v2  ;;  %1595 = vst [vmem:[%s6932_s26 + $0xa18] sm:$0xff] %v1594_v3  ;;  %v1598_v5 = vld [vmem:[%s6927_s25 + $0x1358] sm:$0xff]  ;;  %v1600_v6 = vld [vmem:[%s6927_s25 + $0x1360] sm:$0xff] }
  0xb3   : > { %1597 = vst [vmem:[%s6932_s26 + $0xa20] sm:$0xff] %v1596_v4  ;;  %1599 = vst [vmem:[%s6932_s26 + $0xa28] sm:$0xff] %v1598_v5  ;;  %v1602_v7 = vld [vmem:[%s6927_s25 + $0x1368] sm:$0xff]  ;;  %v1604_v8 = vld [vmem:[%s6927_s25 + $0x1370] sm:$0xff] }
  0xb4   : > { %1601 = vst [vmem:[%s6932_s26 + $0xa30] sm:$0xff] %v1600_v6  ;;  %v1606_v9 = vld [vmem:[%s6927_s25 + $0x1378] sm:$0xff]  ;;  %1603 = vst [vmem:[%s6932_s26 + $0xa38] sm:$0xff] %v1602_v7  ;;  %v1608_v10 = vld [vmem:[%s6927_s25 + $0x1380] sm:$0xff] }
  0xb5   : > { %1605 = vst [vmem:[%s6932_s26 + $0xa40] sm:$0xff] %v1604_v8  ;;  %1607 = vst [vmem:[%s6932_s26 + $0xa48] sm:$0xff] %v1606_v9  ;;  %v1610_v11 = vld [vmem:[%s6927_s25 + $0x1388] sm:$0xff]  ;;  %v1612_v12 = vld [vmem:[%s6927_s25 + $0x1390] sm:$0xff] }
  0xb6   : > { %1609 = vst [vmem:[%s6932_s26 + $0xa50] sm:$0xff] %v1608_v10  ;;  %1611 = vst [vmem:[%s6932_s26 + $0xa58] sm:$0xff] %v1610_v11  ;;  %v1614_v13 = vld [vmem:[%s6927_s25 + $0x1398] sm:$0xff]  ;;  %v1616_v14 = vld [vmem:[%s6927_s25 + $0x13a0] sm:$0xff] }
  0xb7   : > { %1613 = vst [vmem:[%s6932_s26 + $0xa60] sm:$0xff] %v1612_v12  ;;  %v1618_v15 = vld [vmem:[%s6927_s25 + $0x13a8] sm:$0xff]  ;;  %1615 = vst [vmem:[%s6932_s26 + $0xa68] sm:$0xff] %v1614_v13  ;;  %v1620_v16 = vld [vmem:[%s6927_s25 + $0x13b0] sm:$0xff] }
  0xb8   : > { %1617 = vst [vmem:[%s6932_s26 + $0xa70] sm:$0xff] %v1616_v14  ;;  %1619 = vst [vmem:[%s6932_s26 + $0xa78] sm:$0xff] %v1618_v15  ;;  %v1622_v17 = vld [vmem:[%s6927_s25 + $0x13b8] sm:$0xff]  ;;  %v1624_v18 = vld [vmem:[%s6927_s25 + $0x13c0] sm:$0xff] }
  0xb9   : > { %1621 = vst [vmem:[%s6932_s26 + $0xa80] sm:$0xff] %v1620_v16  ;;  %1623 = vst [vmem:[%s6932_s26 + $0xa88] sm:$0xff] %v1622_v17  ;;  %v1626_v19 = vld [vmem:[%s6927_s25 + $0x13c8] sm:$0xff]  ;;  %v1628_v20 = vld [vmem:[%s6927_s25 + $0x13d0] sm:$0xff] }
  0xba   : > { %1625 = vst [vmem:[%s6932_s26 + $0xa90] sm:$0xff] %v1624_v18  ;;  %v1630_v21 = vld [vmem:[%s6927_s25 + $0x13d8] sm:$0xff]  ;;  %1627 = vst [vmem:[%s6932_s26 + $0xa98] sm:$0xff] %v1626_v19  ;;  %v1632_v22 = vld [vmem:[%s6927_s25 + $0x13e0] sm:$0xff] }
  0xbb   : > { %1629 = vst [vmem:[%s6932_s26 + $0xaa0] sm:$0xff] %v1628_v20  ;;  %1631 = vst [vmem:[%s6932_s26 + $0xaa8] sm:$0xff] %v1630_v21  ;;  %v1634_v23 = vld [vmem:[%s6927_s25 + $0x13e8] sm:$0xff]  ;;  %v1636_v24 = vld [vmem:[%s6927_s25 + $0x13f0] sm:$0xff] }
  0xbc   : > { %1633 = vst [vmem:[%s6932_s26 + $0xab0] sm:$0xff] %v1632_v22  ;;  %1635 = vst [vmem:[%s6932_s26 + $0xab8] sm:$0xff] %v1634_v23  ;;  %v1638_v25 = vld [vmem:[%s6927_s25 + $0x13f8] sm:$0xff]  ;;  %v1640_v26 = vld [vmem:[%s6927_s25 + $0x1400] sm:$0xff] }
  0xbd   : > { %1637 = vst [vmem:[%s6932_s26 + $0xac0] sm:$0xff] %v1636_v24  ;;  %v1642_v27 = vld [vmem:[%s6927_s25 + $0x1408] sm:$0xff]  ;;  %1639 = vst [vmem:[%s6932_s26 + $0xac8] sm:$0xff] %v1638_v25  ;;  %v1644_v28 = vld [vmem:[%s6927_s25 + $0x1410] sm:$0xff] }
  0xbe   : > { %1641 = vst [vmem:[%s6932_s26 + $0xad0] sm:$0xff] %v1640_v26  ;;  %1643 = vst [vmem:[%s6932_s26 + $0xad8] sm:$0xff] %v1642_v27  ;;  %v1646_v29 = vld [vmem:[%s6927_s25 + $0x1418] sm:$0xff]  ;;  %v1648_v30 = vld [vmem:[%s6927_s25 + $0x1420] sm:$0xff] }
  0xbf   : > { %1645 = vst [vmem:[%s6932_s26 + $0xae0] sm:$0xff] %v1644_v28  ;;  %1647 = vst [vmem:[%s6932_s26 + $0xae8] sm:$0xff] %v1646_v29  ;;  %v1650_v31 = vld [vmem:[%s6927_s25 + $0x1428] sm:$0xff]  ;;  %v1652_v32 = vld [vmem:[%s6927_s25 + $0x1430] sm:$0xff] }
  0xc0   : > { %1649 = vst [vmem:[%s6932_s26 + $0xaf0] sm:$0xff] %v1648_v30  ;;  %v1654_v33 = vld [vmem:[%s6927_s25 + $0x1438] sm:$0xff]  ;;  %1651 = vst [vmem:[%s6932_s26 + $0xaf8] sm:$0xff] %v1650_v31  ;;  %v1656_v34 = vld [vmem:[%s6927_s25 + $0x1440] sm:$0xff] }
  0xc1   : > { %1653 = vst [vmem:[%s6932_s26 + $0xb00] sm:$0xff] %v1652_v32  ;;  %1655 = vst [vmem:[%s6932_s26 + $0xb08] sm:$0xff] %v1654_v33  ;;  %v1658_v35 = vld [vmem:[%s6927_s25 + $0x1448] sm:$0xff]  ;;  %v1660_v36 = vld [vmem:[%s6927_s25 + $0x1450] sm:$0xff] }
  0xc2   : > { %1657 = vst [vmem:[%s6932_s26 + $0xb10] sm:$0xff] %v1656_v34  ;;  %1659 = vst [vmem:[%s6932_s26 + $0xb18] sm:$0xff] %v1658_v35  ;;  %v1662_v37 = vld [vmem:[%s6927_s25 + $0x1458] sm:$0xff]  ;;  %v1664_v38 = vld [vmem:[%s6927_s25 + $0x1460] sm:$0xff] }
  0xc3   : > { %1661 = vst [vmem:[%s6932_s26 + $0xb20] sm:$0xff] %v1660_v36  ;;  %v1666_v39 = vld [vmem:[%s6927_s25 + $0x1468] sm:$0xff]  ;;  %1663 = vst [vmem:[%s6932_s26 + $0xb28] sm:$0xff] %v1662_v37  ;;  %v1668_v40 = vld [vmem:[%s6927_s25 + $0x1470] sm:$0xff] }
  0xc4   : > { %1665 = vst [vmem:[%s6932_s26 + $0xb30] sm:$0xff] %v1664_v38  ;;  %1667 = vst [vmem:[%s6932_s26 + $0xb38] sm:$0xff] %v1666_v39  ;;  %v1670_v41 = vld [vmem:[%s6927_s25 + $0x1478] sm:$0xff]  ;;  %v1672_v42 = vld [vmem:[%s6927_s25 + $0x1480] sm:$0xff] }
  0xc5   : > { %1669 = vst [vmem:[%s6932_s26 + $0xb40] sm:$0xff] %v1668_v40  ;;  %1671 = vst [vmem:[%s6932_s26 + $0xb48] sm:$0xff] %v1670_v41  ;;  %v1674_v43 = vld [vmem:[%s6927_s25 + $0x1488] sm:$0xff]  ;;  %v1676_v44 = vld [vmem:[%s6927_s25 + $0x1490] sm:$0xff] }
  0xc6   : > { %1673 = vst [vmem:[%s6932_s26 + $0xb50] sm:$0xff] %v1672_v42  ;;  %v1678_v45 = vld [vmem:[%s6927_s25 + $0x1498] sm:$0xff]  ;;  %1675 = vst [vmem:[%s6932_s26 + $0xb58] sm:$0xff] %v1674_v43  ;;  %v1680_v46 = vld [vmem:[%s6927_s25 + $0x14a0] sm:$0xff] }
  0xc7   : > { %1677 = vst [vmem:[%s6932_s26 + $0xb60] sm:$0xff] %v1676_v44  ;;  %1679 = vst [vmem:[%s6932_s26 + $0xb68] sm:$0xff] %v1678_v45  ;;  %v1682_v47 = vld [vmem:[%s6927_s25 + $0x14a8] sm:$0xff]  ;;  %v1684_v48 = vld [vmem:[%s6927_s25 + $0x14b0] sm:$0xff] }
  0xc8   : > { %1681 = vst [vmem:[%s6932_s26 + $0xb70] sm:$0xff] %v1680_v46  ;;  %1683 = vst [vmem:[%s6932_s26 + $0xb78] sm:$0xff] %v1682_v47  ;;  %v1686_v49 = vld [vmem:[%s6927_s25 + $0x14b8] sm:$0xff]  ;;  %v1688_v50 = vld [vmem:[%s6927_s25 + $0x14c0] sm:$0xff] }
  0xc9   : > { %1685 = vst [vmem:[%s6932_s26 + $0xb80] sm:$0xff] %v1684_v48  ;;  %v1690_v51 = vld [vmem:[%s6927_s25 + $0x14c8] sm:$0xff]  ;;  %1687 = vst [vmem:[%s6932_s26 + $0xb88] sm:$0xff] %v1686_v49  ;;  %v1692_v52 = vld [vmem:[%s6927_s25 + $0x14d0] sm:$0xff] }
  0xca   : > { %1689 = vst [vmem:[%s6932_s26 + $0xb90] sm:$0xff] %v1688_v50  ;;  %1691 = vst [vmem:[%s6932_s26 + $0xb98] sm:$0xff] %v1690_v51  ;;  %v1694_v53 = vld [vmem:[%s6927_s25 + $0x14d8] sm:$0xff]  ;;  %v1696_v54 = vld [vmem:[%s6927_s25 + $0x14e0] sm:$0xff] }
  0xcb   : > { %1693 = vst [vmem:[%s6932_s26 + $0xba0] sm:$0xff] %v1692_v52  ;;  %1695 = vst [vmem:[%s6932_s26 + $0xba8] sm:$0xff] %v1694_v53  ;;  %v1698_v55 = vld [vmem:[%s6927_s25 + $0x14e8] sm:$0xff]  ;;  %v1700_v56 = vld [vmem:[%s6927_s25 + $0x14f0] sm:$0xff] }
  0xcc   : > { %1697 = vst [vmem:[%s6932_s26 + $0xbb0] sm:$0xff] %v1696_v54  ;;  %v1702_v57 = vld [vmem:[%s6927_s25 + $0x14f8] sm:$0xff]  ;;  %1699 = vst [vmem:[%s6932_s26 + $0xbb8] sm:$0xff] %v1698_v55  ;;  %v1704_v58 = vld [vmem:[%s6927_s25 + $0x1500] sm:$0xff] }
  0xcd   : > { %1701 = vst [vmem:[%s6932_s26 + $0xbc0] sm:$0xff] %v1700_v56  ;;  %1703 = vst [vmem:[%s6932_s26 + $0xbc8] sm:$0xff] %v1702_v57  ;;  %v1706_v59 = vld [vmem:[%s6927_s25 + $0x1508] sm:$0xff]  ;;  %v1708_v60 = vld [vmem:[%s6927_s25 + $0x1510] sm:$0xff] }
  0xce   : > { %1705 = vst [vmem:[%s6932_s26 + $0xbd0] sm:$0xff] %v1704_v58  ;;  %1707 = vst [vmem:[%s6932_s26 + $0xbd8] sm:$0xff] %v1706_v59  ;;  %v1710_v61 = vld [vmem:[%s6927_s25 + $0x1518] sm:$0xff]  ;;  %v1712_v62 = vld [vmem:[%s6927_s25 + $0x1520] sm:$0xff] }
  0xcf   : > { %1709 = vst [vmem:[%s6932_s26 + $0xbe0] sm:$0xff] %v1708_v60  ;;  %v1714_v63 = vld [vmem:[%s6927_s25 + $0x1528] sm:$0xff]  ;;  %1711 = vst [vmem:[%s6932_s26 + $0xbe8] sm:$0xff] %v1710_v61  ;;  %v1716_v0 = vld [vmem:[%s6927_s25 + $0x1530] sm:$0xff] }
  0xd0   : > { %1713 = vst [vmem:[%s6932_s26 + $0xbf0] sm:$0xff] %v1712_v62  ;;  %1715 = vst [vmem:[%s6932_s26 + $0xbf8] sm:$0xff] %v1714_v63  ;;  %v1718_v1 = vld [vmem:[%s6927_s25 + $0x1538] sm:$0xff]  ;;  %v1720_v2 = vld [vmem:[%s6927_s25 + $0x1540] sm:$0xff] }
  0xd1   : > { %1717 = vst [vmem:[%s6932_s26 + $0xc00] sm:$0xff] %v1716_v0  ;;  %1719 = vst [vmem:[%s6932_s26 + $0xc08] sm:$0xff] %v1718_v1  ;;  %v1722_v3 = vld [vmem:[%s6927_s25 + $0x1548] sm:$0xff]  ;;  %v1724_v4 = vld [vmem:[%s6927_s25 + $0x1550] sm:$0xff] }
  0xd2   : > { %1721 = vst [vmem:[%s6932_s26 + $0xc10] sm:$0xff] %v1720_v2  ;;  %v1726_v5 = vld [vmem:[%s6927_s25 + $0x1558] sm:$0xff]  ;;  %1723 = vst [vmem:[%s6932_s26 + $0xc18] sm:$0xff] %v1722_v3  ;;  %v1728_v6 = vld [vmem:[%s6927_s25 + $0x1560] sm:$0xff] }
  0xd3   : > { %1725 = vst [vmem:[%s6932_s26 + $0xc20] sm:$0xff] %v1724_v4  ;;  %1727 = vst [vmem:[%s6932_s26 + $0xc28] sm:$0xff] %v1726_v5  ;;  %v1730_v7 = vld [vmem:[%s6927_s25 + $0x1568] sm:$0xff] }
  0xd4   : > { %1729 = vst [vmem:[%s6932_s26 + $0xc30] sm:$0xff] %v1728_v6  ;;  %1731 = vst [vmem:[%s6932_s26 + $0xc38] sm:$0xff] %v1730_v7 }
  0xd5 PF: > { %p5327_p5 = scmp.ge.s32.totalorder %s6868_s14, 1  ;;  %p1736_p6 = scmp.lt.s32.totalorder %s6868_s14, 3 }
  0xd7   : > { %p1737_p7 = pnand %p5327_p5, %p1736_p6 }
  0xd9   : > { %1740 = sbr.rel (%p1737_p7) target bundleno = 1213 (0x4bd), region = 66 }
  0xde   : > { %v1774_v8 = vld [vmem:[%s9919_s1] sm:$0xff]  ;;  %v1775_v9 = vld [vmem:[%s9919_s1 + $0x8] sm:$0x1]  ;;  %vm2072_vm0 = vcmask 1043456   ;;  %vm2073_vm1 = vcmask 1044480   ;;  %v9922_v10 = vmov 0.0  }
  0xdf   : > { %6023 = vmatprep.subr.bf16.mxu0 %v9922_v10  ;;  %6221 = vmatprep.subr.bf16.mxu1 %v9922_v10  ;;  %v1776_v11 = vpack.c.bf16 %v1775_v9, %v1774_v8  ;;  %s1743_s4 = sand.u32 1, %s6860_s12   ;;  %v6871_v12 = vmov 65535   ;;  %vm6872_vm2 = vmmov 0   ;;  %vm1924_vm3 = vcmask 72704   ;;  %s1767_s7 = smul.u32 98, %s5322_s15 }
  0xe0   : > { %v2074_v13 = vsel %vm2072_vm0, 4294967295, %v6871_v12  ;;  %6025 = vmatprep.mubr.msk.bf16.mxu0 %vm6872_vm2, %v9922_v10  ;;  %6223 = vmatprep.mubr.msk.bf16.mxu1 %vm6872_vm2, %v9922_v10  ;;  %s6816_s5 = smul.u32 3136, %s1743_s4  ;;  %vm5161_vm4 = vcmask 130048  }
  0xe1   : > { %v2075_v14 = vsel %vm2073_vm1, %v2074_v13, 0  ;;  %p1768_p8 = scmp.lt.s32.totalorder %s1767_s7, 195 }
  0xe2   : > { %v2077_v15 = vand.u32 %v2075_v14, %v1776_v11  ;;  %s7730_s6 = scalar_lea.vmem [#allocation2], %s6816_s5 }
  0xe3   : > { %v1777_v16 = vld [vmem:[%s7730_s6] sm:$0xff]  ;;  %v1778_v17 = vld [vmem:[%s7730_s6 + $0x8] sm:$0xff]  ;;  %v5378_v18 = vld [vmem:[%s7730_s6 + $0x310] sm:$0xff]  ;;  %s10471_s7 = smov (!%p1768_p8, %s1767_s7), 195 }
  0xe4   : > { %6024 = vmatpush3.bf16.msra.mxu0 %v2077_v15  ;;  %6222 = vmatpush3.bf16.msra.mxu1 %v2077_v15  ;;  %v1875_v19 = vpack.c.bf16 %v1778_v17, %v1777_v16  ;;  %v5379_v20 = vld [vmem:[%s7730_s6 + $0x318] sm:$0xff]  ;;  %v1779_v22 = vld [vmem:[%s7730_s6 + $0x10] sm:$0xff]  ;;  %v5380_v24 = vld [vmem:[%s7730_s6 + $0x320] sm:$0xff]  ;;  %s5328_s10 = sshll.u32 %s10471_s7, 3 }
  0xe5   : > { %v2603_v21 = vpack.c.bf16 %v5379_v20, %v5378_v18  ;;  %6419 = vmatprep.subr.bf16.mxu0 %v9922_v10  ;;  %6617 = vmatprep.subr.bf16.mxu1 %v9922_v10  ;;  %v1780_v23 = vld [vmem:[%s7730_s6 + $0x18] sm:$0xff]  ;;  %v5381_v25 = vld [vmem:[%s7730_s6 + $0x328] sm:$0xff]  ;;  %v1781_v28 = vld [vmem:[%s7730_s6 + $0x20] sm:$0xff]  ;;  %s9083_s14 = scalar_lea.vmem %s9921_s3, %s5328_s10 }
  0xe6   : > { %v1876_v26 = vpack.c.bf16 %v1780_v23, %v1779_v22  ;;  %v2604_v27 = vpack.c.bf16 %v5381_v25, %v5380_v24  ;;  %v1782_v29 = vld [vmem:[%s7730_s6 + $0x28] sm:$0xff]  ;;  %v5382_v30 = vld [vmem:[%s7730_s6 + $0x330] sm:$0xff]  ;;  %v5383_v31 = vld [vmem:[%s7730_s6 + $0x338] sm:$0xff] }
  0xe7   : > { %6026 = vmatmul.mubr.msk.bf16.vlgmr.msra.gmra.mxu0 %vm1924_vm3, %v1875_v19  ;;  %6224 = vmatmul.mubr.msk.bf16.vlgmr.msra.gmra.mxu1 %vm1924_vm3, %v2603_v21  ;;  %v1877_v32 = vpack.c.bf16 %v1782_v29, %v1781_v28  ;;  %v2605_v33 = vpack.c.bf16 %v5383_v31, %v5382_v30  ;;  %v1783_v34 = vld [vmem:[%s7730_s6 + $0x30] sm:$0xff]  ;;  %v1784_v35 = vld [vmem:[%s7730_s6 + $0x38] sm:$0xff]  ;;  %v5384_v36 = vld [vmem:[%s7730_s6 + $0x340] sm:$0xff] }
  0xe8   : > { %6420 = vmatpush3.bf16.msra.mxu0 %v2077_v15  ;;  %6618 = vmatpush3.bf16.msra.mxu1 %v2077_v15  ;;  %v5385_v37 = vld [vmem:[%s7730_s6 + $0x348] sm:$0xff]  ;;  %v1878_v38 = vpack.c.bf16 %v1784_v35, %v1783_v34  ;;  %v1785_v40 = vld [vmem:[%s7730_s6 + $0x40] sm:$0xff]  ;;  %v5386_v42 = vld [vmem:[%s7730_s6 + $0x350] sm:$0xff] }
  0xe9   : > { %6029 = vmatprep.mubr.msk.bf16.mxu0 %vm6872_vm2, %v9922_v10  ;;  %6227 = vmatprep.mubr.msk.bf16.mxu1 %vm6872_vm2, %v9922_v10  ;;  %v2606_v39 = vpack.c.bf16 %v5385_v37, %v5384_v36  ;;  %v1786_v41 = vld [vmem:[%s7730_s6 + $0x48] sm:$0xff]  ;;  %v5387_v43 = vld [vmem:[%s7730_s6 + $0x358] sm:$0xff]  ;;  %v1787_v46 = vld [vmem:[%s7730_s6 + $0x50] sm:$0xff] }
  0xea   : > { %v1879_v44 = vpack.c.bf16 %v1786_v41, %v1785_v40  ;;  %v2607_v45 = vpack.c.bf16 %v5387_v43, %v5386_v42  ;;  %v1788_v47 = vld [vmem:[%s7730_s6 + $0x58] sm:$0xff]  ;;  %v5388_v48 = vld [vmem:[%s7730_s6 + $0x360] sm:$0xff]  ;;  %v5389_v49 = vld [vmem:[%s7730_s6 + $0x368] sm:$0xff] }
  0xeb   : > { %v1880_v50 = vpack.c.bf16 %v1788_v47, %v1787_v46  ;;  %v2608_v51 = vpack.c.bf16 %v5389_v49, %v5388_v48  ;;  %v1789_v52 = vld [vmem:[%s7730_s6 + $0x60] sm:$0xff]  ;;  %v1790_v53 = vld [vmem:[%s7730_s6 + $0x68] sm:$0xff]  ;;  %v5390_v54 = vld [vmem:[%s7730_s6 + $0x370] sm:$0xff] }
  0xec   : > { %v5391_v55 = vld [vmem:[%s7730_s6 + $0x378] sm:$0xff]  ;;  %v1881_v56 = vpack.c.bf16 %v1790_v53, %v1789_v52  ;;  %v1791_v58 = vld [vmem:[%s7730_s6 + $0x70] sm:$0xff]  ;;  %v5392_v60 = vld [vmem:[%s7730_s6 + $0x380] sm:$0xff] }
  0xed   : > { %v2609_v57 = vpack.c.bf16 %v5391_v55, %v5390_v54  ;;  %v1792_v59 = vld [vmem:[%s7730_s6 + $0x78] sm:$0xff]  ;;  %v5393_v61 = vld [vmem:[%s7730_s6 + $0x388] sm:$0xff]  ;;  %v1793_v0 = vld [vmem:[%s7730_s6 + $0x80] sm:$0xff] }
  0xee   : > { %v1882_v62 = vpack.c.bf16 %v1792_v59, %v1791_v58  ;;  %v2610_v63 = vpack.c.bf16 %v5393_v61, %v5392_v60  ;;  %v1794_v1 = vld [vmem:[%s7730_s6 + $0x88] sm:$0xff]  ;;  %v5394_v2 = vld [vmem:[%s7730_s6 + $0x390] sm:$0xff]  ;;  %v5395_v3 = vld [vmem:[%s7730_s6 + $0x398] sm:$0xff] }
  0xef   : > { %6030 = vmatmul.mubr.msk.bf16.gmra.mxu0 %vm1924_vm3, %v1876_v26  ;;  %6228 = vmatmul.mubr.msk.bf16.gmra.mxu1 %vm1924_vm3, %v2604_v27  ;;  %v1883_v4 = vpack.c.bf16 %v1794_v1, %v1793_v0  ;;  %v2611_v5 = vpack.c.bf16 %v5395_v3, %v5394_v2  ;;  %v1795_v6 = vld [vmem:[%s7730_s6 + $0x90] sm:$0xff]  ;;  %v1796_v7 = vld [vmem:[%s7730_s6 + $0x98] sm:$0xff]  ;;  %v5396_v8 = vld [vmem:[%s7730_s6 + $0x3a0] sm:$0xff] }
  0xf0   : > { %6033 = vmatprep.mubr.msk.bf16.mxu0 %vm6872_vm2, %v9922_v10  ;;  %6231 = vmatprep.mubr.msk.bf16.mxu1 %vm6872_vm2, %v9922_v10  ;;  %v5397_v9 = vld [vmem:[%s7730_s6 + $0x3a8] sm:$0xff]  ;;  %v1884_v11 = vpack.c.bf16 %v1796_v7, %v1795_v6  ;;  %v1797_v13 = vld [vmem:[%s7730_s6 + $0xa0] sm:$0xff]  ;;  %v5398_v15 = vld [vmem:[%s7730_s6 + $0x3b0] sm:$0xff] }
  0xf1   : > { %v2612_v12 = vpack.c.bf16 %v5397_v9, %v5396_v8  ;;  %v1798_v14 = vld [vmem:[%s7730_s6 + $0xa8] sm:$0xff]  ;;  %v5399_v16 = vld [vmem:[%s7730_s6 + $0x3b8] sm:$0xff]  ;;  %v1799_v19 = vld [vmem:[%s7730_s6 + $0xb0] sm:$0xff] }
  0xf2   : > { %v1885_v17 = vpack.c.bf16 %v1798_v14, %v1797_v13  ;;  %v2613_v18 = vpack.c.bf16 %v5399_v16, %v5398_v15  ;;  %v1800_v20 = vld [vmem:[%s7730_s6 + $0xb8] sm:$0xff]  ;;  %v5400_v21 = vld [vmem:[%s7730_s6 + $0x3c0] sm:$0xff]  ;;  %v5401_v22 = vld [vmem:[%s7730_s6 + $0x3c8] sm:$0xff] }
  0xf3   : > { %v1886_v23 = vpack.c.bf16 %v1800_v20, %v1799_v19  ;;  %v2614_v24 = vpack.c.bf16 %v5401_v22, %v5400_v21  ;;  %v1801_v25 = vld [vmem:[%s7730_s6 + $0xc0] sm:$0xff]  ;;  %v1802_v26 = vld [vmem:[%s7730_s6 + $0xc8] sm:$0xff]  ;;  %v5402_v27 = vld [vmem:[%s7730_s6 + $0x3d0] sm:$0xff] }
  0xf4   : > { %v5403_v28 = vld [vmem:[%s7730_s6 + $0x3d8] sm:$0xff]  ;;  %v1887_v29 = vpack.c.bf16 %v1802_v26, %v1801_v25  ;;  %v1803_v31 = vld [vmem:[%s7730_s6 + $0xd0] sm:$0xff]  ;;  %v5405_v34 = vld [vmem:[%s7730_s6 + $0x3e8] sm:$0xff] }
  0xf5   : > { %v2615_v30 = vpack.c.bf16 %v5403_v28, %v5402_v27  ;;  %v1805_v37 = vld [vmem:[%s7730_s6 + $0xe0] sm:$0xff]  ;;  %v5407_v40 = vld [vmem:[%s7730_s6 + $0x3f8] sm:$0xff]  ;;  %v1807_v43 = vld [vmem:[%s7730_s6 + $0xf0] sm:$0xff] }
  0xf6   : > { %v5409_v46 = vld [vmem:[%s7730_s6 + $0x408] sm:$0xff]  ;;  %v1809_v49 = vld [vmem:[%s7730_s6 + $0x100] sm:$0xff]  ;;  %v5411_v52 = vld [vmem:[%s7730_s6 + $0x418] sm:$0xff] }
  0xf7   : > { %6034 = vmatmul.mubr.msk.bf16.gmra.mxu0 %vm1924_vm3, %v1877_v32  ;;  %6232 = vmatmul.mubr.msk.bf16.gmra.mxu1 %vm1924_vm3, %v2605_v33  ;;  %v1804_v32 = vld [vmem:[%s7730_s6 + $0xd8] sm:$0xff]  ;;  %v5404_v33 = vld [vmem:[%s7730_s6 + $0x3e0] sm:$0xff]  ;;  %v1811_v55 = vld [vmem:[%s7730_s6 + $0x110] sm:$0xff] }
  0xf8   : > { %6037 = vmatprep.mubr.msk.bf16.mxu0 %vm6872_vm2, %v9922_v10  ;;  %6235 = vmatprep.mubr.msk.bf16.mxu1 %vm6872_vm2, %v9922_v10  ;;  %v1888_v35 = vpack.c.bf16 %v1804_v32, %v1803_v31  ;;  %v2616_v36 = vpack.c.bf16 %v5405_v34, %v5404_v33  ;;  %v5413_v58 = vld [vmem:[%s7730_s6 + $0x428] sm:$0xff]  ;;  %v1813_v61 = vld [vmem:[%s7730_s6 + $0x120] sm:$0xff]  ;;  %v5415_v0 = vld [vmem:[%s7730_s6 + $0x438] sm:$0xff] }
  0xf9   : > { %v1815_v3 = vld [vmem:[%s7730_s6 + $0x130] sm:$0xff]  ;;  %v5417_v6 = vld [vmem:[%s7730_s6 + $0x448] sm:$0xff]  ;;  %v1817_v9 = vld [vmem:[%s7730_s6 + $0x140] sm:$0xff] }
  0xfa   : > { %v5419_v13 = vld [vmem:[%s7730_s6 + $0x458] sm:$0xff]  ;;  %v1819_v16 = vld [vmem:[%s7730_s6 + $0x150] sm:$0xff]  ;;  %v5421_v19 = vld [vmem:[%s7730_s6 + $0x468] sm:$0xff] }
  0xfb   : > { %v1821_v22 = vld [vmem:[%s7730_s6 + $0x160] sm:$0xff]  ;;  %v5423_v25 = vld [vmem:[%s7730_s6 + $0x478] sm:$0xff]  ;;  %v1823_v28 = vld [vmem:[%s7730_s6 + $0x170] sm:$0xff] }
  0xfc   : > { %v5425_v31 = vld [vmem:[%s7730_s6 + $0x488] sm:$0xff]  ;;  %v1825_v34 = vld [vmem:[%s7730_s6 + $0x180] sm:$0xff] }
  0xff   : > { %6038 = vmatmul.mubr.msk.bf16.gmra.mxu0 %vm1924_vm3, %v1878_v38  ;;  %6236 = vmatmul.mubr.msk.bf16.gmra.mxu1 %vm1924_vm3, %v2606_v39  ;;  %v1806_v38 = vld [vmem:[%s7730_s6 + $0xe8] sm:$0xff]  ;;  %v5406_v39 = vld [vmem:[%s7730_s6 + $0x3f0] sm:$0xff] }
 0x100   : > { %6041 = vmatprep.mubr.msk.bf16.mxu0 %vm6872_vm2, %v9922_v10  ;;  %6239 = vmatprep.mubr.msk.bf16.mxu1 %vm6872_vm2, %v9922_v10  ;;  %v1889_v41 = vpack.c.bf16 %v1806_v38, %v1805_v37  ;;  %v2617_v42 = vpack.c.bf16 %v5407_v40, %v5406_v39  ;;  %v5427_v37 = vld [vmem:[%s7730_s6 + $0x498] sm:$0xff] }
 0x107   : > { %6042 = vmatmul.mubr.msk.bf16.gmra.mxu0 %vm1924_vm3, %v1879_v44  ;;  %6240 = vmatmul.mubr.msk.bf16.gmra.mxu1 %vm1924_vm3, %v2607_v45  ;;  %v1808_v44 = vld [vmem:[%s7730_s6 + $0xf8] sm:$0xff]  ;;  %v5408_v45 = vld [vmem:[%s7730_s6 + $0x400] sm:$0xff] }
 0x108   : > { %6045 = vmatprep.mubr.msk.bf16.mxu0 %vm6872_vm2, %v9922_v10  ;;  %6243 = vmatprep.mubr.msk.bf16.mxu1 %vm6872_vm2, %v9922_v10  ;;  %v1890_v47 = vpack.c.bf16 %v1808_v44, %v1807_v43  ;;  %v2618_v48 = vpack.c.bf16 %v5409_v46, %v5408_v45  ;;  %v1828_v44 = vld [vmem:[%s7730_s6 + $0x198] sm:$0xff]  ;;  %v5428_v45 = vld [vmem:[%s7730_s6 + $0x4a0] sm:$0xff]  ;;  %v5429_v46 = vld [vmem:[%s7730_s6 + $0x4a8] sm:$0xff] }
 0x10f   : > { %6046 = vmatmul.mubr.msk.bf16.gmra.mxu0 %vm1924_vm3, %v1880_v50  ;;  %6244 = vmatmul.mubr.msk.bf16.gmra.mxu1 %vm1924_vm3, %v2608_v51  ;;  %v1810_v50 = vld [vmem:[%s7730_s6 + $0x108] sm:$0xff]  ;;  %v5410_v51 = vld [vmem:[%s7730_s6 + $0x410] sm:$0xff] }
 0x110   : > { %6049 = vmatprep.mubr.msk.bf16.mxu0 %vm6872_vm2, %v9922_v10  ;;  %6247 = vmatprep.mubr.msk.bf16.mxu1 %vm6872_vm2, %v9922_v10  ;;  %v1891_v53 = vpack.c.bf16 %v1810_v50, %v1809_v49  ;;  %v2619_v54 = vpack.c.bf16 %v5411_v52, %v5410_v51  ;;  %v2628_v52 = vpack.c.bf16 %v5429_v46, %v5428_v45  ;;  %v1835_v46 = vld [vmem:[%s7730_s6 + $0x1d0] sm:$0xff] }
 0x117   : > { %6050 = vmatmul.mubr.msk.bf16.gmra.mxu0 %vm1924_vm3, %v1881_v56  ;;  %6248 = vmatmul.mubr.msk.bf16.gmra.mxu1 %vm1924_vm3, %v2609_v57  ;;  %v1812_v56 = vld [vmem:[%s7730_s6 + $0x118] sm:$0xff]  ;;  %v5412_v57 = vld [vmem:[%s7730_s6 + $0x420] sm:$0xff] }
 0x118   : > { %6053 = vmatprep.mubr.msk.bf16.mxu0 %vm6872_vm2, %v9922_v10  ;;  %6251 = vmatprep.mubr.msk.bf16.mxu1 %vm6872_vm2, %v9922_v10  ;;  %v1892_v59 = vpack.c.bf16 %v1812_v56, %v1811_v55  ;;  %v2620_v60 = vpack.c.bf16 %v5413_v58, %v5412_v57  ;;  %v1829_v58 = vld [vmem:[%s7730_s6 + $0x1a0] sm:$0xff] }
 0x11f   : > { %6054 = vmatmul.mubr.msk.bf16.gmra.mxu0 %vm1924_vm3, %v1882_v62  ;;  %6252 = vmatmul.mubr.msk.bf16.gmra.mxu1 %vm1924_vm3, %v2610_v63  ;;  %v1814_v62 = vld [vmem:[%s7730_s6 + $0x128] sm:$0xff]  ;;  %v5414_v63 = vld [vmem:[%s7730_s6 + $0x430] sm:$0xff] }
 0x120   : > { %6057 = vmatprep.mubr.msk.bf16.mxu0 %vm6872_vm2, %v9922_v10  ;;  %6255 = vmatprep.mubr.msk.bf16.mxu1 %vm6872_vm2, %v9922_v10  ;;  %v1893_v1 = vpack.c.bf16 %v1814_v62, %v1813_v61  ;;  %v2621_v2 = vpack.c.bf16 %v5415_v0, %v5414_v63  ;;  %v5430_v61 = vld [vmem:[%s7730_s6 + $0x4b0] sm:$0xff]  ;;  %v5431_v62 = vld [vmem:[%s7730_s6 + $0x4b8] sm:$0xff] }
 0x127   : > { %6058 = vmatmul.mubr.msk.bf16.gmra.mxu0 %vm1924_vm3, %v1883_v4  ;;  %6256 = vmatmul.mubr.msk.bf16.gmra.mxu1 %vm1924_vm3, %v2611_v5  ;;  %v1816_v4 = vld [vmem:[%s7730_s6 + $0x138] sm:$0xff]  ;;  %v5416_v5 = vld [vmem:[%s7730_s6 + $0x440] sm:$0xff] }
 0x128   : > { %6061 = vmatprep.mubr.msk.bf16.mxu0 %vm6872_vm2, %v9922_v10  ;;  %6259 = vmatprep.mubr.msk.bf16.mxu1 %vm6872_vm2, %v9922_v10  ;;  %v1894_v7 = vpack.c.bf16 %v1816_v4, %v1815_v3  ;;  %v2622_v8 = vpack.c.bf16 %v5417_v6, %v5416_v5  ;;  %v2629_v4 = vpack.c.bf16 %v5431_v62, %v5430_v61 }
 0x12f   : > { %6062 = vmatmul.mubr.msk.bf16.gmra.mxu0 %vm1924_vm3, %v1884_v11  ;;  %6260 = vmatmul.mubr.msk.bf16.gmra.mxu1 %vm1924_vm3, %v2612_v12  ;;  %v1818_v11 = vld [vmem:[%s7730_s6 + $0x148] sm:$0xff]  ;;  %v5418_v12 = vld [vmem:[%s7730_s6 + $0x450] sm:$0xff] }
 0x130   : > { %6065 = vmatprep.mubr.msk.bf16.mxu0 %vm6872_vm2, %v9922_v10  ;;  %6263 = vmatprep.mubr.msk.bf16.mxu1 %vm6872_vm2, %v9922_v10  ;;  %v1895_v14 = vpack.c.bf16 %v1818_v11, %v1817_v9  ;;  %v2623_v15 = vpack.c.bf16 %v5419_v13, %v5418_v12  ;;  %v1831_v11 = vld [vmem:[%s7730_s6 + $0x1b0] sm:$0xff]  ;;  %v1832_v13 = vld [vmem:[%s7730_s6 + $0x1b8] sm:$0xff] }
 0x137   : > { %6066 = vmatmul.mubr.msk.bf16.gmra.mxu0 %vm1924_vm3, %v1885_v17  ;;  %6264 = vmatmul.mubr.msk.bf16.gmra.mxu1 %vm1924_vm3, %v2613_v18  ;;  %v1820_v17 = vld [vmem:[%s7730_s6 + $0x158] sm:$0xff]  ;;  %v5420_v18 = vld [vmem:[%s7730_s6 + $0x460] sm:$0xff] }
 0x138   : > { %6069 = vmatprep.mubr.msk.bf16.mxu0 %vm6872_vm2, %v9922_v10  ;;  %6267 = vmatprep.mubr.msk.bf16.mxu1 %vm6872_vm2, %v9922_v10  ;;  %v1896_v20 = vpack.c.bf16 %v1820_v17, %v1819_v16  ;;  %v2624_v21 = vpack.c.bf16 %v5421_v19, %v5420_v18 }
 0x13f   : > { %6070 = vmatmul.mubr.msk.bf16.gmra.mxu0 %vm1924_vm3, %v1886_v23  ;;  %6268 = vmatmul.mubr.msk.bf16.gmra.mxu1 %vm1924_vm3, %v2614_v24  ;;  %v1822_v23 = vld [vmem:[%s7730_s6 + $0x168] sm:$0xff]  ;;  %v5422_v24 = vld [vmem:[%s7730_s6 + $0x470] sm:$0xff] }
 0x140   : > { %6073 = vmatprep.mubr.msk.bf16.mxu0 %vm6872_vm2, %v9922_v10  ;;  %6271 = vmatprep.mubr.msk.bf16.mxu1 %vm6872_vm2, %v9922_v10  ;;  %v1897_v26 = vpack.c.bf16 %v1822_v23, %v1821_v22  ;;  %v2625_v27 = vpack.c.bf16 %v5423_v25, %v5422_v24 }
 0x147   : > { %6074 = vmatmul.mubr.msk.bf16.gmra.mxu0 %vm1924_vm3, %v1887_v29  ;;  %6272 = vmatmul.mubr.msk.bf16.gmra.mxu1 %vm1924_vm3, %v2615_v30  ;;  %v1824_v29 = vld [vmem:[%s7730_s6 + $0x178] sm:$0xff]  ;;  %v5424_v30 = vld [vmem:[%s7730_s6 + $0x480] sm:$0xff] }
 0x148   : > { %6077 = vmatprep.mubr.msk.bf16.mxu0 %vm6872_vm2, %v9922_v10  ;;  %6275 = vmatprep.mubr.msk.bf16.mxu1 %vm6872_vm2, %v9922_v10  ;;  %v1898_v32 = vpack.c.bf16 %v1824_v29, %v1823_v28  ;;  %v2626_v33 = vpack.c.bf16 %v5425_v31, %v5424_v30  ;;  %v1834_v29 = vld [vmem:[%s7730_s6 + $0x1c8] sm:$0xff]  ;;  %v5434_v30 = vld [vmem:[%s7730_s6 + $0x4d0] sm:$0xff]  ;;  %v5435_v31 = vld [vmem:[%s7730_s6 + $0x4d8] sm:$0xff] }
 0x14f   : > { %6078 = vmatmul.mubr.msk.bf16.gmra.mxu0 %vm1924_vm3, %v1888_v35  ;;  %6276 = vmatmul.mubr.msk.bf16.gmra.mxu1 %vm1924_vm3, %v2616_v36  ;;  %v1826_v35 = vld [vmem:[%s7730_s6 + $0x188] sm:$0xff]  ;;  %v5426_v36 = vld [vmem:[%s7730_s6 + $0x490] sm:$0xff] }
 0x150   : > { %6081 = vmatprep.mubr.msk.bf16.mxu0 %vm6872_vm2, %v9922_v10  ;;  %6279 = vmatprep.mubr.msk.bf16.mxu1 %vm6872_vm2, %v9922_v10  ;;  %v1899_v38 = vpack.c.bf16 %v1826_v35, %v1825_v34  ;;  %v2627_v39 = vpack.c.bf16 %v5427_v37, %v5426_v36  ;;  %v2631_v37 = vpack.c.bf16 %v5435_v31, %v5434_v30 }
 0x157   : > { %6082 = vmatmul.mubr.msk.bf16.gmra.mxu0 %vm1924_vm3, %v1889_v41  ;;  %6280 = vmatmul.mubr.msk.bf16.gmra.mxu1 %vm1924_vm3, %v2617_v42  ;;  %v1827_v42 = vld [vmem:[%s7730_s6 + $0x190] sm:$0xff] }
 0x158   : > { %6085 = vmatprep.mubr.msk.bf16.mxu0 %vm6872_vm2, %v9922_v10  ;;  %6283 = vmatprep.mubr.msk.bf16.mxu1 %vm6872_vm2, %v9922_v10  ;;  %v1900_v51 = vpack.c.bf16 %v1828_v44, %v1827_v42 }
 0x15f   : > { %6086 = vmatmul.mubr.msk.bf16.gmra.mxu0 %vm1924_vm3, %v1890_v47  ;;  %6284 = vmatmul.mubr.msk.bf16.gmra.mxu1 %vm1924_vm3, %v2618_v48 }
 0x160   : > { %6089 = vmatprep.mubr.msk.bf16.mxu0 %vm6872_vm2, %v9922_v10  ;;  %6287 = vmatprep.mubr.msk.bf16.mxu1 %vm6872_vm2, %v9922_v10 }
 0x167   : > { %6090 = vmatmul.mubr.msk.bf16.gmra.mxu0 %vm1924_vm3, %v1891_v53  ;;  %6288 = vmatmul.mubr.msk.bf16.gmra.mxu1 %vm1924_vm3, %v2619_v54 }
 0x168   : > { %6093 = vmatprep.mubr.msk.bf16.mxu0 %vm6872_vm2, %v9922_v10  ;;  %6291 = vmatprep.mubr.msk.bf16.mxu1 %vm6872_vm2, %v9922_v10 }
 0x16f   : > { %6094 = vmatmul.mubr.msk.bf16.gmra.mxu0 %vm1924_vm3, %v1892_v59  ;;  %6292 = vmatmul.mubr.msk.bf16.gmra.mxu1 %vm1924_vm3, %v2620_v60  ;;  %v1830_v60 = vld [vmem:[%s7730_s6 + $0x1a8] sm:$0xff] }
 0x170   : > { %6097 = vmatprep.mubr.msk.bf16.mxu0 %vm6872_vm2, %v9922_v10  ;;  %6295 = vmatprep.mubr.msk.bf16.mxu1 %vm6872_vm2, %v9922_v10  ;;  %v1901_v3 = vpack.c.bf16 %v1830_v60, %v1829_v58 }
 0x177   : > { %6098 = vmatmul.mubr.msk.bf16.gmra.mxu0 %vm1924_vm3, %v1893_v1  ;;  %6296 = vmatmul.mubr.msk.bf16.gmra.mxu1 %vm1924_vm3, %v2621_v2 }
 0x178   : > { %6101 = vmatprep.mubr.msk.bf16.mxu0 %vm6872_vm2, %v9922_v10  ;;  %6299 = vmatprep.mubr.msk.bf16.mxu1 %vm6872_vm2, %v9922_v10 }
 0x17f   : > { %6102 = vmatmul.mubr.msk.bf16.gmra.mxu0 %vm1924_vm3, %v1894_v7  ;;  %6300 = vmatmul.mubr.msk.bf16.gmra.mxu1 %vm1924_vm3, %v2622_v8 }
 0x180   : > { %6105 = vmatprep.mubr.msk.bf16.mxu0 %vm6872_vm2, %v9922_v10  ;;  %6303 = vmatprep.mubr.msk.bf16.mxu1 %vm6872_vm2, %v9922_v10 }
 0x187   : > { %6106 = vmatmul.mubr.msk.bf16.gmra.mxu0 %vm1924_vm3, %v1895_v14  ;;  %6304 = vmatmul.mubr.msk.bf16.gmra.mxu1 %vm1924_vm3, %v2623_v15  ;;  %v5432_v14 = vld [vmem:[%s7730_s6 + $0x4c0] sm:$0xff]  ;;  %v5433_v15 = vld [vmem:[%s7730_s6 + $0x4c8] sm:$0xff] }
 0x188   : > { %6109 = vmatprep.mubr.msk.bf16.mxu0 %vm6872_vm2, %v9922_v10  ;;  %6307 = vmatprep.mubr.msk.bf16.mxu1 %vm6872_vm2, %v9922_v10 }
 0x18f   : > { %6110 = vmatmul.mubr.msk.bf16.gmra.mxu0 %vm1924_vm3, %v1896_v20  ;;  %6308 = vmatmul.mubr.msk.bf16.gmra.mxu1 %vm1924_vm3, %v2624_v21  ;;  %v1902_v20 = vpack.c.bf16 %v1832_v13, %v1831_v11  ;;  %v2630_v21 = vpack.c.bf16 %v5433_v15, %v5432_v14  ;;  %v1838_v13 = vld [vmem:[%s7730_s6 + $0x1e8] sm:$0xff]  ;;  %v5438_v14 = vld [vmem:[%s7730_s6 + $0x4f0] sm:$0xff]  ;;  %v5439_v15 = vld [vmem:[%s7730_s6 + $0x4f8] sm:$0xff] }
 0x190   : > { %6113 = vmatprep.mubr.msk.bf16.mxu0 %vm6872_vm2, %v9922_v10  ;;  %6311 = vmatprep.mubr.msk.bf16.mxu1 %vm6872_vm2, %v9922_v10 }
 0x197   : > { %6114 = vmatmul.mubr.msk.bf16.gmra.mxu0 %vm1924_vm3, %v1897_v26  ;;  %6312 = vmatmul.mubr.msk.bf16.gmra.mxu1 %vm1924_vm3, %v2625_v27  ;;  %v1833_v27 = vld [vmem:[%s7730_s6 + $0x1c0] sm:$0xff] }
 0x198   : > { %6117 = vmatprep.mubr.msk.bf16.mxu0 %vm6872_vm2, %v9922_v10  ;;  %6315 = vmatprep.mubr.msk.bf16.mxu1 %vm6872_vm2, %v9922_v10  ;;  %v1903_v36 = vpack.c.bf16 %v1834_v29, %v1833_v27 }
 0x19f   : > { %6118 = vmatmul.mubr.msk.bf16.gmra.mxu0 %vm1924_vm3, %v1898_v32  ;;  %6316 = vmatmul.mubr.msk.bf16.gmra.mxu1 %vm1924_vm3, %v2626_v33 }
 0x1a0   : > { %6121 = vmatprep.mubr.msk.bf16.mxu0 %vm6872_vm2, %v9922_v10  ;;  %6319 = vmatprep.mubr.msk.bf16.mxu1 %vm6872_vm2, %v9922_v10 }
 0x1a7   : > { %v7978_v40 = vpop.f32.mrf.mxu0  ;;  %6122 = vmatmul.mubr.msk.bf16.gmra.mxu0 %vm1924_vm3, %v1899_v38  ;;  %v7981_v41 = vpop.f32.mrf.mxu1  ;;  %6320 = vmatmul.mubr.msk.bf16.gmra.mxu1 %vm1924_vm3, %v2627_v39 }
 0x1a8   : > { %6125 = vmatprep.mubr.msk.bf16.mxu0 %vm6872_vm2, %v9922_v10  ;;  %6323 = vmatprep.mubr.msk.bf16.mxu1 %vm6872_vm2, %v9922_v10 }
 0x1a9   : > { %v6027_v47 = vpop.f32.mrf.mxu0  ;;  %v6225_v48 = vpop.f32.mrf.mxu1 }
 0x1aa   : > { %v1836_v48 = vld [vmem:[%s7730_s6 + $0x1d8] sm:$0xff] }
 0x1ab   : > { %v7994_v49 = vpop.f32.mrf.mxu0  ;;  %v7996_v50 = vpop.f32.mrf.mxu1  ;;  %v1904_v61 = vpack.c.bf16 %v1836_v48, %v1835_v46 }
 0x1ad   : > { %v6028_v54 = vpop.f32.mrf.mxu0  ;;  %v6226_v55 = vpop.f32.mrf.mxu1 }
 0x1af   : > { %v8000_v56 = vpop.f32.mrf.mxu0  ;;  %6126 = vmatmul.mubr.msk.bf16.gmra.mxu0 %vm1924_vm3, %v1900_v51  ;;  %v8003_v57 = vpop.f32.mrf.mxu1  ;;  %6324 = vmatmul.mubr.msk.bf16.gmra.mxu1 %vm1924_vm3, %v2628_v52  ;;  %v5436_v51 = vld [vmem:[%s7730_s6 + $0x4e0] sm:$0xff]  ;;  %v5437_v52 = vld [vmem:[%s7730_s6 + $0x4e8] sm:$0xff] }
 0x1b0   : > { %6129 = vmatprep.mubr.msk.bf16.mxu0 %vm6872_vm2, %v9922_v10  ;;  %6327 = vmatprep.mubr.msk.bf16.mxu1 %vm6872_vm2, %v9922_v10  ;;  %v2632_v62 = vpack.c.bf16 %v5437_v52, %v5436_v51 }
 0x1b1   : > { %v6031_v63 = vpop.f32.mrf.mxu0  ;;  %v6229_v0 = vpop.f32.mrf.mxu1 }
 0x1b3   : > { %v8016_v1 = vpop.f32.mrf.mxu0  ;;  %v8018_v2 = vpop.f32.mrf.mxu1 }
 0x1b5   : > { %v6032_v6 = vpop.f32.mrf.mxu0  ;;  %v6230_v7 = vpop.f32.mrf.mxu1 }
 0x1b6   : > { %v1837_v7 = vld [vmem:[%s7730_s6 + $0x1e0] sm:$0xff] }
 0x1b7   : > { %v8022_v8 = vpop.f32.mrf.mxu0  ;;  %6130 = vmatmul.mubr.msk.bf16.gmra.mxu0 %vm1924_vm3, %v1901_v3  ;;  %v8025_v9 = vpop.f32.mrf.mxu1  ;;  %6328 = vmatmul.mubr.msk.bf16.gmra.mxu1 %vm1924_vm3, %v2629_v4 }
 0x1b8   : > { %6133 = vmatprep.mubr.msk.bf16.mxu0 %vm6872_vm2, %v9922_v10  ;;  %6331 = vmatprep.mubr.msk.bf16.mxu1 %vm6872_vm2, %v9922_v10 }
 0x1b9   : > { %v6035_v16 = vpop.f32.mrf.mxu0  ;;  %v6233_v17 = vpop.f32.mrf.mxu1 }
 0x1bb   : > { %v8038_v18 = vpop.f32.mrf.mxu0  ;;  %v8040_v19 = vpop.f32.mrf.mxu1 }
 0x1bd   : > { %v6036_v23 = vpop.f32.mrf.mxu0  ;;  %v6234_v24 = vpop.f32.mrf.mxu1 }
 0x1be   : > { %v1905_v23 = vpack.c.bf16 %v1838_v13, %v1837_v7  ;;  %v2633_v24 = vpack.c.bf16 %v5439_v15, %v5438_v14  ;;  %v1841_v13 = vld [vmem:[%s7730_s6 + $0x200] sm:$0xff]  ;;  %v1842_v15 = vld [vmem:[%s7730_s6 + $0x208] sm:$0xff] }
 0x1bf   : > { %v8044_v25 = vpop.f32.mrf.mxu0  ;;  %6134 = vmatmul.mubr.msk.bf16.gmra.mxu0 %vm1924_vm3, %v1902_v20  ;;  %v8047_v26 = vpop.f32.mrf.mxu1  ;;  %6332 = vmatmul.mubr.msk.bf16.gmra.mxu1 %vm1924_vm3, %v2630_v21 }
 0x1c0   : > { %6137 = vmatprep.mubr.msk.bf16.mxu0 %vm6872_vm2, %v9922_v10  ;;  %6335 = vmatprep.mubr.msk.bf16.mxu1 %vm6872_vm2, %v9922_v10 }
 0x1c1   : > { %v6039_v32 = vpop.f32.mrf.mxu0  ;;  %v6237_v33 = vpop.f32.mrf.mxu1 }
 0x1c2   : > { %v1839_v33 = vld [vmem:[%s7730_s6 + $0x1f0] sm:$0xff] }
 0x1c3   : > { %v8060_v34 = vpop.f32.mrf.mxu0  ;;  %v8062_v35 = vpop.f32.mrf.mxu1 }
 0x1c5   : > { %v6040_v39 = vpop.f32.mrf.mxu0  ;;  %v6238_v42 = vpop.f32.mrf.mxu1 }
 0x1c6   : > { %v5440_v39 = vld [vmem:[%s7730_s6 + $0x500] sm:$0xff]  ;;  %v5441_v42 = vld [vmem:[%s7730_s6 + $0x508] sm:$0xff] }
 0x1c7   : > { %v8066_v44 = vpop.f32.mrf.mxu0  ;;  %6138 = vmatmul.mubr.msk.bf16.gmra.mxu0 %vm1924_vm3, %v1903_v36  ;;  %v8069_v45 = vpop.f32.mrf.mxu1  ;;  %6336 = vmatmul.mubr.msk.bf16.gmra.mxu1 %vm1924_vm3, %v2631_v37  ;;  %v1840_v37 = vld [vmem:[%s7730_s6 + $0x1f8] sm:$0xff] }
 0x1c8   : > { %6141 = vmatprep.mubr.msk.bf16.mxu0 %vm6872_vm2, %v9922_v10  ;;  %6339 = vmatprep.mubr.msk.bf16.mxu1 %vm6872_vm2, %v9922_v10 }
 0x1c9   : > { %v6043_v54 = vpop.f32.mrf.mxu0  ;;  %v6241_v55 = vpop.f32.mrf.mxu1 }
 0x1ca   : > { %v1906_v54 = vpack.c.bf16 %v1840_v37, %v1839_v33  ;;  %v2634_v55 = vpack.c.bf16 %v5441_v42, %v5440_v39  ;;  %v1907_v33 = vpack.c.bf16 %v1842_v15, %v1841_v13  ;;  %v5444_v13 = vld [vmem:[%s7730_s6 + $0x520] sm:$0xff]  ;;  %v5445_v15 = vld [vmem:[%s7730_s6 + $0x528] sm:$0xff] }
 0x1cb   : > { %v8082_v58 = vpop.f32.mrf.mxu0  ;;  %v8084_v60 = vpop.f32.mrf.mxu1 }
 0x1cd   : > { %v6044_v0 = vpop.f32.mrf.mxu0  ;;  %v6242_v3 = vpop.f32.mrf.mxu1 }
 0x1cf   : > { %v8088_v4 = vpop.f32.mrf.mxu0  ;;  %6142 = vmatmul.mubr.msk.bf16.gmra.mxu0 %vm1924_vm3, %v1904_v61  ;;  %v8091_v6 = vpop.f32.mrf.mxu1  ;;  %6340 = vmatmul.mubr.msk.bf16.gmra.mxu1 %vm1924_vm3, %v2632_v62 }
 0x1d0   : > { %6145 = vmatprep.mubr.msk.bf16.mxu0 %vm6872_vm2, %v9922_v10  ;;  %6343 = vmatprep.mubr.msk.bf16.mxu1 %vm6872_vm2, %v9922_v10 }
 0x1d1   : > { %v6047_v16 = vpop.f32.mrf.mxu0  ;;  %v6245_v17 = vpop.f32.mrf.mxu1 }
 0x1d2   : > { %v5442_v16 = vld [vmem:[%s7730_s6 + $0x510] sm:$0xff]  ;;  %v5443_v17 = vld [vmem:[%s7730_s6 + $0x518] sm:$0xff] }
 0x1d3   : > { %v8104_v20 = vpop.f32.mrf.mxu0  ;;  %v8106_v21 = vpop.f32.mrf.mxu1  ;;  %v2635_v37 = vpack.c.bf16 %v5443_v17, %v5442_v16 }
 0x1d5   : > { %v6048_v29 = vpop.f32.mrf.mxu0  ;;  %v6246_v30 = vpop.f32.mrf.mxu1 }
 0x1d7   : > { %v8110_v31 = vpop.f32.mrf.mxu0  ;;  %6146 = vmatmul.mubr.msk.bf16.gmra.mxu0 %vm1924_vm3, %v1905_v23  ;;  %v8113_v32 = vpop.f32.mrf.mxu1  ;;  %6344 = vmatmul.mubr.msk.bf16.gmra.mxu1 %vm1924_vm3, %v2633_v24 }
 0x1d8   : > { %6149 = vmatprep.mubr.msk.bf16.mxu0 %vm6872_vm2, %v9922_v10  ;;  %6347 = vmatprep.mubr.msk.bf16.mxu1 %vm6872_vm2, %v9922_v10 }
 0x1d9   : > { %v6051_v46 = vpop.f32.mrf.mxu0  ;;  %v6249_v48 = vpop.f32.mrf.mxu1 }
 0x1db   : > { %v8126_v51 = vpop.f32.mrf.mxu0  ;;  %v8128_v52 = vpop.f32.mrf.mxu1 }
 0x1dd   : > { %v6052_v62 = vpop.f32.mrf.mxu0  ;;  %v6250_v0 = vpop.f32.mrf.mxu1 }
 0x1de   : > { %v1844_v0 = vld [vmem:[%s7730_s6 + $0x218] sm:$0xff] }
 0x1df   : > { %v8132_v3 = vpop.f32.mrf.mxu0  ;;  %6150 = vmatmul.mubr.msk.bf16.gmra.mxu0 %vm1924_vm3, %v1906_v54  ;;  %v8135_v7 = vpop.f32.mrf.mxu1  ;;  %6348 = vmatmul.mubr.msk.bf16.gmra.mxu1 %vm1924_vm3, %v2634_v55  ;;  %v1843_v55 = vld [vmem:[%s7730_s6 + $0x210] sm:$0xff] }
 0x1e0   : > { %6153 = vmatprep.mubr.msk.bf16.mxu0 %vm6872_vm2, %v9922_v10  ;;  %6351 = vmatprep.mubr.msk.bf16.mxu1 %vm6872_vm2, %v9922_v10 }
 0x1e1   : > { %v6055_v23 = vpop.f32.mrf.mxu0  ;;  %v6253_v24 = vpop.f32.mrf.mxu1 }
 0x1e3   : > { %v8148_v29 = vpop.f32.mrf.mxu0  ;;  %v8150_v30 = vpop.f32.mrf.mxu1 }
 0x1e5   : > { %v6056_v42 = vpop.f32.mrf.mxu0  ;;  %v6254_v46 = vpop.f32.mrf.mxu1 }
 0x1e7   : > { %v8154_v48 = vpop.f32.mrf.mxu0  ;;  %6154 = vmatmul.mubr.msk.bf16.gmra.mxu0 %vm1924_vm3, %v1907_v33  ;;  %v8157_v54 = vpop.f32.mrf.mxu1  ;;  %6352 = vmatmul.mubr.msk.bf16.gmra.mxu1 %vm1924_vm3, %v2635_v37  ;;  %v1908_v33 = vpack.c.bf16 %v1844_v0, %v1843_v55  ;;  %v2636_v37 = vpack.c.bf16 %v5445_v15, %v5444_v13  ;;  %v1846_v55 = vld [vmem:[%s7730_s6 + $0x228] sm:$0xff]  ;;  %v5447_v0 = vld [vmem:[%s7730_s6 + $0x538] sm:$0xff] }
 0x1e8   : > { %6157 = vmatprep.mubr.msk.bf16.mxu0 %vm6872_vm2, %v9922_v10  ;;  %6355 = vmatprep.mubr.msk.bf16.mxu1 %vm6872_vm2, %v9922_v10 }
 0x1e9   : > { %v6059_v16 = vpop.f32.mrf.mxu0  ;;  %v6257_v17 = vpop.f32.mrf.mxu1 }
 0x1ea   : > { %v1845_v17 = vld [vmem:[%s7730_s6 + $0x220] sm:$0xff] }
 0x1eb   : > { %v8170_v23 = vpop.f32.mrf.mxu0  ;;  %v8172_v24 = vpop.f32.mrf.mxu1 }
 0x1ed   : > { %v6060_v46 = vpop.f32.mrf.mxu0  ;;  %v6258_v62 = vpop.f32.mrf.mxu1 }
 0x1ee   : > { %v5446_v62 = vld [vmem:[%s7730_s6 + $0x530] sm:$0xff]  ;;  %v1909_v46 = vpack.c.bf16 %v1846_v55, %v1845_v17  ;;  %v5449_v17 = vld [vmem:[%s7730_s6 + $0x548] sm:$0xff] }
 0x1ef   : > { %v8176_v39 = vpop.f32.mrf.mxu0  ;;  %6158 = vmatmul.mubr.msk.bf16.gmra.mxu0 %vm1924_vm3, %v1908_v33  ;;  %v8179_v16 = vpop.f32.mrf.mxu1  ;;  %6356 = vmatmul.mubr.msk.bf16.gmra.mxu1 %vm1924_vm3, %v2636_v37  ;;  %v2637_v14 = vpack.c.bf16 %v5447_v0, %v5446_v62 }
 0x1f0   : > { %6161 = vmatprep.mubr.msk.bf16.mxu0 %vm6872_vm2, %v9922_v10  ;;  %6359 = vmatprep.mubr.msk.bf16.mxu1 %vm6872_vm2, %v9922_v10 }
 0x1f1   : > { %v6063_v13 = vpop.f32.mrf.mxu0  ;;  %v6261_v15 = vpop.f32.mrf.mxu1 }
 0x1f2   : > { %v1847_v15 = vld [vmem:[%s7730_s6 + $0x230] sm:$0xff] }
 0x1f3   : > { %v8192_v33 = vpop.f32.mrf.mxu0  ;;  %v8194_v37 = vpop.f32.mrf.mxu1 }
 0x1f5   : > { %v6064_v61 = vpop.f32.mrf.mxu0  ;;  %v6262_v36 = vpop.f32.mrf.mxu1 }
 0x1f6   : > { %v1848_v61 = vld [vmem:[%s7730_s6 + $0x238] sm:$0xff]  ;;  %v5448_v36 = vld [vmem:[%s7730_s6 + $0x540] sm:$0xff] }
 0x1f7   : > { %v8198_v27 = vpop.f32.mrf.mxu0  ;;  %6162 = vmatmul.mubr.msk.bf16.gmra.mxu0 %vm1924_vm3, %v1909_v46  ;;  %v8201_v13 = vpop.f32.mrf.mxu1  ;;  %6360 = vmatmul.mubr.msk.bf16.gmra.mxu1 %vm1924_vm3, %v2637_v14  ;;  %v1910_v46 = vpack.c.bf16 %v1848_v61, %v1847_v15  ;;  %v2638_v11 = vpack.c.bf16 %v5449_v17, %v5448_v36  ;;  %v5451_v15 = vld [vmem:[%s7730_s6 + $0x558] sm:$0xff] }
 0x1f8   : > { %6165 = vmatprep.mubr.msk.bf16.mxu0 %vm6872_vm2, %v9922_v10  ;;  %6363 = vmatprep.mubr.msk.bf16.mxu1 %vm6872_vm2, %v9922_v10 }
 0x1f9   : > { %v6067_v55 = vpop.f32.mrf.mxu0  ;;  %v6265_v62 = vpop.f32.mrf.mxu1 }
 0x1fa   : > { %v1849_v62 = vld [vmem:[%s7730_s6 + $0x240] sm:$0xff] }
 0x1fb   : > { %v8214_v0 = vpop.f32.mrf.mxu0  ;;  %v8216_v14 = vpop.f32.mrf.mxu1 }
 0x1fd   : > { %v6068_v63 = vpop.f32.mrf.mxu0  ;;  %v6266_v47 = vpop.f32.mrf.mxu1 }
 0x1fe   : > { %v1850_v63 = vld [vmem:[%s7730_s6 + $0x248] sm:$0xff]  ;;  %v5450_v47 = vld [vmem:[%s7730_s6 + $0x550] sm:$0xff] }
 0x1ff   : > { %v8220_v38 = vpop.f32.mrf.mxu0  ;;  %6166 = vmatmul.mubr.msk.bf16.gmra.mxu0 %vm1924_vm3, %v1910_v46  ;;  %v8223_v55 = vpop.f32.mrf.mxu1  ;;  %6364 = vmatmul.mubr.msk.bf16.gmra.mxu1 %vm1924_vm3, %v2638_v11  ;;  %v1911_v46 = vpack.c.bf16 %v1850_v63, %v1849_v62  ;;  %v2639_v28 = vpack.c.bf16 %v5451_v15, %v5450_v47  ;;  %v5453_v62 = vld [vmem:[%s7730_s6 + $0x568] sm:$0xff] }
 0x200   : > { %6169 = vmatprep.mubr.msk.bf16.mxu0 %vm6872_vm2, %v9922_v10  ;;  %6367 = vmatprep.mubr.msk.bf16.mxu1 %vm6872_vm2, %v9922_v10 }
 0x201   : > { %v6071_v61 = vpop.f32.mrf.mxu0  ;;  %v6269_v36 = vpop.f32.mrf.mxu1 }
 0x202   : > { %v1851_v36 = vld [vmem:[%s7730_s6 + $0x250] sm:$0xff] }
 0x203   : > { %v8236_v17 = vpop.f32.mrf.mxu0  ;;  %v8238_v11 = vpop.f32.mrf.mxu1 }
 0x204   : > { %10072 = vst [vmem:[#allocation3_spill] sm:$0xff] %v8238_v11 }
 0x205   : > { %v6072_v22 = vpop.f32.mrf.mxu0  ;;  %v6270_v12 = vpop.f32.mrf.mxu1 }
 0x206   : > { %v1852_v22 = vld [vmem:[%s7730_s6 + $0x258] sm:$0xff]  ;;  %v5452_v12 = vld [vmem:[%s7730_s6 + $0x560] sm:$0xff] }
 0x207   : > { %v8242_v5 = vpop.f32.mrf.mxu0  ;;  %6170 = vmatmul.mubr.msk.bf16.gmra.mxu0 %vm1924_vm3, %v1911_v46  ;;  %v8245_v61 = vpop.f32.mrf.mxu1  ;;  %6368 = vmatmul.mubr.msk.bf16.gmra.mxu1 %vm1924_vm3, %v2639_v28  ;;  %v1912_v46 = vpack.c.bf16 %v1852_v22, %v1851_v36  ;;  %v2640_v59 = vpack.c.bf16 %v5453_v62, %v5452_v12  ;;  %v5455_v36 = vld [vmem:[%s7730_s6 + $0x578] sm:$0xff] }
 0x208   : > { %10073 = vst [vmem:[#allocation4_spill] sm:$0xff] %v8242_v5  ;;  %10074 = vst [vmem:[#allocation5_spill] sm:$0xff] %v8245_v61  ;;  %6173 = vmatprep.mubr.msk.bf16.mxu0 %vm6872_vm2, %v9922_v10  ;;  %6371 = vmatprep.mubr.msk.bf16.mxu1 %vm6872_vm2, %v9922_v10  ;;  %v10079_v5 = vmov 0.0  }
 0x209   : > { %v6075_v63 = vpop.f32.mrf.mxu0  ;;  %v6273_v47 = vpop.f32.mrf.mxu1 }
 0x20a   : > { %v1853_v47 = vld [vmem:[%s7730_s6 + $0x260] sm:$0xff] }
 0x20b   : > { %v8258_v15 = vpop.f32.mrf.mxu0  ;;  %v8260_v28 = vpop.f32.mrf.mxu1 }
 0x20c   : > { %10075 = vst [vmem:[#allocation6_spill] sm:$0xff] %v8258_v15  ;;  %10076 = vst [vmem:[#allocation7_spill] sm:$0xff] %v8260_v28 }
 0x20d   : > { %v6076_v53 = vpop.f32.mrf.mxu0  ;;  %v6274_v43 = vpop.f32.mrf.mxu1 }
 0x20e   : > { %v1854_v53 = vld [vmem:[%s7730_s6 + $0x268] sm:$0xff]  ;;  %v5454_v43 = vld [vmem:[%s7730_s6 + $0x570] sm:$0xff] }
 0x20f   : > { %v8264_v10 = vpop.f32.mrf.mxu0  ;;  %6174 = vmatmul.mubr.msk.bf16.gmra.mxu0 %vm1924_vm3, %v1912_v46  ;;  %v8267_v63 = vpop.f32.mrf.mxu1  ;;  %6372 = vmatmul.mubr.msk.bf16.gmra.mxu1 %vm1924_vm3, %v2640_v59  ;;  %v1913_v46 = vpack.c.bf16 %v1854_v53, %v1853_v47  ;;  %v2641_v61 = vpack.c.bf16 %v5455_v36, %v5454_v43  ;;  %v5457_v47 = vld [vmem:[%s7730_s6 + $0x588] sm:$0xff] }
 0x210   : > { %10077 = vst [vmem:[#allocation8_spill] sm:$0xff] %v8264_v10  ;;  %10078 = vst [vmem:[#allocation9_spill] sm:$0xff] %v8267_v63  ;;  %6177 = vmatprep.mubr.msk.bf16.mxu0 %vm6872_vm2, %v10079_v5  ;;  %6375 = vmatprep.mubr.msk.bf16.mxu1 %vm6872_vm2, %v10079_v5 }
 0x211   : > { %v6079_v22 = vpop.f32.mrf.mxu0  ;;  %v6277_v12 = vpop.f32.mrf.mxu1 }
 0x212   : > { %v1855_v12 = vld [vmem:[%s7730_s6 + $0x270] sm:$0xff] }
 0x213   : > { %v8280_v62 = vpop.f32.mrf.mxu0  ;;  %v8282_v59 = vpop.f32.mrf.mxu1 }
 0x214   : > { %10080 = vst [vmem:[#allocation10_spill] sm:$0xff] %v8280_v62  ;;  %10081 = vst [vmem:[#allocation11_spill] sm:$0xff] %v8282_v59 }
 0x215   : > { %v6080_v63 = vpop.f32.mrf.mxu0  ;;  %v6278_v10 = vpop.f32.mrf.mxu1 }
 0x216   : > { %v1856_v63 = vld [vmem:[%s7730_s6 + $0x278] sm:$0xff]  ;;  %v5456_v10 = vld [vmem:[%s7730_s6 + $0x580] sm:$0xff] }
 0x217   : > { %v8286_v28 = vpop.f32.mrf.mxu0  ;;  %6178 = vmatmul.mubr.msk.bf16.gmra.mxu0 %vm1924_vm3, %v1913_v46  ;;  %v8289_v22 = vpop.f32.mrf.mxu1  ;;  %6376 = vmatmul.mubr.msk.bf16.gmra.mxu1 %vm1924_vm3, %v2641_v61  ;;  %v1914_v46 = vpack.c.bf16 %v1856_v63, %v1855_v12  ;;  %v2642_v15 = vpack.c.bf16 %v5457_v47, %v5456_v10  ;;  %v5459_v12 = vld [vmem:[%s7730_s6 + $0x598] sm:$0xff] }
 0x218   : > { %10082 = vst [vmem:[#allocation12_spill] sm:$0xff] %v8286_v28  ;;  %10083 = vst [vmem:[#allocation13_spill] sm:$0xff] %v8289_v22  ;;  %6181 = vmatprep.mubr.msk.bf16.mxu0 %vm6872_vm2, %v10079_v5  ;;  %6379 = vmatprep.mubr.msk.bf16.mxu1 %vm6872_vm2, %v10079_v5 }
 0x219   : > { %v6083_v53 = vpop.f32.mrf.mxu0  ;;  %v6281_v43 = vpop.f32.mrf.mxu1 }
 0x21a   : > { %v1857_v43 = vld [vmem:[%s7730_s6 + $0x280] sm:$0xff] }
 0x21b   : > { %v8302_v36 = vpop.f32.mrf.mxu0  ;;  %v8304_v61 = vpop.f32.mrf.mxu1 }
 0x21c   : > { %10084 = vst [vmem:[#allocation14_spill] sm:$0xff] %v8302_v36  ;;  %10085 = vst [vmem:[#allocation15_spill] sm:$0xff] %v8304_v61 }
 0x21d   : > { %v6084_v22 = vpop.f32.mrf.mxu0  ;;  %v6282_v28 = vpop.f32.mrf.mxu1 }
 0x21e   : > { %v1858_v22 = vld [vmem:[%s7730_s6 + $0x288] sm:$0xff]  ;;  %v5458_v28 = vld [vmem:[%s7730_s6 + $0x590] sm:$0xff] }
 0x21f   : > { %v8308_v59 = vpop.f32.mrf.mxu0  ;;  %6182 = vmatmul.mubr.msk.bf16.gmra.mxu0 %vm1924_vm3, %v1914_v46  ;;  %v8311_v53 = vpop.f32.mrf.mxu1  ;;  %6380 = vmatmul.mubr.msk.bf16.gmra.mxu1 %vm1924_vm3, %v2642_v15  ;;  %v1915_v46 = vpack.c.bf16 %v1858_v22, %v1857_v43  ;;  %v2643_v62 = vpack.c.bf16 %v5459_v12, %v5458_v28  ;;  %v5461_v43 = vld [vmem:[%s7730_s6 + $0x5a8] sm:$0xff] }
 0x220   : > { %10086 = vst [vmem:[#allocation16_spill] sm:$0xff] %v8308_v59  ;;  %10087 = vst [vmem:[#allocation17_spill] sm:$0xff] %v8311_v53  ;;  %6185 = vmatprep.mubr.msk.bf16.mxu0 %vm6872_vm2, %v10079_v5  ;;  %6383 = vmatprep.mubr.msk.bf16.mxu1 %vm6872_vm2, %v10079_v5 }
 0x221   : > { %v6087_v63 = vpop.f32.mrf.mxu0  ;;  %v6285_v10 = vpop.f32.mrf.mxu1 }
 0x222   : > { %v1859_v10 = vld [vmem:[%s7730_s6 + $0x290] sm:$0xff] }
 0x223   : > { %v8324_v47 = vpop.f32.mrf.mxu0  ;;  %v8326_v15 = vpop.f32.mrf.mxu1 }
 0x224   : > { %10088 = vst [vmem:[#allocation18_spill] sm:$0xff] %v8324_v47  ;;  %10089 = vst [vmem:[#allocation19_spill] sm:$0xff] %v8326_v15 }
 0x225   : > { %v6088_v53 = vpop.f32.mrf.mxu0  ;;  %v6286_v59 = vpop.f32.mrf.mxu1 }
 0x226   : > { %v1860_v53 = vld [vmem:[%s7730_s6 + $0x298] sm:$0xff]  ;;  %v5460_v59 = vld [vmem:[%s7730_s6 + $0x5a0] sm:$0xff] }
 0x227   : > { %v8330_v61 = vpop.f32.mrf.mxu0  ;;  %6186 = vmatmul.mubr.msk.bf16.gmra.mxu0 %vm1924_vm3, %v1915_v46  ;;  %v8333_v63 = vpop.f32.mrf.mxu1  ;;  %6384 = vmatmul.mubr.msk.bf16.gmra.mxu1 %vm1924_vm3, %v2643_v62  ;;  %v1916_v46 = vpack.c.bf16 %v1860_v53, %v1859_v10  ;;  %v2644_v36 = vpack.c.bf16 %v5461_v43, %v5460_v59  ;;  %v5463_v10 = vld [vmem:[%s7730_s6 + $0x5b8] sm:$0xff] }
 0x228   : > { %10090 = vst [vmem:[#allocation20_spill] sm:$0xff] %v8330_v61  ;;  %10091 = vst [vmem:[#allocation21_spill] sm:$0xff] %v8333_v63  ;;  %6189 = vmatprep.mubr.msk.bf16.mxu0 %vm6872_vm2, %v10079_v5  ;;  %6387 = vmatprep.mubr.msk.bf16.mxu1 %vm6872_vm2, %v10079_v5 }
 0x229   : > { %v6091_v22 = vpop.f32.mrf.mxu0  ;;  %v6289_v28 = vpop.f32.mrf.mxu1 }
 0x22a   : > { %v1861_v28 = vld [vmem:[%s7730_s6 + $0x2a0] sm:$0xff] }
 0x22b   : > { %v8346_v12 = vpop.f32.mrf.mxu0  ;;  %v8348_v62 = vpop.f32.mrf.mxu1 }
 0x22c   : > { %10092 = vst [vmem:[#allocation22_spill] sm:$0xff] %v8346_v12  ;;  %10093 = vst [vmem:[#allocation23_spill] sm:$0xff] %v8348_v62 }
 0x22d   : > { %v6092_v63 = vpop.f32.mrf.mxu0  ;;  %v6290_v61 = vpop.f32.mrf.mxu1 }
 0x22e   : > { %v1862_v63 = vld [vmem:[%s7730_s6 + $0x2a8] sm:$0xff]  ;;  %v5462_v61 = vld [vmem:[%s7730_s6 + $0x5b0] sm:$0xff] }
 0x22f   : > { %v8352_v15 = vpop.f32.mrf.mxu0  ;;  %6190 = vmatmul.mubr.msk.bf16.gmra.mxu0 %vm1924_vm3, %v1916_v46  ;;  %v8355_v22 = vpop.f32.mrf.mxu1  ;;  %6388 = vmatmul.mubr.msk.bf16.gmra.mxu1 %vm1924_vm3, %v2644_v36  ;;  %v1917_v46 = vpack.c.bf16 %v1862_v63, %v1861_v28  ;;  %v2645_v47 = vpack.c.bf16 %v5463_v10, %v5462_v61  ;;  %v5465_v28 = vld [vmem:[%s7730_s6 + $0x5c8] sm:$0xff] }
 0x230   : > { %10094 = vst [vmem:[#allocation24_spill] sm:$0xff] %v8352_v15  ;;  %10095 = vst [vmem:[#allocation25_spill] sm:$0xff] %v8355_v22  ;;  %6193 = vmatprep.mubr.msk.bf16.mxu0 %vm6872_vm2, %v10079_v5  ;;  %6391 = vmatprep.mubr.msk.bf16.mxu1 %vm6872_vm2, %v10079_v5 }
 0x231   : > { %v6095_v53 = vpop.f32.mrf.mxu0  ;;  %v6293_v59 = vpop.f32.mrf.mxu1 }
 0x232   : > { %v1863_v59 = vld [vmem:[%s7730_s6 + $0x2b0] sm:$0xff] }
 0x233   : > { %v8368_v43 = vpop.f32.mrf.mxu0  ;;  %v8370_v36 = vpop.f32.mrf.mxu1 }
 0x234   : > { %10096 = vst [vmem:[#allocation26_spill] sm:$0xff] %v8368_v43  ;;  %10097 = vst [vmem:[#allocation27_spill] sm:$0xff] %v8370_v36 }
 0x235   : > { %v6096_v22 = vpop.f32.mrf.mxu0  ;;  %v6294_v15 = vpop.f32.mrf.mxu1 }
 0x236   : > { %v1864_v22 = vld [vmem:[%s7730_s6 + $0x2b8] sm:$0xff]  ;;  %v5464_v15 = vld [vmem:[%s7730_s6 + $0x5c0] sm:$0xff] }
 0x237   : > { %v8374_v62 = vpop.f32.mrf.mxu0  ;;  %6194 = vmatmul.mubr.msk.bf16.gmra.mxu0 %vm1924_vm3, %v1917_v46  ;;  %v8377_v53 = vpop.f32.mrf.mxu1  ;;  %6392 = vmatmul.mubr.msk.bf16.gmra.mxu1 %vm1924_vm3, %v2645_v47  ;;  %v1918_v46 = vpack.c.bf16 %v1864_v22, %v1863_v59  ;;  %v2646_v12 = vpack.c.bf16 %v5465_v28, %v5464_v15  ;;  %v5467_v59 = vld [vmem:[%s7730_s6 + $0x5d8] sm:$0xff] }
 0x238   : > { %10098 = vst [vmem:[#allocation28_spill] sm:$0xff] %v8374_v62  ;;  %10099 = vst [vmem:[#allocation29_spill] sm:$0xff] %v8377_v53  ;;  %6197 = vmatprep.mubr.msk.bf16.mxu0 %vm6872_vm2, %v10079_v5  ;;  %6395 = vmatprep.mubr.msk.bf16.mxu1 %vm6872_vm2, %v10079_v5 }
 0x239   : > { %v6099_v63 = vpop.f32.mrf.mxu0  ;;  %v6297_v61 = vpop.f32.mrf.mxu1 }
 0x23a   : > { %v1865_v61 = vld [vmem:[%s7730_s6 + $0x2c0] sm:$0xff] }
 0x23b   : > { %v8390_v10 = vpop.f32.mrf.mxu0  ;;  %v8392_v47 = vpop.f32.mrf.mxu1 }
 0x23c   : > { %10100 = vst [vmem:[#allocation30_spill] sm:$0xff] %v8390_v10  ;;  %10101 = vst [vmem:[#allocation31_spill] sm:$0xff] %v8392_v47 }
 0x23d   : > { %v6100_v53 = vpop.f32.mrf.mxu0  ;;  %v6298_v62 = vpop.f32.mrf.mxu1 }
 0x23e   : > { %v1866_v53 = vld [vmem:[%s7730_s6 + $0x2c8] sm:$0xff]  ;;  %v5466_v62 = vld [vmem:[%s7730_s6 + $0x5d0] sm:$0xff] }
 0x23f   : > { %v8396_v36 = vpop.f32.mrf.mxu0  ;;  %6198 = vmatmul.mubr.msk.bf16.gmra.mxu0 %vm1924_vm3, %v1918_v46  ;;  %v8399_v63 = vpop.f32.mrf.mxu1  ;;  %6396 = vmatmul.mubr.msk.bf16.gmra.mxu1 %vm1924_vm3, %v2646_v12  ;;  %v1919_v46 = vpack.c.bf16 %v1866_v53, %v1865_v61  ;;  %v2647_v43 = vpack.c.bf16 %v5467_v59, %v5466_v62  ;;  %v5469_v61 = vld [vmem:[%s7730_s6 + $0x5e8] sm:$0xff] }
 0x240   : > { %10102 = vst [vmem:[#allocation32_spill] sm:$0xff] %v8396_v36  ;;  %10103 = vst [vmem:[#allocation33_spill] sm:$0xff] %v8399_v63  ;;  %6201 = vmatprep.mubr.msk.bf16.mxu0 %vm6872_vm2, %v10079_v5  ;;  %6399 = vmatprep.mubr.msk.bf16.mxu1 %vm6872_vm2, %v10079_v5 }
 0x241   : > { %v6103_v22 = vpop.f32.mrf.mxu0  ;;  %v6301_v15 = vpop.f32.mrf.mxu1 }
 0x242   : > { %v1867_v15 = vld [vmem:[%s7730_s6 + $0x2d0] sm:$0xff] }
 0x243   : > { %v8412_v28 = vpop.f32.mrf.mxu0  ;;  %v8414_v12 = vpop.f32.mrf.mxu1 }
 0x244   : > { %10104 = vst [vmem:[#allocation34_spill] sm:$0xff] %v8412_v28  ;;  %10105 = vst [vmem:[#allocation35_spill] sm:$0xff] %v8414_v12 }
 0x245   : > { %v6104_v63 = vpop.f32.mrf.mxu0  ;;  %v6302_v36 = vpop.f32.mrf.mxu1 }
 0x246   : > { %v1868_v63 = vld [vmem:[%s7730_s6 + $0x2d8] sm:$0xff]  ;;  %v5468_v36 = vld [vmem:[%s7730_s6 + $0x5e0] sm:$0xff] }
 0x247   : > { %v8418_v47 = vpop.f32.mrf.mxu0  ;;  %6202 = vmatmul.mubr.msk.bf16.gmra.mxu0 %vm1924_vm3, %v1919_v46  ;;  %v8421_v22 = vpop.f32.mrf.mxu1  ;;  %6400 = vmatmul.mubr.msk.bf16.gmra.mxu1 %vm1924_vm3, %v2647_v43  ;;  %v1920_v46 = vpack.c.bf16 %v1868_v63, %v1867_v15  ;;  %v2648_v10 = vpack.c.bf16 %v5469_v61, %v5468_v36  ;;  %v5471_v15 = vld [vmem:[%s7730_s6 + $0x5f8] sm:$0xff] }
 0x248   : > { %10106 = vst [vmem:[#allocation36_spill] sm:$0xff] %v8418_v47  ;;  %10107 = vst [vmem:[#allocation37_spill] sm:$0xff] %v8421_v22  ;;  %6205 = vmatprep.mubr.msk.bf16.mxu0 %vm6872_vm2, %v10079_v5  ;;  %6403 = vmatprep.mubr.msk.bf16.mxu1 %vm6872_vm2, %v10079_v5 }
 0x249   : > { %v6107_v53 = vpop.f32.mrf.mxu0  ;;  %v6305_v62 = vpop.f32.mrf.mxu1 }
 0x24a   : > { %v1869_v62 = vld [vmem:[%s7730_s6 + $0x2e0] sm:$0xff] }
 0x24b   : > { %v8434_v59 = vpop.f32.mrf.mxu0  ;;  %v8436_v43 = vpop.f32.mrf.mxu1 }
 0x24c   : > { %10108 = vst [vmem:[#allocation38_spill] sm:$0xff] %v8434_v59  ;;  %10109 = vst [vmem:[#allocation39_spill] sm:$0xff] %v8436_v43 }
 0x24d   : > { %v6108_v22 = vpop.f32.mrf.mxu0  ;;  %v6306_v47 = vpop.f32.mrf.mxu1 }
 0x24e   : > { %v1870_v22 = vld [vmem:[%s7730_s6 + $0x2e8] sm:$0xff]  ;;  %v5470_v47 = vld [vmem:[%s7730_s6 + $0x5f0] sm:$0xff] }
 0x24f   : > { %v8440_v12 = vpop.f32.mrf.mxu0  ;;  %6206 = vmatmul.mubr.msk.bf16.gmra.mxu0 %vm1924_vm3, %v1920_v46  ;;  %v8443_v53 = vpop.f32.mrf.mxu1  ;;  %6404 = vmatmul.mubr.msk.bf16.gmra.mxu1 %vm1924_vm3, %v2648_v10  ;;  %v1921_v46 = vpack.c.bf16 %v1870_v22, %v1869_v62  ;;  %v2649_v28 = vpack.c.bf16 %v5471_v15, %v5470_v47  ;;  %v5473_v62 = vld [vmem:[%s7730_s6 + $0x608] sm:$0xff] }
 0x250   : > { %10110 = vst [vmem:[#allocation40_spill] sm:$0xff] %v8440_v12  ;;  %10111 = vst [vmem:[#allocation41_spill] sm:$0xff] %v8443_v53  ;;  %6209 = vmatprep.mubr.msk.bf16.mxu0 %vm6872_vm2, %v10079_v5  ;;  %6407 = vmatprep.mubr.msk.bf16.mxu1 %vm6872_vm2, %v10079_v5 }
 0x251   : > { %v6111_v63 = vpop.f32.mrf.mxu0  ;;  %v6309_v36 = vpop.f32.mrf.mxu1 }
 0x252   : > { %v1871_v36 = vld [vmem:[%s7730_s6 + $0x2f0] sm:$0xff] }
 0x253   : > { %v8456_v61 = vpop.f32.mrf.mxu0  ;;  %v8458_v10 = vpop.f32.mrf.mxu1 }
 0x254   : > { %10112 = vst [vmem:[#allocation42_spill] sm:$0xff] %v8456_v61  ;;  %10113 = vst [vmem:[#allocation43_spill] sm:$0xff] %v8458_v10 }
 0x255   : > { %v6112_v53 = vpop.f32.mrf.mxu0  ;;  %v6310_v12 = vpop.f32.mrf.mxu1 }
 0x256   : > { %v1872_v53 = vld [vmem:[%s7730_s6 + $0x2f8] sm:$0xff]  ;;  %v5472_v12 = vld [vmem:[%s7730_s6 + $0x600] sm:$0xff] }
 0x257   : > { %v8462_v43 = vpop.f32.mrf.mxu0  ;;  %6210 = vmatmul.mubr.msk.bf16.gmra.mxu0 %vm1924_vm3, %v1921_v46  ;;  %v8465_v63 = vpop.f32.mrf.mxu1  ;;  %6408 = vmatmul.mubr.msk.bf16.gmra.mxu1 %vm1924_vm3, %v2649_v28  ;;  %v1922_v46 = vpack.c.bf16 %v1872_v53, %v1871_v36  ;;  %v2650_v59 = vpack.c.bf16 %v5473_v62, %v5472_v12  ;;  %v5475_v36 = vld [vmem:[%s7730_s6 + $0x618] sm:$0xff] }
 0x258   : > { %10114 = vst [vmem:[#allocation44_spill] sm:$0xff] %v8462_v43  ;;  %10115 = vst [vmem:[#allocation45_spill] sm:$0xff] %v8465_v63  ;;  %6213 = vmatprep.mubr.msk.bf16.mxu0 %vm6872_vm2, %v10079_v5  ;;  %6411 = vmatprep.mubr.msk.bf16.mxu1 %vm6872_vm2, %v10079_v5 }
 0x259   : > { %v6115_v22 = vpop.f32.mrf.mxu0  ;;  %v6313_v47 = vpop.f32.mrf.mxu1 }
 0x25a   : > { %v1873_v47 = vld [vmem:[%s7730_s6 + $0x300] sm:$0xff] }
 0x25b   : > { %v8478_v15 = vpop.f32.mrf.mxu0  ;;  %v8480_v28 = vpop.f32.mrf.mxu1 }
 0x25c   : > { %10116 = vst [vmem:[#allocation46_spill] sm:$0xff] %v8478_v15  ;;  %10117 = vst [vmem:[#allocation47_spill] sm:$0xff] %v8480_v28 }
 0x25d   : > { %v6116_v63 = vpop.f32.mrf.mxu0  ;;  %v6314_v43 = vpop.f32.mrf.mxu1 }
 0x25e   : > { %v1874_v63 = vld [vmem:[%s7730_s6 + $0x308] sm:$0xff]  ;;  %v5474_v43 = vld [vmem:[%s7730_s6 + $0x610] sm:$0xff] }
 0x25f   : > { %v8484_v10 = vpop.f32.mrf.mxu0  ;;  %6214 = vmatmul.mubr.msk.bf16.gmra.mxu0 %vm1924_vm3, %v1922_v46  ;;  %v8487_v22 = vpop.f32.mrf.mxu1  ;;  %6412 = vmatmul.mubr.msk.bf16.gmra.mxu1 %vm1924_vm3, %v2650_v59  ;;  %v1923_v46 = vpack.c.bf16 %v1874_v63, %v1873_v47  ;;  %v2651_v61 = vpack.c.bf16 %v5475_v36, %v5474_v43  ;;  %v5673_v47 = vld [vmem:[%s7730_s6 + $0x938] sm:$0xff] }
 0x260   : > { %10118 = vst [vmem:[#allocation48_spill] sm:$0xff] %v8484_v10  ;;  %10119 = vst [vmem:[#allocation49_spill] sm:$0xff] %v8487_v22  ;;  %6217 = vmatprep.mubr.msk.bf16.mxu0 %vm6872_vm2, %v10079_v5  ;;  %6415 = vmatprep.mubr.msk.bf16.mxu1 %vm6872_vm2, %v10079_v5 }
 0x261   : > { %v6119_v53 = vpop.f32.mrf.mxu0  ;;  %v6317_v12 = vpop.f32.mrf.mxu1 }
 0x262   : > { %v5525_v12 = vld [vmem:[%s7730_s6 + $0x620] sm:$0xff] }
 0x263   : > { %v8500_v62 = vpop.f32.mrf.mxu0  ;;  %v8502_v59 = vpop.f32.mrf.mxu1 }
 0x264   : > { %10120 = vst [vmem:[#allocation50_spill] sm:$0xff] %v8500_v62  ;;  %10121 = vst [vmem:[#allocation51_spill] sm:$0xff] %v8502_v59 }
 0x265   : > { %v6120_v22 = vpop.f32.mrf.mxu0  ;;  %v6318_v10 = vpop.f32.mrf.mxu1 }
 0x266   : > { %v5526_v22 = vld [vmem:[%s7730_s6 + $0x628] sm:$0xff]  ;;  %v5672_v10 = vld [vmem:[%s7730_s6 + $0x930] sm:$0xff] }
 0x267   : > { %v8506_v28 = vpop.f32.mrf.mxu0  ;;  %6218 = vmatmul.mubr.msk.bf16.gmra.mxu0 %vm1924_vm3, %v1923_v46  ;;  %v8509_v53 = vpop.f32.mrf.mxu1  ;;  %6416 = vmatmul.mubr.msk.bf16.gmra.mxu1 %vm1924_vm3, %v2651_v61  ;;  %v3421_v46 = vpack.c.bf16 %v5526_v22, %v5525_v12  ;;  %v4239_v15 = vpack.c.bf16 %v5673_v47, %v5672_v10  ;;  %v5675_v12 = vld [vmem:[%s7730_s6 + $0x948] sm:$0xff] }
 0x268   : > { %10122 = vst [vmem:[#allocation52_spill] sm:$0xff] %v8506_v28  ;;  %10123 = vst [vmem:[#allocation53_spill] sm:$0xff] %v8509_v53  ;;  %6421 = vmatprep.mubr.msk.bf16.mxu0 %vm6872_vm2, %v10079_v5  ;;  %6619 = vmatprep.mubr.msk.bf16.mxu1 %vm6872_vm2, %v10079_v5 }
 0x269   : > { %v6123_v63 = vpop.f32.mrf.mxu0  ;;  %v6321_v43 = vpop.f32.mrf.mxu1 }
 0x26a   : > { %v5527_v63 = vld [vmem:[%s7730_s6 + $0x630] sm:$0xff] }
 0x26b   : > { %v8522_v36 = vpop.f32.mrf.mxu0  ;;  %v8524_v61 = vpop.f32.mrf.mxu1 }
 0x26c   : > { %10124 = vst [vmem:[#allocation54_spill] sm:$0xff] %v8522_v36  ;;  %10125 = vst [vmem:[#allocation55_spill] sm:$0xff] %v8524_v61 }
 0x26d   : > { %v6124_v53 = vpop.f32.mrf.mxu0  ;;  %v6322_v28 = vpop.f32.mrf.mxu1 }
 0x26e   : > { %v5528_v53 = vld [vmem:[%s7730_s6 + $0x638] sm:$0xff]  ;;  %v5674_v28 = vld [vmem:[%s7730_s6 + $0x940] sm:$0xff] }
 0x26f   : > { %v8528_v59 = vpop.f32.mrf.mxu0  ;;  %v8530_v62 = vpop.f32.mrf.mxu1  ;;  %6422 = vmatmul.mubr.msk.bf16.vlgmr.msra.gmra.mxu0 %vm1924_vm3, %v3421_v46  ;;  %6620 = vmatmul.mubr.msk.bf16.vlgmr.msra.gmra.mxu1 %vm1924_vm3, %v4239_v15  ;;  %v3422_v46 = vpack.c.bf16 %v5528_v53, %v5527_v63  ;;  %v4240_v43 = vpack.c.bf16 %v5675_v12, %v5674_v28  ;;  %v5677_v63 = vld [vmem:[%s7730_s6 + $0x958] sm:$0xff] }
 0x270   : > { %10126 = vst [vmem:[#allocation56_spill] sm:$0xff] %v8528_v59  ;;  %10127 = vst [vmem:[#allocation57_spill] sm:$0xff] %v8530_v62  ;;  %6425 = vmatprep.mubr.msk.bf16.mxu0 %vm6872_vm2, %v10079_v5  ;;  %6623 = vmatprep.mubr.msk.bf16.mxu1 %vm6872_vm2, %v10079_v5 }
 0x271   : > { %v6127_v22 = vpop.f32.mrf.mxu0  ;;  %v6325_v10 = vpop.f32.mrf.mxu1 }
 0x272   : > { %v5529_v22 = vld [vmem:[%s7730_s6 + $0x640] sm:$0xff] }
 0x273   : > { %v8544_v47 = vpop.f32.mrf.mxu0  ;;  %v8546_v15 = vpop.f32.mrf.mxu1 }
 0x274   : > { %10128 = vst [vmem:[#allocation58_spill] sm:$0xff] %v8544_v47  ;;  %10129 = vst [vmem:[#allocation59_spill] sm:$0xff] %v8546_v15 }
 0x275   : > { %v6128_v62 = vpop.f32.mrf.mxu0  ;;  %v6326_v59 = vpop.f32.mrf.mxu1 }
 0x276   : > { %v5530_v62 = vld [vmem:[%s7730_s6 + $0x648] sm:$0xff]  ;;  %v5676_v59 = vld [vmem:[%s7730_s6 + $0x950] sm:$0xff] }
 0x277   : > { %v8550_v61 = vpop.f32.mrf.mxu0  ;;  %v8552_v36 = vpop.f32.mrf.mxu1  ;;  %6426 = vmatmul.mubr.msk.bf16.gmra.mxu0 %vm1924_vm3, %v3422_v46  ;;  %6624 = vmatmul.mubr.msk.bf16.gmra.mxu1 %vm1924_vm3, %v4240_v43  ;;  %v3423_v46 = vpack.c.bf16 %v5530_v62, %v5529_v22  ;;  %v4241_v10 = vpack.c.bf16 %v5677_v63, %v5676_v59  ;;  %v5679_v22 = vld [vmem:[%s7730_s6 + $0x968] sm:$0xff] }
 0x278   : > { %10130 = vst [vmem:[#allocation60_spill] sm:$0xff] %v8550_v61  ;;  %10131 = vst [vmem:[#allocation61_spill] sm:$0xff] %v8552_v36  ;;  %6429 = vmatprep.mubr.msk.bf16.mxu0 %vm6872_vm2, %v10079_v5  ;;  %6627 = vmatprep.mubr.msk.bf16.mxu1 %vm6872_vm2, %v10079_v5 }
 0x279   : > { %v6131_v53 = vpop.f32.mrf.mxu0  ;;  %v6329_v28 = vpop.f32.mrf.mxu1 }
 0x27a   : > { %v5531_v53 = vld [vmem:[%s7730_s6 + $0x650] sm:$0xff] }
 0x27b   : > { %v8566_v12 = vpop.f32.mrf.mxu0  ;;  %v8568_v43 = vpop.f32.mrf.mxu1 }
 0x27c   : > { %10132 = vst [vmem:[#allocation62_spill] sm:$0xff] %v8566_v12  ;;  %10133 = vst [vmem:[#allocation63_spill] sm:$0xff] %v8568_v43 }
 0x27d   : > { %v6132_v36 = vpop.f32.mrf.mxu0  ;;  %v6330_v61 = vpop.f32.mrf.mxu1 }
 0x27e   : > { %v5532_v36 = vld [vmem:[%s7730_s6 + $0x658] sm:$0xff]  ;;  %v5678_v61 = vld [vmem:[%s7730_s6 + $0x960] sm:$0xff] }
 0x27f   : > { %v8572_v15 = vpop.f32.mrf.mxu0  ;;  %v8574_v47 = vpop.f32.mrf.mxu1  ;;  %6430 = vmatmul.mubr.msk.bf16.gmra.mxu0 %vm1924_vm3, %v3423_v46  ;;  %6628 = vmatmul.mubr.msk.bf16.gmra.mxu1 %vm1924_vm3, %v4241_v10  ;;  %v3424_v46 = vpack.c.bf16 %v5532_v36, %v5531_v53  ;;  %v4242_v28 = vpack.c.bf16 %v5679_v22, %v5678_v61  ;;  %v5681_v53 = vld [vmem:[%s7730_s6 + $0x978] sm:$0xff] }
 0x280   : > { %10134 = vst [vmem:[#allocation64_spill] sm:$0xff] %v8572_v15  ;;  %10135 = vst [vmem:[#allocation65_spill] sm:$0xff] %v8574_v47  ;;  %6433 = vmatprep.mubr.msk.bf16.mxu0 %vm6872_vm2, %v10079_v5  ;;  %6631 = vmatprep.mubr.msk.bf16.mxu1 %vm6872_vm2, %v10079_v5 }
 0x281   : > { %v6135_v62 = vpop.f32.mrf.mxu0  ;;  %v6333_v59 = vpop.f32.mrf.mxu1 }
 0x282   : > { %v5533_v62 = vld [vmem:[%s7730_s6 + $0x660] sm:$0xff] }
 0x283   : > { %v8588_v63 = vpop.f32.mrf.mxu0  ;;  %v8590_v10 = vpop.f32.mrf.mxu1 }
 0x284   : > { %10136 = vst [vmem:[#allocation66_spill] sm:$0xff] %v8588_v63  ;;  %10137 = vst [vmem:[#allocation67_spill] sm:$0xff] %v8590_v10 }
 0x285   : > { %v6136_v47 = vpop.f32.mrf.mxu0  ;;  %v6334_v15 = vpop.f32.mrf.mxu1 }
 0x286   : > { %v5534_v47 = vld [vmem:[%s7730_s6 + $0x668] sm:$0xff]  ;;  %v5680_v15 = vld [vmem:[%s7730_s6 + $0x970] sm:$0xff] }
 0x287   : > { %v8594_v43 = vpop.f32.mrf.mxu0  ;;  %v8596_v12 = vpop.f32.mrf.mxu1  ;;  %6434 = vmatmul.mubr.msk.bf16.gmra.mxu0 %vm1924_vm3, %v3424_v46  ;;  %6632 = vmatmul.mubr.msk.bf16.gmra.mxu1 %vm1924_vm3, %v4242_v28  ;;  %v3425_v46 = vpack.c.bf16 %v5534_v47, %v5533_v62  ;;  %v4243_v59 = vpack.c.bf16 %v5681_v53, %v5680_v15  ;;  %v5683_v62 = vld [vmem:[%s7730_s6 + $0x988] sm:$0xff] }
 0x288   : > { %10138 = vst [vmem:[#allocation68_spill] sm:$0xff] %v8594_v43  ;;  %10139 = vst [vmem:[#allocation69_spill] sm:$0xff] %v8596_v12  ;;  %6437 = vmatprep.mubr.msk.bf16.mxu0 %vm6872_vm2, %v10079_v5  ;;  %6635 = vmatprep.mubr.msk.bf16.mxu1 %vm6872_vm2, %v10079_v5 }
 0x289   : > { %v6139_v36 = vpop.f32.mrf.mxu0  ;;  %v6337_v61 = vpop.f32.mrf.mxu1 }
 0x28a   : > { %v5535_v36 = vld [vmem:[%s7730_s6 + $0x670] sm:$0xff] }
 0x28b   : > { %v8610_v22 = vpop.f32.mrf.mxu0  ;;  %v8612_v28 = vpop.f32.mrf.mxu1 }
 0x28c   : > { %10140 = vst [vmem:[#allocation70_spill] sm:$0xff] %v8610_v22  ;;  %10141 = vst [vmem:[#allocation71_spill] sm:$0xff] %v8612_v28 }
 0x28d   : > { %v6140_v12 = vpop.f32.mrf.mxu0  ;;  %v6338_v43 = vpop.f32.mrf.mxu1 }
 0x28e   : > { %v5536_v12 = vld [vmem:[%s7730_s6 + $0x678] sm:$0xff]  ;;  %v5682_v43 = vld [vmem:[%s7730_s6 + $0x980] sm:$0xff] }
 0x28f   : > { %v8616_v10 = vpop.f32.mrf.mxu0  ;;  %v8618_v63 = vpop.f32.mrf.mxu1  ;;  %6438 = vmatmul.mubr.msk.bf16.gmra.mxu0 %vm1924_vm3, %v3425_v46  ;;  %6636 = vmatmul.mubr.msk.bf16.gmra.mxu1 %vm1924_vm3, %v4243_v59  ;;  %v3426_v46 = vpack.c.bf16 %v5536_v12, %v5535_v36  ;;  %v4244_v61 = vpack.c.bf16 %v5683_v62, %v5682_v43  ;;  %v5685_v36 = vld [vmem:[%s7730_s6 + $0x998] sm:$0xff] }
 0x290   : > { %10142 = vst [vmem:[#allocation72_spill] sm:$0xff] %v8616_v10  ;;  %10143 = vst [vmem:[#allocation73_spill] sm:$0xff] %v8618_v63  ;;  %6441 = vmatprep.mubr.msk.bf16.mxu0 %vm6872_vm2, %v10079_v5  ;;  %6639 = vmatprep.mubr.msk.bf16.mxu1 %vm6872_vm2, %v10079_v5 }
 0x291   : > { %v6143_v47 = vpop.f32.mrf.mxu0  ;;  %v6341_v15 = vpop.f32.mrf.mxu1 }
 0x292   : > { %v5537_v47 = vld [vmem:[%s7730_s6 + $0x680] sm:$0xff] }
 0x293   : > { %v8632_v53 = vpop.f32.mrf.mxu0  ;;  %v8634_v59 = vpop.f32.mrf.mxu1 }
 0x294   : > { %10144 = vst [vmem:[#allocation74_spill] sm:$0xff] %v8632_v53  ;;  %10145 = vst [vmem:[#allocation75_spill] sm:$0xff] %v8634_v59 }
 0x295   : > { %v6144_v63 = vpop.f32.mrf.mxu0  ;;  %v6342_v10 = vpop.f32.mrf.mxu1 }
 0x296   : > { %v5538_v63 = vld [vmem:[%s7730_s6 + $0x688] sm:$0xff]  ;;  %v5684_v10 = vld [vmem:[%s7730_s6 + $0x990] sm:$0xff] }
 0x297   : > { %v8638_v28 = vpop.f32.mrf.mxu0  ;;  %v8640_v22 = vpop.f32.mrf.mxu1  ;;  %6442 = vmatmul.mubr.msk.bf16.gmra.mxu0 %vm1924_vm3, %v3426_v46  ;;  %6640 = vmatmul.mubr.msk.bf16.gmra.mxu1 %vm1924_vm3, %v4244_v61  ;;  %v3427_v46 = vpack.c.bf16 %v5538_v63, %v5537_v47  ;;  %v4245_v15 = vpack.c.bf16 %v5685_v36, %v5684_v10  ;;  %v5687_v47 = vld [vmem:[%s7730_s6 + $0x9a8] sm:$0xff] }
 0x298   : > { %10146 = vst [vmem:[#allocation76_spill] sm:$0xff] %v8638_v28  ;;  %10147 = vst [vmem:[#allocation77_spill] sm:$0xff] %v8640_v22  ;;  %6445 = vmatprep.mubr.msk.bf16.mxu0 %vm6872_vm2, %v10079_v5  ;;  %6643 = vmatprep.mubr.msk.bf16.mxu1 %vm6872_vm2, %v10079_v5 }
 0x299   : > { %v6147_v12 = vpop.f32.mrf.mxu0  ;;  %v6345_v43 = vpop.f32.mrf.mxu1 }
 0x29a   : > { %v5539_v12 = vld [vmem:[%s7730_s6 + $0x690] sm:$0xff] }
 0x29b   : > { %v8654_v62 = vpop.f32.mrf.mxu0  ;;  %v8656_v61 = vpop.f32.mrf.mxu1 }
 0x29c   : > { %10148 = vst [vmem:[#allocation78_spill] sm:$0xff] %v8654_v62  ;;  %10149 = vst [vmem:[#allocation79_spill] sm:$0xff] %v8656_v61 }
 0x29d   : > { %v6148_v22 = vpop.f32.mrf.mxu0  ;;  %v6346_v28 = vpop.f32.mrf.mxu1 }
 0x29e   : > { %v5540_v22 = vld [vmem:[%s7730_s6 + $0x698] sm:$0xff]  ;;  %v5686_v28 = vld [vmem:[%s7730_s6 + $0x9a0] sm:$0xff] }
 0x29f   : > { %v8660_v59 = vpop.f32.mrf.mxu0  ;;  %v8662_v53 = vpop.f32.mrf.mxu1  ;;  %6446 = vmatmul.mubr.msk.bf16.gmra.mxu0 %vm1924_vm3, %v3427_v46  ;;  %6644 = vmatmul.mubr.msk.bf16.gmra.mxu1 %vm1924_vm3, %v4245_v15  ;;  %v3428_v46 = vpack.c.bf16 %v5540_v22, %v5539_v12  ;;  %v4246_v43 = vpack.c.bf16 %v5687_v47, %v5686_v28  ;;  %v5689_v12 = vld [vmem:[%s7730_s6 + $0x9b8] sm:$0xff] }
 0x2a0   : > { %10150 = vst [vmem:[#allocation80_spill] sm:$0xff] %v8660_v59  ;;  %10151 = vst [vmem:[#allocation81_spill] sm:$0xff] %v8662_v53  ;;  %6449 = vmatprep.mubr.msk.bf16.mxu0 %vm6872_vm2, %v10079_v5  ;;  %6647 = vmatprep.mubr.msk.bf16.mxu1 %vm6872_vm2, %v10079_v5 }
 0x2a1   : > { %v6151_v63 = vpop.f32.mrf.mxu0  ;;  %v6349_v10 = vpop.f32.mrf.mxu1 }
 0x2a2   : > { %v5541_v63 = vld [vmem:[%s7730_s6 + $0x6a0] sm:$0xff] }
 0x2a3   : > { %v8676_v36 = vpop.f32.mrf.mxu0  ;;  %v8678_v15 = vpop.f32.mrf.mxu1 }
 0x2a4   : > { %10152 = vst [vmem:[#allocation82_spill] sm:$0xff] %v8676_v36  ;;  %10153 = vst [vmem:[#allocation83_spill] sm:$0xff] %v8678_v15 }
 0x2a5   : > { %v6152_v53 = vpop.f32.mrf.mxu0  ;;  %v6350_v59 = vpop.f32.mrf.mxu1 }
 0x2a6   : > { %v5542_v53 = vld [vmem:[%s7730_s6 + $0x6a8] sm:$0xff]  ;;  %v5688_v59 = vld [vmem:[%s7730_s6 + $0x9b0] sm:$0xff] }
 0x2a7   : > { %v8682_v61 = vpop.f32.mrf.mxu0  ;;  %v8684_v62 = vpop.f32.mrf.mxu1  ;;  %6450 = vmatmul.mubr.msk.bf16.gmra.mxu0 %vm1924_vm3, %v3428_v46  ;;  %6648 = vmatmul.mubr.msk.bf16.gmra.mxu1 %vm1924_vm3, %v4246_v43  ;;  %v3429_v46 = vpack.c.bf16 %v5542_v53, %v5541_v63  ;;  %v4247_v10 = vpack.c.bf16 %v5689_v12, %v5688_v59  ;;  %v5691_v63 = vld [vmem:[%s7730_s6 + $0x9c8] sm:$0xff] }
 0x2a8   : > { %10154 = vst [vmem:[#allocation84_spill] sm:$0xff] %v8682_v61  ;;  %10155 = vst [vmem:[#allocation85_spill] sm:$0xff] %v8684_v62  ;;  %6453 = vmatprep.mubr.msk.bf16.mxu0 %vm6872_vm2, %v10079_v5  ;;  %6651 = vmatprep.mubr.msk.bf16.mxu1 %vm6872_vm2, %v10079_v5 }
 0x2a9   : > { %v6155_v22 = vpop.f32.mrf.mxu0  ;;  %v6353_v28 = vpop.f32.mrf.mxu1 }
 0x2aa   : > { %v5543_v22 = vld [vmem:[%s7730_s6 + $0x6b0] sm:$0xff] }
 0x2ab   : > { %v8698_v47 = vpop.f32.mrf.mxu0  ;;  %v8700_v43 = vpop.f32.mrf.mxu1 }
 0x2ac   : > { %10156 = vst [vmem:[#allocation86_spill] sm:$0xff] %v8698_v47  ;;  %10157 = vst [vmem:[#allocation87_spill] sm:$0xff] %v8700_v43 }
 0x2ad   : > { %v6156_v62 = vpop.f32.mrf.mxu0  ;;  %v6354_v61 = vpop.f32.mrf.mxu1 }
 0x2ae   : > { %v5544_v62 = vld [vmem:[%s7730_s6 + $0x6b8] sm:$0xff]  ;;  %v5690_v61 = vld [vmem:[%s7730_s6 + $0x9c0] sm:$0xff] }
 0x2af   : > { %v8704_v15 = vpop.f32.mrf.mxu0  ;;  %v8706_v36 = vpop.f32.mrf.mxu1  ;;  %6454 = vmatmul.mubr.msk.bf16.gmra.mxu0 %vm1924_vm3, %v3429_v46  ;;  %6652 = vmatmul.mubr.msk.bf16.gmra.mxu1 %vm1924_vm3, %v4247_v10  ;;  %v3430_v46 = vpack.c.bf16 %v5544_v62, %v5543_v22  ;;  %v4248_v28 = vpack.c.bf16 %v5691_v63, %v5690_v61  ;;  %v5693_v22 = vld [vmem:[%s7730_s6 + $0x9d8] sm:$0xff] }
 0x2b0   : > { %10158 = vst [vmem:[#allocation88_spill] sm:$0xff] %v8704_v15  ;;  %10159 = vst [vmem:[#allocation89_spill] sm:$0xff] %v8706_v36  ;;  %6457 = vmatprep.mubr.msk.bf16.mxu0 %vm6872_vm2, %v10079_v5  ;;  %6655 = vmatprep.mubr.msk.bf16.mxu1 %vm6872_vm2, %v10079_v5 }
 0x2b1   : > { %v6159_v53 = vpop.f32.mrf.mxu0  ;;  %v6357_v59 = vpop.f32.mrf.mxu1 }
 0x2b2   : > { %v5545_v53 = vld [vmem:[%s7730_s6 + $0x6c0] sm:$0xff] }
 0x2b3   : > { %v8720_v12 = vpop.f32.mrf.mxu0  ;;  %v8722_v10 = vpop.f32.mrf.mxu1 }
 0x2b4   : > { %10160 = vst [vmem:[#allocation90_spill] sm:$0xff] %v8720_v12  ;;  %10161 = vst [vmem:[#allocation91_spill] sm:$0xff] %v8722_v10 }
 0x2b5   : > { %v6160_v36 = vpop.f32.mrf.mxu0  ;;  %v6358_v15 = vpop.f32.mrf.mxu1 }
 0x2b6   : > { %v5546_v36 = vld [vmem:[%s7730_s6 + $0x6c8] sm:$0xff]  ;;  %v5692_v15 = vld [vmem:[%s7730_s6 + $0x9d0] sm:$0xff] }
 0x2b7   : > { %v8726_v43 = vpop.f32.mrf.mxu0  ;;  %v8728_v47 = vpop.f32.mrf.mxu1  ;;  %6458 = vmatmul.mubr.msk.bf16.gmra.mxu0 %vm1924_vm3, %v3430_v46  ;;  %6656 = vmatmul.mubr.msk.bf16.gmra.mxu1 %vm1924_vm3, %v4248_v28  ;;  %v3431_v46 = vpack.c.bf16 %v5546_v36, %v5545_v53  ;;  %v4249_v59 = vpack.c.bf16 %v5693_v22, %v5692_v15  ;;  %v5695_v53 = vld [vmem:[%s7730_s6 + $0x9e8] sm:$0xff] }
 0x2b8   : > { %10162 = vst [vmem:[#allocation92_spill] sm:$0xff] %v8726_v43  ;;  %10163 = vst [vmem:[#allocation93_spill] sm:$0xff] %v8728_v47  ;;  %6461 = vmatprep.mubr.msk.bf16.mxu0 %vm6872_vm2, %v10079_v5  ;;  %6659 = vmatprep.mubr.msk.bf16.mxu1 %vm6872_vm2, %v10079_v5 }
 0x2b9   : > { %v6163_v62 = vpop.f32.mrf.mxu0  ;;  %v6361_v61 = vpop.f32.mrf.mxu1 }
 0x2ba   : > { %v5547_v62 = vld [vmem:[%s7730_s6 + $0x6d0] sm:$0xff] }
 0x2bb   : > { %v8742_v63 = vpop.f32.mrf.mxu0  ;;  %v8744_v28 = vpop.f32.mrf.mxu1 }
 0x2bc   : > { %10164 = vst [vmem:[#allocation94_spill] sm:$0xff] %v8742_v63  ;;  %10165 = vst [vmem:[#allocation95_spill] sm:$0xff] %v8744_v28 }
 0x2bd   : > { %v6164_v47 = vpop.f32.mrf.mxu0  ;;  %v6362_v43 = vpop.f32.mrf.mxu1 }
 0x2be   : > { %v5548_v47 = vld [vmem:[%s7730_s6 + $0x6d8] sm:$0xff]  ;;  %v5694_v43 = vld [vmem:[%s7730_s6 + $0x9e0] sm:$0xff] }
 0x2bf   : > { %v8748_v10 = vpop.f32.mrf.mxu0  ;;  %v8750_v12 = vpop.f32.mrf.mxu1  ;;  %6462 = vmatmul.mubr.msk.bf16.gmra.mxu0 %vm1924_vm3, %v3431_v46  ;;  %6660 = vmatmul.mubr.msk.bf16.gmra.mxu1 %vm1924_vm3, %v4249_v59  ;;  %v3432_v46 = vpack.c.bf16 %v5548_v47, %v5547_v62  ;;  %v4250_v61 = vpack.c.bf16 %v5695_v53, %v5694_v43  ;;  %v5697_v62 = vld [vmem:[%s7730_s6 + $0x9f8] sm:$0xff] }
 0x2c0   : > { %10166 = vst [vmem:[#allocation96_spill] sm:$0xff] %v8748_v10  ;;  %10167 = vst [vmem:[#allocation97_spill] sm:$0xff] %v8750_v12  ;;  %6465 = vmatprep.mubr.msk.bf16.mxu0 %vm6872_vm2, %v10079_v5  ;;  %6663 = vmatprep.mubr.msk.bf16.mxu1 %vm6872_vm2, %v10079_v5 }
 0x2c1   : > { %v6167_v36 = vpop.f32.mrf.mxu0  ;;  %v6365_v15 = vpop.f32.mrf.mxu1 }
 0x2c2   : > { %v5549_v36 = vld [vmem:[%s7730_s6 + $0x6e0] sm:$0xff] }
 0x2c3   : > { %v8764_v22 = vpop.f32.mrf.mxu0  ;;  %v8766_v59 = vpop.f32.mrf.mxu1 }
 0x2c4   : > { %10168 = vst [vmem:[#allocation98_spill] sm:$0xff] %v8764_v22  ;;  %10169 = vst [vmem:[#allocation99_spill] sm:$0xff] %v8766_v59 }
 0x2c5   : > { %v6168_v12 = vpop.f32.mrf.mxu0  ;;  %v6366_v10 = vpop.f32.mrf.mxu1 }
 0x2c6   : > { %v5550_v12 = vld [vmem:[%s7730_s6 + $0x6e8] sm:$0xff]  ;;  %v5696_v10 = vld [vmem:[%s7730_s6 + $0x9f0] sm:$0xff] }
 0x2c7   : > { %v8770_v28 = vpop.f32.mrf.mxu0  ;;  %v8772_v63 = vpop.f32.mrf.mxu1  ;;  %6466 = vmatmul.mubr.msk.bf16.gmra.mxu0 %vm1924_vm3, %v3432_v46  ;;  %6664 = vmatmul.mubr.msk.bf16.gmra.mxu1 %vm1924_vm3, %v4250_v61  ;;  %v3433_v46 = vpack.c.bf16 %v5550_v12, %v5549_v36  ;;  %v4251_v15 = vpack.c.bf16 %v5697_v62, %v5696_v10  ;;  %v5699_v36 = vld [vmem:[%s7730_s6 + $0xa08] sm:$0xff] }
 0x2c8   : > { %10170 = vst [vmem:[#allocation100_spill] sm:$0xff] %v8770_v28  ;;  %10171 = vst [vmem:[#allocation101_spill] sm:$0xff] %v8772_v63  ;;  %6469 = vmatprep.mubr.msk.bf16.mxu0 %vm6872_vm2, %v10079_v5  ;;  %6667 = vmatprep.mubr.msk.bf16.mxu1 %vm6872_vm2, %v10079_v5 }
 0x2c9   : > { %v6171_v47 = vpop.f32.mrf.mxu0  ;;  %v6369_v43 = vpop.f32.mrf.mxu1 }
 0x2ca   : > { %v5551_v47 = vld [vmem:[%s7730_s6 + $0x6f0] sm:$0xff] }
 0x2cb   : > { %v8786_v53 = vpop.f32.mrf.mxu0  ;;  %v8788_v61 = vpop.f32.mrf.mxu1 }
 0x2cc   : > { %10172 = vst [vmem:[#allocation102_spill] sm:$0xff] %v8786_v53  ;;  %10173 = vst [vmem:[#allocation103_spill] sm:$0xff] %v8788_v61 }
 0x2cd   : > { %v6172_v63 = vpop.f32.mrf.mxu0  ;;  %v6370_v28 = vpop.f32.mrf.mxu1 }
 0x2ce   : > { %v5552_v63 = vld [vmem:[%s7730_s6 + $0x6f8] sm:$0xff]  ;;  %v5698_v28 = vld [vmem:[%s7730_s6 + $0xa00] sm:$0xff] }
 0x2cf   : > { %v8792_v59 = vpop.f32.mrf.mxu0  ;;  %v8794_v22 = vpop.f32.mrf.mxu1  ;;  %6470 = vmatmul.mubr.msk.bf16.gmra.mxu0 %vm1924_vm3, %v3433_v46  ;;  %6668 = vmatmul.mubr.msk.bf16.gmra.mxu1 %vm1924_vm3, %v4251_v15  ;;  %v3434_v46 = vpack.c.bf16 %v5552_v63, %v5551_v47  ;;  %v4252_v43 = vpack.c.bf16 %v5699_v36, %v5698_v28  ;;  %v5701_v47 = vld [vmem:[%s7730_s6 + $0xa18] sm:$0xff] }
 0x2d0   : > { %10174 = vst [vmem:[#allocation104_spill] sm:$0xff] %v8792_v59  ;;  %10175 = vst [vmem:[#allocation105_spill] sm:$0xff] %v8794_v22  ;;  %6473 = vmatprep.mubr.msk.bf16.mxu0 %vm6872_vm2, %v10079_v5  ;;  %6671 = vmatprep.mubr.msk.bf16.mxu1 %vm6872_vm2, %v10079_v5 }
 0x2d1   : > { %v6175_v12 = vpop.f32.mrf.mxu0  ;;  %v6373_v10 = vpop.f32.mrf.mxu1 }
 0x2d2   : > { %v5553_v12 = vld [vmem:[%s7730_s6 + $0x700] sm:$0xff] }
 0x2d3   : > { %v8808_v62 = vpop.f32.mrf.mxu0  ;;  %v8810_v15 = vpop.f32.mrf.mxu1 }
 0x2d4   : > { %10176 = vst [vmem:[#allocation106_spill] sm:$0xff] %v8808_v62  ;;  %10177 = vst [vmem:[#allocation107_spill] sm:$0xff] %v8810_v15 }
 0x2d5   : > { %v6176_v22 = vpop.f32.mrf.mxu0  ;;  %v6374_v59 = vpop.f32.mrf.mxu1 }
 0x2d6   : > { %v5554_v22 = vld [vmem:[%s7730_s6 + $0x708] sm:$0xff]  ;;  %v5700_v59 = vld [vmem:[%s7730_s6 + $0xa10] sm:$0xff] }
 0x2d7   : > { %v8814_v61 = vpop.f32.mrf.mxu0  ;;  %v8816_v53 = vpop.f32.mrf.mxu1  ;;  %6474 = vmatmul.mubr.msk.bf16.gmra.mxu0 %vm1924_vm3, %v3434_v46  ;;  %6672 = vmatmul.mubr.msk.bf16.gmra.mxu1 %vm1924_vm3, %v4252_v43  ;;  %v3435_v46 = vpack.c.bf16 %v5554_v22, %v5553_v12  ;;  %v4253_v10 = vpack.c.bf16 %v5701_v47, %v5700_v59  ;;  %v5703_v12 = vld [vmem:[%s7730_s6 + $0xa28] sm:$0xff] }
 0x2d8   : > { %10178 = vst [vmem:[#allocation108_spill] sm:$0xff] %v8814_v61  ;;  %10179 = vst [vmem:[#allocation109_spill] sm:$0xff] %v8816_v53  ;;  %6477 = vmatprep.mubr.msk.bf16.mxu0 %vm6872_vm2, %v10079_v5  ;;  %6675 = vmatprep.mubr.msk.bf16.mxu1 %vm6872_vm2, %v10079_v5 }
 0x2d9   : > { %v6179_v63 = vpop.f32.mrf.mxu0  ;;  %v6377_v28 = vpop.f32.mrf.mxu1 }
 0x2da   : > { %v5555_v63 = vld [vmem:[%s7730_s6 + $0x710] sm:$0xff] }
 0x2db   : > { %v8830_v36 = vpop.f32.mrf.mxu0  ;;  %v8832_v43 = vpop.f32.mrf.mxu1 }
 0x2dc   : > { %10180 = vst [vmem:[#allocation110_spill] sm:$0xff] %v8830_v36  ;;  %10181 = vst [vmem:[#allocation111_spill] sm:$0xff] %v8832_v43 }
 0x2dd   : > { %v6180_v53 = vpop.f32.mrf.mxu0  ;;  %v6378_v61 = vpop.f32.mrf.mxu1 }
 0x2de   : > { %v5556_v53 = vld [vmem:[%s7730_s6 + $0x718] sm:$0xff]  ;;  %v5702_v61 = vld [vmem:[%s7730_s6 + $0xa20] sm:$0xff] }
 0x2df   : > { %v8836_v15 = vpop.f32.mrf.mxu0  ;;  %v8838_v62 = vpop.f32.mrf.mxu1  ;;  %6478 = vmatmul.mubr.msk.bf16.gmra.mxu0 %vm1924_vm3, %v3435_v46  ;;  %6676 = vmatmul.mubr.msk.bf16.gmra.mxu1 %vm1924_vm3, %v4253_v10  ;;  %v3436_v46 = vpack.c.bf16 %v5556_v53, %v5555_v63  ;;  %v4254_v28 = vpack.c.bf16 %v5703_v12, %v5702_v61  ;;  %v5705_v63 = vld [vmem:[%s7730_s6 + $0xa38] sm:$0xff] }
 0x2e0   : > { %10182 = vst [vmem:[#allocation112_spill] sm:$0xff] %v8836_v15  ;;  %10183 = vst [vmem:[#allocation113_spill] sm:$0xff] %v8838_v62  ;;  %6481 = vmatprep.mubr.msk.bf16.mxu0 %vm6872_vm2, %v10079_v5  ;;  %6679 = vmatprep.mubr.msk.bf16.mxu1 %vm6872_vm2, %v10079_v5 }
 0x2e1   : > { %v6183_v22 = vpop.f32.mrf.mxu0  ;;  %v6381_v59 = vpop.f32.mrf.mxu1 }
 0x2e2   : > { %v5557_v22 = vld [vmem:[%s7730_s6 + $0x720] sm:$0xff] }
 0x2e3   : > { %v8852_v47 = vpop.f32.mrf.mxu0  ;;  %v8854_v10 = vpop.f32.mrf.mxu1 }
 0x2e4   : > { %10184 = vst [vmem:[#allocation114_spill] sm:$0xff] %v8852_v47  ;;  %10185 = vst [vmem:[#allocation115_spill] sm:$0xff] %v8854_v10 }
 0x2e5   : > { %v6184_v62 = vpop.f32.mrf.mxu0  ;;  %v6382_v15 = vpop.f32.mrf.mxu1 }
 0x2e6   : > { %v5558_v62 = vld [vmem:[%s7730_s6 + $0x728] sm:$0xff]  ;;  %v5704_v15 = vld [vmem:[%s7730_s6 + $0xa30] sm:$0xff] }
 0x2e7   : > { %v8858_v43 = vpop.f32.mrf.mxu0  ;;  %v8860_v36 = vpop.f32.mrf.mxu1  ;;  %6482 = vmatmul.mubr.msk.bf16.gmra.mxu0 %vm1924_vm3, %v3436_v46  ;;  %6680 = vmatmul.mubr.msk.bf16.gmra.mxu1 %vm1924_vm3, %v4254_v28  ;;  %v3437_v46 = vpack.c.bf16 %v5558_v62, %v5557_v22  ;;  %v4255_v59 = vpack.c.bf16 %v5705_v63, %v5704_v15  ;;  %v5707_v22 = vld [vmem:[%s7730_s6 + $0xa48] sm:$0xff] }
 0x2e8   : > { %10186 = vst [vmem:[#allocation116_spill] sm:$0xff] %v8858_v43  ;;  %10187 = vst [vmem:[#allocation117_spill] sm:$0xff] %v8860_v36  ;;  %6485 = vmatprep.mubr.msk.bf16.mxu0 %vm6872_vm2, %v10079_v5  ;;  %6683 = vmatprep.mubr.msk.bf16.mxu1 %vm6872_vm2, %v10079_v5 }
 0x2e9   : > { %v6187_v53 = vpop.f32.mrf.mxu0  ;;  %v6385_v61 = vpop.f32.mrf.mxu1 }
 0x2ea   : > { %v5559_v53 = vld [vmem:[%s7730_s6 + $0x730] sm:$0xff] }
 0x2eb   : > { %v8874_v12 = vpop.f32.mrf.mxu0  ;;  %v8876_v28 = vpop.f32.mrf.mxu1 }
 0x2ec   : > { %10188 = vst [vmem:[#allocation118_spill] sm:$0xff] %v8874_v12  ;;  %10189 = vst [vmem:[#allocation119_spill] sm:$0xff] %v8876_v28 }
 0x2ed   : > { %v6188_v36 = vpop.f32.mrf.mxu0  ;;  %v6386_v43 = vpop.f32.mrf.mxu1 }
 0x2ee   : > { %v5560_v36 = vld [vmem:[%s7730_s6 + $0x738] sm:$0xff]  ;;  %v5706_v43 = vld [vmem:[%s7730_s6 + $0xa40] sm:$0xff] }
 0x2ef   : > { %v8880_v10 = vpop.f32.mrf.mxu0  ;;  %v8882_v47 = vpop.f32.mrf.mxu1  ;;  %6486 = vmatmul.mubr.msk.bf16.gmra.mxu0 %vm1924_vm3, %v3437_v46  ;;  %6684 = vmatmul.mubr.msk.bf16.gmra.mxu1 %vm1924_vm3, %v4255_v59  ;;  %v3438_v46 = vpack.c.bf16 %v5560_v36, %v5559_v53  ;;  %v4256_v61 = vpack.c.bf16 %v5707_v22, %v5706_v43  ;;  %v5709_v53 = vld [vmem:[%s7730_s6 + $0xa58] sm:$0xff] }
 0x2f0   : > { %10190 = vst [vmem:[#allocation120_spill] sm:$0xff] %v8880_v10  ;;  %10191 = vst [vmem:[#allocation121_spill] sm:$0xff] %v8882_v47  ;;  %6489 = vmatprep.mubr.msk.bf16.mxu0 %vm6872_vm2, %v10079_v5  ;;  %6687 = vmatprep.mubr.msk.bf16.mxu1 %vm6872_vm2, %v10079_v5 }
 0x2f1   : > { %v6191_v62 = vpop.f32.mrf.mxu0  ;;  %v6389_v15 = vpop.f32.mrf.mxu1 }
 0x2f2   : > { %v5561_v62 = vld [vmem:[%s7730_s6 + $0x740] sm:$0xff] }
 0x2f3   : > { %v8896_v63 = vpop.f32.mrf.mxu0  ;;  %v8898_v59 = vpop.f32.mrf.mxu1 }
 0x2f4   : > { %10192 = vst [vmem:[#allocation122_spill] sm:$0xff] %v8896_v63  ;;  %10193 = vst [vmem:[#allocation123_spill] sm:$0xff] %v8898_v59 }
 0x2f5   : > { %v6192_v47 = vpop.f32.mrf.mxu0  ;;  %v6390_v10 = vpop.f32.mrf.mxu1 }
 0x2f6   : > { %v5562_v47 = vld [vmem:[%s7730_s6 + $0x748] sm:$0xff]  ;;  %v5708_v10 = vld [vmem:[%s7730_s6 + $0xa50] sm:$0xff] }
 0x2f7   : > { %v8902_v28 = vpop.f32.mrf.mxu0  ;;  %v8904_v12 = vpop.f32.mrf.mxu1  ;;  %6490 = vmatmul.mubr.msk.bf16.gmra.mxu0 %vm1924_vm3, %v3438_v46  ;;  %6688 = vmatmul.mubr.msk.bf16.gmra.mxu1 %vm1924_vm3, %v4256_v61  ;;  %v3439_v46 = vpack.c.bf16 %v5562_v47, %v5561_v62  ;;  %v4257_v15 = vpack.c.bf16 %v5709_v53, %v5708_v10  ;;  %v5711_v62 = vld [vmem:[%s7730_s6 + $0xa68] sm:$0xff] }
 0x2f8   : > { %10194 = vst [vmem:[#allocation124_spill] sm:$0xff] %v8902_v28  ;;  %10195 = vst [vmem:[#allocation125_spill] sm:$0xff] %v8904_v12  ;;  %6493 = vmatprep.mubr.msk.bf16.mxu0 %vm6872_vm2, %v10079_v5  ;;  %6691 = vmatprep.mubr.msk.bf16.mxu1 %vm6872_vm2, %v10079_v5 }
 0x2f9   : > { %v6195_v36 = vpop.f32.mrf.mxu0  ;;  %v6393_v43 = vpop.f32.mrf.mxu1 }
 0x2fa   : > { %v5563_v36 = vld [vmem:[%s7730_s6 + $0x750] sm:$0xff] }
 0x2fb   : > { %v8918_v22 = vpop.f32.mrf.mxu0  ;;  %v8920_v61 = vpop.f32.mrf.mxu1 }
 0x2fc   : > { %10196 = vst [vmem:[#allocation126_spill] sm:$0xff] %v8918_v22  ;;  %10197 = vst [vmem:[#allocation127_spill] sm:$0xff] %v8920_v61 }
 0x2fd   : > { %v6196_v12 = vpop.f32.mrf.mxu0  ;;  %v6394_v28 = vpop.f32.mrf.mxu1 }
 0x2fe   : > { %v5564_v12 = vld [vmem:[%s7730_s6 + $0x758] sm:$0xff]  ;;  %v5710_v28 = vld [vmem:[%s7730_s6 + $0xa60] sm:$0xff] }
 0x2ff   : > { %v8924_v59 = vpop.f32.mrf.mxu0  ;;  %v8926_v63 = vpop.f32.mrf.mxu1  ;;  %6494 = vmatmul.mubr.msk.bf16.gmra.mxu0 %vm1924_vm3, %v3439_v46  ;;  %6692 = vmatmul.mubr.msk.bf16.gmra.mxu1 %vm1924_vm3, %v4257_v15  ;;  %v3440_v46 = vpack.c.bf16 %v5564_v12, %v5563_v36  ;;  %v4258_v43 = vpack.c.bf16 %v5711_v62, %v5710_v28  ;;  %v5713_v36 = vld [vmem:[%s7730_s6 + $0xa78] sm:$0xff] }
 0x300   : > { %10198 = vst [vmem:[#allocation128_spill] sm:$0xff] %v8924_v59  ;;  %10199 = vst [vmem:[#allocation129_spill] sm:$0xff] %v8926_v63  ;;  %6497 = vmatprep.mubr.msk.bf16.mxu0 %vm6872_vm2, %v10079_v5  ;;  %6695 = vmatprep.mubr.msk.bf16.mxu1 %vm6872_vm2, %v10079_v5 }
 0x301   : > { %v6199_v47 = vpop.f32.mrf.mxu0  ;;  %v6397_v10 = vpop.f32.mrf.mxu1 }
 0x302   : > { %v5565_v47 = vld [vmem:[%s7730_s6 + $0x760] sm:$0xff] }
 0x303   : > { %v8940_v53 = vpop.f32.mrf.mxu0  ;;  %v8942_v15 = vpop.f32.mrf.mxu1 }
 0x304   : > { %10200 = vst [vmem:[#allocation130_spill] sm:$0xff] %v8940_v53  ;;  %10201 = vst [vmem:[#allocation131_spill] sm:$0xff] %v8942_v15 }
 0x305   : > { %v6200_v63 = vpop.f32.mrf.mxu0  ;;  %v6398_v59 = vpop.f32.mrf.mxu1 }
 0x306   : > { %v5566_v63 = vld [vmem:[%s7730_s6 + $0x768] sm:$0xff]  ;;  %v5712_v59 = vld [vmem:[%s7730_s6 + $0xa70] sm:$0xff] }
 0x307   : > { %v8946_v61 = vpop.f32.mrf.mxu0  ;;  %v8948_v22 = vpop.f32.mrf.mxu1  ;;  %6498 = vmatmul.mubr.msk.bf16.gmra.mxu0 %vm1924_vm3, %v3440_v46  ;;  %6696 = vmatmul.mubr.msk.bf16.gmra.mxu1 %vm1924_vm3, %v4258_v43  ;;  %v3441_v46 = vpack.c.bf16 %v5566_v63, %v5565_v47  ;;  %v4259_v10 = vpack.c.bf16 %v5713_v36, %v5712_v59  ;;  %v5715_v47 = vld [vmem:[%s7730_s6 + $0xa88] sm:$0xff] }
 0x308   : > { %10202 = vst [vmem:[#allocation132_spill] sm:$0xff] %v8946_v61  ;;  %10203 = vst [vmem:[#allocation133_spill] sm:$0xff] %v8948_v22  ;;  %6501 = vmatprep.mubr.msk.bf16.mxu0 %vm6872_vm2, %v10079_v5  ;;  %6699 = vmatprep.mubr.msk.bf16.mxu1 %vm6872_vm2, %v10079_v5 }
 0x309   : > { %v6203_v12 = vpop.f32.mrf.mxu0  ;;  %v6401_v28 = vpop.f32.mrf.mxu1 }
 0x30a   : > { %v5567_v12 = vld [vmem:[%s7730_s6 + $0x770] sm:$0xff] }
 0x30b   : > { %v8962_v62 = vpop.f32.mrf.mxu0  ;;  %v8964_v43 = vpop.f32.mrf.mxu1 }
 0x30c   : > { %10204 = vst [vmem:[#allocation134_spill] sm:$0xff] %v8962_v62  ;;  %10205 = vst [vmem:[#allocation135_spill] sm:$0xff] %v8964_v43 }
 0x30d   : > { %v6204_v22 = vpop.f32.mrf.mxu0  ;;  %v6402_v61 = vpop.f32.mrf.mxu1 }
 0x30e   : > { %v5568_v22 = vld [vmem:[%s7730_s6 + $0x778] sm:$0xff]  ;;  %v5714_v61 = vld [vmem:[%s7730_s6 + $0xa80] sm:$0xff] }
 0x30f   : > { %v8968_v15 = vpop.f32.mrf.mxu0  ;;  %v8970_v53 = vpop.f32.mrf.mxu1  ;;  %6502 = vmatmul.mubr.msk.bf16.gmra.mxu0 %vm1924_vm3, %v3441_v46  ;;  %6700 = vmatmul.mubr.msk.bf16.gmra.mxu1 %vm1924_vm3, %v4259_v10  ;;  %v3442_v46 = vpack.c.bf16 %v5568_v22, %v5567_v12  ;;  %v4260_v28 = vpack.c.bf16 %v5715_v47, %v5714_v61  ;;  %v5717_v12 = vld [vmem:[%s7730_s6 + $0xa98] sm:$0xff] }
 0x310   : > { %10206 = vst [vmem:[#allocation136_spill] sm:$0xff] %v8968_v15  ;;  %10207 = vst [vmem:[#allocation137_spill] sm:$0xff] %v8970_v53  ;;  %6505 = vmatprep.mubr.msk.bf16.mxu0 %vm6872_vm2, %v10079_v5  ;;  %6703 = vmatprep.mubr.msk.bf16.mxu1 %vm6872_vm2, %v10079_v5 }
 0x311   : > { %v6207_v63 = vpop.f32.mrf.mxu0  ;;  %v6405_v59 = vpop.f32.mrf.mxu1 }
 0x312   : > { %v5569_v63 = vld [vmem:[%s7730_s6 + $0x780] sm:$0xff] }
 0x313   : > { %v8984_v36 = vpop.f32.mrf.mxu0  ;;  %v8986_v10 = vpop.f32.mrf.mxu1 }
 0x314   : > { %10208 = vst [vmem:[#allocation138_spill] sm:$0xff] %v8984_v36  ;;  %10209 = vst [vmem:[#allocation139_spill] sm:$0xff] %v8986_v10 }
 0x315   : > { %v6208_v53 = vpop.f32.mrf.mxu0  ;;  %v6406_v15 = vpop.f32.mrf.mxu1 }
 0x316   : > { %v5570_v53 = vld [vmem:[%s7730_s6 + $0x788] sm:$0xff]  ;;  %v5716_v15 = vld [vmem:[%s7730_s6 + $0xa90] sm:$0xff] }
 0x317   : > { %v8990_v43 = vpop.f32.mrf.mxu0  ;;  %v8992_v62 = vpop.f32.mrf.mxu1  ;;  %6506 = vmatmul.mubr.msk.bf16.gmra.mxu0 %vm1924_vm3, %v3442_v46  ;;  %6704 = vmatmul.mubr.msk.bf16.gmra.mxu1 %vm1924_vm3, %v4260_v28  ;;  %v3443_v46 = vpack.c.bf16 %v5570_v53, %v5569_v63  ;;  %v4261_v59 = vpack.c.bf16 %v5717_v12, %v5716_v15  ;;  %v5719_v63 = vld [vmem:[%s7730_s6 + $0xaa8] sm:$0xff] }
 0x318   : > { %10210 = vst [vmem:[#allocation140_spill] sm:$0xff] %v8990_v43  ;;  %10211 = vst [vmem:[#allocation141_spill] sm:$0xff] %v8992_v62  ;;  %6509 = vmatprep.mubr.msk.bf16.mxu0 %vm6872_vm2, %v10079_v5  ;;  %6707 = vmatprep.mubr.msk.bf16.mxu1 %vm6872_vm2, %v10079_v5 }
 0x319   : > { %v6211_v22 = vpop.f32.mrf.mxu0  ;;  %v6409_v61 = vpop.f32.mrf.mxu1 }
 0x31a   : > { %v5571_v22 = vld [vmem:[%s7730_s6 + $0x790] sm:$0xff] }
 0x31b   : > { %v9006_v47 = vpop.f32.mrf.mxu0  ;;  %v9008_v28 = vpop.f32.mrf.mxu1 }
 0x31c   : > { %10212 = vst [vmem:[#allocation142_spill] sm:$0xff] %v9006_v47  ;;  %10213 = vst [vmem:[#allocation143_spill] sm:$0xff] %v9008_v28  ;;  %v10221_v47 = vmax.f32 %v7978_v40, %v7981_v41 }
 0x31d   : > { %v6212_v62 = vpop.f32.mrf.mxu0  ;;  %v6410_v43 = vpop.f32.mrf.mxu1 }
 0x31e   : > { %v5572_v62 = vld [vmem:[%s7730_s6 + $0x798] sm:$0xff]  ;;  %v5718_v43 = vld [vmem:[%s7730_s6 + $0xaa0] sm:$0xff] }
 0x31f   : > { %v9012_v10 = vpop.f32.mrf.mxu0  ;;  %v9014_v36 = vpop.f32.mrf.mxu1  ;;  %6510 = vmatmul.mubr.msk.bf16.gmra.mxu0 %vm1924_vm3, %v3443_v46  ;;  %6708 = vmatmul.mubr.msk.bf16.gmra.mxu1 %vm1924_vm3, %v4261_v59  ;;  %v3444_v46 = vpack.c.bf16 %v5572_v62, %v5571_v22  ;;  %v4262_v61 = vpack.c.bf16 %v5719_v63, %v5718_v43  ;;  %v5721_v62 = vld [vmem:[%s7730_s6 + $0xab8] sm:$0xff] }
 0x320   : > { %10214 = vst [vmem:[#allocation144_spill] sm:$0xff] %v9012_v10  ;;  %10215 = vst [vmem:[#allocation145_spill] sm:$0xff] %v9014_v36  ;;  %6513 = vmatprep.mubr.msk.bf16.mxu0 %vm6872_vm2, %v10079_v5  ;;  %6711 = vmatprep.mubr.msk.bf16.mxu1 %vm6872_vm2, %v10079_v5 }
 0x321   : > { %v6215_v53 = vpop.f32.mrf.mxu0  ;;  %v6413_v15 = vpop.f32.mrf.mxu1 }
 0x322   : > { %v5573_v15 = vld [vmem:[%s7730_s6 + $0x7a0] sm:$0xff] }
 0x323   : > { %v9028_v12 = vpop.f32.mrf.mxu0  ;;  %v9030_v59 = vpop.f32.mrf.mxu1 }
 0x324   : > { %10216 = vst [vmem:[#allocation146_spill] sm:$0xff] %v9028_v12  ;;  %10217 = vst [vmem:[#allocation147_spill] sm:$0xff] %v9030_v59 }
 0x325   : > { %v6216_v36 = vpop.f32.mrf.mxu0  ;;  %v6414_v10 = vpop.f32.mrf.mxu1 }
 0x326   : > { %v5574_v36 = vld [vmem:[%s7730_s6 + $0x7a8] sm:$0xff]  ;;  %v5720_v10 = vld [vmem:[%s7730_s6 + $0xab0] sm:$0xff] }
 0x327   : > { %v9036_v28 = vpop.f32.mrf.mxu0  ;;  %v9038_v53 = vpop.f32.mrf.mxu1  ;;  %6514 = vmatmul.mubr.msk.bf16.gmra.mxu0 %vm1924_vm3, %v3444_v46  ;;  %6712 = vmatmul.mubr.msk.bf16.gmra.mxu1 %vm1924_vm3, %v4262_v61  ;;  %v3445_v22 = vpack.c.bf16 %v5574_v36, %v5573_v15  ;;  %v4263_v42 = vpack.c.bf16 %v5721_v62, %v5720_v10  ;;  %v5723_v15 = vld [vmem:[%s7730_s6 + $0xac8] sm:$0xff] }
 0x328   : > { %10218 = vst [vmem:[#allocation148_spill] sm:$0xff] %v9036_v28  ;;  %10219 = vst [vmem:[#allocation149_spill] sm:$0xff] %v9038_v53  ;;  %6517 = vmatprep.mubr.msk.bf16.mxu0 %vm6872_vm2, %v10079_v5  ;;  %6715 = vmatprep.mubr.msk.bf16.mxu1 %vm6872_vm2, %v10079_v5  ;;  %v10222_v53 = vmax.f32 %v7994_v49, %v7996_v50  ;;  %v5577_v49 = vld [vmem:[%s7730_s6 + $0x7c0] sm:$0xff] }
 0x329   : > { %v6219_v43 = vpop.f32.mrf.mxu0  ;;  %v6417_v63 = vpop.f32.mrf.mxu1 }
 0x32a   : > { %v5575_v63 = vld [vmem:[%s7730_s6 + $0x7b0] sm:$0xff] }
 0x32b   : > { %v9052_v46 = vpop.f32.mrf.mxu0  ;;  %v9054_v61 = vpop.f32.mrf.mxu1 }
 0x32c   : > { %10220 = vst [vmem:[#allocation150_spill] sm:$0xff] %v9054_v61 }
 0x32d   : > { %v6220_v28 = vpop.f32.mrf.mxu0  ;;  %v6418_v59 = vpop.f32.mrf.mxu1 }
 0x32e   : > { %v5576_v28 = vld [vmem:[%s7730_s6 + $0x7b8] sm:$0xff]  ;;  %v5722_v59 = vld [vmem:[%s7730_s6 + $0xac0] sm:$0xff] }
 0x32f   : > { %v3651_v12 = vpop.f32.mrf.mxu0  ;;  %6518 = vmatmul.mubr.msk.bf16.gmra.mxu0 %vm1924_vm3, %v3445_v22  ;;  %v4469_v43 = vpop.f32.mrf.mxu1  ;;  %6716 = vmatmul.mubr.msk.bf16.gmra.mxu1 %vm1924_vm3, %v4263_v42  ;;  %v9074_v22 = vld [vmem:[%s9920_s2] ss:$0 sm:$0xff] }
 0x330   : > { %v4042_v11 = vmax.f32 %v10221_v47, %v3651_v12  ;;  %6521 = vmatprep.mubr.msk.bf16.mxu0 %vm6872_vm2, %v10079_v5  ;;  %6719 = vmatprep.mubr.msk.bf16.mxu1 %vm6872_vm2, %v10079_v5  ;;  %v3446_v47 = vpack.c.bf16 %v5576_v28, %v5575_v63  ;;  %v4264_v12 = vpack.c.bf16 %v5723_v15, %v5722_v59 }
 0x331   : > { %v6423_v42 = vpop.f32.mrf.mxu0  ;;  %v6621_v36 = vpop.f32.mrf.mxu1 }
 0x332   : > { %v4860_v10 = vmax.f32 %v4042_v11, %v4469_v43  ;;  %v5724_v36 = vld [vmem:[%s7730_s6 + $0xad0] sm:$0xff] }
 0x333   : > { %v3654_v40 = vpop.f32.mrf.mxu0  ;;  %v4472_v41 = vpop.f32.mrf.mxu1 }
 0x334   : > { %v4965_v62 = vadd.f32 %v9074_v22, %v4860_v10  ;;  %v4043_v61 = vmax.f32 %v10222_v53, %v3654_v40  ;;  %v10223_v53 = vmax.f32 %v8000_v56, %v8003_v57  ;;  %v5725_v10 = vld [vmem:[%s7730_s6 + $0xad8] sm:$0xff] }
 0x335   : > { %v6424_v11 = vpop.f32.mrf.mxu0  ;;  %v6622_v43 = vpop.f32.mrf.mxu1  ;;  %v4265_v56 = vpack.c.bf16 %v5725_v10, %v5724_v36  ;;  %v5580_v10 = vld [vmem:[%s7730_s6 + $0x7d8] sm:$0xff] }
 0x336   : > { %v5063_v63 = vmax.f32 %v4965_v62, 0.0  ;;  %v4861_v28 = vmax.f32 %v4043_v61, %v4472_v41  ;;  %v5578_v61 = vld [vmem:[%s7730_s6 + $0x7c8] sm:$0xff] }
 0x337   : > { %v3659_v59 = vpop.f32.mrf.mxu0  ;;  %6522 = vmatmul.mubr.msk.bf16.gmra.mxu0 %vm1924_vm3, %v3446_v47  ;;  %v4477_v15 = vpop.f32.mrf.mxu1  ;;  %6720 = vmatmul.mubr.msk.bf16.gmra.mxu1 %vm1924_vm3, %v4264_v12  ;;  %v3447_v43 = vpack.c.bf16 %v5578_v61, %v5577_v49  ;;  %v5579_v61 = vld [vmem:[%s7730_s6 + $0x7d0] sm:$0xff] }
 0x338   : > { %5162 = vst.msk [vmem:[%s9083_s14] sm:$0xff] %vm5161_vm4, %v5063_v63  ;;  %v4966_v50 = vadd.f32 %v9074_v22, %v4861_v28  ;;  %v4044_v42 = vmax.f32 %v10223_v53, %v3659_v59  ;;  %6525 = vmatprep.mubr.msk.bf16.mxu0 %vm6872_vm2, %v10079_v5  ;;  %6723 = vmatprep.mubr.msk.bf16.mxu1 %vm6872_vm2, %v10079_v5 }
 0x339   : > { %v6427_v40 = vpop.f32.mrf.mxu0  ;;  %v6625_v41 = vpop.f32.mrf.mxu1  ;;  %v10224_v63 = vmax.f32 %v8016_v1, %v8018_v2  ;;  %v10225_v2 = vmax.f32 %v8022_v8, %v8025_v9 }
 0x33a   : > { %v5064_v47 = vmax.f32 %v4966_v50, 0.0  ;;  %v4862_v12 = vmax.f32 %v4044_v42, %v4477_v15  ;;  %v5726_v40 = vld [vmem:[%s7730_s6 + $0xae0] sm:$0xff]  ;;  %v5727_v41 = vld [vmem:[%s7730_s6 + $0xae8] sm:$0xff] }
 0x33b   : > { %v3662_v62 = vpop.f32.mrf.mxu0  ;;  %v4480_v11 = vpop.f32.mrf.mxu1  ;;  %v4266_v8 = vpack.c.bf16 %v5727_v41, %v5726_v40 }
 0x33c   : > { %5163 = vst.msk [vmem:[%s9083_s14 + $0x8] sm:$0xff] %vm5161_vm4, %v5064_v47  ;;  %v4967_v57 = vadd.f32 %v9074_v22, %v4862_v12  ;;  %v4045_v28 = vmax.f32 %v10224_v63, %v3662_v62  ;;  %v10226_v63 = vmax.f32 %v8038_v18, %v8040_v19  ;;  %v10227_v19 = vmax.f32 %v8044_v25, %v8047_v26 }
 0x33d   : > { %v6428_v59 = vpop.f32.mrf.mxu0  ;;  %v6626_v50 = vpop.f32.mrf.mxu1 }
 0x33e   : > { %v5065_v15 = vmax.f32 %v4967_v57, 0.0  ;;  %v4863_v53 = vmax.f32 %v4045_v28, %v4480_v11  ;;  %v3448_v57 = vpack.c.bf16 %v5580_v10, %v5579_v61  ;;  %v5581_v61 = vld [vmem:[%s7730_s6 + $0x7e0] sm:$0xff]  ;;  %v5729_v10 = vld [vmem:[%s7730_s6 + $0xaf8] sm:$0xff] }
 0x33f   : > { %v3667_v42 = vpop.f32.mrf.mxu0  ;;  %6526 = vmatmul.mubr.msk.bf16.gmra.mxu0 %vm1924_vm3, %v3447_v43  ;;  %v4485_v49 = vpop.f32.mrf.mxu1  ;;  %6724 = vmatmul.mubr.msk.bf16.gmra.mxu1 %vm1924_vm3, %v4265_v56 }
 0x340   : > { %5164 = vst.msk [vmem:[%s9083_s14 + $0x10] sm:$0xff] %vm5161_vm4, %v5065_v15  ;;  %v4968_v1 = vadd.f32 %v9074_v22, %v4863_v53  ;;  %v4046_v36 = vmax.f32 %v10225_v2, %v3667_v42  ;;  %6529 = vmatprep.mubr.msk.bf16.mxu0 %vm6872_vm2, %v10079_v5  ;;  %6727 = vmatprep.mubr.msk.bf16.mxu1 %vm6872_vm2, %v10079_v5  ;;  %v5582_v2 = vld [vmem:[%s7730_s6 + $0x7e8] sm:$0xff] }
 0x341   : > { %v6431_v47 = vpop.f32.mrf.mxu0  ;;  %v6629_v12 = vpop.f32.mrf.mxu1 }
 0x342   : > { %v5066_v62 = vmax.f32 %v4968_v1, 0.0  ;;  %v4864_v11 = vmax.f32 %v4046_v36, %v4485_v49  ;;  %v5728_v36 = vld [vmem:[%s7730_s6 + $0xaf0] sm:$0xff] }
 0x343   : > { %v3670_v43 = vpop.f32.mrf.mxu0  ;;  %v4488_v56 = vpop.f32.mrf.mxu1  ;;  %v4267_v25 = vpack.c.bf16 %v5729_v10, %v5728_v36 }
 0x344   : > { %5165 = vst.msk [vmem:[%s9083_s14 + $0x18] sm:$0xff] %vm5161_vm4, %v5066_v62  ;;  %v4969_v9 = vadd.f32 %v9074_v22, %v4864_v11  ;;  %v4047_v28 = vmax.f32 %v10226_v63, %v3670_v43  ;;  %v3449_v43 = vpack.c.bf16 %v5582_v2, %v5581_v61  ;;  %v5731_v61 = vld [vmem:[%s7730_s6 + $0xb08] sm:$0xff] }
 0x345   : > { %v6432_v59 = vpop.f32.mrf.mxu0  ;;  %v6630_v50 = vpop.f32.mrf.mxu1 }
 0x346   : > { %v5067_v15 = vmax.f32 %v4969_v9, 0.0  ;;  %v4865_v53 = vmax.f32 %v4047_v28, %v4488_v56  ;;  %v10228_v56 = vmax.f32 %v8060_v34, %v8062_v35  ;;  %v10229_v35 = vmax.f32 %v8066_v44, %v8069_v45 }
 0x347   : > { %v3675_v42 = vpop.f32.mrf.mxu0  ;;  %6530 = vmatmul.mubr.msk.bf16.gmra.mxu0 %vm1924_vm3, %v3448_v57  ;;  %v4493_v49 = vpop.f32.mrf.mxu1  ;;  %6728 = vmatmul.mubr.msk.bf16.gmra.mxu1 %vm1924_vm3, %v4266_v8 }
 0x348   : > { %5166 = vst.msk [vmem:[%s9083_s14 + $0x20] sm:$0xff] %vm5161_vm4, %v5067_v15  ;;  %v4970_v18 = vadd.f32 %v9074_v22, %v4865_v53  ;;  %v4048_v1 = vmax.f32 %v10227_v19, %v3675_v42  ;;  %6533 = vmatprep.mubr.msk.bf16.mxu0 %vm6872_vm2, %v10079_v5  ;;  %6731 = vmatprep.mubr.msk.bf16.mxu1 %vm6872_vm2, %v10079_v5  ;;  %v5583_v15 = vld [vmem:[%s7730_s6 + $0x7f0] sm:$0xff]  ;;  %v5584_v42 = vld [vmem:[%s7730_s6 + $0x7f8] sm:$0xff] }
 0x349   : > { %v6435_v40 = vpop.f32.mrf.mxu0  ;;  %v6633_v41 = vpop.f32.mrf.mxu1 }
 0x34a   : > { %v5068_v47 = vmax.f32 %v4970_v18, 0.0  ;;  %v4866_v12 = vmax.f32 %v4048_v1, %v4493_v49  ;;  %v5730_v49 = vld [vmem:[%s7730_s6 + $0xb00] sm:$0xff]  ;;  %v3450_v40 = vpack.c.bf16 %v5584_v42, %v5583_v15  ;;  %v10230_v41 = vmax.f32 %v8082_v58, %v8084_v60 }
 0x34b   : > { %v3678_v62 = vpop.f32.mrf.mxu0  ;;  %v4496_v11 = vpop.f32.mrf.mxu1  ;;  %v4268_v44 = vpack.c.bf16 %v5731_v61, %v5730_v49  ;;  %v10231_v60 = vmax.f32 %v8088_v4, %v8091_v6  ;;  %v10232_v42 = vmax.f32 %v8104_v20, %v8106_v21  ;;  %v10233_v21 = vmax.f32 %v8110_v31, %v8113_v32 }
 0x34c   : > { %5167 = vst.msk [vmem:[%s9083_s14 + $0x28] sm:$0xff] %vm5161_vm4, %v5068_v47  ;;  %v4971_v26 = vadd.f32 %v9074_v22, %v4866_v12  ;;  %v4049_v57 = vmax.f32 %v10228_v56, %v3678_v62  ;;  %v5585_v56 = vld [vmem:[%s7730_s6 + $0x800] sm:$0xff] }
 0x34d   : > { %v6436_v8 = vpop.f32.mrf.mxu0  ;;  %v6634_v9 = vpop.f32.mrf.mxu1 }
 0x34e   : > { %v5069_v63 = vmax.f32 %v4971_v26, 0.0  ;;  %v4867_v28 = vmax.f32 %v4049_v57, %v4496_v11  ;;  %v5586_v8 = vld [vmem:[%s7730_s6 + $0x808] sm:$0xff]  ;;  %v5732_v9 = vld [vmem:[%s7730_s6 + $0xb10] sm:$0xff] }
 0x34f   : > { %v3683_v59 = vpop.f32.mrf.mxu0  ;;  %6534 = vmatmul.mubr.msk.bf16.gmra.mxu0 %vm1924_vm3, %v3449_v43  ;;  %v4501_v50 = vpop.f32.mrf.mxu1  ;;  %6732 = vmatmul.mubr.msk.bf16.gmra.mxu1 %vm1924_vm3, %v4267_v25 }
 0x350   : > { %5168 = vst.msk [vmem:[%s9083_s14 + $0x30] sm:$0xff] %vm5161_vm4, %v5069_v63  ;;  %v4972_v34 = vadd.f32 %v9074_v22, %v4867_v28  ;;  %v4050_v53 = vmax.f32 %v10229_v35, %v3683_v59  ;;  %6537 = vmatprep.mubr.msk.bf16.mxu0 %vm6872_vm2, %v10079_v5  ;;  %6735 = vmatprep.mubr.msk.bf16.mxu1 %vm6872_vm2, %v10079_v5  ;;  %v5733_v63 = vld [vmem:[%s7730_s6 + $0xb18] sm:$0xff] }
 0x351   : > { %v6439_v18 = vpop.f32.mrf.mxu0  ;;  %v6637_v19 = vpop.f32.mrf.mxu1  ;;  %v4269_v4 = vpack.c.bf16 %v5733_v63, %v5732_v9 }
 0x352   : > { %v5070_v1 = vmax.f32 %v4972_v34, 0.0  ;;  %v4868_v2 = vmax.f32 %v4050_v53, %v4501_v50  ;;  %v3451_v53 = vpack.c.bf16 %v5586_v8, %v5585_v56  ;;  %v10234_v56 = vmax.f32 %v8126_v51, %v8128_v52 }
 0x353   : > { %v3686_v36 = vpop.f32.mrf.mxu0  ;;  %v4504_v10 = vpop.f32.mrf.mxu1  ;;  %v10235_v52 = vmax.f32 %v8132_v3, %v8135_v7 }
 0x354   : > { %5169 = vst.msk [vmem:[%s9083_s14 + $0x38] sm:$0xff] %vm5161_vm4, %v5070_v1  ;;  %v4973_v45 = vadd.f32 %v9074_v22, %v4868_v2  ;;  %v4051_v47 = vmax.f32 %v10230_v41, %v3686_v36  ;;  %v5735_v41 = vld [vmem:[%s7730_s6 + $0xb28] sm:$0xff] }
 0x355   : > { %v6440_v12 = vpop.f32.mrf.mxu0  ;;  %v6638_v62 = vpop.f32.mrf.mxu1 }
 0x356   : > { %v5071_v11 = vmax.f32 %v4973_v45, 0.0  ;;  %v4869_v43 = vmax.f32 %v4051_v47, %v4504_v10  ;;  %v5587_v10 = vld [vmem:[%s7730_s6 + $0x810] sm:$0xff]  ;;  %v5734_v45 = vld [vmem:[%s7730_s6 + $0xb20] sm:$0xff] }
 0x357   : > { %v3691_v25 = vpop.f32.mrf.mxu0  ;;  %6538 = vmatmul.mubr.msk.bf16.gmra.mxu0 %vm1924_vm3, %v3450_v40  ;;  %v4509_v26 = vpop.f32.mrf.mxu1  ;;  %6736 = vmatmul.mubr.msk.bf16.gmra.mxu1 %vm1924_vm3, %v4268_v44  ;;  %v5588_v44 = vld [vmem:[%s7730_s6 + $0x818] sm:$0xff]  ;;  %v4270_v31 = vpack.c.bf16 %v5735_v41, %v5734_v45 }
 0x358   : > { %5170 = vst.msk [vmem:[%s9083_s14 + $0x40] sm:$0xff] %vm5161_vm4, %v5071_v11  ;;  %v4974_v58 = vadd.f32 %v9074_v22, %v4869_v43  ;;  %v4052_v57 = vmax.f32 %v10231_v60, %v3691_v25  ;;  %6541 = vmatprep.mubr.msk.bf16.mxu0 %vm6872_vm2, %v10079_v5  ;;  %6739 = vmatprep.mubr.msk.bf16.mxu1 %vm6872_vm2, %v10079_v5  ;;  %v5592_v41 = vld [vmem:[%s7730_s6 + $0x838] sm:$0xff] }
 0x359   : > { %v6443_v28 = vpop.f32.mrf.mxu0  ;;  %v6641_v59 = vpop.f32.mrf.mxu1 }
 0x35a   : > { %v5072_v50 = vmax.f32 %v4974_v58, 0.0  ;;  %v4870_v15 = vmax.f32 %v4052_v57, %v4509_v26  ;;  %v3452_v26 = vpack.c.bf16 %v5588_v44, %v5587_v10  ;;  %v5589_v59 = vld [vmem:[%s7730_s6 + $0x820] sm:$0xff]  ;;  %v5591_v44 = vld [vmem:[%s7730_s6 + $0x830] sm:$0xff] }
 0x35b   : > { %v3694_v34 = vpop.f32.mrf.mxu0  ;;  %v4512_v35 = vpop.f32.mrf.mxu1 }
 0x35c   : > { %5171 = vst.msk [vmem:[%s9083_s14 + $0x48] sm:$0xff] %vm5161_vm4, %v5072_v50  ;;  %v4975_v6 = vadd.f32 %v9074_v22, %v4870_v15  ;;  %v4053_v49 = vmax.f32 %v10232_v42, %v3694_v34  ;;  %v5590_v15 = vld [vmem:[%s7730_s6 + $0x828] sm:$0xff]  ;;  %v5736_v34 = vld [vmem:[%s7730_s6 + $0xb30] sm:$0xff] }
 0x35d   : > { %v6444_v61 = vpop.f32.mrf.mxu0  ;;  %v6642_v18 = vpop.f32.mrf.mxu1 }
 0x35e   : > { %v5073_v19 = vmax.f32 %v4975_v6, 0.0  ;;  %v4871_v1 = vmax.f32 %v4053_v49, %v4512_v35  ;;  %v5737_v35 = vld [vmem:[%s7730_s6 + $0xb38] sm:$0xff]  ;;  %v3453_v18 = vpack.c.bf16 %v5590_v15, %v5589_v59  ;;  %v5593_v59 = vld [vmem:[%s7730_s6 + $0x840] sm:$0xff] }
 0x35f   : > { %v3699_v2 = vpop.f32.mrf.mxu0  ;;  %6542 = vmatmul.mubr.msk.bf16.gmra.mxu0 %vm1924_vm3, %v3451_v53  ;;  %v4517_v36 = vpop.f32.mrf.mxu1  ;;  %6740 = vmatmul.mubr.msk.bf16.gmra.mxu1 %vm1924_vm3, %v4269_v4  ;;  %v4271_v3 = vpack.c.bf16 %v5737_v35, %v5736_v34  ;;  %v5741_v15 = vld [vmem:[%s7730_s6 + $0xb58] sm:$0xff] }
 0x360   : > { %5172 = vst.msk [vmem:[%s9083_s14 + $0x50] sm:$0xff] %vm5161_vm4, %v5073_v19  ;;  %v4976_v20 = vadd.f32 %v9074_v22, %v4871_v1  ;;  %v4054_v40 = vmax.f32 %v10233_v21, %v3699_v2  ;;  %6545 = vmatprep.mubr.msk.bf16.mxu0 %vm6872_vm2, %v10079_v5  ;;  %6743 = vmatprep.mubr.msk.bf16.mxu1 %vm6872_vm2, %v10079_v5 }
 0x361   : > { %v6447_v47 = vpop.f32.mrf.mxu0  ;;  %v6645_v12 = vpop.f32.mrf.mxu1  ;;  %v10236_v19 = vmax.f32 %v8148_v29, %v8150_v30  ;;  %v10237_v30 = vmax.f32 %v8154_v48, %v8157_v54 }
 0x362   : > { %v5074_v62 = vmax.f32 %v4976_v20, 0.0  ;;  %v4872_v11 = vmax.f32 %v4054_v40, %v4517_v36  ;;  %v5738_v47 = vld [vmem:[%s7730_s6 + $0xb40] sm:$0xff]  ;;  %v5739_v12 = vld [vmem:[%s7730_s6 + $0xb48] sm:$0xff] }
 0x363   : > { %v3702_v43 = vpop.f32.mrf.mxu0  ;;  %v4520_v25 = vpop.f32.mrf.mxu1  ;;  %v4272_v48 = vpack.c.bf16 %v5739_v12, %v5738_v47 }
 0x364   : > { %5173 = vst.msk [vmem:[%s9083_s14 + $0x58] sm:$0xff] %vm5161_vm4, %v5074_v62  ;;  %v4977_v32 = vadd.f32 %v9074_v22, %v4872_v11  ;;  %v4055_v58 = vmax.f32 %v10234_v56, %v3702_v43  ;;  %v10238_v56 = vmax.f32 %v8170_v23, %v8172_v24  ;;  %v10239_v24 = vmax.f32 %v8176_v39, %v8179_v16 }
 0x365   : > { %v6448_v60 = vpop.f32.mrf.mxu0  ;;  %v6646_v57 = vpop.f32.mrf.mxu1 }
 0x366   : > { %v5075_v8 = vmax.f32 %v4977_v32, 0.0  ;;  %v4873_v9 = vmax.f32 %v4055_v58, %v4520_v25  ;;  %v3454_v32 = vpack.c.bf16 %v5592_v41, %v5591_v44  ;;  %v5743_v44 = vld [vmem:[%s7730_s6 + $0xb68] sm:$0xff] }
 0x367   : > { %v3707_v63 = vpop.f32.mrf.mxu0  ;;  %6546 = vmatmul.mubr.msk.bf16.gmra.mxu0 %vm1924_vm3, %v3452_v26  ;;  %v4525_v28 = vpop.f32.mrf.mxu1  ;;  %6744 = vmatmul.mubr.msk.bf16.gmra.mxu1 %vm1924_vm3, %v4270_v31 }
 0x368   : > { %5174 = vst.msk [vmem:[%s9083_s14 + $0x60] sm:$0xff] %vm5161_vm4, %v5075_v8  ;;  %v4978_v51 = vadd.f32 %v9074_v22, %v4873_v9  ;;  %v4056_v50 = vmax.f32 %v10235_v52, %v3707_v63  ;;  %6549 = vmatprep.mubr.msk.bf16.mxu0 %vm6872_vm2, %v10079_v5  ;;  %6747 = vmatprep.mubr.msk.bf16.mxu1 %vm6872_vm2, %v10079_v5  ;;  %v5594_v52 = vld [vmem:[%s7730_s6 + $0x848] sm:$0xff] }
 0x369   : > { %v6451_v53 = vpop.f32.mrf.mxu0  ;;  %v6649_v4 = vpop.f32.mrf.mxu1 }
 0x36a   : > { %v5076_v6 = vmax.f32 %v4978_v51, 0.0  ;;  %v4874_v42 = vmax.f32 %v4056_v50, %v4525_v28  ;;  %v5740_v50 = vld [vmem:[%s7730_s6 + $0xb50] sm:$0xff] }
 0x36b   : > { %v3710_v49 = vpop.f32.mrf.mxu0  ;;  %v4528_v61 = vpop.f32.mrf.mxu1  ;;  %v4273_v39 = vpack.c.bf16 %v5741_v15, %v5740_v50 }
 0x36c   : > { %5175 = vst.msk [vmem:[%s9083_s14 + $0x68] sm:$0xff] %vm5161_vm4, %v5076_v6  ;;  %v4979_v7 = vadd.f32 %v9074_v22, %v4874_v42  ;;  %v4057_v1 = vmax.f32 %v10236_v19, %v3710_v49  ;;  %v3455_v49 = vpack.c.bf16 %v5594_v52, %v5593_v59  ;;  %v10244_v52 = vld [vmem:[#allocation3_spill] sm:$0xff] }
 0x36d   : > { %v6452_v2 = vpop.f32.mrf.mxu0  ;;  %v6650_v36 = vpop.f32.mrf.mxu1  ;;  %v10245_v50 = vmax.f32 %v8236_v17, %v10244_v52 }
 0x36e   : > { %v5077_v10 = vmax.f32 %v4979_v7, 0.0  ;;  %v4875_v20 = vmax.f32 %v4057_v1, %v4528_v61  ;;  %v10240_v61 = vmax.f32 %v8192_v33, %v8194_v37  ;;  %v10241_v37 = vmax.f32 %v8198_v27, %v8201_v13 }
 0x36f   : > { %v3715_v21 = vpop.f32.mrf.mxu0  ;;  %6550 = vmatmul.mubr.msk.bf16.gmra.mxu0 %vm1924_vm3, %v3453_v18  ;;  %v4533_v40 = vpop.f32.mrf.mxu1  ;;  %6748 = vmatmul.mubr.msk.bf16.gmra.mxu1 %vm1924_vm3, %v4271_v3 }
 0x370   : > { %5176 = vst.msk [vmem:[%s9083_s14 + $0x70] sm:$0xff] %vm5161_vm4, %v5077_v10  ;;  %v4980_v29 = vadd.f32 %v9074_v22, %v4875_v20  ;;  %v4058_v45 = vmax.f32 %v10237_v30, %v3715_v21  ;;  %6553 = vmatprep.mubr.msk.bf16.mxu0 %vm6872_vm2, %v10079_v5  ;;  %6751 = vmatprep.mubr.msk.bf16.mxu1 %vm6872_vm2, %v10079_v5  ;;  %v5595_v10 = vld [vmem:[%s7730_s6 + $0x850] sm:$0xff]  ;;  %v5596_v21 = vld [vmem:[%s7730_s6 + $0x858] sm:$0xff] }
 0x371   : > { %v6455_v62 = vpop.f32.mrf.mxu0  ;;  %v6653_v11 = vpop.f32.mrf.mxu1 }
 0x372   : > { %v5078_v43 = vmax.f32 %v4980_v29, 0.0  ;;  %v4876_v25 = vmax.f32 %v4058_v45, %v4533_v40  ;;  %v5742_v40 = vld [vmem:[%s7730_s6 + $0xb60] sm:$0xff]  ;;  %v3456_v62 = vpack.c.bf16 %v5596_v21, %v5595_v10  ;;  %v10242_v11 = vmax.f32 %v8214_v0, %v8216_v14 }
 0x373   : > { %v3718_v26 = vpop.f32.mrf.mxu0  ;;  %v4536_v31 = vpop.f32.mrf.mxu1  ;;  %v4274_v27 = vpack.c.bf16 %v5743_v44, %v5742_v40  ;;  %v10243_v14 = vmax.f32 %v8220_v38, %v8223_v55  ;;  %v10249_v44 = vld [vmem:[#allocation6_spill] sm:$0xff] }
 0x374   : > { %5177 = vst.msk [vmem:[%s9083_s14 + $0x78] sm:$0xff] %vm5161_vm4, %v5078_v43  ;;  %v4981_v54 = vadd.f32 %v9074_v22, %v4876_v25  ;;  %v4059_v58 = vmax.f32 %v10238_v56, %v3718_v26  ;;  %v5597_v56 = vld [vmem:[%s7730_s6 + $0x860] sm:$0xff] }
 0x375   : > { %v6456_v60 = vpop.f32.mrf.mxu0  ;;  %v6654_v57 = vpop.f32.mrf.mxu1 }
 0x376   : > { %v5079_v8 = vmax.f32 %v4981_v54, 0.0  ;;  %v4877_v9 = vmax.f32 %v4059_v58, %v4536_v31  ;;  %v5598_v60 = vld [vmem:[%s7730_s6 + $0x868] sm:$0xff]  ;;  %v5744_v57 = vld [vmem:[%s7730_s6 + $0xb70] sm:$0xff] }
 0x377   : > { %v3723_v63 = vpop.f32.mrf.mxu0  ;;  %6554 = vmatmul.mubr.msk.bf16.gmra.mxu0 %vm1924_vm3, %v3454_v32  ;;  %v4541_v28 = vpop.f32.mrf.mxu1  ;;  %6752 = vmatmul.mubr.msk.bf16.gmra.mxu1 %vm1924_vm3, %v4272_v48 }
 0x378   : > { %5178 = vst.msk [vmem:[%s9083_s14 + $0x80] sm:$0xff] %vm5161_vm4, %v5079_v8  ;;  %v4982_v23 = vadd.f32 %v9074_v22, %v4877_v9  ;;  %v4060_v51 = vmax.f32 %v10239_v24, %v3723_v63  ;;  %6557 = vmatprep.mubr.msk.bf16.mxu0 %vm6872_vm2, %v10079_v5  ;;  %6755 = vmatprep.mubr.msk.bf16.mxu1 %vm6872_vm2, %v10079_v5  ;;  %v5745_v8 = vld [vmem:[%s7730_s6 + $0xb78] sm:$0xff] }
 0x379   : > { %v6459_v34 = vpop.f32.mrf.mxu0  ;;  %v6657_v35 = vpop.f32.mrf.mxu1  ;;  %v4275_v38 = vpack.c.bf16 %v5745_v8, %v5744_v57 }
 0x37a   : > { %v5080_v53 = vmax.f32 %v4982_v23, 0.0  ;;  %v4878_v4 = vmax.f32 %v4060_v51, %v4541_v28  ;;  %v3457_v51 = vpack.c.bf16 %v5598_v60, %v5597_v56  ;;  %v5749_v56 = vld [vmem:[%s7730_s6 + $0xb98] sm:$0xff] }
 0x37b   : > { %v3726_v6 = vpop.f32.mrf.mxu0  ;;  %v4544_v42 = vpop.f32.mrf.mxu1 }
 0x37c   : > { %5179 = vst.msk [vmem:[%s9083_s14 + $0x88] sm:$0xff] %vm5161_vm4, %v5080_v53  ;;  %v4983_v16 = vadd.f32 %v9074_v22, %v4878_v4  ;;  %v4061_v18 = vmax.f32 %v10240_v61, %v3726_v6 }
 0x37d   : > { %v6460_v3 = vpop.f32.mrf.mxu0  ;;  %v6658_v7 = vpop.f32.mrf.mxu1 }
 0x37e   : > { %v5081_v19 = vmax.f32 %v4983_v16, 0.0  ;;  %v4879_v1 = vmax.f32 %v4061_v18, %v4544_v42  ;;  %v10247_v16 = vld [vmem:[#allocation5_spill] sm:$0xff]  ;;  %v5600_v3 = vld [vmem:[%s7730_s6 + $0x878] sm:$0xff]  ;;  %v5746_v7 = vld [vmem:[%s7730_s6 + $0xb80] sm:$0xff] }
 0x37f   : > { %v3731_v2 = vpop.f32.mrf.mxu0  ;;  %6558 = vmatmul.mubr.msk.bf16.gmra.mxu0 %vm1924_vm3, %v3455_v49  ;;  %v4549_v36 = vpop.f32.mrf.mxu1  ;;  %6756 = vmatmul.mubr.msk.bf16.gmra.mxu1 %vm1924_vm3, %v4273_v39  ;;  %v5599_v49 = vld [vmem:[%s7730_s6 + $0x870] sm:$0xff]  ;;  %v10246_v39 = vld [vmem:[#allocation4_spill] sm:$0xff] }
 0x380   : > { %5180 = vst.msk [vmem:[%s9083_s14 + $0x90] sm:$0xff] %vm5161_vm4, %v5081_v19  ;;  %v4984_v33 = vadd.f32 %v9074_v22, %v4879_v1  ;;  %v4062_v20 = vmax.f32 %v10241_v37, %v3731_v2  ;;  %6561 = vmatprep.mubr.msk.bf16.mxu0 %vm6872_vm2, %v10079_v5  ;;  %6759 = vmatprep.mubr.msk.bf16.mxu1 %vm6872_vm2, %v10079_v5  ;;  %v5747_v19 = vld [vmem:[%s7730_s6 + $0xb88] sm:$0xff] }
 0x381   : > { %v6463_v29 = vpop.f32.mrf.mxu0  ;;  %v6661_v30 = vpop.f32.mrf.mxu1  ;;  %v10248_v61 = vmax.f32 %v10246_v39, %v10247_v16  ;;  %v4276_v21 = vpack.c.bf16 %v5747_v19, %v5746_v7  ;;  %v5750_v39 = vld [vmem:[%s7730_s6 + $0xba0] sm:$0xff]  ;;  %v5751_v16 = vld [vmem:[%s7730_s6 + $0xba8] sm:$0xff] }
 0x382   : > { %v5082_v45 = vmax.f32 %v4984_v33, 0.0  ;;  %v4880_v41 = vmax.f32 %v4062_v20, %v4549_v36  ;;  %v3458_v20 = vpack.c.bf16 %v5600_v3, %v5599_v49  ;;  %v10250_v29 = vld [vmem:[#allocation7_spill] sm:$0xff] }
 0x383   : > { %v3734_v47 = vpop.f32.mrf.mxu0  ;;  %v4552_v12 = vpop.f32.mrf.mxu1  ;;  %v10251_v30 = vmax.f32 %v10249_v44, %v10250_v29 }
 0x384   : > { %5181 = vst.msk [vmem:[%s9083_s14 + $0x98] sm:$0xff] %vm5161_vm4, %v5082_v45  ;;  %v4985_v13 = vadd.f32 %v9074_v22, %v4880_v41  ;;  %v4063_v43 = vmax.f32 %v10242_v11, %v3734_v47  ;;  %v5601_v11 = vld [vmem:[%s7730_s6 + $0x880] sm:$0xff] }
 0x385   : > { %v6464_v25 = vpop.f32.mrf.mxu0  ;;  %v6662_v26 = vpop.f32.mrf.mxu1 }
 0x386   : > { %v5083_v31 = vmax.f32 %v4985_v13, 0.0  ;;  %v4881_v32 = vmax.f32 %v4063_v43, %v4552_v12  ;;  %v10252_v25 = vld [vmem:[#allocation8_spill] sm:$0xff]  ;;  %v10253_v26 = vld [vmem:[#allocation9_spill] sm:$0xff] }
 0x387   : > { %v3739_v48 = vpop.f32.mrf.mxu0  ;;  %6562 = vmatmul.mubr.msk.bf16.gmra.mxu0 %vm1924_vm3, %v3456_v62  ;;  %v4557_v54 = vpop.f32.mrf.mxu1  ;;  %6760 = vmatmul.mubr.msk.bf16.gmra.mxu1 %vm1924_vm3, %v4274_v27 }
 0x388   : > { %5182 = vst.msk [vmem:[%s9083_s14 + $0xa0] sm:$0xff] %vm5161_vm4, %v5083_v31  ;;  %v4986_v0 = vadd.f32 %v9074_v22, %v4881_v32  ;;  %v4064_v58 = vmax.f32 %v10243_v14, %v3739_v48  ;;  %6565 = vmatprep.mubr.msk.bf16.mxu0 %vm6872_vm2, %v10079_v5  ;;  %6763 = vmatprep.mubr.msk.bf16.mxu1 %vm6872_vm2, %v10079_v5  ;;  %v5602_v48 = vld [vmem:[%s7730_s6 + $0x888] sm:$0xff] }
 0x389   : > { %v6467_v9 = vpop.f32.mrf.mxu0  ;;  %v6665_v63 = vpop.f32.mrf.mxu1  ;;  %v10254_v31 = vmax.f32 %v10252_v25, %v10253_v26  ;;  %v5752_v25 = vld [vmem:[%s7730_s6 + $0xbb0] sm:$0xff]  ;;  %v5753_v26 = vld [vmem:[%s7730_s6 + $0xbb8] sm:$0xff] }
 0x38a   : > { %v5084_v28 = vmax.f32 %v4986_v0, 0.0  ;;  %v4882_v59 = vmax.f32 %v4064_v58, %v4557_v54  ;;  %v5748_v54 = vld [vmem:[%s7730_s6 + $0xb90] sm:$0xff]  ;;  %v3459_v9 = vpack.c.bf16 %v5602_v48, %v5601_v11 }
 0x38b   : > { %v3742_v23 = vpop.f32.mrf.mxu0  ;;  %v4560_v24 = vpop.f32.mrf.mxu1  ;;  %v4277_v63 = vpack.c.bf16 %v5749_v56, %v5748_v54 }
 0x38c   : > { %5183 = vst.msk [vmem:[%s9083_s14 + $0xa8] sm:$0xff] %vm5161_vm4, %v5084_v28  ;;  %v4987_v55 = vadd.f32 %v9074_v22, %v4882_v59  ;;  %v4065_v15 = vmax.f32 %v10245_v50, %v3742_v23  ;;  %v10255_v59 = vld [vmem:[#allocation10_spill] sm:$0xff]  ;;  %v10256_v23 = vld [vmem:[#allocation11_spill] sm:$0xff] }
 0x38d   : > { %v6468_v34 = vpop.f32.mrf.mxu0  ;;  %v6666_v35 = vpop.f32.mrf.mxu1 }
 0x38e   : > { %v5085_v53 = vmax.f32 %v4987_v55, 0.0  ;;  %v4883_v4 = vmax.f32 %v4065_v15, %v4560_v24  ;;  %v10257_v24 = vmax.f32 %v10255_v59, %v10256_v23  ;;  %v5603_v35 = vld [vmem:[%s7730_s6 + $0x890] sm:$0xff] }
 0x38f   : > { %v3747_v6 = vpop.f32.mrf.mxu0  ;;  %6566 = vmatmul.mubr.msk.bf16.gmra.mxu0 %vm1924_vm3, %v3457_v51  ;;  %v4565_v42 = vpop.f32.mrf.mxu1  ;;  %6764 = vmatmul.mubr.msk.bf16.gmra.mxu1 %vm1924_vm3, %v4275_v38 }
 0x390   : > { %5184 = vst.msk [vmem:[%s9083_s14 + $0xb0] sm:$0xff] %vm5161_vm4, %v5085_v53  ;;  %v4988_v17 = vadd.f32 %v9074_v22, %v4883_v4  ;;  %v4066_v18 = vmax.f32 %v10248_v61, %v3747_v6  ;;  %6569 = vmatprep.mubr.msk.bf16.mxu0 %vm6872_vm2, %v10079_v5  ;;  %6767 = vmatprep.mubr.msk.bf16.mxu1 %vm6872_vm2, %v10079_v5  ;;  %v10258_v4 = vld [vmem:[#allocation12_spill] sm:$0xff]  ;;  %v10259_v6 = vld [vmem:[#allocation13_spill] sm:$0xff] }
 0x391   : > { %v6471_v1 = vpop.f32.mrf.mxu0  ;;  %v6669_v2 = vpop.f32.mrf.mxu1 }
 0x392   : > { %v5086_v36 = vmax.f32 %v4988_v17, 0.0  ;;  %v4884_v10 = vmax.f32 %v4066_v18, %v4565_v42  ;;  %v10260_v42 = vmax.f32 %v10258_v4, %v10259_v6  ;;  %v5604_v17 = vld [vmem:[%s7730_s6 + $0x898] sm:$0xff]  ;;  %v5754_v4 = vld [vmem:[%s7730_s6 + $0xbc0] sm:$0xff]  ;;  %v5755_v6 = vld [vmem:[%s7730_s6 + $0xbc8] sm:$0xff] }
 0x393   : > { %v3750_v33 = vpop.f32.mrf.mxu0  ;;  %v4568_v37 = vpop.f32.mrf.mxu1  ;;  %v3460_v2 = vpack.c.bf16 %v5604_v17, %v5603_v35 }
 0x394   : > { %5185 = vst.msk [vmem:[%s9083_s14 + $0xb8] sm:$0xff] %vm5161_vm4, %v5086_v36  ;;  %v4989_v40 = vadd.f32 %v9074_v22, %v4884_v10  ;;  %v4067_v45 = vmax.f32 %v10251_v30, %v3750_v33  ;;  %v4278_v36 = vpack.c.bf16 %v5751_v16, %v5750_v39  ;;  %v10261_v33 = vld [vmem:[#allocation14_spill] sm:$0xff] }
 0x395   : > { %v6472_v41 = vpop.f32.mrf.mxu0  ;;  %v6670_v47 = vpop.f32.mrf.mxu1 }
 0x396   : > { %v5087_v12 = vmax.f32 %v4989_v40, 0.0  ;;  %v4885_v62 = vmax.f32 %v4067_v45, %v4568_v37  ;;  %v10262_v37 = vld [vmem:[#allocation15_spill] sm:$0xff] }
 0x397   : > { %v3755_v27 = vpop.f32.mrf.mxu0  ;;  %6570 = vmatmul.mubr.msk.bf16.gmra.mxu0 %vm1924_vm3, %v3458_v20  ;;  %v4573_v13 = vpop.f32.mrf.mxu1  ;;  %6768 = vmatmul.mubr.msk.bf16.gmra.mxu1 %vm1924_vm3, %v4276_v21  ;;  %v10263_v20 = vmax.f32 %v10261_v33, %v10262_v37  ;;  %v5605_v47 = vld [vmem:[%s7730_s6 + $0x8a0] sm:$0xff] }
 0x398   : > { %5186 = vst.msk [vmem:[%s9083_s14 + $0xc0] sm:$0xff] %vm5161_vm4, %v5087_v12  ;;  %v4990_v43 = vadd.f32 %v9074_v22, %v4885_v62  ;;  %v4068_v32 = vmax.f32 %v10254_v31, %v3755_v27  ;;  %6573 = vmatprep.mubr.msk.bf16.mxu0 %vm6872_vm2, %v10079_v5  ;;  %6771 = vmatprep.mubr.msk.bf16.mxu1 %vm6872_vm2, %v10079_v5  ;;  %v10264_v62 = vld [vmem:[#allocation16_spill] sm:$0xff]  ;;  %v10265_v27 = vld [vmem:[#allocation17_spill] sm:$0xff] }
 0x399   : > { %v6475_v0 = vpop.f32.mrf.mxu0  ;;  %v6673_v14 = vpop.f32.mrf.mxu1 }
 0x39a   : > { %v5088_v58 = vmax.f32 %v4990_v43, 0.0  ;;  %v4886_v60 = vmax.f32 %v4068_v32, %v4573_v13  ;;  %v10266_v13 = vmax.f32 %v10264_v62, %v10265_v27  ;;  %v5606_v43 = vld [vmem:[%s7730_s6 + $0x8a8] sm:$0xff]  ;;  %v5756_v62 = vld [vmem:[%s7730_s6 + $0xbd0] sm:$0xff]  ;;  %v5757_v27 = vld [vmem:[%s7730_s6 + $0xbd8] sm:$0xff] }
 0x39b   : > { %v3758_v57 = vpop.f32.mrf.mxu0  ;;  %v4576_v8 = vpop.f32.mrf.mxu1  ;;  %v3461_v14 = vpack.c.bf16 %v5606_v43, %v5605_v47 }
 0x39c   : > { %5187 = vst.msk [vmem:[%s9083_s14 + $0xc8] sm:$0xff] %vm5161_vm4, %v5088_v58  ;;  %v4991_v28 = vadd.f32 %v9074_v22, %v4886_v60  ;;  %v4069_v51 = vmax.f32 %v10257_v24, %v3758_v57  ;;  %v4279_v58 = vpack.c.bf16 %v5753_v26, %v5752_v25  ;;  %v10267_v57 = vld [vmem:[#allocation18_spill] sm:$0xff] }
 0x39d   : > { %v6476_v38 = vpop.f32.mrf.mxu0  ;;  %v6674_v55 = vpop.f32.mrf.mxu1 }
 0x39e   : > { %v5089_v52 = vmax.f32 %v4991_v28, 0.0  ;;  %v4887_v50 = vmax.f32 %v4069_v51, %v4576_v8  ;;  %v10268_v8 = vld [vmem:[#allocation19_spill] sm:$0xff]  ;;  %v5607_v55 = vld [vmem:[%s7730_s6 + $0x8b0] sm:$0xff] }
 0x39f   : > { %v3763_v15 = vpop.f32.mrf.mxu0  ;;  %6574 = vmatmul.mubr.msk.bf16.gmra.mxu0 %vm1924_vm3, %v3459_v9  ;;  %v4581_v34 = vpop.f32.mrf.mxu1  ;;  %6772 = vmatmul.mubr.msk.bf16.gmra.mxu1 %vm1924_vm3, %v4277_v63  ;;  %v10269_v9 = vmax.f32 %v10267_v57, %v10268_v8 }
 0x3a0   : > { %5188 = vst.msk [vmem:[%s9083_s14 + $0xd0] sm:$0xff] %vm5161_vm4, %v5089_v52  ;;  %v4992_v53 = vadd.f32 %v9074_v22, %v4887_v50  ;;  %v4070_v49 = vmax.f32 %v10260_v42, %v3763_v15  ;;  %6577 = vmatprep.mubr.msk.bf16.mxu0 %vm6872_vm2, %v10079_v5  ;;  %6775 = vmatprep.mubr.msk.bf16.mxu1 %vm6872_vm2, %v10079_v5  ;;  %v10270_v50 = vld [vmem:[#allocation20_spill] sm:$0xff]  ;;  %v10271_v15 = vld [vmem:[#allocation21_spill] sm:$0xff] }
 0x3a1   : > { %v6479_v61 = vpop.f32.mrf.mxu0  ;;  %v6677_v18 = vpop.f32.mrf.mxu1 }
 0x3a2   : > { %v5090_v3 = vmax.f32 %v4992_v53, 0.0  ;;  %v4888_v7 = vmax.f32 %v4070_v49, %v4581_v34  ;;  %v10272_v34 = vmax.f32 %v10270_v50, %v10271_v15  ;;  %v5608_v53 = vld [vmem:[%s7730_s6 + $0x8b8] sm:$0xff]  ;;  %v5758_v50 = vld [vmem:[%s7730_s6 + $0xbe0] sm:$0xff]  ;;  %v5759_v15 = vld [vmem:[%s7730_s6 + $0xbe8] sm:$0xff] }
 0x3a3   : > { %v3766_v19 = vpop.f32.mrf.mxu0  ;;  %v4584_v1 = vpop.f32.mrf.mxu1  ;;  %v3462_v18 = vpack.c.bf16 %v5608_v53, %v5607_v55 }
 0x3a4   : > { %5189 = vst.msk [vmem:[%s9083_s14 + $0xd8] sm:$0xff] %vm5161_vm4, %v5090_v3  ;;  %v4993_v10 = vadd.f32 %v9074_v22, %v4888_v7  ;;  %v4071_v21 = vmax.f32 %v10263_v20, %v3766_v19  ;;  %v4280_v3 = vpack.c.bf16 %v5755_v6, %v5754_v4  ;;  %v10273_v19 = vld [vmem:[#allocation22_spill] sm:$0xff] }
 0x3a5   : > { %v6480_v40 = vpop.f32.mrf.mxu0  ;;  %v6678_v44 = vpop.f32.mrf.mxu1 }
 0x3a6   : > { %v5091_v29 = vmax.f32 %v4993_v10, 0.0  ;;  %v4889_v30 = vmax.f32 %v4071_v21, %v4584_v1  ;;  %v10274_v1 = vld [vmem:[#allocation23_spill] sm:$0xff] }
 0x3a7   : > { %v3771_v45 = vpop.f32.mrf.mxu0  ;;  %6578 = vmatmul.mubr.msk.bf16.gmra.mxu0 %vm1924_vm3, %v3460_v2  ;;  %v4589_v41 = vpop.f32.mrf.mxu1  ;;  %6776 = vmatmul.mubr.msk.bf16.gmra.mxu1 %vm1924_vm3, %v4278_v36  ;;  %v10275_v2 = vmax.f32 %v10273_v19, %v10274_v1  ;;  %v5609_v44 = vld [vmem:[%s7730_s6 + $0x8c0] sm:$0xff] }
 0x3a8   : > { %5190 = vst.msk [vmem:[%s9083_s14 + $0xe0] sm:$0xff] %vm5161_vm4, %v5091_v29  ;;  %v4994_v12 = vadd.f32 %v9074_v22, %v4889_v30  ;;  %v4072_v11 = vmax.f32 %v10266_v13, %v3771_v45  ;;  %6581 = vmatprep.mubr.msk.bf16.mxu0 %vm6872_vm2, %v10079_v5  ;;  %6779 = vmatprep.mubr.msk.bf16.mxu1 %vm6872_vm2, %v10079_v5  ;;  %v10276_v30 = vld [vmem:[#allocation24_spill] sm:$0xff]  ;;  %v10277_v45 = vld [vmem:[#allocation25_spill] sm:$0xff] }
 0x3a9   : > { %v6483_v31 = vpop.f32.mrf.mxu0  ;;  %v6681_v32 = vpop.f32.mrf.mxu1 }
 0x3aa   : > { %v5092_v48 = vmax.f32 %v4994_v12, 0.0  ;;  %v4890_v54 = vmax.f32 %v4072_v11, %v4589_v41  ;;  %v10278_v41 = vmax.f32 %v10276_v30, %v10277_v45  ;;  %v5610_v12 = vld [vmem:[%s7730_s6 + $0x8c8] sm:$0xff]  ;;  %v5760_v30 = vld [vmem:[%s7730_s6 + $0xbf0] sm:$0xff]  ;;  %v5761_v45 = vld [vmem:[%s7730_s6 + $0xbf8] sm:$0xff] }
 0x3ab   : > { %v3774_v56 = vpop.f32.mrf.mxu0  ;;  %v4592_v0 = vpop.f32.mrf.mxu1  ;;  %v3463_v32 = vpack.c.bf16 %v5610_v12, %v5609_v44 }
 0x3ac   : > { %5191 = vst.msk [vmem:[%s9083_s14 + $0xe8] sm:$0xff] %vm5161_vm4, %v5092_v48  ;;  %v4995_v60 = vadd.f32 %v9074_v22, %v4890_v54  ;;  %v4073_v63 = vmax.f32 %v10269_v9, %v3774_v56  ;;  %v4281_v48 = vpack.c.bf16 %v5757_v27, %v5756_v62  ;;  %v10279_v56 = vld [vmem:[#allocation26_spill] sm:$0xff] }
 0x3ad   : > { %v6484_v28 = vpop.f32.mrf.mxu0  ;;  %v6682_v59 = vpop.f32.mrf.mxu1 }
 0x3ae   : > { %v5093_v23 = vmax.f32 %v4995_v60, 0.0  ;;  %v4891_v24 = vmax.f32 %v4073_v63, %v4592_v0  ;;  %v10280_v0 = vld [vmem:[#allocation27_spill] sm:$0xff]  ;;  %v5611_v59 = vld [vmem:[%s7730_s6 + $0x8d0] sm:$0xff] }
 0x3af   : > { %v3779_v51 = vpop.f32.mrf.mxu0  ;;  %6582 = vmatmul.mubr.msk.bf16.gmra.mxu0 %vm1924_vm3, %v3461_v14  ;;  %v4597_v38 = vpop.f32.mrf.mxu1  ;;  %6780 = vmatmul.mubr.msk.bf16.gmra.mxu1 %vm1924_vm3, %v4279_v58  ;;  %v10281_v14 = vmax.f32 %v10279_v56, %v10280_v0 }
 0x3b0   : > { %5192 = vst.msk [vmem:[%s9083_s14 + $0xf0] sm:$0xff] %vm5161_vm4, %v5093_v23  ;;  %v4996_v52 = vadd.f32 %v9074_v22, %v4891_v24  ;;  %v4074_v35 = vmax.f32 %v10272_v34, %v3779_v51  ;;  %6585 = vmatprep.mubr.msk.bf16.mxu0 %vm6872_vm2, %v10079_v5  ;;  %6783 = vmatprep.mubr.msk.bf16.mxu1 %vm6872_vm2, %v10079_v5  ;;  %v10282_v24 = vld [vmem:[#allocation28_spill] sm:$0xff]  ;;  %v10283_v51 = vld [vmem:[#allocation29_spill] sm:$0xff] }
 0x3b1   : > { %v6487_v42 = vpop.f32.mrf.mxu0  ;;  %v6685_v49 = vpop.f32.mrf.mxu1 }
 0x3b2   : > { %v5094_v17 = vmax.f32 %v4996_v52, 0.0  ;;  %v4892_v39 = vmax.f32 %v4074_v35, %v4597_v38  ;;  %v10284_v38 = vmax.f32 %v10282_v24, %v10283_v51  ;;  %v5612_v52 = vld [vmem:[%s7730_s6 + $0x8d8] sm:$0xff]  ;;  %v4282_v49 = vpack.c.bf16 %v5759_v15, %v5758_v50  ;;  %v5762_v24 = vld [vmem:[%s7730_s6 + $0xc00] sm:$0xff]  ;;  %v5763_v51 = vld [vmem:[%s7730_s6 + $0xc08] sm:$0xff] }
 0x3b3   : > { %v3782_v16 = vpop.f32.mrf.mxu0  ;;  %v4600_v61 = vpop.f32.mrf.mxu1  ;;  %v3464_v42 = vpack.c.bf16 %v5612_v52, %v5611_v59 }
 0x3b4   : > { %5193 = vst.msk [vmem:[%s9083_s14 + $0xf8] sm:$0xff] %vm5161_vm4, %v5094_v17  ;;  %v4997_v7 = vadd.f32 %v9074_v22, %v4892_v39  ;;  %v4075_v36 = vmax.f32 %v10275_v2, %v3782_v16  ;;  %v9480_v17 = vld [vmem:[%s9920_s2] ss:$0 sm:$0xff]  ;;  %v10285_v16 = vld [vmem:[#allocation30_spill] sm:$0xff] }
 0x3b5   : > { %v6488_v10 = vpop.f32.mrf.mxu0  ;;  %v6686_v33 = vpop.f32.mrf.mxu1 }
 0x3b6   : > { %v5095_v37 = vmax.f32 %v4997_v7, 0.0  ;;  %v4893_v20 = vmax.f32 %v4075_v36, %v4600_v61  ;;  %v10286_v61 = vld [vmem:[#allocation31_spill] sm:$0xff] }
 0x3b7   : > { %v3787_v21 = vpop.f32.mrf.mxu0  ;;  %6586 = vmatmul.mubr.msk.bf16.gmra.mxu0 %vm1924_vm3, %v3462_v18  ;;  %v4605_v40 = vpop.f32.mrf.mxu1  ;;  %6784 = vmatmul.mubr.msk.bf16.gmra.mxu1 %vm1924_vm3, %v4280_v3  ;;  %v10287_v18 = vmax.f32 %v10285_v16, %v10286_v61  ;;  %v5613_v33 = vld [vmem:[%s7730_s6 + $0x8e0] sm:$0xff] }
 0x3b8   : > { %5194 = vst.msk [vmem:[%s9083_s14 + $0x100] sm:$0xff] %vm5161_vm4, %v5095_v37  ;;  %v4998_v29 = vadd.f32 %v9074_v22, %v4893_v20  ;;  %v4076_v47 = vmax.f32 %v10278_v41, %v3787_v21  ;;  %6589 = vmatprep.mubr.msk.bf16.mxu0 %vm6872_vm2, %v10079_v5  ;;  %6787 = vmatprep.mubr.msk.bf16.mxu1 %vm6872_vm2, %v10079_v5  ;;  %v10288_v20 = vld [vmem:[#allocation32_spill] sm:$0xff]  ;;  %v10289_v21 = vld [vmem:[#allocation33_spill] sm:$0xff] }
 0x3b9   : > { %v6491_v13 = vpop.f32.mrf.mxu0  ;;  %v6689_v11 = vpop.f32.mrf.mxu1 }
 0x3ba   : > { %v5096_v43 = vmax.f32 %v4998_v29, 0.0  ;;  %v4894_v25 = vmax.f32 %v4076_v47, %v4605_v40  ;;  %v10290_v40 = vmax.f32 %v10288_v20, %v10289_v21  ;;  %v5614_v29 = vld [vmem:[%s7730_s6 + $0x8e8] sm:$0xff]  ;;  %v5764_v20 = vld [vmem:[%s7730_s6 + $0xc10] sm:$0xff]  ;;  %v5765_v21 = vld [vmem:[%s7730_s6 + $0xc18] sm:$0xff] }
 0x3bb   : > { %v3790_v26 = vpop.f32.mrf.mxu0  ;;  %v4608_v31 = vpop.f32.mrf.mxu1  ;;  %v3465_v11 = vpack.c.bf16 %v5614_v29, %v5613_v33 }
 0x3bc   : > { %5195 = vst.msk [vmem:[%s9083_s14 + $0x108] sm:$0xff] %vm5161_vm4, %v5096_v43  ;;  %v4999_v54 = vadd.f32 %v9074_v22, %v4894_v25  ;;  %v4077_v58 = vmax.f32 %v10281_v14, %v3790_v26  ;;  %v4283_v43 = vpack.c.bf16 %v5761_v45, %v5760_v30  ;;  %v10291_v26 = vld [vmem:[#allocation34_spill] sm:$0xff] }
 0x3bd   : > { %v6492_v60 = vpop.f32.mrf.mxu0  ;;  %v6690_v57 = vpop.f32.mrf.mxu1 }
 0x3be   : > { %v5097_v8 = vmax.f32 %v4999_v54, 0.0  ;;  %v4895_v9 = vmax.f32 %v4077_v58, %v4608_v31  ;;  %v10292_v31 = vld [vmem:[#allocation35_spill] sm:$0xff]  ;;  %v5615_v57 = vld [vmem:[%s7730_s6 + $0x8f0] sm:$0xff] }
 0x3bf   : > { %v3795_v63 = vpop.f32.mrf.mxu0  ;;  %6590 = vmatmul.mubr.msk.bf16.gmra.mxu0 %vm1924_vm3, %v3463_v32  ;;  %v4613_v28 = vpop.f32.mrf.mxu1  ;;  %6788 = vmatmul.mubr.msk.bf16.gmra.mxu1 %vm1924_vm3, %v4281_v48  ;;  %v10293_v32 = vmax.f32 %v10291_v26, %v10292_v31 }
 0x3c0   : > { %5196 = vst.msk [vmem:[%s9083_s14 + $0x110] sm:$0xff] %vm5161_vm4, %v5097_v8  ;;  %v5000_v23 = vadd.f32 %v9074_v22, %v4895_v9  ;;  %v4078_v55 = vmax.f32 %v10284_v38, %v3795_v63  ;;  %6593 = vmatprep.mubr.msk.bf16.mxu0 %vm6872_vm2, %v10079_v5  ;;  %6791 = vmatprep.mubr.msk.bf16.mxu1 %vm6872_vm2, %v10079_v5  ;;  %v10294_v9 = vld [vmem:[#allocation36_spill] sm:$0xff]  ;;  %v10295_v63 = vld [vmem:[#allocation37_spill] sm:$0xff] }
 0x3c1   : > { %v6495_v34 = vpop.f32.mrf.mxu0  ;;  %v6693_v35 = vpop.f32.mrf.mxu1 }
 0x3c2   : > { %v5098_v53 = vmax.f32 %v5000_v23, 0.0  ;;  %v4896_v4 = vmax.f32 %v4078_v55, %v4613_v28  ;;  %v10296_v28 = vmax.f32 %v10294_v9, %v10295_v63  ;;  %v5616_v23 = vld [vmem:[%s7730_s6 + $0x8f8] sm:$0xff]  ;;  %v5766_v9 = vld [vmem:[%s7730_s6 + $0xc20] sm:$0xff]  ;;  %v5767_v63 = vld [vmem:[%s7730_s6 + $0xc28] sm:$0xff] }
 0x3c3   : > { %v3798_v6 = vpop.f32.mrf.mxu0  ;;  %v4616_v22 = vpop.f32.mrf.mxu1  ;;  %v3466_v35 = vpack.c.bf16 %v5616_v23, %v5615_v57 }
 0x3c4   : > { %5197 = vst.msk [vmem:[%s9083_s14 + $0x118] sm:$0xff] %vm5161_vm4, %v5098_v53  ;;  %v5001_v39 = vadd.f32 %v9480_v17, %v4896_v4  ;;  %v4079_v3 = vmax.f32 %v10287_v18, %v3798_v6  ;;  %v4284_v53 = vpack.c.bf16 %v5763_v51, %v5762_v24  ;;  %v10297_v6 = vld [vmem:[#allocation38_spill] sm:$0xff] }
 0x3c5   : > { %v6496_v7 = vpop.f32.mrf.mxu0  ;;  %v6694_v19 = vpop.f32.mrf.mxu1 }
 0x3c6   : > { %v5099_v1 = vmax.f32 %v5001_v39, 0.0  ;;  %v4897_v2 = vmax.f32 %v4079_v3, %v4616_v22  ;;  %v10298_v22 = vld [vmem:[#allocation39_spill] sm:$0xff] }
 0x3c7   : > { %v3803_v36 = vpop.f32.mrf.mxu0  ;;  %6594 = vmatmul.mubr.msk.bf16.gmra.mxu0 %vm1924_vm3, %v3464_v42  ;;  %v4621_v10 = vpop.f32.mrf.mxu1  ;;  %6792 = vmatmul.mubr.msk.bf16.gmra.mxu1 %vm1924_vm3, %v4282_v49  ;;  %v10299_v42 = vmax.f32 %v10297_v6, %v10298_v22  ;;  %v5617_v19 = vld [vmem:[%s7730_s6 + $0x900] sm:$0xff] }
 0x3c8   : > { %5198 = vst.msk [vmem:[%s9083_s14 + $0x120] sm:$0xff] %vm5161_vm4, %v5099_v1  ;;  %v5002_v37 = vadd.f32 %v9480_v17, %v4897_v2  ;;  %v4080_v44 = vmax.f32 %v10290_v40, %v3803_v36  ;;  %6597 = vmatprep.mubr.msk.bf16.mxu0 %vm6872_vm2, %v10079_v5  ;;  %6795 = vmatprep.mubr.msk.bf16.mxu1 %vm6872_vm2, %v10079_v5  ;;  %v10300_v2 = vld [vmem:[#allocation40_spill] sm:$0xff]  ;;  %v10301_v36 = vld [vmem:[#allocation41_spill] sm:$0xff] }
 0x3c9   : > { %v6499_v41 = vpop.f32.mrf.mxu0  ;;  %v6697_v47 = vpop.f32.mrf.mxu1 }
 0x3ca   : > { %v5100_v12 = vmax.f32 %v5002_v37, 0.0  ;;  %v4898_v62 = vmax.f32 %v4080_v44, %v4621_v10  ;;  %v10302_v10 = vmax.f32 %v10300_v2, %v10301_v36  ;;  %v5618_v37 = vld [vmem:[%s7730_s6 + $0x908] sm:$0xff]  ;;  %v5768_v2 = vld [vmem:[%s7730_s6 + $0xc30] sm:$0xff]  ;;  %v5769_v36 = vld [vmem:[%s7730_s6 + $0xc38] sm:$0xff] }
 0x3cb   : > { %v3806_v27 = vpop.f32.mrf.mxu0  ;;  %v4624_v13 = vpop.f32.mrf.mxu1  ;;  %v3467_v47 = vpack.c.bf16 %v5618_v37, %v5617_v19 }
 0x3cc   : > { %5199 = vst.msk [vmem:[%s9083_s14 + $0x128] sm:$0xff] %vm5161_vm4, %v5100_v12  ;;  %v5003_v25 = vadd.f32 %v9480_v17, %v4898_v62  ;;  %v4081_v48 = vmax.f32 %v10293_v32, %v3806_v27  ;;  %v4285_v12 = vpack.c.bf16 %v5765_v21, %v5764_v20  ;;  %v10303_v27 = vld [vmem:[#allocation42_spill] sm:$0xff] }
 0x3cd   : > { %v6500_v54 = vpop.f32.mrf.mxu0  ;;  %v6698_v56 = vpop.f32.mrf.mxu1 }
 0x3ce   : > { %v5101_v0 = vmax.f32 %v5003_v25, 0.0  ;;  %v4899_v14 = vmax.f32 %v4081_v48, %v4624_v13  ;;  %v10304_v13 = vld [vmem:[#allocation43_spill] sm:$0xff]  ;;  %v5619_v56 = vld [vmem:[%s7730_s6 + $0x910] sm:$0xff] }
 0x3cf   : > { %v3811_v58 = vpop.f32.mrf.mxu0  ;;  %6598 = vmatmul.mubr.msk.bf16.gmra.mxu0 %vm1924_vm3, %v3465_v11  ;;  %v4629_v60 = vpop.f32.mrf.mxu1  ;;  %6796 = vmatmul.mubr.msk.bf16.gmra.mxu1 %vm1924_vm3, %v4283_v43  ;;  %v10305_v11 = vmax.f32 %v10303_v27, %v10304_v13 }
 0x3d0   : > { %5200 = vst.msk [vmem:[%s9083_s14 + $0x130] sm:$0xff] %vm5161_vm4, %v5101_v0  ;;  %v5004_v8 = vadd.f32 %v9480_v17, %v4899_v14  ;;  %v4082_v59 = vmax.f32 %v10296_v28, %v3811_v58  ;;  %6601 = vmatprep.mubr.msk.bf16.mxu0 %vm6872_vm2, %v10079_v5  ;;  %6799 = vmatprep.mubr.msk.bf16.mxu1 %vm6872_vm2, %v10079_v5  ;;  %v10306_v14 = vld [vmem:[#allocation44_spill] sm:$0xff]  ;;  %v10307_v58 = vld [vmem:[#allocation45_spill] sm:$0xff] }
 0x3d1   : > { %v6503_v38 = vpop.f32.mrf.mxu0  ;;  %v6701_v55 = vpop.f32.mrf.mxu1 }
 0x3d2   : > { %v5102_v52 = vmax.f32 %v5004_v8, 0.0  ;;  %v4900_v50 = vmax.f32 %v4082_v59, %v4629_v60  ;;  %v10308_v60 = vmax.f32 %v10306_v14, %v10307_v58  ;;  %v5620_v8 = vld [vmem:[%s7730_s6 + $0x918] sm:$0xff] }
 0x3d3   : > { %v3814_v15 = vpop.f32.mrf.mxu0  ;;  %v4632_v34 = vpop.f32.mrf.mxu1  ;;  %v3468_v55 = vpack.c.bf16 %v5620_v8, %v5619_v56  ;;  %v10321_v8 = vld [vmem:[#allocation54_spill] sm:$0xff] }
 0x3d4   : > { %5201 = vst.msk [vmem:[%s9083_s14 + $0x138] sm:$0xff] %vm5161_vm4, %v5102_v52  ;;  %v5005_v4 = vadd.f32 %v9480_v17, %v4900_v50  ;;  %v4083_v49 = vmax.f32 %v10299_v42, %v3814_v15  ;;  %v4286_v52 = vpack.c.bf16 %v5767_v63, %v5766_v9  ;;  %v10309_v15 = vld [vmem:[#allocation46_spill] sm:$0xff]  ;;  %v10322_v9 = vld [vmem:[#allocation55_spill] sm:$0xff] }
 0x3d5   : > { %v6504_v39 = vpop.f32.mrf.mxu0  ;;  %v6702_v16 = vpop.f32.mrf.mxu1  ;;  %v10323_v63 = vmax.f32 %v10321_v8, %v10322_v9 }
 0x3d6   : > { %v5103_v61 = vmax.f32 %v5005_v4, 0.0  ;;  %v4901_v18 = vmax.f32 %v4083_v49, %v4632_v34  ;;  %v10310_v34 = vld [vmem:[#allocation47_spill] sm:$0xff] }
 0x3d7   : > { %v3819_v3 = vpop.f32.mrf.mxu0  ;;  %6602 = vmatmul.mubr.msk.bf16.gmra.mxu0 %vm1924_vm3, %v3466_v35  ;;  %v4637_v7 = vpop.f32.mrf.mxu1  ;;  %6800 = vmatmul.mubr.msk.bf16.gmra.mxu1 %vm1924_vm3, %v4284_v53  ;;  %v10311_v35 = vmax.f32 %v10309_v15, %v10310_v34  ;;  %v5621_v16 = vld [vmem:[%s7730_s6 + $0x920] sm:$0xff]  ;;  %v10325_v15 = vld [vmem:[#allocation57_spill] sm:$0xff] }
 0x3d8   : > { %5202 = vst.msk [vmem:[%s9083_s14 + $0x140] sm:$0xff] %vm5161_vm4, %v5103_v61  ;;  %v5006_v1 = vadd.f32 %v9480_v17, %v4901_v18  ;;  %v4084_v33 = vmax.f32 %v10302_v10, %v3819_v3  ;;  %6605 = vmatprep.mubr.msk.bf16.mxu0 %vm6872_vm2, %v10079_v5  ;;  %6803 = vmatprep.mubr.msk.bf16.mxu1 %vm6872_vm2, %v10079_v5  ;;  %v10312_v18 = vld [vmem:[#allocation48_spill] sm:$0xff]  ;;  %v10313_v3 = vld [vmem:[#allocation49_spill] sm:$0xff] }
 0x3d9   : > { %v6507_v40 = vpop.f32.mrf.mxu0  ;;  %v6705_v44 = vpop.f32.mrf.mxu1 }
 0x3da   : > { %v5104_v29 = vmax.f32 %v5006_v1, 0.0  ;;  %v4902_v30 = vmax.f32 %v4084_v33, %v4637_v7  ;;  %v10314_v7 = vmax.f32 %v10312_v18, %v10313_v3  ;;  %v5622_v1 = vld [vmem:[%s7730_s6 + $0x928] sm:$0xff] }
 0x3db   : > { %v3822_v45 = vpop.f32.mrf.mxu0  ;;  %v4640_v41 = vpop.f32.mrf.mxu1  ;;  %v3469_v44 = vpack.c.bf16 %v5622_v1, %v5621_v16  ;;  %v10327_v16 = vld [vmem:[#allocation58_spill] sm:$0xff] }
 0x3dc   : > { %5203 = vst.msk [vmem:[%s9083_s14 + $0x148] sm:$0xff] %vm5161_vm4, %v5104_v29  ;;  %v5007_v62 = vadd.f32 %v9480_v17, %v4902_v30  ;;  %v4085_v43 = vmax.f32 %v10305_v11, %v3822_v45  ;;  %v4287_v29 = vpack.c.bf16 %v5769_v36, %v5768_v2  ;;  %v10315_v45 = vld [vmem:[#allocation50_spill] sm:$0xff] }
 0x3dd   : > { %v6508_v25 = vpop.f32.mrf.mxu0  ;;  %v6706_v26 = vpop.f32.mrf.mxu1 }
 0x3de   : > { %v5105_v31 = vmax.f32 %v5007_v62, 0.0  ;;  %v4903_v32 = vmax.f32 %v4085_v43, %v4640_v41  ;;  %v10316_v41 = vld [vmem:[#allocation51_spill] sm:$0xff]  ;;  %v10318_v26 = vld [vmem:[#allocation52_spill] sm:$0xff] }
 0x3df   : > { %v3827_v48 = vpop.f32.mrf.mxu0  ;;  %6606 = vmatmul.mubr.msk.bf16.gmra.mxu0 %vm1924_vm3, %v3467_v47  ;;  %v4645_v54 = vpop.f32.mrf.mxu1  ;;  %6804 = vmatmul.mubr.msk.bf16.gmra.mxu1 %vm1924_vm3, %v4285_v12  ;;  %v10317_v47 = vmax.f32 %v10315_v45, %v10316_v41 }
 0x3e0   : > { %5204 = vst.msk [vmem:[%s9083_s14 + $0x150] sm:$0xff] %vm5161_vm4, %v5105_v31  ;;  %v5008_v0 = vadd.f32 %v9480_v17, %v4903_v32  ;;  %v4086_v57 = vmax.f32 %v10308_v60, %v3827_v48  ;;  %6609 = vmatprep.mubr.msk.bf16.mxu0 %vm6872_vm2, %v10079_v5  ;;  %6807 = vmatprep.mubr.msk.bf16.mxu1 %vm6872_vm2, %v10079_v5  ;;  %v10319_v31 = vld [vmem:[#allocation53_spill] sm:$0xff] }
 0x3e1   : > { %v6511_v28 = vpop.f32.mrf.mxu0  ;;  %v6709_v59 = vpop.f32.mrf.mxu1  ;;  %v10320_v32 = vmax.f32 %v10318_v26, %v10319_v31 }
 0x3e2   : > { %v5106_v23 = vmax.f32 %v5008_v0, 0.0  ;;  %v4904_v24 = vmax.f32 %v4086_v57, %v4645_v54 }
 0x3e3   : > { %v3830_v51 = vpop.f32.mrf.mxu0  ;;  %v4648_v38 = vpop.f32.mrf.mxu1 }
 0x3e4   : > { %5205 = vst.msk [vmem:[%s9083_s14 + $0x158] sm:$0xff] %vm5161_vm4, %v5106_v23  ;;  %v5009_v50 = vadd.f32 %v9480_v17, %v4904_v24  ;;  %v4087_v53 = vmax.f32 %v10311_v35, %v3830_v51 }
 0x3e5   : > { %v6512_v4 = vpop.f32.mrf.mxu0  ;;  %v6710_v6 = vpop.f32.mrf.mxu1 }
 0x3e6   : > { %v5107_v22 = vmax.f32 %v5009_v50, 0.0  ;;  %v4905_v42 = vmax.f32 %v4087_v53, %v4648_v38  ;;  %v10324_v50 = vld [vmem:[#allocation56_spill] sm:$0xff] }
 0x3e7   : > { %v3835_v49 = vpop.f32.mrf.mxu0  ;;  %6610 = vmatmul.mubr.msk.bf16.gmra.mxu0 %vm1924_vm3, %v3468_v55  ;;  %v4653_v39 = vpop.f32.mrf.mxu1  ;;  %6808 = vmatmul.mubr.msk.bf16.gmra.mxu1 %vm1924_vm3, %v4286_v52  ;;  %v10326_v34 = vmax.f32 %v10324_v50, %v10325_v15 }
 0x3e8   : > { %5206 = vst.msk [vmem:[%s9083_s14 + $0x160] sm:$0xff] %vm5161_vm4, %v5107_v22  ;;  %v5010_v61 = vadd.f32 %v9480_v17, %v4905_v42  ;;  %v4088_v19 = vmax.f32 %v10314_v7, %v3835_v49  ;;  %6613 = vmatprep.mubr.msk.bf16.mxu0 %vm6872_vm2, %v10079_v5  ;;  %6811 = vmatprep.mubr.msk.bf16.mxu1 %vm6872_vm2, %v10079_v5 }
 0x3e9   : > { %v6515_v10 = vpop.f32.mrf.mxu0  ;;  %v6713_v33 = vpop.f32.mrf.mxu1 }
 0x3ea   : > { %v5108_v37 = vmax.f32 %v5010_v61, 0.0  ;;  %v4906_v20 = vmax.f32 %v4088_v19, %v4653_v39  ;;  %v10328_v61 = vld [vmem:[#allocation59_spill] sm:$0xff] }
 0x3eb   : > { %v3838_v21 = vpop.f32.mrf.mxu0  ;;  %v4656_v40 = vpop.f32.mrf.mxu1  ;;  %v10329_v18 = vmax.f32 %v10327_v16, %v10328_v61 }
 0x3ec   : > { %5207 = vst.msk [vmem:[%s9083_s14 + $0x168] sm:$0xff] %vm5161_vm4, %v5108_v37  ;;  %v5011_v30 = vadd.f32 %v9480_v17, %v4906_v20  ;;  %v4089_v5 = vmax.f32 %v10317_v47, %v3838_v21  ;;  %v10330_v37 = vld [vmem:[#allocation60_spill] sm:$0xff]  ;;  %v10331_v20 = vld [vmem:[#allocation61_spill] sm:$0xff] }
 0x3ed   : > { %v6516_v12 = vpop.f32.mrf.mxu0  ;;  %v6714_v62 = vpop.f32.mrf.mxu1  ;;  %v10332_v21 = vmax.f32 %v10330_v37, %v10331_v20 }
 0x3ee   : > { %v5109_v27 = vmax.f32 %v5011_v30, 0.0  ;;  %v4907_v13 = vmax.f32 %v4089_v5, %v4656_v40  ;;  %v10333_v12 = vld [vmem:[#allocation62_spill] sm:$0xff]  ;;  %v10334_v62 = vld [vmem:[#allocation63_spill] sm:$0xff] }
 0x3ef   : > { %v3843_v11 = vpop.f32.mrf.mxu0  ;;  %6614 = vmatmul.mubr.msk.bf16.gmra.mxu0 %vm1924_vm3, %v3469_v44  ;;  %v4661_v43 = vpop.f32.mrf.mxu1  ;;  %6812 = vmatmul.mubr.msk.bf16.gmra.mxu1 %vm1924_vm3, %v4287_v29 }
 0x3f0   : > { %5208 = vst.msk [vmem:[%s9083_s14 + $0x170] sm:$0xff] %vm5161_vm4, %v5109_v27  ;;  %v5012_v25 = vadd.f32 %v9480_v17, %v4907_v13  ;;  %v4090_v48 = vmax.f32 %v10320_v32, %v3843_v11  ;;  %v10335_v27 = vmax.f32 %v10333_v12, %v10334_v62 }
 0x3f1   : > { %v6519_v54 = vpop.f32.mrf.mxu0  ;;  %v6717_v56 = vpop.f32.mrf.mxu1 }
 0x3f2   : > { %v5110_v0 = vmax.f32 %v5012_v25, 0.0  ;;  %v4908_v14 = vmax.f32 %v4090_v48, %v4661_v43  ;;  %v10336_v54 = vld [vmem:[#allocation64_spill] sm:$0xff]  ;;  %v10337_v56 = vld [vmem:[#allocation65_spill] sm:$0xff] }
 0x3f3   : > { %v3846_v58 = vpop.f32.mrf.mxu0  ;;  %v4664_v60 = vpop.f32.mrf.mxu1 }
 0x3f4   : > { %5209 = vst.msk [vmem:[%s9083_s14 + $0x178] sm:$0xff] %vm5161_vm4, %v5110_v0  ;;  %v5013_v57 = vadd.f32 %v9480_v17, %v4908_v14  ;;  %v4091_v28 = vmax.f32 %v10323_v63, %v3846_v58  ;;  %v10338_v0 = vmax.f32 %v10336_v54, %v10337_v56 }
 0x3f5   : > { %v6520_v59 = vpop.f32.mrf.mxu0  ;;  %v6718_v23 = vpop.f32.mrf.mxu1 }
 0x3f6   : > { %v5111_v24 = vmax.f32 %v5013_v57, 0.0  ;;  %v4909_v51 = vmax.f32 %v4091_v28, %v4664_v60  ;;  %v10339_v59 = vld [vmem:[#allocation66_spill] sm:$0xff]  ;;  %v10340_v23 = vld [vmem:[#allocation67_spill] sm:$0xff] }
 0x3f7   : > { %v3851_v38 = vpop.f32.mrf.mxu0  ;;  %v4669_v55 = vpop.f32.mrf.mxu1 }
 0x3f8   : > { %5210 = vst.msk [vmem:[%s9083_s14 + $0x180] sm:$0xff] %vm5161_vm4, %v5111_v24  ;;  %v5014_v52 = vadd.f32 %v9480_v17, %v4909_v51  ;;  %v4092_v35 = vmax.f32 %v10326_v34, %v3851_v38  ;;  %v10341_v24 = vmax.f32 %v10339_v59, %v10340_v23 }
 0x3f9   : > { %v6523_v53 = vpop.f32.mrf.mxu0  ;;  %v6721_v4 = vpop.f32.mrf.mxu1 }
 0x3fa   : > { %v5112_v6 = vmax.f32 %v5014_v52, 0.0  ;;  %v4910_v22 = vmax.f32 %v4092_v35, %v4669_v55  ;;  %v10342_v53 = vld [vmem:[#allocation68_spill] sm:$0xff]  ;;  %v10343_v4 = vld [vmem:[#allocation69_spill] sm:$0xff] }
 0x3fb   : > { %v3854_v42 = vpop.f32.mrf.mxu0  ;;  %v4672_v49 = vpop.f32.mrf.mxu1 }
 0x3fc   : > { %5211 = vst.msk [vmem:[%s9083_s14 + $0x188] sm:$0xff] %vm5161_vm4, %v5112_v6  ;;  %v5015_v39 = vadd.f32 %v9480_v17, %v4910_v22  ;;  %v4093_v3 = vmax.f32 %v10329_v18, %v3854_v42  ;;  %v10344_v6 = vmax.f32 %v10342_v53, %v10343_v4 }
 0x3fd   : > { %v6524_v7 = vpop.f32.mrf.mxu0  ;;  %v6722_v19 = vpop.f32.mrf.mxu1 }
 0x3fe   : > { %v5113_v1 = vmax.f32 %v5015_v39, 0.0  ;;  %v4911_v2 = vmax.f32 %v4093_v3, %v4672_v49  ;;  %v10345_v7 = vld [vmem:[#allocation70_spill] sm:$0xff]  ;;  %v10346_v19 = vld [vmem:[#allocation71_spill] sm:$0xff] }
 0x3ff   : > { %v3859_v36 = vpop.f32.mrf.mxu0  ;;  %v4677_v10 = vpop.f32.mrf.mxu1 }
 0x400   : > { %5212 = vst.msk [vmem:[%s9083_s14 + $0x190] sm:$0xff] %vm5161_vm4, %v5113_v1  ;;  %v5016_v33 = vadd.f32 %v9480_v17, %v4911_v2  ;;  %v4094_v40 = vmax.f32 %v10332_v21, %v3859_v36  ;;  %v10347_v1 = vmax.f32 %v10345_v7, %v10346_v19 }
 0x401   : > { %v6527_v44 = vpop.f32.mrf.mxu0  ;;  %v6725_v29 = vpop.f32.mrf.mxu1 }
 0x402   : > { %v5114_v30 = vmax.f32 %v5016_v33, 0.0  ;;  %v4912_v45 = vmax.f32 %v4094_v40, %v4677_v10  ;;  %v10348_v44 = vld [vmem:[#allocation72_spill] sm:$0xff]  ;;  %v10349_v29 = vld [vmem:[#allocation73_spill] sm:$0xff] }
 0x403   : > { %v3862_v41 = vpop.f32.mrf.mxu0  ;;  %v4680_v47 = vpop.f32.mrf.mxu1 }
 0x404   : > { %5213 = vst.msk [vmem:[%s9083_s14 + $0x198] sm:$0xff] %vm5161_vm4, %v5114_v30  ;;  %v5017_v5 = vadd.f32 %v9480_v17, %v4912_v45  ;;  %v4095_v13 = vmax.f32 %v10335_v27, %v3862_v41  ;;  %v10350_v30 = vmax.f32 %v10348_v44, %v10349_v29 }
 0x405   : > { %v6528_v11 = vpop.f32.mrf.mxu0  ;;  %v6726_v43 = vpop.f32.mrf.mxu1 }
 0x406   : > { %v5115_v25 = vmax.f32 %v5017_v5, 0.0  ;;  %v4913_v26 = vmax.f32 %v4095_v13, %v4680_v47  ;;  %v10351_v11 = vld [vmem:[#allocation74_spill] sm:$0xff]  ;;  %v10352_v43 = vld [vmem:[#allocation75_spill] sm:$0xff] }
 0x407   : > { %v3867_v31 = vpop.f32.mrf.mxu0  ;;  %v4685_v32 = vpop.f32.mrf.mxu1 }
 0x408   : > { %5214 = vst.msk [vmem:[%s9083_s14 + $0x1a0] sm:$0xff] %vm5161_vm4, %v5115_v25  ;;  %v5018_v48 = vadd.f32 %v9480_v17, %v4913_v26  ;;  %v4096_v14 = vmax.f32 %v10338_v0, %v3867_v31  ;;  %v10353_v25 = vmax.f32 %v10351_v11, %v10352_v43 }
 0x409   : > { %v6531_v58 = vpop.f32.mrf.mxu0  ;;  %v6729_v60 = vpop.f32.mrf.mxu1 }
 0x40a   : > { %v5116_v57 = vmax.f32 %v5018_v48, 0.0  ;;  %v4914_v8 = vmax.f32 %v4096_v14, %v4685_v32  ;;  %v10354_v58 = vld [vmem:[#allocation76_spill] sm:$0xff]  ;;  %v10355_v60 = vld [vmem:[#allocation77_spill] sm:$0xff] }
 0x40b   : > { %v3870_v9 = vpop.f32.mrf.mxu0  ;;  %v4688_v63 = vpop.f32.mrf.mxu1 }
 0x40c   : > { %5215 = vst.msk [vmem:[%s9083_s14 + $0x1a8] sm:$0xff] %vm5161_vm4, %v5116_v57  ;;  %v5019_v28 = vadd.f32 %v9480_v17, %v4914_v8  ;;  %v4097_v51 = vmax.f32 %v10341_v24, %v3870_v9  ;;  %v10356_v57 = vmax.f32 %v10354_v58, %v10355_v60 }
 0x40d   : > { %v6532_v38 = vpop.f32.mrf.mxu0  ;;  %v6730_v55 = vpop.f32.mrf.mxu1 }
 0x40e   : > { %v5117_v52 = vmax.f32 %v5019_v28, 0.0  ;;  %v4915_v50 = vmax.f32 %v4097_v51, %v4688_v63  ;;  %v10357_v38 = vld [vmem:[#allocation78_spill] sm:$0xff]  ;;  %v10358_v55 = vld [vmem:[#allocation79_spill] sm:$0xff] }
 0x40f   : > { %v3875_v15 = vpop.f32.mrf.mxu0  ;;  %v4693_v34 = vpop.f32.mrf.mxu1 }
 0x410   : > { %5216 = vst.msk [vmem:[%s9083_s14 + $0x1b0] sm:$0xff] %vm5161_vm4, %v5117_v52  ;;  %v5020_v35 = vadd.f32 %v9480_v17, %v4915_v50  ;;  %v4098_v22 = vmax.f32 %v10344_v6, %v3875_v15  ;;  %v10359_v52 = vmax.f32 %v10357_v38, %v10358_v55 }
 0x411   : > { %v6535_v42 = vpop.f32.mrf.mxu0  ;;  %v6733_v49 = vpop.f32.mrf.mxu1 }
 0x412   : > { %v5118_v39 = vmax.f32 %v5020_v35, 0.0  ;;  %v4916_v16 = vmax.f32 %v4098_v22, %v4693_v34  ;;  %v10360_v42 = vld [vmem:[#allocation80_spill] sm:$0xff]  ;;  %v10361_v49 = vld [vmem:[#allocation81_spill] sm:$0xff] }
 0x413   : > { %v3878_v61 = vpop.f32.mrf.mxu0  ;;  %v4696_v18 = vpop.f32.mrf.mxu1 }
 0x414   : > { %5217 = vst.msk [vmem:[%s9083_s14 + $0x1b8] sm:$0xff] %vm5161_vm4, %v5118_v39  ;;  %v5021_v3 = vadd.f32 %v9480_v17, %v4916_v16  ;;  %v4099_v2 = vmax.f32 %v10347_v1, %v3878_v61  ;;  %v10362_v39 = vmax.f32 %v10360_v42, %v10361_v49 }
 0x415   : > { %v6536_v36 = vpop.f32.mrf.mxu0  ;;  %v6734_v10 = vpop.f32.mrf.mxu1 }
 0x416   : > { %v5119_v33 = vmax.f32 %v5021_v3, 0.0  ;;  %v4917_v37 = vmax.f32 %v4099_v2, %v4696_v18  ;;  %v10363_v36 = vld [vmem:[#allocation82_spill] sm:$0xff]  ;;  %v10364_v10 = vld [vmem:[#allocation83_spill] sm:$0xff] }
 0x417   : > { %v3883_v20 = vpop.f32.mrf.mxu0  ;;  %v4701_v21 = vpop.f32.mrf.mxu1 }
 0x418   : > { %5218 = vst.msk [vmem:[%s9083_s14 + $0x1c0] sm:$0xff] %vm5161_vm4, %v5119_v33  ;;  %v5022_v40 = vadd.f32 %v9480_v17, %v4917_v37  ;;  %v4100_v45 = vmax.f32 %v10350_v30, %v3883_v20  ;;  %v10365_v33 = vmax.f32 %v10363_v36, %v10364_v10 }
 0x419   : > { %v6539_v41 = vpop.f32.mrf.mxu0  ;;  %v6737_v47 = vpop.f32.mrf.mxu1 }
 0x41a   : > { %v5120_v5 = vmax.f32 %v5022_v40, 0.0  ;;  %v4918_v12 = vmax.f32 %v4100_v45, %v4701_v21  ;;  %v10366_v41 = vld [vmem:[#allocation84_spill] sm:$0xff]  ;;  %v10367_v47 = vld [vmem:[#allocation85_spill] sm:$0xff] }
 0x41b   : > { %v3886_v62 = vpop.f32.mrf.mxu0  ;;  %v4704_v27 = vpop.f32.mrf.mxu1 }
 0x41c   : > { %5219 = vst.msk [vmem:[%s9083_s14 + $0x1c8] sm:$0xff] %vm5161_vm4, %v5120_v5  ;;  %v5023_v13 = vadd.f32 %v9480_v17, %v4918_v12  ;;  %v4101_v26 = vmax.f32 %v10353_v25, %v3886_v62  ;;  %v10368_v5 = vmax.f32 %v10366_v41, %v10367_v47 }
 0x41d   : > { %v6540_v31 = vpop.f32.mrf.mxu0  ;;  %v6738_v32 = vpop.f32.mrf.mxu1 }
 0x41e   : > { %v5121_v48 = vmax.f32 %v5023_v13, 0.0  ;;  %v4919_v54 = vmax.f32 %v4101_v26, %v4704_v27  ;;  %v10369_v31 = vld [vmem:[#allocation86_spill] sm:$0xff]  ;;  %v10370_v32 = vld [vmem:[#allocation87_spill] sm:$0xff] }
 0x41f   : > { %v3891_v56 = vpop.f32.mrf.mxu0  ;;  %v4709_v0 = vpop.f32.mrf.mxu1 }
 0x420   : > { %5220 = vst.msk [vmem:[%s9083_s14 + $0x1d0] sm:$0xff] %vm5161_vm4, %v5121_v48  ;;  %v5024_v14 = vadd.f32 %v9480_v17, %v4919_v54  ;;  %v4102_v8 = vmax.f32 %v10356_v57, %v3891_v56  ;;  %v10371_v48 = vmax.f32 %v10369_v31, %v10370_v32 }
 0x421   : > { %v6543_v9 = vpop.f32.mrf.mxu0  ;;  %v6741_v63 = vpop.f32.mrf.mxu1 }
 0x422   : > { %v5122_v28 = vmax.f32 %v5024_v14, 0.0  ;;  %v4920_v59 = vmax.f32 %v4102_v8, %v4709_v0  ;;  %v10372_v9 = vld [vmem:[#allocation88_spill] sm:$0xff]  ;;  %v10373_v63 = vld [vmem:[#allocation89_spill] sm:$0xff] }
 0x423   : > { %v3894_v23 = vpop.f32.mrf.mxu0  ;;  %v4712_v24 = vpop.f32.mrf.mxu1 }
 0x424   : > { %5221 = vst.msk [vmem:[%s9083_s14 + $0x1d8] sm:$0xff] %vm5161_vm4, %v5122_v28  ;;  %v5025_v51 = vadd.f32 %v9480_v17, %v4920_v59  ;;  %v4103_v50 = vmax.f32 %v10359_v52, %v3894_v23  ;;  %v10374_v28 = vmax.f32 %v10372_v9, %v10373_v63 }
 0x425   : > { %v6544_v15 = vpop.f32.mrf.mxu0  ;;  %v6742_v34 = vpop.f32.mrf.mxu1 }
 0x426   : > { %v5123_v35 = vmax.f32 %v5025_v51, 0.0  ;;  %v4921_v53 = vmax.f32 %v4103_v50, %v4712_v24  ;;  %v10375_v15 = vld [vmem:[#allocation90_spill] sm:$0xff]  ;;  %v10376_v34 = vld [vmem:[#allocation91_spill] sm:$0xff] }
 0x427   : > { %v3899_v4 = vpop.f32.mrf.mxu0  ;;  %v4717_v6 = vpop.f32.mrf.mxu1 }
 0x428   : > { %5222 = vst.msk [vmem:[%s9083_s14 + $0x1e0] sm:$0xff] %vm5161_vm4, %v5123_v35  ;;  %v5026_v22 = vadd.f32 %v9480_v17, %v4921_v53  ;;  %v4104_v16 = vmax.f32 %v10362_v39, %v3899_v4  ;;  %v10377_v35 = vmax.f32 %v10375_v15, %v10376_v34 }
 0x429   : > { %v6547_v61 = vpop.f32.mrf.mxu0  ;;  %v6745_v18 = vpop.f32.mrf.mxu1 }
 0x42a   : > { %v5124_v3 = vmax.f32 %v5026_v22, 0.0  ;;  %v4922_v7 = vmax.f32 %v4104_v16, %v4717_v6  ;;  %v10378_v61 = vld [vmem:[#allocation92_spill] sm:$0xff]  ;;  %v10379_v18 = vld [vmem:[#allocation93_spill] sm:$0xff] }
 0x42b   : > { %v3902_v19 = vpop.f32.mrf.mxu0  ;;  %v4720_v1 = vpop.f32.mrf.mxu1 }
 0x42c   : > { %5223 = vst.msk [vmem:[%s9083_s14 + $0x1e8] sm:$0xff] %vm5161_vm4, %v5124_v3  ;;  %v5027_v2 = vadd.f32 %v9480_v17, %v4922_v7  ;;  %v4105_v37 = vmax.f32 %v10365_v33, %v3902_v19  ;;  %v10380_v3 = vmax.f32 %v10378_v61, %v10379_v18 }
 0x42d   : > { %v6548_v20 = vpop.f32.mrf.mxu0  ;;  %v6746_v21 = vpop.f32.mrf.mxu1 }
 0x42e   : > { %v5125_v40 = vmax.f32 %v5027_v2, 0.0  ;;  %v4923_v44 = vmax.f32 %v4105_v37, %v4720_v1  ;;  %v10381_v20 = vld [vmem:[#allocation94_spill] sm:$0xff]  ;;  %v10382_v21 = vld [vmem:[#allocation95_spill] sm:$0xff] }
 0x42f   : > { %v3907_v29 = vpop.f32.mrf.mxu0  ;;  %v4725_v30 = vpop.f32.mrf.mxu1 }
 0x430   : > { %5224 = vst.msk [vmem:[%s9083_s14 + $0x1f0] sm:$0xff] %vm5161_vm4, %v5125_v40  ;;  %v5028_v45 = vadd.f32 %v9480_v17, %v4923_v44  ;;  %v4106_v12 = vmax.f32 %v10368_v5, %v3907_v29  ;;  %v10383_v40 = vmax.f32 %v10381_v20, %v10382_v21 }
 0x431   : > { %v6551_v62 = vpop.f32.mrf.mxu0  ;;  %v6749_v27 = vpop.f32.mrf.mxu1 }
 0x432   : > { %v5126_v13 = vmax.f32 %v5028_v45, 0.0  ;;  %v4924_v11 = vmax.f32 %v4106_v12, %v4725_v30  ;;  %v10384_v62 = vld [vmem:[#allocation96_spill] sm:$0xff]  ;;  %v10385_v27 = vld [vmem:[#allocation97_spill] sm:$0xff] }
 0x433   : > { %v3910_v43 = vpop.f32.mrf.mxu0  ;;  %v4728_v25 = vpop.f32.mrf.mxu1 }
 0x434   : > { %5225 = vst.msk [vmem:[%s9083_s14 + $0x1f8] sm:$0xff] %vm5161_vm4, %v5126_v13  ;;  %v5029_v26 = vadd.f32 %v9480_v17, %v4924_v11  ;;  %v4107_v54 = vmax.f32 %v10371_v48, %v3910_v43  ;;  %v10386_v13 = vmax.f32 %v10384_v62, %v10385_v27 }
 0x435   : > { %v6552_v56 = vpop.f32.mrf.mxu0  ;;  %v6750_v0 = vpop.f32.mrf.mxu1 }
 0x436   : > { %v5127_v14 = vmax.f32 %v5029_v26, 0.0  ;;  %v4925_v58 = vmax.f32 %v4107_v54, %v4728_v25  ;;  %v10387_v56 = vld [vmem:[#allocation98_spill] sm:$0xff]  ;;  %v10388_v0 = vld [vmem:[#allocation99_spill] sm:$0xff] }
 0x437   : > { %v3915_v60 = vpop.f32.mrf.mxu0  ;;  %v4733_v57 = vpop.f32.mrf.mxu1 }
 0x438   : > { %5226 = vst.msk [vmem:[%s9083_s14 + $0x200] sm:$0xff] %vm5161_vm4, %v5127_v14  ;;  %v5030_v8 = vadd.f32 %v9480_v17, %v4925_v58  ;;  %v4108_v59 = vmax.f32 %v10374_v28, %v3915_v60  ;;  %v10389_v14 = vmax.f32 %v10387_v56, %v10388_v0 }
 0x439   : > { %v6555_v23 = vpop.f32.mrf.mxu0  ;;  %v6753_v24 = vpop.f32.mrf.mxu1 }
 0x43a   : > { %v5128_v51 = vmax.f32 %v5030_v8, 0.0  ;;  %v4926_v38 = vmax.f32 %v4108_v59, %v4733_v57  ;;  %v10390_v23 = vld [vmem:[#allocation100_spill] sm:$0xff]  ;;  %v10391_v24 = vld [vmem:[#allocation101_spill] sm:$0xff] }
 0x43b   : > { %v3918_v55 = vpop.f32.mrf.mxu0  ;;  %v4736_v52 = vpop.f32.mrf.mxu1 }
 0x43c   : > { %5227 = vst.msk [vmem:[%s9083_s14 + $0x208] sm:$0xff] %vm5161_vm4, %v5128_v51  ;;  %v5031_v50 = vadd.f32 %v9480_v17, %v4926_v38  ;;  %v4109_v53 = vmax.f32 %v10377_v35, %v3918_v55  ;;  %v10392_v51 = vmax.f32 %v10390_v23, %v10391_v24 }
 0x43d   : > { %v6556_v4 = vpop.f32.mrf.mxu0  ;;  %v6754_v6 = vpop.f32.mrf.mxu1 }
 0x43e   : > { %v5129_v22 = vmax.f32 %v5031_v50, 0.0  ;;  %v4927_v42 = vmax.f32 %v4109_v53, %v4736_v52  ;;  %v10393_v4 = vld [vmem:[#allocation102_spill] sm:$0xff]  ;;  %v10394_v6 = vld [vmem:[#allocation103_spill] sm:$0xff] }
 0x43f   : > { %v3923_v49 = vpop.f32.mrf.mxu0  ;;  %v4741_v39 = vpop.f32.mrf.mxu1 }
 0x440   : > { %5228 = vst.msk [vmem:[%s9083_s14 + $0x210] sm:$0xff] %vm5161_vm4, %v5129_v22  ;;  %v5032_v16 = vadd.f32 %v9480_v17, %v4927_v42  ;;  %v4110_v7 = vmax.f32 %v10380_v3, %v3923_v49  ;;  %v10395_v22 = vmax.f32 %v10393_v4, %v10394_v6 }
 0x441   : > { %v6559_v19 = vpop.f32.mrf.mxu0  ;;  %v6757_v1 = vpop.f32.mrf.mxu1 }
 0x442   : > { %v5130_v2 = vmax.f32 %v5032_v16, 0.0  ;;  %v4928_v36 = vmax.f32 %v4110_v7, %v4741_v39  ;;  %v10396_v19 = vld [vmem:[#allocation104_spill] sm:$0xff]  ;;  %v10397_v1 = vld [vmem:[#allocation105_spill] sm:$0xff] }
 0x443   : > { %v3926_v10 = vpop.f32.mrf.mxu0  ;;  %v4744_v33 = vpop.f32.mrf.mxu1 }
 0x444   : > { %5229 = vst.msk [vmem:[%s9083_s14 + $0x218] sm:$0xff] %vm5161_vm4, %v5130_v2  ;;  %v5033_v37 = vadd.f32 %v9480_v17, %v4928_v36  ;;  %v4111_v44 = vmax.f32 %v10383_v40, %v3926_v10  ;;  %v10398_v2 = vmax.f32 %v10396_v19, %v10397_v1 }
 0x445   : > { %v6560_v29 = vpop.f32.mrf.mxu0  ;;  %v6758_v30 = vpop.f32.mrf.mxu1 }
 0x446   : > { %v5131_v45 = vmax.f32 %v5033_v37, 0.0  ;;  %v4929_v41 = vmax.f32 %v4111_v44, %v4744_v33  ;;  %v10399_v29 = vld [vmem:[#allocation106_spill] sm:$0xff]  ;;  %v10400_v30 = vld [vmem:[#allocation107_spill] sm:$0xff] }
 0x447   : > { %v3931_v47 = vpop.f32.mrf.mxu0  ;;  %v4749_v5 = vpop.f32.mrf.mxu1 }
 0x448   : > { %5230 = vst.msk [vmem:[%s9083_s14 + $0x220] sm:$0xff] %vm5161_vm4, %v5131_v45  ;;  %v5034_v12 = vadd.f32 %v9480_v17, %v4929_v41  ;;  %v4112_v11 = vmax.f32 %v10386_v13, %v3931_v47  ;;  %v10401_v45 = vmax.f32 %v10399_v29, %v10400_v30 }
 0x449   : > { %v6563_v43 = vpop.f32.mrf.mxu0  ;;  %v6761_v25 = vpop.f32.mrf.mxu1 }
 0x44a   : > { %v5132_v26 = vmax.f32 %v5034_v12, 0.0  ;;  %v4930_v31 = vmax.f32 %v4112_v11, %v4749_v5  ;;  %v10402_v43 = vld [vmem:[#allocation108_spill] sm:$0xff]  ;;  %v10403_v25 = vld [vmem:[#allocation109_spill] sm:$0xff] }
 0x44b   : > { %v3934_v32 = vpop.f32.mrf.mxu0  ;;  %v4752_v48 = vpop.f32.mrf.mxu1 }
 0x44c   : > { %5231 = vst.msk [vmem:[%s9083_s14 + $0x228] sm:$0xff] %vm5161_vm4, %v5132_v26  ;;  %v5035_v54 = vadd.f32 %v9480_v17, %v4930_v31  ;;  %v4113_v58 = vmax.f32 %v10389_v14, %v3934_v32  ;;  %v10404_v26 = vmax.f32 %v10402_v43, %v10403_v25 }
 0x44d   : > { %v6564_v60 = vpop.f32.mrf.mxu0  ;;  %v6762_v57 = vpop.f32.mrf.mxu1 }
 0x44e   : > { %v5133_v8 = vmax.f32 %v5035_v54, 0.0  ;;  %v4931_v9 = vmax.f32 %v4113_v58, %v4752_v48  ;;  %v10405_v60 = vld [vmem:[#allocation110_spill] sm:$0xff]  ;;  %v10406_v57 = vld [vmem:[#allocation111_spill] sm:$0xff] }
 0x44f   : > { %v3939_v63 = vpop.f32.mrf.mxu0  ;;  %v4757_v28 = vpop.f32.mrf.mxu1 }
 0x450   : > { %5232 = vst.msk [vmem:[%s9083_s14 + $0x230] sm:$0xff] %vm5161_vm4, %v5133_v8  ;;  %v5036_v59 = vadd.f32 %v9480_v17, %v4931_v9  ;;  %v4114_v38 = vmax.f32 %v10392_v51, %v3939_v63  ;;  %v10407_v8 = vmax.f32 %v10405_v60, %v10406_v57 }
 0x451   : > { %v6567_v55 = vpop.f32.mrf.mxu0  ;;  %v6765_v52 = vpop.f32.mrf.mxu1 }
 0x452   : > { %v5134_v50 = vmax.f32 %v5036_v59, 0.0  ;;  %v4932_v15 = vmax.f32 %v4114_v38, %v4757_v28  ;;  %v10408_v55 = vld [vmem:[#allocation112_spill] sm:$0xff]  ;;  %v10409_v52 = vld [vmem:[#allocation113_spill] sm:$0xff] }
 0x453   : > { %v3942_v34 = vpop.f32.mrf.mxu0  ;;  %v4760_v35 = vpop.f32.mrf.mxu1 }
 0x454   : > { %5233 = vst.msk [vmem:[%s9083_s14 + $0x238] sm:$0xff] %vm5161_vm4, %v5134_v50  ;;  %v5037_v53 = vadd.f32 %v9480_v17, %v4932_v15  ;;  %v4115_v42 = vmax.f32 %v10395_v22, %v3942_v34  ;;  %v10410_v50 = vmax.f32 %v10408_v55, %v10409_v52 }
 0x455   : > { %v6568_v49 = vpop.f32.mrf.mxu0  ;;  %v6766_v39 = vpop.f32.mrf.mxu1 }
 0x456   : > { %v5135_v16 = vmax.f32 %v5037_v53, 0.0  ;;  %v4933_v61 = vmax.f32 %v4115_v42, %v4760_v35  ;;  %v10411_v49 = vld [vmem:[#allocation114_spill] sm:$0xff]  ;;  %v10412_v39 = vld [vmem:[#allocation115_spill] sm:$0xff] }
 0x457   : > { %v3947_v18 = vpop.f32.mrf.mxu0  ;;  %v4765_v3 = vpop.f32.mrf.mxu1 }
 0x458   : > { %5234 = vst.msk [vmem:[%s9083_s14 + $0x240] sm:$0xff] %vm5161_vm4, %v5135_v16  ;;  %v5038_v7 = vadd.f32 %v9480_v17, %v4933_v61  ;;  %v4116_v36 = vmax.f32 %v10398_v2, %v3947_v18  ;;  %v10413_v16 = vmax.f32 %v10411_v49, %v10412_v39 }
 0x459   : > { %v6571_v10 = vpop.f32.mrf.mxu0  ;;  %v6769_v33 = vpop.f32.mrf.mxu1 }
 0x45a   : > { %v5136_v37 = vmax.f32 %v5038_v7, 0.0  ;;  %v4934_v20 = vmax.f32 %v4116_v36, %v4765_v3  ;;  %v10414_v10 = vld [vmem:[#allocation116_spill] sm:$0xff]  ;;  %v10415_v33 = vld [vmem:[#allocation117_spill] sm:$0xff] }
 0x45b   : > { %v3950_v21 = vpop.f32.mrf.mxu0  ;;  %v4768_v40 = vpop.f32.mrf.mxu1 }
 0x45c   : > { %5235 = vst.msk [vmem:[%s9083_s14 + $0x248] sm:$0xff] %vm5161_vm4, %v5136_v37  ;;  %v5039_v44 = vadd.f32 %v9480_v17, %v4934_v20  ;;  %v4117_v41 = vmax.f32 %v10401_v45, %v3950_v21  ;;  %v10416_v37 = vmax.f32 %v10414_v10, %v10415_v33 }
 0x45d   : > { %v6572_v47 = vpop.f32.mrf.mxu0  ;;  %v6770_v5 = vpop.f32.mrf.mxu1 }
 0x45e   : > { %v5137_v12 = vmax.f32 %v5039_v44, 0.0  ;;  %v4935_v62 = vmax.f32 %v4117_v41, %v4768_v40  ;;  %v10417_v47 = vld [vmem:[#allocation118_spill] sm:$0xff]  ;;  %v10418_v5 = vld [vmem:[#allocation119_spill] sm:$0xff] }
 0x45f   : > { %v3955_v27 = vpop.f32.mrf.mxu0  ;;  %v4773_v13 = vpop.f32.mrf.mxu1 }
 0x460   : > { %5236 = vst.msk [vmem:[%s9083_s14 + $0x250] sm:$0xff] %vm5161_vm4, %v5137_v12  ;;  %v5040_v11 = vadd.f32 %v9480_v17, %v4935_v62  ;;  %v4118_v31 = vmax.f32 %v10404_v26, %v3955_v27  ;;  %v10419_v12 = vmax.f32 %v10417_v47, %v10418_v5 }
 0x461   : > { %v6575_v32 = vpop.f32.mrf.mxu0  ;;  %v6773_v48 = vpop.f32.mrf.mxu1 }
 0x462   : > { %v5138_v54 = vmax.f32 %v5040_v11, 0.0  ;;  %v4936_v56 = vmax.f32 %v4118_v31, %v4773_v13  ;;  %v10420_v32 = vld [vmem:[#allocation120_spill] sm:$0xff]  ;;  %v10421_v48 = vld [vmem:[#allocation121_spill] sm:$0xff] }
 0x463   : > { %v3958_v0 = vpop.f32.mrf.mxu0  ;;  %v4776_v14 = vpop.f32.mrf.mxu1 }
 0x464   : > { %5237 = vst.msk [vmem:[%s9083_s14 + $0x258] sm:$0xff] %vm5161_vm4, %v5138_v54  ;;  %v5041_v58 = vadd.f32 %v9480_v17, %v4936_v56  ;;  %v4119_v9 = vmax.f32 %v10407_v8, %v3958_v0  ;;  %v10422_v54 = vmax.f32 %v10420_v32, %v10421_v48 }
 0x465   : > { %v6576_v63 = vpop.f32.mrf.mxu0  ;;  %v6774_v28 = vpop.f32.mrf.mxu1 }
 0x466   : > { %v5139_v59 = vmax.f32 %v5041_v58, 0.0  ;;  %v4937_v23 = vmax.f32 %v4119_v9, %v4776_v14  ;;  %v10423_v63 = vld [vmem:[#allocation122_spill] sm:$0xff]  ;;  %v10424_v28 = vld [vmem:[#allocation123_spill] sm:$0xff] }
 0x467   : > { %v3963_v24 = vpop.f32.mrf.mxu0  ;;  %v4781_v51 = vpop.f32.mrf.mxu1 }
 0x468   : > { %5238 = vst.msk [vmem:[%s9083_s14 + $0x260] sm:$0xff] %vm5161_vm4, %v5139_v59  ;;  %v5042_v38 = vadd.f32 %v9480_v17, %v4937_v23  ;;  %v4120_v15 = vmax.f32 %v10410_v50, %v3963_v24  ;;  %v10425_v59 = vmax.f32 %v10423_v63, %v10424_v28 }
 0x469   : > { %v6579_v34 = vpop.f32.mrf.mxu0  ;;  %v6777_v35 = vpop.f32.mrf.mxu1 }
 0x46a   : > { %v5140_v53 = vmax.f32 %v5042_v38, 0.0  ;;  %v4938_v4 = vmax.f32 %v4120_v15, %v4781_v51  ;;  %v10426_v34 = vld [vmem:[#allocation124_spill] sm:$0xff]  ;;  %v10427_v35 = vld [vmem:[#allocation125_spill] sm:$0xff] }
 0x46b   : > { %v3966_v6 = vpop.f32.mrf.mxu0  ;;  %v4784_v22 = vpop.f32.mrf.mxu1 }
 0x46c   : > { %5239 = vst.msk [vmem:[%s9083_s14 + $0x268] sm:$0xff] %vm5161_vm4, %v5140_v53  ;;  %v5043_v42 = vadd.f32 %v9480_v17, %v4938_v4  ;;  %v4121_v61 = vmax.f32 %v10413_v16, %v3966_v6  ;;  %v10428_v53 = vmax.f32 %v10426_v34, %v10427_v35 }
 0x46d   : > { %v6580_v18 = vpop.f32.mrf.mxu0  ;;  %v6778_v3 = vpop.f32.mrf.mxu1 }
 0x46e   : > { %v5141_v7 = vmax.f32 %v5043_v42, 0.0  ;;  %v4939_v19 = vmax.f32 %v4121_v61, %v4784_v22  ;;  %v10429_v18 = vld [vmem:[#allocation126_spill] sm:$0xff]  ;;  %v10430_v3 = vld [vmem:[#allocation127_spill] sm:$0xff] }
 0x46f   : > { %v3971_v1 = vpop.f32.mrf.mxu0  ;;  %v4789_v2 = vpop.f32.mrf.mxu1 }
 0x470   : > { %5240 = vst.msk [vmem:[%s9083_s14 + $0x270] sm:$0xff] %vm5161_vm4, %v5141_v7  ;;  %v5044_v36 = vadd.f32 %v9480_v17, %v4939_v19  ;;  %v4122_v20 = vmax.f32 %v10416_v37, %v3971_v1  ;;  %v10431_v7 = vmax.f32 %v10429_v18, %v10430_v3 }
 0x471   : > { %v6583_v21 = vpop.f32.mrf.mxu0  ;;  %v6781_v40 = vpop.f32.mrf.mxu1 }
 0x472   : > { %v5142_v44 = vmax.f32 %v5044_v36, 0.0  ;;  %v4940_v29 = vmax.f32 %v4122_v20, %v4789_v2  ;;  %v10432_v21 = vld [vmem:[#allocation128_spill] sm:$0xff]  ;;  %v10433_v40 = vld [vmem:[#allocation129_spill] sm:$0xff] }
 0x473   : > { %v3974_v30 = vpop.f32.mrf.mxu0  ;;  %v4792_v45 = vpop.f32.mrf.mxu1 }
 0x474   : > { %5241 = vst.msk [vmem:[%s9083_s14 + $0x278] sm:$0xff] %vm5161_vm4, %v5142_v44  ;;  %v5045_v41 = vadd.f32 %v9480_v17, %v4940_v29  ;;  %v4123_v62 = vmax.f32 %v10419_v12, %v3974_v30  ;;  %v10434_v44 = vmax.f32 %v10432_v21, %v10433_v40 }
 0x475   : > { %v6584_v27 = vpop.f32.mrf.mxu0  ;;  %v6782_v13 = vpop.f32.mrf.mxu1 }
 0x476   : > { %v5143_v11 = vmax.f32 %v5045_v41, 0.0  ;;  %v4941_v43 = vmax.f32 %v4123_v62, %v4792_v45  ;;  %v10435_v27 = vld [vmem:[#allocation130_spill] sm:$0xff]  ;;  %v10436_v13 = vld [vmem:[#allocation131_spill] sm:$0xff] }
 0x477   : > { %v3979_v25 = vpop.f32.mrf.mxu0  ;;  %v4797_v26 = vpop.f32.mrf.mxu1 }
 0x478   : > { %5242 = vst.msk [vmem:[%s9083_s14 + $0x280] sm:$0xff] %vm5161_vm4, %v5143_v11  ;;  %v5046_v31 = vadd.f32 %v9480_v17, %v4941_v43  ;;  %v4124_v56 = vmax.f32 %v10422_v54, %v3979_v25  ;;  %v10437_v11 = vmax.f32 %v10435_v27, %v10436_v13 }
 0x479   : > { %v6587_v0 = vpop.f32.mrf.mxu0  ;;  %v6785_v14 = vpop.f32.mrf.mxu1 }
 0x47a   : > { %v5144_v58 = vmax.f32 %v5046_v31, 0.0  ;;  %v4942_v60 = vmax.f32 %v4124_v56, %v4797_v26  ;;  %v10438_v0 = vld [vmem:[#allocation132_spill] sm:$0xff]  ;;  %v10439_v14 = vld [vmem:[#allocation133_spill] sm:$0xff] }
 0x47b   : > { %v3982_v57 = vpop.f32.mrf.mxu0  ;;  %v4800_v8 = vpop.f32.mrf.mxu1 }
 0x47c   : > { %5243 = vst.msk [vmem:[%s9083_s14 + $0x288] sm:$0xff] %vm5161_vm4, %v5144_v58  ;;  %v5047_v9 = vadd.f32 %v9480_v17, %v4942_v60  ;;  %v4125_v23 = vmax.f32 %v10425_v59, %v3982_v57  ;;  %v10440_v58 = vmax.f32 %v10438_v0, %v10439_v14 }
 0x47d   : > { %v6588_v24 = vpop.f32.mrf.mxu0  ;;  %v6786_v51 = vpop.f32.mrf.mxu1 }
 0x47e   : > { %v5145_v38 = vmax.f32 %v5047_v9, 0.0  ;;  %v4943_v55 = vmax.f32 %v4125_v23, %v4800_v8  ;;  %v9849_v23 = vld [vmem:[%s9920_s2] ss:$0 sm:$0xff]  ;;  %v10441_v24 = vld [vmem:[#allocation134_spill] sm:$0xff] }
 0x47f   : > { %v3987_v52 = vpop.f32.mrf.mxu0  ;;  %v4805_v50 = vpop.f32.mrf.mxu1  ;;  %v10442_v51 = vld [vmem:[#allocation135_spill] sm:$0xff] }
 0x480   : > { %5244 = vst.msk [vmem:[%s9083_s14 + $0x290] sm:$0xff] %vm5161_vm4, %v5145_v38  ;;  %v5048_v15 = vadd.f32 %v9480_v17, %v4943_v55  ;;  %v4126_v4 = vmax.f32 %v10428_v53, %v3987_v52  ;;  %v10443_v38 = vmax.f32 %v10441_v24, %v10442_v51 }
 0x481   : > { %v6591_v6 = vpop.f32.mrf.mxu0  ;;  %v6789_v22 = vpop.f32.mrf.mxu1 }
 0x482   : > { %v5146_v42 = vmax.f32 %v5048_v15, 0.0  ;;  %v4944_v49 = vmax.f32 %v4126_v4, %v4805_v50  ;;  %v10444_v6 = vld [vmem:[#allocation136_spill] sm:$0xff]  ;;  %v10445_v22 = vld [vmem:[#allocation137_spill] sm:$0xff] }
 0x483   : > { %v3990_v39 = vpop.f32.mrf.mxu0  ;;  %v4808_v16 = vpop.f32.mrf.mxu1 }
 0x484   : > { %5245 = vst.msk [vmem:[%s9083_s14 + $0x298] sm:$0xff] %vm5161_vm4, %v5146_v42  ;;  %v5049_v61 = vadd.f32 %v9480_v17, %v4944_v49  ;;  %v4127_v19 = vmax.f32 %v10431_v7, %v3990_v39  ;;  %v10446_v42 = vmax.f32 %v10444_v6, %v10445_v22 }
 0x485   : > { %v6592_v1 = vpop.f32.mrf.mxu0  ;;  %v6790_v2 = vpop.f32.mrf.mxu1 }
 0x486   : > { %v5147_v36 = vmax.f32 %v5049_v61, 0.0  ;;  %v4945_v10 = vmax.f32 %v4127_v19, %v4808_v16  ;;  %v10447_v1 = vld [vmem:[#allocation138_spill] sm:$0xff]  ;;  %v10448_v2 = vld [vmem:[#allocation139_spill] sm:$0xff] }
 0x487   : > { %v3995_v33 = vpop.f32.mrf.mxu0  ;;  %v4813_v37 = vpop.f32.mrf.mxu1 }
 0x488   : > { %5246 = vst.msk [vmem:[%s9083_s14 + $0x2a0] sm:$0xff] %vm5161_vm4, %v5147_v36  ;;  %v5050_v20 = vadd.f32 %v9480_v17, %v4945_v10  ;;  %v4128_v29 = vmax.f32 %v10434_v44, %v3995_v33  ;;  %v10449_v36 = vmax.f32 %v10447_v1, %v10448_v2 }
 0x489   : > { %v6595_v30 = vpop.f32.mrf.mxu0  ;;  %v6793_v45 = vpop.f32.mrf.mxu1 }
 0x48a   : > { %v5148_v41 = vmax.f32 %v5050_v20, 0.0  ;;  %v4946_v47 = vmax.f32 %v4128_v29, %v4813_v37  ;;  %v10450_v30 = vld [vmem:[#allocation140_spill] sm:$0xff]  ;;  %v10451_v45 = vld [vmem:[#allocation141_spill] sm:$0xff] }
 0x48b   : > { %v3998_v5 = vpop.f32.mrf.mxu0  ;;  %v4816_v12 = vpop.f32.mrf.mxu1 }
 0x48c   : > { %5247 = vst.msk [vmem:[%s9083_s14 + $0x2a8] sm:$0xff] %vm5161_vm4, %v5148_v41  ;;  %v5051_v62 = vadd.f32 %v9480_v17, %v4946_v47  ;;  %v4129_v43 = vmax.f32 %v10437_v11, %v3998_v5  ;;  %v10452_v41 = vmax.f32 %v10450_v30, %v10451_v45 }
 0x48d   : > { %v6596_v25 = vpop.f32.mrf.mxu0  ;;  %v6794_v26 = vpop.f32.mrf.mxu1 }
 0x48e   : > { %v5149_v31 = vmax.f32 %v5051_v62, 0.0  ;;  %v4947_v32 = vmax.f32 %v4129_v43, %v4816_v12  ;;  %v10453_v25 = vld [vmem:[#allocation142_spill] sm:$0xff]  ;;  %v10454_v26 = vld [vmem:[#allocation143_spill] sm:$0xff] }
 0x48f   : > { %v4003_v48 = vpop.f32.mrf.mxu0  ;;  %v4821_v54 = vpop.f32.mrf.mxu1 }
 0x490   : > { %5248 = vst.msk [vmem:[%s9083_s14 + $0x2b0] sm:$0xff] %vm5161_vm4, %v5149_v31  ;;  %v5052_v56 = vadd.f32 %v9480_v17, %v4947_v32  ;;  %v4130_v60 = vmax.f32 %v10440_v58, %v4003_v48  ;;  %v10455_v31 = vmax.f32 %v10453_v25, %v10454_v26 }
 0x491   : > { %v6599_v57 = vpop.f32.mrf.mxu0  ;;  %v6797_v8 = vpop.f32.mrf.mxu1 }
 0x492   : > { %v5150_v9 = vmax.f32 %v5052_v56, 0.0  ;;  %v4948_v63 = vmax.f32 %v4130_v60, %v4821_v54  ;;  %v10456_v57 = vld [vmem:[#allocation144_spill] sm:$0xff]  ;;  %v10457_v8 = vld [vmem:[#allocation145_spill] sm:$0xff] }
 0x493   : > { %v4006_v28 = vpop.f32.mrf.mxu0  ;;  %v4824_v59 = vpop.f32.mrf.mxu1 }
 0x494   : > { %5249 = vst.msk [vmem:[%s9083_s14 + $0x2b8] sm:$0xff] %vm5161_vm4, %v5150_v9  ;;  %v5053_v17 = vadd.f32 %v9849_v23, %v4948_v63  ;;  %v4131_v55 = vmax.f32 %v10443_v38, %v4006_v28  ;;  %v10458_v9 = vmax.f32 %v10456_v57, %v10457_v8 }
 0x495   : > { %v6600_v52 = vpop.f32.mrf.mxu0  ;;  %v6798_v50 = vpop.f32.mrf.mxu1 }
 0x496   : > { %v5151_v15 = vmax.f32 %v5053_v17, 0.0  ;;  %v4949_v34 = vmax.f32 %v4131_v55, %v4824_v59  ;;  %v10459_v52 = vld [vmem:[#allocation146_spill] sm:$0xff]  ;;  %v10460_v50 = vld [vmem:[#allocation147_spill] sm:$0xff] }
 0x497   : > { %v4011_v35 = vpop.f32.mrf.mxu0  ;;  %v4829_v53 = vpop.f32.mrf.mxu1 }
 0x498   : > { %5250 = vst.msk [vmem:[%s9083_s14 + $0x2c0] sm:$0xff] %vm5161_vm4, %v5151_v15  ;;  %v5054_v4 = vadd.f32 %v9849_v23, %v4949_v34  ;;  %v4132_v49 = vmax.f32 %v10446_v42, %v4011_v35  ;;  %v10461_v15 = vmax.f32 %v10459_v52, %v10460_v50 }
 0x499   : > { %v6603_v39 = vpop.f32.mrf.mxu0  ;;  %v6801_v16 = vpop.f32.mrf.mxu1 }
 0x49a   : > { %v5152_v61 = vmax.f32 %v5054_v4, 0.0  ;;  %v4950_v18 = vmax.f32 %v4132_v49, %v4829_v53  ;;  %v10462_v39 = vld [vmem:[#allocation148_spill] sm:$0xff]  ;;  %v10463_v16 = vld [vmem:[#allocation149_spill] sm:$0xff] }
 0x49b   : > { %v4014_v3 = vpop.f32.mrf.mxu0  ;;  %v4832_v7 = vpop.f32.mrf.mxu1 }
 0x49c   : > { %5251 = vst.msk [vmem:[%s9083_s14 + $0x2c8] sm:$0xff] %vm5161_vm4, %v5152_v61  ;;  %v5055_v19 = vadd.f32 %v9849_v23, %v4950_v18  ;;  %v4133_v10 = vmax.f32 %v10449_v36, %v4014_v3  ;;  %v10464_v61 = vmax.f32 %v10462_v39, %v10463_v16 }
 0x49d   : > { %v6604_v33 = vpop.f32.mrf.mxu0  ;;  %v6802_v37 = vpop.f32.mrf.mxu1 }
 0x49e   : > { %v5153_v20 = vmax.f32 %v5055_v19, 0.0  ;;  %v4951_v21 = vmax.f32 %v4133_v10, %v4832_v7  ;;  %v10465_v33 = vld [vmem:[#allocation150_spill] sm:$0xff] }
 0x49f   : > { %v4019_v40 = vpop.f32.mrf.mxu0  ;;  %v4837_v44 = vpop.f32.mrf.mxu1  ;;  %v10466_v37 = vmax.f32 %v9052_v46, %v10465_v33 }
 0x4a0   : > { %5252 = vst.msk [vmem:[%s9083_s14 + $0x2d0] sm:$0xff] %vm5161_vm4, %v5153_v20  ;;  %v5056_v29 = vadd.f32 %v9849_v23, %v4951_v21  ;;  %v4134_v47 = vmax.f32 %v10452_v41, %v4019_v40 }
 0x4a1   : > { %v6607_v5 = vpop.f32.mrf.mxu0  ;;  %v6805_v12 = vpop.f32.mrf.mxu1 }
 0x4a2   : > { %v5154_v62 = vmax.f32 %v5056_v29, 0.0  ;;  %v4952_v27 = vmax.f32 %v4134_v47, %v4837_v44 }
 0x4a3   : > { %v4022_v13 = vpop.f32.mrf.mxu0  ;;  %v4840_v11 = vpop.f32.mrf.mxu1 }
 0x4a4   : > { %5253 = vst.msk [vmem:[%s9083_s14 + $0x2d8] sm:$0xff] %vm5161_vm4, %v5154_v62  ;;  %v5057_v43 = vadd.f32 %v9849_v23, %v4952_v27  ;;  %v4135_v32 = vmax.f32 %v10455_v31, %v4022_v13 }
 0x4a5   : > { %v6608_v48 = vpop.f32.mrf.mxu0  ;;  %v6806_v54 = vpop.f32.mrf.mxu1 }
 0x4a6   : > { %v5155_v56 = vmax.f32 %v5057_v43, 0.0  ;;  %v4953_v0 = vmax.f32 %v4135_v32, %v4840_v11 }
 0x4a7   : > { %v4027_v14 = vpop.f32.mrf.mxu0  ;;  %v4845_v58 = vpop.f32.mrf.mxu1 }
 0x4a8   : > { %5254 = vst.msk [vmem:[%s9083_s14 + $0x2e0] sm:$0xff] %vm5161_vm4, %v5155_v56  ;;  %v5058_v60 = vadd.f32 %v9849_v23, %v4953_v0  ;;  %v4136_v63 = vmax.f32 %v10458_v9, %v4027_v14 }
 0x4a9   : > { %v6611_v28 = vpop.f32.mrf.mxu0  ;;  %v6809_v59 = vpop.f32.mrf.mxu1 }
 0x4aa   : > { %v5156_v17 = vmax.f32 %v5058_v60, 0.0  ;;  %v4954_v24 = vmax.f32 %v4136_v63, %v4845_v58 }
 0x4ab   : > { %v4030_v51 = vpop.f32.mrf.mxu0  ;;  %v4848_v38 = vpop.f32.mrf.mxu1 }
 0x4ac   : > { %5255 = vst.msk [vmem:[%s9083_s14 + $0x2e8] sm:$0xff] %vm5161_vm4, %v5156_v17  ;;  %v5059_v55 = vadd.f32 %v9849_v23, %v4954_v24  ;;  %v4137_v34 = vmax.f32 %v10461_v15, %v4030_v51 }
 0x4ad   : > { %v6612_v35 = vpop.f32.mrf.mxu0  ;;  %v6810_v53 = vpop.f32.mrf.mxu1 }
 0x4ae   : > { %v5157_v4 = vmax.f32 %v5059_v55, 0.0  ;;  %v4955_v6 = vmax.f32 %v4137_v34, %v4848_v38 }
 0x4af   : > { %v4035_v22 = vpop.f32.mrf.mxu0  ;;  %v4853_v42 = vpop.f32.mrf.mxu1 }
 0x4b0   : > { %5256 = vst.msk [vmem:[%s9083_s14 + $0x2f0] sm:$0xff] %vm5161_vm4, %v5157_v4  ;;  %v5060_v49 = vadd.f32 %v9849_v23, %v4955_v6  ;;  %v4138_v18 = vmax.f32 %v10464_v61, %v4035_v22 }
 0x4b1   : > { %v6615_v3 = vpop.f32.mrf.mxu0  ;;  %v6813_v7 = vpop.f32.mrf.mxu1 }
 0x4b2   : > { %v5158_v19 = vmax.f32 %v5060_v49, 0.0  ;;  %v4956_v1 = vmax.f32 %v4138_v18, %v4853_v42 }
 0x4b3   : > { %v4038_v2 = vpop.f32.mrf.mxu0  ;;  %v4856_v36 = vpop.f32.mrf.mxu1 }
 0x4b4   : > { %5257 = vst.msk [vmem:[%s9083_s14 + $0x2f8] sm:$0xff] %vm5161_vm4, %v5158_v19  ;;  %v5061_v10 = vadd.f32 %v9849_v23, %v4956_v1  ;;  %v4139_v20 = vmax.f32 %v10466_v37, %v4038_v2 }
 0x4b5   : > { %v6616_v21 = vpop.f32.mrf.mxu0  ;;  %v6814_v40 = vpop.f32.mrf.mxu1 }
 0x4b6   : > { %v5159_v44 = vmax.f32 %v5061_v10, 0.0  ;;  %v4957_v29 = vmax.f32 %v4139_v20, %v4856_v36 }
 0x4b8   : > { %5258 = vst.msk [vmem:[%s9083_s14 + $0x300] sm:$0xff] %vm5161_vm4, %v5159_v44  ;;  %v5062_v30 = vadd.f32 %v9849_v23, %v4957_v29 }
 0x4ba   : > { %v5160_v45 = vmax.f32 %v5062_v30, 0.0 }
 0x4bc   : > { %5259 = vst.msk [vmem:[%s9083_s14 + $0x308] sm:$0xff] %vm5161_vm4, %v5160_v45 }
 0x4bd PF: > { %p10_p9 = scmp.ge.s32.totalorder %s6910_s16, 4   ;;  %s10467_s12 = smov %s6864_s13 }
 0x4be   : > { %s10468_s13 = smov %s6919_s19  ;;  %s10469_s14 = smov %s6910_s16 }
 0x4bf   :  { %12 = sbr.rel (!%p10_p9) target bundleno = 2 (0x2), region = 108 }

// kernel: simple_cnn_forward.5
= control target key start
LH: loop header
LB: loop body
LE: loop exit
PB: predicated region body
PF: predicated region fallthrough
CT: control target
= control target key end

     0   :  { %s1639_s0 = inlined_call_operand.vmem [shape: f32[8,1568], index: 0, kind: input, shape index: {}]   ;;  %s1640_s1 = inlined_call_operand.vmem [shape: f32[1568,128], index: 1, kind: input, shape index: {}]   ;;  %s1641_s2 = inlined_call_operand.vmem [shape: f32[1,128], index: 2, kind: input, shape index: {}]   ;;  %s1642_s3 = inlined_call_operand.vmem [shape: f32[128,10], index: 3, kind: input, shape index: {}]   ;;  %s1643_s4 = inlined_call_operand.vmem [shape: f32[1,10], index: 4, kind: input, shape index: {}]   ;;  %s1644_s5 = inlined_call_operand.hbm [shape: f32[8,10], index: 5, kind: output, shape index: {}]  }
   0x1   :  { %v78_v0 = vld [vmem:[%s1640_s1 + $0xf0] sm:$0xff]  ;;  %v79_v1 = vld [vmem:[%s1640_s1 + $0xf8] sm:$0xff]  ;;  %v76_v11 = vld [vmem:[%s1640_s1 + $0xe0] sm:$0xff] }
   0x2   :  { %v110_v2 = vld [vmem:[%s1640_s1 + $0x1f0] sm:$0xff]  ;;  %v259_v3 = vpack.c.bf16 %v79_v1, %v78_v0  ;;  %v111_v4 = vld [vmem:[%s1640_s1 + $0x1f8] sm:$0xff]  ;;  %v77_v13 = vld [vmem:[%s1640_s1 + $0xe8] sm:$0xff] }
   0x3   :  { %v62_v5 = vld [vmem:[%s1640_s1 + $0x70] sm:$0xff]  ;;  %v63_v6 = vld [vmem:[%s1640_s1 + $0x78] sm:$0xff]  ;;  %v275_v7 = vpack.c.bf16 %v111_v4, %v110_v2  ;;  %v108_v14 = vld [vmem:[%s1640_s1 + $0x1e0] sm:$0xff]  ;;  %v258_v16 = vpack.c.bf16 %v77_v13, %v76_v11 }
   0x4   :  { %v251_v8 = vpack.c.bf16 %v63_v6, %v62_v5  ;;  %v94_v9 = vld [vmem:[%s1640_s1 + $0x170] sm:$0xff]  ;;  %v95_v10 = vld [vmem:[%s1640_s1 + $0x178] sm:$0xff]  ;;  %725 = vmatprep.subr.bf16.mxu0 %v259_v3  ;;  %v109_v15 = vld [vmem:[%s1640_s1 + $0x1e8] sm:$0xff] }
   0x5   :  { %v267_v12 = vpack.c.bf16 %v95_v10, %v94_v9  ;;  %747 = vmatprep.subr.bf16.mxu1 %v275_v7  ;;  %v274_v17 = vpack.c.bf16 %v109_v15, %v108_v14  ;;  %v60_v18 = vld [vmem:[%s1640_s1 + $0x60] sm:$0xff]  ;;  %v61_v19 = vld [vmem:[%s1640_s1 + $0x68] sm:$0xff]  ;;  %v74_v23 = vld [vmem:[%s1640_s1 + $0xd0] sm:$0xff] }
   0x6   :  { %726 = vmatpush3.bf16.msra.mxu0 %v251_v8  ;;  %v92_v20 = vld [vmem:[%s1640_s1 + $0x160] sm:$0xff]  ;;  %v250_v21 = vpack.c.bf16 %v61_v19, %v60_v18  ;;  %v93_v22 = vld [vmem:[%s1640_s1 + $0x168] sm:$0xff]  ;;  %v75_v24 = vld [vmem:[%s1640_s1 + $0xd8] sm:$0xff] }
   0x7   :  { %748 = vmatpush3.bf16.msra.mxu1 %v267_v12  ;;  %727 = vmatprep.subr.bf16.mxu0 %v258_v16  ;;  %v266_v25 = vpack.c.bf16 %v93_v22, %v92_v20  ;;  %v257_v26 = vpack.c.bf16 %v75_v24, %v74_v23  ;;  %v106_v27 = vld [vmem:[%s1640_s1 + $0x1d0] sm:$0xff]  ;;  %v107_v28 = vld [vmem:[%s1640_s1 + $0x1d8] sm:$0xff]  ;;  %v72_v35 = vld [vmem:[%s1640_s1 + $0xc0] sm:$0xff] }
   0x8   :  { %749 = vmatprep.subr.bf16.mxu1 %v274_v17  ;;  %v58_v29 = vld [vmem:[%s1640_s1 + $0x50] sm:$0xff]  ;;  %v273_v30 = vpack.c.bf16 %v107_v28, %v106_v27  ;;  %v59_v31 = vld [vmem:[%s1640_s1 + $0x58] sm:$0xff]  ;;  %v73_v36 = vld [vmem:[%s1640_s1 + $0xc8] sm:$0xff] }
   0x9   :  { %v90_v32 = vld [vmem:[%s1640_s1 + $0x150] sm:$0xff]  ;;  %v91_v33 = vld [vmem:[%s1640_s1 + $0x158] sm:$0xff]  ;;  %v249_v34 = vpack.c.bf16 %v59_v31, %v58_v29  ;;  %v104_v37 = vld [vmem:[%s1640_s1 + $0x1c0] sm:$0xff]  ;;  %v256_v39 = vpack.c.bf16 %v73_v36, %v72_v35 }
   0xa   :  { %728 = vmatpush3.bf16.msra.mxu0 %v250_v21  ;;  %v265_v38 = vpack.c.bf16 %v91_v33, %v90_v32  ;;  %v105_v40 = vld [vmem:[%s1640_s1 + $0x1c8] sm:$0xff]  ;;  %v56_v41 = vld [vmem:[%s1640_s1 + $0x40] sm:$0xff]  ;;  %v70_v46 = vld [vmem:[%s1640_s1 + $0xb0] sm:$0xff] }
   0xb   :  { %750 = vmatpush3.bf16.msra.mxu1 %v266_v25  ;;  %729 = vmatprep.subr.bf16.mxu0 %v257_v26  ;;  %v57_v42 = vld [vmem:[%s1640_s1 + $0x48] sm:$0xff]  ;;  %v272_v43 = vpack.c.bf16 %v105_v40, %v104_v37  ;;  %v88_v44 = vld [vmem:[%s1640_s1 + $0x140] sm:$0xff]  ;;  %v71_v47 = vld [vmem:[%s1640_s1 + $0xb8] sm:$0xff] }
   0xc   :  { %751 = vmatprep.subr.bf16.mxu1 %v273_v30  ;;  %v89_v45 = vld [vmem:[%s1640_s1 + $0x148] sm:$0xff]  ;;  %v102_v48 = vld [vmem:[%s1640_s1 + $0x1b0] sm:$0xff]  ;;  %v103_v49 = vld [vmem:[%s1640_s1 + $0x1b8] sm:$0xff]  ;;  %v248_v50 = vpack.c.bf16 %v57_v42, %v56_v41  ;;  %v255_v52 = vpack.c.bf16 %v71_v47, %v70_v46 }
   0xd   :  { %v264_v51 = vpack.c.bf16 %v89_v45, %v88_v44  ;;  %v54_v53 = vld [vmem:[%s1640_s1 + $0x30] sm:$0xff]  ;;  %v55_v54 = vld [vmem:[%s1640_s1 + $0x38] sm:$0xff]  ;;  %v271_v56 = vpack.c.bf16 %v103_v49, %v102_v48  ;;  %v68_v58 = vld [vmem:[%s1640_s1 + $0xa0] sm:$0xff] }
   0xe   :  { %730 = vmatpush3.bf16.msra.mxu0 %v249_v34  ;;  %v86_v55 = vld [vmem:[%s1640_s1 + $0x130] sm:$0xff]  ;;  %v87_v57 = vld [vmem:[%s1640_s1 + $0x138] sm:$0xff]  ;;  %v69_v59 = vld [vmem:[%s1640_s1 + $0xa8] sm:$0xff]  ;;  %v247_v62 = vpack.c.bf16 %v55_v54, %v54_v53 }
   0xf   :  { %752 = vmatpush3.bf16.msra.mxu1 %v265_v38  ;;  %731 = vmatprep.subr.bf16.mxu0 %v256_v39  ;;  %v100_v60 = vld [vmem:[%s1640_s1 + $0x1a0] sm:$0xff]  ;;  %v101_v61 = vld [vmem:[%s1640_s1 + $0x1a8] sm:$0xff]  ;;  %v263_v63 = vpack.c.bf16 %v87_v57, %v86_v55  ;;  %v254_v0 = vpack.c.bf16 %v69_v59, %v68_v58  ;;  %v66_v6 = vld [vmem:[%s1640_s1 + $0x90] sm:$0xff] }
  0x10   :  { %753 = vmatprep.subr.bf16.mxu1 %v272_v43  ;;  %v52_v1 = vld [vmem:[%s1640_s1 + $0x20] sm:$0xff]  ;;  %v53_v2 = vld [vmem:[%s1640_s1 + $0x28] sm:$0xff]  ;;  %v270_v4 = vpack.c.bf16 %v101_v61, %v100_v60  ;;  %v67_v7 = vld [vmem:[%s1640_s1 + $0x98] sm:$0xff] }
  0x11   :  { %v84_v3 = vld [vmem:[%s1640_s1 + $0x120] sm:$0xff]  ;;  %v85_v5 = vld [vmem:[%s1640_s1 + $0x128] sm:$0xff]  ;;  %v98_v8 = vld [vmem:[%s1640_s1 + $0x190] sm:$0xff]  ;;  %v246_v10 = vpack.c.bf16 %v53_v2, %v52_v1  ;;  %v253_v14 = vpack.c.bf16 %v67_v7, %v66_v6 }
  0x12   :  { %732 = vmatpush3.bf16.msra.mxu0 %v248_v50  ;;  %v99_v9 = vld [vmem:[%s1640_s1 + $0x198] sm:$0xff]  ;;  %v50_v11 = vld [vmem:[%s1640_s1 + $0x10] sm:$0xff]  ;;  %v262_v13 = vpack.c.bf16 %v85_v5, %v84_v3  ;;  %v23_v16 = vld [vmem:[%s1639_s0 + $0x8] sm:$0xff] }
  0x13   :  { %754 = vmatpush3.bf16.msra.mxu1 %v264_v51  ;;  %733 = vmatprep.subr.bf16.mxu0 %v255_v52  ;;  %v51_v12 = vld [vmem:[%s1640_s1 + $0x18] sm:$0xff]  ;;  %v82_v15 = vld [vmem:[%s1640_s1 + $0x110] sm:$0xff]  ;;  %v269_v18 = vpack.c.bf16 %v99_v9, %v98_v8  ;;  %v64_v20 = vld [vmem:[%s1640_s1 + $0x80] sm:$0xff]  ;;  %v36_v22 = vpack.c.bf16 %v23_v16, %v23_v16 }
  0x14   :  { %755 = vmatprep.subr.bf16.mxu1 %v271_v56  ;;  %v25_v17 = vld [vmem:[%s1639_s0 + $0x18] sm:$0xff]  ;;  %v65_v21 = vld [vmem:[%s1640_s1 + $0x88] sm:$0xff]  ;;  %v96_v24 = vld [vmem:[%s1640_s1 + $0x180] sm:$0xff]  ;;  %v245_v26 = vpack.c.bf16 %v51_v12, %v50_v11 }
  0x15   :  { %v83_v19 = vld [vmem:[%s1640_s1 + $0x118] sm:$0xff]  ;;  %v38_v23 = vpack.c.bf16 %v25_v17, %v25_v17  ;;  %v97_v25 = vld [vmem:[%s1640_s1 + $0x188] sm:$0xff]  ;;  %385 = vmatprep.mubr.bf16.mxu0 %v36_v22  ;;  %v252_v28 = vpack.c.bf16 %v65_v21, %v64_v20  ;;  %v48_v29 = vld [vmem:[%s1640_s1] sm:$0xff] }
  0x16   :  { %734 = vmatpush3.bf16.msra.mxu0 %v247_v62  ;;  %v261_v27 = vpack.c.bf16 %v83_v19, %v82_v15  ;;  %v49_v30 = vld [vmem:[%s1640_s1 + $0x8] sm:$0xff]  ;;  %v80_v31 = vld [vmem:[%s1640_s1 + $0x100] sm:$0xff]  ;;  %v268_v32 = vpack.c.bf16 %v97_v25, %v96_v24  ;;  %v142_v34 = vld [vmem:[%s1640_s1 + $0x2f0] sm:$0xff] }
  0x17   :  { %756 = vmatpush3.bf16.msra.mxu1 %v263_v63  ;;  %735 = vmatprep.subr.bf16.mxu0 %v254_v0  ;;  %v81_v33 = vld [vmem:[%s1640_s1 + $0x108] sm:$0xff]  ;;  %v143_v35 = vld [vmem:[%s1640_s1 + $0x2f8] sm:$0xff]  ;;  %v174_v36 = vld [vmem:[%s1640_s1 + $0x3f0] sm:$0xff]  ;;  %v244_v38 = vpack.c.bf16 %v49_v30, %v48_v29 }
  0x18   :  { %757 = vmatprep.subr.bf16.mxu1 %v270_v4  ;;  %425 = vmatprep.mubr.bf16.mxu1 %v38_v23  ;;  %v175_v37 = vld [vmem:[%s1640_s1 + $0x3f8] sm:$0xff]  ;;  %v22_v39 = vld [vmem:[%s1639_s0] sm:$0xff]  ;;  %v24_v40 = vld [vmem:[%s1639_s0 + $0x10] sm:$0xff]  ;;  %v260_v41 = vpack.c.bf16 %v81_v33, %v80_v31  ;;  %v291_v42 = vpack.c.bf16 %v143_v35, %v142_v34 }
  0x19   :  { %v126_v43 = vld [vmem:[%s1640_s1 + $0x270] sm:$0xff]  ;;  %v127_v44 = vld [vmem:[%s1640_s1 + $0x278] sm:$0xff]  ;;  %v307_v46 = vpack.c.bf16 %v175_v37, %v174_v36  ;;  %v140_v48 = vld [vmem:[%s1640_s1 + $0x2e0] sm:$0xff]  ;;  %v35_v50 = vpack.c.bf16 %v22_v39, %v22_v39  ;;  %v37_v53 = vpack.c.bf16 %v24_v40, %v24_v40 }
  0x1a   :  { %736 = vmatpush3.bf16.msra.mxu0 %v246_v10  ;;  %v158_v45 = vld [vmem:[%s1640_s1 + $0x370] sm:$0xff]  ;;  %v159_v47 = vld [vmem:[%s1640_s1 + $0x378] sm:$0xff]  ;;  %v141_v49 = vld [vmem:[%s1640_s1 + $0x2e8] sm:$0xff]  ;;  %v283_v54 = vpack.c.bf16 %v127_v44, %v126_v43 }
  0x1b   :  { %758 = vmatpush3.bf16.msra.mxu1 %v262_v13  ;;  %737 = vmatprep.subr.bf16.mxu0 %v253_v14  ;;  %v172_v51 = vld [vmem:[%s1640_s1 + $0x3e0] sm:$0xff]  ;;  %v173_v52 = vld [vmem:[%s1640_s1 + $0x3e8] sm:$0xff]  ;;  %v299_v55 = vpack.c.bf16 %v159_v47, %v158_v45  ;;  %v290_v56 = vpack.c.bf16 %v141_v49, %v140_v48  ;;  %v138_v62 = vld [vmem:[%s1640_s1 + $0x2d0] sm:$0xff] }
  0x1c   :  { %759 = vmatprep.subr.bf16.mxu1 %v269_v18  ;;  %v124_v57 = vld [vmem:[%s1640_s1 + $0x260] sm:$0xff]  ;;  %v125_v58 = vld [vmem:[%s1640_s1 + $0x268] sm:$0xff]  ;;  %v306_v60 = vpack.c.bf16 %v173_v52, %v172_v51  ;;  %v139_v63 = vld [vmem:[%s1640_s1 + $0x2d8] sm:$0xff] }
  0x1d   :  { %v156_v59 = vld [vmem:[%s1640_s1 + $0x360] sm:$0xff]  ;;  %v157_v61 = vld [vmem:[%s1640_s1 + $0x368] sm:$0xff]  ;;  %v170_v0 = vld [vmem:[%s1640_s1 + $0x3d0] sm:$0xff]  ;;  %v282_v2 = vpack.c.bf16 %v125_v58, %v124_v57  ;;  %v289_v4 = vpack.c.bf16 %v139_v63, %v138_v62 }
  0x1e   :  { %738 = vmatpush3.bf16.msra.mxu0 %v245_v26  ;;  %v171_v1 = vld [vmem:[%s1640_s1 + $0x3d8] sm:$0xff]  ;;  %v298_v3 = vpack.c.bf16 %v157_v61, %v156_v59  ;;  %v122_v5 = vld [vmem:[%s1640_s1 + $0x250] sm:$0xff]  ;;  %v136_v10 = vld [vmem:[%s1640_s1 + $0x2c0] sm:$0xff] }
  0x1f   :  { %760 = vmatpush3.bf16.msra.mxu1 %v261_v27  ;;  %739 = vmatprep.subr.bf16.mxu0 %v252_v28  ;;  %v123_v6 = vld [vmem:[%s1640_s1 + $0x258] sm:$0xff]  ;;  %v154_v7 = vld [vmem:[%s1640_s1 + $0x350] sm:$0xff]  ;;  %v305_v8 = vpack.c.bf16 %v171_v1, %v170_v0  ;;  %v137_v11 = vld [vmem:[%s1640_s1 + $0x2c8] sm:$0xff] }
  0x20   :  { %761 = vmatprep.subr.bf16.mxu1 %v268_v32  ;;  %v155_v9 = vld [vmem:[%s1640_s1 + $0x358] sm:$0xff]  ;;  %v168_v12 = vld [vmem:[%s1640_s1 + $0x3c0] sm:$0xff]  ;;  %v169_v13 = vld [vmem:[%s1640_s1 + $0x3c8] sm:$0xff]  ;;  %v281_v14 = vpack.c.bf16 %v123_v6, %v122_v5  ;;  %v288_v17 = vpack.c.bf16 %v137_v11, %v136_v10 }
  0x21   :  { %v120_v15 = vld [vmem:[%s1640_s1 + $0x240] sm:$0xff]  ;;  %v297_v16 = vpack.c.bf16 %v155_v9, %v154_v7  ;;  %v121_v18 = vld [vmem:[%s1640_s1 + $0x248] sm:$0xff]  ;;  %v304_v21 = vpack.c.bf16 %v169_v13, %v168_v12  ;;  %v134_v22 = vld [vmem:[%s1640_s1 + $0x2b0] sm:$0xff] }
  0x22   :  { %740 = vmatpush3.bf16.msra.mxu0 %v244_v38  ;;  %v152_v19 = vld [vmem:[%s1640_s1 + $0x340] sm:$0xff]  ;;  %v153_v20 = vld [vmem:[%s1640_s1 + $0x348] sm:$0xff]  ;;  %v135_v23 = vld [vmem:[%s1640_s1 + $0x2b8] sm:$0xff]  ;;  %v280_v26 = vpack.c.bf16 %v121_v18, %v120_v15 }
  0x23   :  { %762 = vmatpush3.bf16.msra.mxu1 %v260_v41  ;;  %769 = vmatprep.subr.bf16.mxu0 %v291_v42  ;;  %v166_v24 = vld [vmem:[%s1640_s1 + $0x3b0] sm:$0xff]  ;;  %v167_v25 = vld [vmem:[%s1640_s1 + $0x3b8] sm:$0xff]  ;;  %v296_v27 = vpack.c.bf16 %v153_v20, %v152_v19  ;;  %v27_v28 = vld [vmem:[%s1639_s0 + $0x28] sm:$0xff]  ;;  %v287_v30 = vpack.c.bf16 %v135_v23, %v134_v22 }
  0x24   :  { %791 = vmatprep.subr.bf16.mxu1 %v307_v46  ;;  %v29_v29 = vld [vmem:[%s1639_s0 + $0x38] sm:$0xff]  ;;  %v118_v31 = vld [vmem:[%s1640_s1 + $0x230] sm:$0xff]  ;;  %v40_v34 = vpack.c.bf16 %v27_v28, %v27_v28  ;;  %v303_v36 = vpack.c.bf16 %v167_v25, %v166_v24  ;;  %v132_v38 = vld [vmem:[%s1640_s1 + $0x2a0] sm:$0xff] }
  0x25   :  { %386 = vmatmul.mubr.bf16.vlgmr.msra.gmra.mxu0 %v35_v50  ;;  %v119_v32 = vld [vmem:[%s1640_s1 + $0x238] sm:$0xff]  ;;  %v150_v33 = vld [vmem:[%s1640_s1 + $0x330] sm:$0xff]  ;;  %v42_v35 = vpack.c.bf16 %v29_v29, %v29_v29  ;;  %v133_v39 = vld [vmem:[%s1640_s1 + $0x2a8] sm:$0xff] }
  0x26   :  { %426 = vmatmul.mubr.bf16.vlgmr.msra.gmra.mxu1 %v37_v53  ;;  %770 = vmatpush3.bf16.msra.mxu0 %v283_v54  ;;  %v151_v37 = vld [vmem:[%s1640_s1 + $0x338] sm:$0xff]  ;;  %v164_v40 = vld [vmem:[%s1640_s1 + $0x3a0] sm:$0xff]  ;;  %v165_v41 = vld [vmem:[%s1640_s1 + $0x3a8] sm:$0xff]  ;;  %v279_v42 = vpack.c.bf16 %v119_v32, %v118_v31  ;;  %v286_v44 = vpack.c.bf16 %v133_v39, %v132_v38 }
  0x27   :  { %792 = vmatpush3.bf16.msra.mxu1 %v299_v55  ;;  %771 = vmatprep.subr.bf16.mxu0 %v290_v56  ;;  %v295_v43 = vpack.c.bf16 %v151_v37, %v150_v33  ;;  %v116_v45 = vld [vmem:[%s1640_s1 + $0x220] sm:$0xff]  ;;  %v117_v46 = vld [vmem:[%s1640_s1 + $0x228] sm:$0xff]  ;;  %v302_v48 = vpack.c.bf16 %v165_v41, %v164_v40  ;;  %v130_v50 = vld [vmem:[%s1640_s1 + $0x290] sm:$0xff] }
  0x28   :  { %793 = vmatprep.subr.bf16.mxu1 %v306_v60  ;;  %465 = vmatprep.mubr.bf16.mxu0 %v40_v34  ;;  %v148_v47 = vld [vmem:[%s1640_s1 + $0x320] sm:$0xff]  ;;  %v149_v49 = vld [vmem:[%s1640_s1 + $0x328] sm:$0xff]  ;;  %v131_v51 = vld [vmem:[%s1640_s1 + $0x298] sm:$0xff]  ;;  %v278_v54 = vpack.c.bf16 %v117_v46, %v116_v45 }
  0x29   :  { %505 = vmatprep.mubr.bf16.mxu1 %v42_v35  ;;  %v162_v52 = vld [vmem:[%s1640_s1 + $0x390] sm:$0xff]  ;;  %v163_v53 = vld [vmem:[%s1640_s1 + $0x398] sm:$0xff]  ;;  %v294_v55 = vpack.c.bf16 %v149_v49, %v148_v47  ;;  %v285_v56 = vpack.c.bf16 %v131_v51, %v130_v50  ;;  %v128_v62 = vld [vmem:[%s1640_s1 + $0x280] sm:$0xff] }
  0x2a   :  { %772 = vmatpush3.bf16.msra.mxu0 %v282_v2  ;;  %v114_v57 = vld [vmem:[%s1640_s1 + $0x210] sm:$0xff]  ;;  %v115_v58 = vld [vmem:[%s1640_s1 + $0x218] sm:$0xff]  ;;  %v301_v60 = vpack.c.bf16 %v163_v53, %v162_v52  ;;  %v129_v63 = vld [vmem:[%s1640_s1 + $0x288] sm:$0xff] }
  0x2b   :  { %794 = vmatpush3.bf16.msra.mxu1 %v298_v3  ;;  %773 = vmatprep.subr.bf16.mxu0 %v289_v4  ;;  %v146_v59 = vld [vmem:[%s1640_s1 + $0x310] sm:$0xff]  ;;  %v147_v61 = vld [vmem:[%s1640_s1 + $0x318] sm:$0xff]  ;;  %v160_v0 = vld [vmem:[%s1640_s1 + $0x380] sm:$0xff]  ;;  %v277_v2 = vpack.c.bf16 %v115_v58, %v114_v57  ;;  %v284_v4 = vpack.c.bf16 %v129_v63, %v128_v62 }
  0x2c   :  { %795 = vmatprep.subr.bf16.mxu1 %v305_v8  ;;  %v161_v1 = vld [vmem:[%s1640_s1 + $0x388] sm:$0xff]  ;;  %v293_v3 = vpack.c.bf16 %v147_v61, %v146_v59  ;;  %v112_v5 = vld [vmem:[%s1640_s1 + $0x200] sm:$0xff]  ;;  %v206_v10 = vld [vmem:[%s1640_s1 + $0x4f0] sm:$0xff] }
  0x2d   :  { %v113_v6 = vld [vmem:[%s1640_s1 + $0x208] sm:$0xff]  ;;  %v144_v7 = vld [vmem:[%s1640_s1 + $0x300] sm:$0xff]  ;;  %v300_v8 = vpack.c.bf16 %v161_v1, %v160_v0  ;;  %v207_v11 = vld [vmem:[%s1640_s1 + $0x4f8] sm:$0xff] }
  0x2e   :  { %774 = vmatpush3.bf16.msra.mxu0 %v281_v14  ;;  %v145_v9 = vld [vmem:[%s1640_s1 + $0x308] sm:$0xff]  ;;  %v238_v12 = vld [vmem:[%s1640_s1 + $0x5f0] sm:$0xff]  ;;  %v239_v13 = vld [vmem:[%s1640_s1 + $0x5f8] sm:$0xff]  ;;  %v276_v14 = vpack.c.bf16 %v113_v6, %v112_v5  ;;  %v323_v18 = vpack.c.bf16 %v207_v11, %v206_v10 }
  0x2f   :  { %796 = vmatpush3.bf16.msra.mxu1 %v297_v16  ;;  %775 = vmatprep.subr.bf16.mxu0 %v288_v17  ;;  %v26_v15 = vld [vmem:[%s1639_s0 + $0x20] sm:$0xff]  ;;  %v28_v16 = vld [vmem:[%s1639_s0 + $0x30] sm:$0xff]  ;;  %v292_v17 = vpack.c.bf16 %v145_v9, %v144_v7  ;;  %v191_v20 = vld [vmem:[%s1640_s1 + $0x478] sm:$0xff]  ;;  %v339_v22 = vpack.c.bf16 %v239_v13, %v238_v12 }
  0x30   :  { %797 = vmatprep.subr.bf16.mxu1 %v304_v21  ;;  %v190_v19 = vld [vmem:[%s1640_s1 + $0x470] sm:$0xff]  ;;  %v223_v23 = vld [vmem:[%s1640_s1 + $0x578] sm:$0xff]  ;;  %v204_v24 = vld [vmem:[%s1640_s1 + $0x4e0] sm:$0xff]  ;;  %v41_v29 = vpack.c.bf16 %v28_v16, %v28_v16 }
  0x31   :  { %v222_v21 = vld [vmem:[%s1640_s1 + $0x570] sm:$0xff]  ;;  %v205_v25 = vld [vmem:[%s1640_s1 + $0x4e8] sm:$0xff]  ;;  %v188_v31 = vld [vmem:[%s1640_s1 + $0x460] sm:$0xff] }
  0x32   :  { %776 = vmatpush3.bf16.msra.mxu0 %v280_v26  ;;  %v39_v26 = vpack.c.bf16 %v26_v15, %v26_v15  ;;  %v237_v28 = vld [vmem:[%s1640_s1 + $0x5e8] sm:$0xff]  ;;  %v331_v32 = vpack.c.bf16 %v223_v23, %v222_v21  ;;  %v322_v33 = vpack.c.bf16 %v205_v25, %v204_v24  ;;  %v220_v35 = vld [vmem:[%s1640_s1 + $0x560] sm:$0xff]  ;;  %v202_v38 = vld [vmem:[%s1640_s1 + $0x4d0] sm:$0xff] }
  0x33   :  { %798 = vmatpush3.bf16.msra.mxu1 %v296_v27  ;;  %777 = vmatprep.subr.bf16.mxu0 %v287_v30  ;;  %v236_v27 = vld [vmem:[%s1640_s1 + $0x5e0] sm:$0xff]  ;;  %v315_v30 = vpack.c.bf16 %v191_v20, %v190_v19  ;;  %v189_v34 = vld [vmem:[%s1640_s1 + $0x468] sm:$0xff]  ;;  %v203_v39 = vld [vmem:[%s1640_s1 + $0x4d8] sm:$0xff] }
  0x34   :  { %799 = vmatprep.subr.bf16.mxu1 %v303_v36  ;;  %v221_v36 = vld [vmem:[%s1640_s1 + $0x568] sm:$0xff]  ;;  %v338_v37 = vpack.c.bf16 %v237_v28, %v236_v27  ;;  %v234_v41 = vld [vmem:[%s1640_s1 + $0x5d0] sm:$0xff]  ;;  %v314_v45 = vpack.c.bf16 %v189_v34, %v188_v31  ;;  %v321_v49 = vpack.c.bf16 %v203_v39, %v202_v38  ;;  %v187_v50 = vld [vmem:[%s1640_s1 + $0x458] sm:$0xff] }
  0x35   :  { %v31_v40 = vld [vmem:[%s1639_s0 + $0x48] sm:$0xff]  ;;  %v186_v46 = vld [vmem:[%s1640_s1 + $0x450] sm:$0xff] }
  0x36   :  { %778 = vmatpush3.bf16.msra.mxu0 %v279_v42  ;;  %v235_v42 = vld [vmem:[%s1640_s1 + $0x5d8] sm:$0xff]  ;;  %v218_v51 = vld [vmem:[%s1640_s1 + $0x550] sm:$0xff] }
  0x37   :  { %800 = vmatpush3.bf16.msra.mxu1 %v295_v43  ;;  %779 = vmatprep.subr.bf16.mxu0 %v286_v44  ;;  %v44_v43 = vpack.c.bf16 %v31_v40, %v31_v40  ;;  %v33_v44 = vld [vmem:[%s1639_s0 + $0x58] sm:$0xff] }
  0x38   :  { %801 = vmatprep.subr.bf16.mxu1 %v302_v48  ;;  %v46_v47 = vpack.c.bf16 %v33_v44, %v33_v44  ;;  %v330_v48 = vpack.c.bf16 %v221_v36, %v220_v35 }
  0x3a   :  { %780 = vmatpush3.bf16.msra.mxu0 %v278_v54 }
  0x3b   :  { %802 = vmatpush3.bf16.msra.mxu1 %v294_v55  ;;  %781 = vmatprep.subr.bf16.mxu0 %v285_v56 }
  0x3c   :  { %803 = vmatprep.subr.bf16.mxu1 %v301_v60 }
  0x3e   :  { %782 = vmatpush3.bf16.msra.mxu0 %v277_v2 }
  0x3f   :  { %804 = vmatpush3.bf16.msra.mxu1 %v293_v3  ;;  %783 = vmatprep.subr.bf16.mxu0 %v284_v4 }
  0x40   :  { %805 = vmatprep.subr.bf16.mxu1 %v300_v8 }
  0x42   :  { %784 = vmatpush3.bf16.msra.mxu0 %v276_v14 }
  0x43   :  { %806 = vmatpush3.bf16.msra.mxu1 %v292_v17  ;;  %813 = vmatprep.subr.bf16.mxu0 %v323_v18 }
  0x44   :  { %835 = vmatprep.subr.bf16.mxu1 %v339_v22 }
  0x45   :  { %466 = vmatmul.mubr.bf16.vlgmr.msra.gmra.mxu0 %v39_v26 }
  0x46   :  { %506 = vmatmul.mubr.bf16.vlgmr.msra.gmra.mxu1 %v41_v29  ;;  %814 = vmatpush3.bf16.msra.mxu0 %v315_v30 }
  0x47   :  { %836 = vmatpush3.bf16.msra.mxu1 %v331_v32  ;;  %815 = vmatprep.subr.bf16.mxu0 %v322_v33 }
  0x48   :  { %10 = vsyncpa [#allocation3], 0  ;;  %837 = vmatprep.subr.bf16.mxu1 %v338_v37  ;;  %v337_v52 = vpack.c.bf16 %v235_v42, %v234_v41  ;;  %v219_v53 = vld [vmem:[%s1640_s1 + $0x558] sm:$0xff]  ;;  %v200_v54 = vld [vmem:[%s1640_s1 + $0x4c0] sm:$0xff]  ;;  %545 = vmatprep.mubr.bf16.mxu0 %v44_v43  ;;  %v313_v58 = vpack.c.bf16 %v187_v50, %v186_v46  ;;  %vm923_vm0 = vmmov 0   ;;  %vm349_vm1 = vcmask 261120  }
  0x49   :  { %v201_v55 = vld [vmem:[%s1640_s1 + $0x4c8] sm:$0xff]  ;;  %v232_v56 = vld [vmem:[%s1640_s1 + $0x5c0] sm:$0xff]  ;;  %585 = vmatprep.mubr.bf16.mxu1 %v46_v47  ;;  %v329_v59 = vpack.c.bf16 %v219_v53, %v218_v51  ;;  %v198_v2 = vld [vmem:[%s1640_s1 + $0x4b0] sm:$0xff]  ;;  %s924_s16 = smov [#allocation2]   ;;  %vm706_vm2 = vcmask 80896  }
  0x4a   :  { %v233_v57 = vld [vmem:[%s1640_s1 + $0x5c8] sm:$0xff]  ;;  %816 = vmatpush3.bf16.msra.mxu0 %v314_v45  ;;  %v320_v60 = vpack.c.bf16 %v201_v55, %v200_v54  ;;  %v184_v61 = vld [vmem:[%s1640_s1 + $0x440] sm:$0xff]  ;;  %v199_v3 = vld [vmem:[%s1640_s1 + $0x4b8] sm:$0xff]  ;;  %s714_s17 = sshll.u32 %s924_s16, 4  ;;  %s715_s17 = int_to_ptr.vmem [resolvable:$true] %s714_s17 }
  0x4b   :  { %838 = vmatpush3.bf16.msra.mxu1 %v330_v48  ;;  %817 = vmatprep.subr.bf16.mxu0 %v321_v49  ;;  %v185_v62 = vld [vmem:[%s1640_s1 + $0x448] sm:$0xff]  ;;  %v216_v63 = vld [vmem:[%s1640_s1 + $0x540] sm:$0xff]  ;;  %v336_v0 = vpack.c.bf16 %v233_v57, %v232_v56  ;;  %v230_v4 = vld [vmem:[%s1640_s1 + $0x5b0] sm:$0xff]  ;;  %v319_v8 = vpack.c.bf16 %v199_v3, %v198_v2  ;;  %s900_s18 = scalar_lea.vmem %s715_s17, 128  ;;  %p905_p1 = scmp.lt.s32.totalorder %s715_s17, %s715_s17 }
  0x4c   :  { %839 = vmatprep.subr.bf16.mxu1 %v337_v52  ;;  %v217_v1 = vld [vmem:[%s1640_s1 + $0x548] sm:$0xff]  ;;  %v231_v5 = vld [vmem:[%s1640_s1 + $0x5b8] sm:$0xff]  ;;  %v312_v6 = vpack.c.bf16 %v185_v62, %v184_v61  ;;  %v182_v9 = vld [vmem:[%s1640_s1 + $0x430] sm:$0xff]  ;;  %p901_p0 = scmp.ne.s32.totalorder %s715_s17, %s900_s18  ;;  %p906_p2 = scmp.lt.s32.totalorder %s900_s18, %s900_s18 }
  0x4d   :  { %v328_v7 = vpack.c.bf16 %v217_v1, %v216_v63  ;;  %v183_v10 = vld [vmem:[%s1640_s1 + $0x438] sm:$0xff]  ;;  %v214_v11 = vld [vmem:[%s1640_s1 + $0x530] sm:$0xff]  ;;  %v335_v12 = vpack.c.bf16 %v231_v5, %v230_v4  ;;  %v196_v14 = vld [vmem:[%s1640_s1 + $0x4a0] sm:$0xff] }
  0x4e   :  { %818 = vmatpush3.bf16.msra.mxu0 %v313_v58  ;;  %v215_v13 = vld [vmem:[%s1640_s1 + $0x538] sm:$0xff]  ;;  %v197_v15 = vld [vmem:[%s1640_s1 + $0x4a8] sm:$0xff]  ;;  %v228_v16 = vld [vmem:[%s1640_s1 + $0x5a0] sm:$0xff]  ;;  %v311_v18 = vpack.c.bf16 %v183_v10, %v182_v9  ;;  %p907_p3 = por %p906_p2, %p905_p1 }
  0x4f   :  { %840 = vmatpush3.bf16.msra.mxu1 %v329_v59  ;;  %819 = vmatprep.subr.bf16.mxu0 %v320_v60  ;;  %v229_v17 = vld [vmem:[%s1640_s1 + $0x5a8] sm:$0xff]  ;;  %v327_v19 = vpack.c.bf16 %v215_v13, %v214_v11  ;;  %v318_v20 = vpack.c.bf16 %v197_v15, %v196_v14  ;;  %v180_v21 = vld [vmem:[%s1640_s1 + $0x420] sm:$0xff]  ;;  %v194_v26 = vld [vmem:[%s1640_s1 + $0x490] sm:$0xff]  ;;  %v922_v59 = vmov 0.0  }
  0x50   :  { %841 = vmatprep.subr.bf16.mxu1 %v336_v0  ;;  %v181_v22 = vld [vmem:[%s1640_s1 + $0x428] sm:$0xff]  ;;  %v212_v23 = vld [vmem:[%s1640_s1 + $0x520] sm:$0xff]  ;;  %v334_v24 = vpack.c.bf16 %v229_v17, %v228_v16  ;;  %v195_v27 = vld [vmem:[%s1640_s1 + $0x498] sm:$0xff]  ;;  %p908_p4 = pnand %p907_p3, %p901_p0 }
  0x51   :  { %v213_v25 = vld [vmem:[%s1640_s1 + $0x528] sm:$0xff]  ;;  %v226_v28 = vld [vmem:[%s1640_s1 + $0x590] sm:$0xff]  ;;  %v227_v29 = vld [vmem:[%s1640_s1 + $0x598] sm:$0xff]  ;;  %v310_v30 = vpack.c.bf16 %v181_v22, %v180_v21  ;;  %v317_v32 = vpack.c.bf16 %v195_v27, %v194_v26 }
  0x52   :  { %820 = vmatpush3.bf16.msra.mxu0 %v312_v6  ;;  %v326_v31 = vpack.c.bf16 %v213_v25, %v212_v23  ;;  %v178_v33 = vld [vmem:[%s1640_s1 + $0x410] sm:$0xff]  ;;  %v179_v34 = vld [vmem:[%s1640_s1 + $0x418] sm:$0xff]  ;;  %v333_v36 = vpack.c.bf16 %v227_v29, %v226_v28  ;;  %v192_v38 = vld [vmem:[%s1640_s1 + $0x480] sm:$0xff] }
  0x53   :  { %842 = vmatpush3.bf16.msra.mxu1 %v328_v7  ;;  %821 = vmatprep.subr.bf16.mxu0 %v319_v8  ;;  %v210_v35 = vld [vmem:[%s1640_s1 + $0x510] sm:$0xff]  ;;  %v211_v37 = vld [vmem:[%s1640_s1 + $0x518] sm:$0xff]  ;;  %v193_v39 = vld [vmem:[%s1640_s1 + $0x488] sm:$0xff]  ;;  %v309_v42 = vpack.c.bf16 %v179_v34, %v178_v33 }
  0x54   :  { %843 = vmatprep.subr.bf16.mxu1 %v335_v12  ;;  %v224_v40 = vld [vmem:[%s1640_s1 + $0x580] sm:$0xff]  ;;  %v225_v41 = vld [vmem:[%s1640_s1 + $0x588] sm:$0xff]  ;;  %v325_v43 = vpack.c.bf16 %v211_v37, %v210_v35  ;;  %v316_v44 = vpack.c.bf16 %v193_v39, %v192_v38  ;;  %v32_v53 = vld [vmem:[%s1639_s0 + $0x50] sm:$0xff] }
  0x55   :  { %v176_v45 = vld [vmem:[%s1640_s1 + $0x400] sm:$0xff]  ;;  %v177_v46 = vld [vmem:[%s1640_s1 + $0x408] sm:$0xff]  ;;  %v332_v47 = vpack.c.bf16 %v225_v41, %v224_v40  ;;  %v242_v54 = vld [vmem:[%s1640_s1 + $0x610] sm:$0xff]  ;;  %v45_v57 = vpack.c.bf16 %v32_v53, %v32_v53 }
  0x56   :  { %822 = vmatpush3.bf16.msra.mxu0 %v311_v18  ;;  %v208_v48 = vld [vmem:[%s1640_s1 + $0x500] sm:$0xff]  ;;  %v209_v49 = vld [vmem:[%s1640_s1 + $0x508] sm:$0xff]  ;;  %v308_v50 = vpack.c.bf16 %v177_v46, %v176_v45  ;;  %v243_v55 = vld [vmem:[%s1640_s1 + $0x618] sm:$0xff] }
  0x57   :  { %844 = vmatpush3.bf16.msra.mxu1 %v327_v19  ;;  %823 = vmatprep.subr.bf16.mxu0 %v318_v20  ;;  %v30_v51 = vld [vmem:[%s1639_s0 + $0x40] sm:$0xff]  ;;  %v324_v52 = vpack.c.bf16 %v209_v49, %v208_v48  ;;  %v341_v58 = vpack.c.bf16 %v243_v55, %v242_v54  ;;  %v241_v61 = vld [vmem:[%s1640_s1 + $0x608] sm:$0xff]  ;;  %v649_v1 = vld [vmem:[%s1642_s3 + $0x70] sm:$0xff] }
  0x58   :  { %845 = vmatprep.subr.bf16.mxu1 %v334_v24  ;;  %v43_v56 = vpack.c.bf16 %v30_v51, %v30_v51  ;;  %v240_v60 = vld [vmem:[%s1640_s1 + $0x600] sm:$0xff]  ;;  %v650_v2 = vld [vmem:[%s1642_s3 + $0x78] sm:$0xff]  ;;  %v648_v5 = vld [vmem:[%s1642_s3 + $0x68] sm:$0xff] }
  0x59   :  { %v340_v62 = vpack.c.bf16 %v241_v61, %v240_v60  ;;  %v34_v63 = vld [vmem:[%s1639_s0 + $0x60] sm:$0xff]  ;;  %v658_v4 = vpack.c.bf16 %v650_v2, %v649_v1  ;;  %v645_v7 = vld [vmem:[%s1642_s3 + $0x50] sm:$0xff]  ;;  %v646_v8 = vld [vmem:[%s1642_s3 + $0x58] sm:$0xff] }
  0x5a   :  { %824 = vmatpush3.bf16.msra.mxu0 %v310_v30  ;;  %v47_v0 = vpack.c.bf16 %v34_v63, %v34_v63  ;;  %v647_v3 = vld [vmem:[%s1642_s3 + $0x60] sm:$0xff]  ;;  %v656_v9 = vpack.c.bf16 %v646_v8, %v645_v7  ;;  %v644_v11 = vld [vmem:[%s1642_s3 + $0x48] sm:$0xff]  ;;  %v641_v13 = vld [vmem:[%s1642_s3 + $0x30] sm:$0xff] }
  0x5b   :  { %846 = vmatpush3.bf16.msra.mxu1 %v326_v31  ;;  %825 = vmatprep.subr.bf16.mxu0 %v317_v32  ;;  %v657_v6 = vpack.c.bf16 %v648_v5, %v647_v3  ;;  %v643_v10 = vld [vmem:[%s1642_s3 + $0x40] sm:$0xff]  ;;  %v642_v14 = vld [vmem:[%s1642_s3 + $0x38] sm:$0xff]  ;;  %v640_v17 = vld [vmem:[%s1642_s3 + $0x28] sm:$0xff] }
  0x5c   :  { %847 = vmatprep.subr.bf16.mxu1 %v333_v36  ;;  %v655_v12 = vpack.c.bf16 %v644_v11, %v643_v10  ;;  %v654_v15 = vpack.c.bf16 %v642_v14, %v641_v13  ;;  %v639_v16 = vld [vmem:[%s1642_s3 + $0x20] sm:$0xff]  ;;  %v637_v19 = vld [vmem:[%s1642_s3 + $0x10] sm:$0xff]  ;;  %v638_v20 = vld [vmem:[%s1642_s3 + $0x18] sm:$0xff] }
  0x5d   :  { %v653_v18 = vpack.c.bf16 %v640_v17, %v639_v16  ;;  %v652_v21 = vpack.c.bf16 %v638_v20, %v637_v19  ;;  %v635_v22 = vld [vmem:[%s1642_s3] sm:$0xff]  ;;  %v636_v23 = vld [vmem:[%s1642_s3 + $0x8] sm:$0xff] }
  0x5e   :  { %826 = vmatpush3.bf16.msra.mxu0 %v309_v42  ;;  %v651_v24 = vpack.c.bf16 %v636_v23, %v635_v22  ;;  %v722_v42 = vld [vmem:[%s1641_s2] ss:$0 sm:$0xff] }
  0x5f   :  { %848 = vmatpush3.bf16.msra.mxu1 %v325_v43  ;;  %827 = vmatprep.subr.bf16.mxu0 %v316_v44  ;;  %v724_v5 = vld [vmem:[%s1643_s4] ss:$0 sm:$0xff] }
  0x60   :  { %849 = vmatprep.subr.bf16.mxu1 %v332_v47 }
  0x62   :  { %828 = vmatpush3.bf16.msra.mxu0 %v308_v50 }
  0x63   :  { %850 = vmatpush3.bf16.msra.mxu1 %v324_v52  ;;  %869 = vmatprep.subr.bf16.mxu0 %v922_v59 }
  0x64   :  { %877 = vmatprep.subr.bf16.mxu1 %v922_v59 }
  0x65   :  { %546 = vmatmul.mubr.bf16.vlgmr.msra.gmra.mxu0 %v43_v56 }
  0x66   :  { %586 = vmatmul.mubr.bf16.vlgmr.msra.gmra.mxu1 %v45_v57  ;;  %870 = vmatpush3.bf16.msra.mxu0 %v341_v58 }
  0x67   :  { %871 = vmatprep.subr.bf16.mxu0 %v922_v59  ;;  %873 = vmatprep.mubr.msk.bf16.mxu0 %vm923_vm0, %v922_v59 }
  0x68   :  { %893 = vmatprep.mubr.msk.bf16.mxu1 %vm923_vm0, %v922_v59  ;;  %878 = vmatpush3.bf16.msra.mxu1 %v658_v4 }
  0x69   :  { %879 = vmatprep.subr.bf16.mxu1 %v922_v59 }
  0x6a   :  { %872 = vmatpush3.bf16.msra.mxu0 %v340_v62 }
  0x6c   :  { %880 = vmatpush3.bf16.msra.mxu1 %v657_v6 }
  0x6d   :  { %874 = vmatmul.mubr.msk.bf16.vlgmr.msra.gmra.mxu0 %vm349_vm1, %v47_v0  ;;  %881 = vmatprep.subr.bf16.mxu1 %v922_v59 }
  0x70   :  { %882 = vmatpush3.bf16.msra.mxu1 %v656_v9 }
  0x71   :  { %883 = vmatprep.subr.bf16.mxu1 %v922_v59 }
  0x74   :  { %884 = vmatpush3.bf16.msra.mxu1 %v655_v12 }
  0x75   :  { %885 = vmatprep.subr.bf16.mxu1 %v922_v59 }
  0x78   :  { %886 = vmatpush3.bf16.msra.mxu1 %v654_v15 }
  0x79   :  { %887 = vmatprep.subr.bf16.mxu1 %v922_v59 }
  0x7c   :  { %888 = vmatpush3.bf16.msra.mxu1 %v653_v18 }
  0x7d   :  { %889 = vmatprep.subr.bf16.mxu1 %v922_v59 }
  0x80   :  { %890 = vmatpush3.bf16.msra.mxu1 %v652_v21 }
  0x81   :  { %891 = vmatprep.subr.bf16.mxu1 %v922_v59 }
  0x84   :  { %892 = vmatpush3.bf16.msra.mxu1 %v651_v24 }
  0xe5   :  { %v741_v25 = vpop.f32.mrf.mxu0 }
  0xe6   :  { %v763_v26 = vpop.f32.mrf.mxu1 }
  0xe7   :  { %v742_v27 = vpop.f32.mrf.mxu0 }
  0xe8   :  { %v764_v28 = vpop.f32.mrf.mxu1  ;;  %v743_v41 = vadd.f32 %v742_v27, %v741_v25 }
  0xe9   :  { %v744_v29 = vpop.f32.mrf.mxu0  ;;  %v765_v44 = vadd.f32 %v764_v28, %v763_v26 }
  0xea   :  { %v766_v30 = vpop.f32.mrf.mxu1  ;;  %v388_v43 = vadd.f32 %v743_v41, %v722_v42 }
  0xeb   :  { %v745_v31 = vpop.f32.mrf.mxu0 }
  0xec   :  { %v767_v32 = vpop.f32.mrf.mxu1  ;;  %v428_v46 = vadd.f32 %v765_v44, %v388_v43 }
 0x105   :  { %v785_v33 = vpop.f32.mrf.mxu0 }
 0x106   :  { %v807_v34 = vpop.f32.mrf.mxu1 }
 0x107   :  { %v786_v35 = vpop.f32.mrf.mxu0 }
 0x108   :  { %v808_v36 = vpop.f32.mrf.mxu1  ;;  %v787_v45 = vadd.f32 %v786_v35, %v785_v33 }
 0x109   :  { %v788_v37 = vpop.f32.mrf.mxu0  ;;  %v809_v48 = vadd.f32 %v808_v36, %v807_v34 }
 0x10a   :  { %v810_v38 = vpop.f32.mrf.mxu1  ;;  %v468_v47 = vadd.f32 %v787_v45, %v428_v46 }
 0x10b   :  { %v789_v39 = vpop.f32.mrf.mxu0 }
 0x10c   :  { %v811_v40 = vpop.f32.mrf.mxu1  ;;  %v508_v52 = vadd.f32 %v809_v48, %v468_v47 }
 0x125   :  { %v829_v49 = vpop.f32.mrf.mxu0 }
 0x126   :  { %v851_v50 = vpop.f32.mrf.mxu1 }
 0x127   :  { %v830_v51 = vpop.f32.mrf.mxu0 }
 0x128   :  { %v831_v53 = vadd.f32 %v830_v51, %v829_v49  ;;  %v852_v54 = vpop.f32.mrf.mxu1 }
 0x129   :  { %v832_v55 = vpop.f32.mrf.mxu0  ;;  %v853_v57 = vadd.f32 %v852_v54, %v851_v50 }
 0x12a   :  { %v548_v56 = vadd.f32 %v831_v53, %v508_v52  ;;  %v854_v58 = vpop.f32.mrf.mxu1 }
 0x12b   :  { %v833_v59 = vpop.f32.mrf.mxu0 }
 0x12c   :  { %v855_v60 = vpop.f32.mrf.mxu1  ;;  %v588_v61 = vadd.f32 %v853_v57, %v548_v56 }
 0x12d   :  { %v627_v62 = vpop.f32.mrf.mxu0 }
 0x12e   :  { %v628_v63 = vadd.f32 %v627_v62, %v588_v61 }
 0x12f   :  { %v875_v0 = vpop.f32.mrf.mxu0 }
 0x130   :  { %v633_v1 = vmax.f32 %v628_v63, 0.0 }
 0x131   :  { %v630_v2 = vpop.f32.mrf.mxu0 }
 0x132   :  { %v634_v3 = vpack.c.bf16 %v633_v1, %v633_v1 }
 0x133   :  { %v876_v4 = vpop.f32.mrf.mxu0 }
 0x134   :  { %894 = vmatmul.mubr.bf16.vlgmr.msra.gmra.mxu1 %v634_v3 }
 0x1f4   :  { %v700_v6 = vpop.f32.mrf.mxu1 }
 0x1f5   :  { %v701_v7 = vadd.f32 %v724_v5, %v700_v6 }
 0x1f6   :  { %v895_v8 = vpop.f32.mrf.mxu1 }
 0x1f7   :  { %707 = vst.msk [vmem:[#allocation2] sm:$0xff] %vm706_vm2, %v701_v7 }
 0x1f8   :  { %v703_v9 = vpop.f32.mrf.mxu1 }
 0x1f9   :  { %911 = shalt.err (!%p908_p4)
}
 0x1fa   :  { %717 = dma.vmem_to_hbm [thread:$0]  %s715_s17, 128, %s1644_s5, [#allocation3]   ;;  %v896_v10 = vpop.f32.mrf.mxu1 }
 0x1fb   :  { %920 = dma.done.wait [#allocation3], 128  }
 0x1fc   :  { %921 = vsyncadd [#allocation3], 4294967168 }
 0x1fd   :  { %721 = vsyncpa [#allocation3], 1 }

// kernel: simple_cnn_forward.4
= control target key start
LH: loop header
LB: loop body
LE: loop exit
PB: predicated region body
PF: predicated region fallthrough
CT: control target
= control target key end

     0   :  { %v2568_v0 = vmov 0   ;;  %vm190_vm0 = vcmask 130048   ;;  %vm2118_vm1 = vcmask 261120   ;;  %s4700_s1 = inlined_call_operand.vmem [shape: f32[144,32], index: 1, kind: input, shape index: {}]   ;;  %s4701_s0 = inlined_call_operand.vmem [shape: f32[4,392,144], index: 0, kind: input, shape index: {}]   ;;  %s4702_s2 = inlined_call_operand.vmem [shape: f32[1,32], index: 2, kind: input, shape index: {}]   ;;  %s4703_s3 = inlined_call_operand.vmem [shape: f32[392,32], index: 3, kind: output, shape index: {}]  }
   0x1   :  { %266 = vmatprep.subr.bf16.mxu0 %v2568_v0  ;;  %722 = vmatprep.subr.bf16.mxu1 %v2568_v0  ;;  %v29_v1 = vld [vmem:[%s4700_s1 + $0x70] sm:$0xff]  ;;  %v30_v2 = vld [vmem:[%s4700_s1 + $0x78] sm:$0xff]  ;;  %v27_v3 = vld [vmem:[%s4700_s1 + $0x60] sm:$0xff] }
   0x2   :  { %v2600_v4 = vpack.c.bf16 %v30_v2, %v29_v1  ;;  %v28_v5 = vld [vmem:[%s4700_s1 + $0x68] sm:$0xff]  ;;  %v25_v7 = vld [vmem:[%s4700_s1 + $0x50] sm:$0xff]  ;;  %v26_v8 = vld [vmem:[%s4700_s1 + $0x58] sm:$0xff] }
   0x3   :  { %v2607_v6 = vpack.c.bf16 %v28_v5, %v27_v3  ;;  %v43_v9 = vld [vmem:[%s4701_s0 + $0x8] sm:$0xff]  ;;  %v45_v10 = vld [vmem:[%s4701_s0 + $0x18] sm:$0xff]  ;;  %v2628_v12 = vpack.c.bf16 %v26_v8, %v25_v7  ;;  %v23_v15 = vld [vmem:[%s4700_s1 + $0x40] sm:$0xff] }
   0x4   :  { %267 = vmatpush1.bf16.msra.mxu0 %v2600_v4  ;;  %723 = vmatpush1.bf16.msra.mxu1 %v2600_v4  ;;  %v2198_v11 = vld [vmem:[%s4701_s0 + $0x318] sm:$0xff]  ;;  %v141_v13 = vpack.c.bf16 %v45_v10, %v43_v9  ;;  %v2200_v14 = vld [vmem:[%s4701_s0 + $0x328] sm:$0xff]  ;;  %v21_v19 = vld [vmem:[%s4700_s1 + $0x30] sm:$0xff] }
   0x5   :  { %268 = vmatprep.subr.bf16.mxu0 %v2568_v0  ;;  %724 = vmatprep.subr.bf16.mxu1 %v2568_v0  ;;  %v24_v16 = vld [vmem:[%s4700_s1 + $0x48] sm:$0xff]  ;;  %v598_v17 = vpack.c.bf16 %v2200_v14, %v2198_v11  ;;  %v22_v20 = vld [vmem:[%s4700_s1 + $0x38] sm:$0xff]  ;;  %v19_v22 = vld [vmem:[%s4700_s1 + $0x20] sm:$0xff] }
   0x6   :  { %2172 = vmatprep.mubr.msk.bf16.mxu0 %vm190_vm0, %v141_v13  ;;  %v2645_v18 = vpack.c.bf16 %v24_v16, %v23_v15  ;;  %v2657_v21 = vpack.c.bf16 %v22_v20, %v21_v19  ;;  %v20_v23 = vld [vmem:[%s4700_s1 + $0x28] sm:$0xff]  ;;  %v17_v25 = vld [vmem:[%s4700_s1 + $0x10] sm:$0xff]  ;;  %v18_v26 = vld [vmem:[%s4700_s1 + $0x18] sm:$0xff] }
   0x7   :  { %2295 = vmatprep.mubr.msk.bf16.mxu1 %vm190_vm0, %v598_v17  ;;  %v2669_v24 = vpack.c.bf16 %v20_v23, %v19_v22  ;;  %v2681_v27 = vpack.c.bf16 %v18_v26, %v17_v25  ;;  %v15_v28 = vld [vmem:[%s4700_s1] sm:$0xff]  ;;  %v16_v29 = vld [vmem:[%s4700_s1 + $0x8] sm:$0xff]  ;;  %v44_v35 = vld [vmem:[%s4701_s0 + $0x10] sm:$0xff] }
   0x8   :  { %269 = vmatpush1.bf16.msra.mxu0 %v2607_v6  ;;  %725 = vmatpush1.bf16.msra.mxu1 %v2607_v6  ;;  %v2693_v30 = vpack.c.bf16 %v16_v29, %v15_v28  ;;  %v31_v31 = vld [vmem:[%s4700_s1 + $0x80] sm:$0xff]  ;;  %v32_v32 = vld [vmem:[%s4700_s1 + $0x88] sm:$0xff]  ;;  %v2197_v36 = vld [vmem:[%s4701_s0 + $0x310] sm:$0xff] }
   0x9   :  { %270 = vmatprep.subr.bf16.mxu0 %v2568_v0  ;;  %726 = vmatprep.subr.bf16.mxu1 %v2568_v0  ;;  %v42_v33 = vld [vmem:[%s4701_s0] sm:$0xff]  ;;  %v2708_v34 = vpack.c.bf16 %v32_v32, %v31_v31  ;;  %v47_v38 = vld [vmem:[%s4701_s0 + $0x28] sm:$0xff]  ;;  %v49_v39 = vld [vmem:[%s4701_s0 + $0x38] sm:$0xff] }
   0xa   :  { %v2199_v37 = vld [vmem:[%s4701_s0 + $0x320] sm:$0xff]  ;;  %v2202_v40 = vld [vmem:[%s4701_s0 + $0x338] sm:$0xff]  ;;  %v2204_v41 = vld [vmem:[%s4701_s0 + $0x348] sm:$0xff]  ;;  %v140_v42 = vpack.c.bf16 %v44_v35, %v42_v33  ;;  %v143_v44 = vpack.c.bf16 %v49_v39, %v47_v38 }
   0xb   :  { %v597_v43 = vpack.c.bf16 %v2199_v37, %v2197_v36  ;;  %v600_v45 = vpack.c.bf16 %v2204_v41, %v2202_v40  ;;  %v46_v46 = vld [vmem:[%s4701_s0 + $0x20] sm:$0xff]  ;;  %v48_v47 = vld [vmem:[%s4701_s0 + $0x30] sm:$0xff]  ;;  %v51_v50 = vld [vmem:[%s4701_s0 + $0x48] sm:$0xff] }
   0xc   :  { %271 = vmatpush1.bf16.msra.mxu0 %v2628_v12  ;;  %727 = vmatpush1.bf16.msra.mxu1 %v2628_v12  ;;  %v2201_v48 = vld [vmem:[%s4701_s0 + $0x330] sm:$0xff]  ;;  %v2203_v49 = vld [vmem:[%s4701_s0 + $0x340] sm:$0xff]  ;;  %v53_v51 = vld [vmem:[%s4701_s0 + $0x58] sm:$0xff]  ;;  %v142_v54 = vpack.c.bf16 %v48_v47, %v46_v46 }
   0xd   :  { %272 = vmatprep.subr.bf16.mxu0 %v2568_v0  ;;  %728 = vmatprep.subr.bf16.mxu1 %v2568_v0  ;;  %v2206_v52 = vld [vmem:[%s4701_s0 + $0x358] sm:$0xff]  ;;  %v2208_v53 = vld [vmem:[%s4701_s0 + $0x368] sm:$0xff]  ;;  %v599_v55 = vpack.c.bf16 %v2203_v49, %v2201_v48  ;;  %v145_v56 = vpack.c.bf16 %v53_v51, %v51_v50  ;;  %v50_v58 = vld [vmem:[%s4701_s0 + $0x40] sm:$0xff] }
   0xe   :  { %v602_v57 = vpack.c.bf16 %v2208_v53, %v2206_v52  ;;  %v52_v59 = vld [vmem:[%s4701_s0 + $0x50] sm:$0xff]  ;;  %v2207_v61 = vld [vmem:[%s4701_s0 + $0x360] sm:$0xff]  ;;  %v55_v62 = vld [vmem:[%s4701_s0 + $0x68] sm:$0xff] }
   0xf   :  { %v2205_v60 = vld [vmem:[%s4701_s0 + $0x350] sm:$0xff]  ;;  %v57_v63 = vld [vmem:[%s4701_s0 + $0x78] sm:$0xff]  ;;  %v2212_v2 = vld [vmem:[%s4701_s0 + $0x388] sm:$0xff]  ;;  %v144_v3 = vpack.c.bf16 %v52_v59, %v50_v58 }
  0x10   :  { %273 = vmatpush1.bf16.msra.mxu0 %v2645_v18  ;;  %729 = vmatpush1.bf16.msra.mxu1 %v2645_v18  ;;  %v2210_v1 = vld [vmem:[%s4701_s0 + $0x378] sm:$0xff]  ;;  %v147_v5 = vpack.c.bf16 %v57_v63, %v55_v62  ;;  %v54_v7 = vld [vmem:[%s4701_s0 + $0x60] sm:$0xff]  ;;  %v56_v8 = vld [vmem:[%s4701_s0 + $0x70] sm:$0xff] }
  0x11   :  { %274 = vmatprep.subr.bf16.mxu0 %v2568_v0  ;;  %730 = vmatprep.subr.bf16.mxu1 %v2568_v0  ;;  %v2209_v9 = vld [vmem:[%s4701_s0 + $0x370] sm:$0xff]  ;;  %v2211_v10 = vld [vmem:[%s4701_s0 + $0x380] sm:$0xff]  ;;  %v59_v11 = vld [vmem:[%s4701_s0 + $0x88] sm:$0xff]  ;;  %v146_v15 = vpack.c.bf16 %v56_v8, %v54_v7 }
  0x12   :  { %v2214_v13 = vld [vmem:[%s4701_s0 + $0x398] sm:$0xff]  ;;  %v2216_v14 = vld [vmem:[%s4701_s0 + $0x3a8] sm:$0xff]  ;;  %v603_v16 = vpack.c.bf16 %v2211_v10, %v2209_v9  ;;  %v58_v19 = vld [vmem:[%s4701_s0 + $0x80] sm:$0xff] }
  0x13   :  { %v60_v20 = vld [vmem:[%s4701_s0 + $0x90] sm:$0xff]  ;;  %v2215_v22 = vld [vmem:[%s4701_s0 + $0x3a0] sm:$0xff]  ;;  %v63_v23 = vld [vmem:[%s4701_s0 + $0xa8] sm:$0xff] }
  0x14   :  { %275 = vmatpush1.bf16.msra.mxu0 %v2657_v21  ;;  %731 = vmatpush1.bf16.msra.mxu1 %v2657_v21  ;;  %v2218_v25 = vld [vmem:[%s4701_s0 + $0x3b8] sm:$0xff]  ;;  %v2220_v26 = vld [vmem:[%s4701_s0 + $0x3c8] sm:$0xff]  ;;  %v148_v28 = vpack.c.bf16 %v60_v20, %v58_v19  ;;  %v64_v33 = vld [vmem:[%s4701_s0 + $0xb0] sm:$0xff] }
  0x15   :  { %276 = vmatprep.subr.bf16.mxu0 %v2568_v0  ;;  %732 = vmatprep.subr.bf16.mxu1 %v2568_v0  ;;  %v608_v32 = vpack.c.bf16 %v2220_v26, %v2218_v25  ;;  %v67_v35 = vld [vmem:[%s4701_s0 + $0xc8] sm:$0xff]  ;;  %v69_v36 = vld [vmem:[%s4701_s0 + $0xd8] sm:$0xff] }
  0x16   :  { %v2222_v37 = vld [vmem:[%s4701_s0 + $0x3d8] sm:$0xff]  ;;  %v2224_v38 = vld [vmem:[%s4701_s0 + $0x3e8] sm:$0xff]  ;;  %v153_v41 = vpack.c.bf16 %v69_v36, %v67_v35 }
  0x17   :  { %v71_v46 = vld [vmem:[%s4701_s0 + $0xe8] sm:$0xff]  ;;  %v73_v47 = vld [vmem:[%s4701_s0 + $0xf8] sm:$0xff] }
  0x18   :  { %277 = vmatpush1.bf16.msra.mxu0 %v2669_v24  ;;  %733 = vmatpush1.bf16.msra.mxu1 %v2669_v24  ;;  %v2226_v48 = vld [vmem:[%s4701_s0 + $0x3f8] sm:$0xff]  ;;  %v2228_v49 = vld [vmem:[%s4701_s0 + $0x408] sm:$0xff]  ;;  %v155_v52 = vpack.c.bf16 %v73_v47, %v71_v46 }
  0x19   :  { %278 = vmatprep.subr.bf16.mxu0 %v2568_v0  ;;  %734 = vmatprep.subr.bf16.mxu1 %v2568_v0  ;;  %v612_v53 = vpack.c.bf16 %v2228_v49, %v2226_v48  ;;  %v75_v58 = vld [vmem:[%s4701_s0 + $0x108] sm:$0xff]  ;;  %v77_v59 = vld [vmem:[%s4701_s0 + $0x118] sm:$0xff] }
  0x1a   :  { %v79_v7 = vld [vmem:[%s4701_s0 + $0x128] sm:$0xff]  ;;  %v81_v8 = vld [vmem:[%s4701_s0 + $0x138] sm:$0xff] }
  0x1b   :  { %v2234_v9 = vld [vmem:[%s4701_s0 + $0x438] sm:$0xff]  ;;  %v2236_v10 = vld [vmem:[%s4701_s0 + $0x448] sm:$0xff] }
  0x1c   :  { %279 = vmatpush1.bf16.msra.mxu0 %v2681_v27  ;;  %735 = vmatpush1.bf16.msra.mxu1 %v2681_v27  ;;  %v83_v19 = vld [vmem:[%s4701_s0 + $0x148] sm:$0xff]  ;;  %v85_v20 = vld [vmem:[%s4701_s0 + $0x158] sm:$0xff] }
  0x1d   :  { %280 = vmatprep.subr.bf16.mxu0 %v2568_v0  ;;  %736 = vmatprep.subr.bf16.mxu1 %v2568_v0  ;;  %v161_v25 = vpack.c.bf16 %v85_v20, %v83_v19 }
  0x20   :  { %281 = vmatpush1.bf16.msra.mxu0 %v2693_v30  ;;  %737 = vmatpush1.bf16.msra.mxu1 %v2693_v30 }
  0x21   :  { %296 = vmatprep.subr.bf16.mxu0 %v2568_v0  ;;  %752 = vmatprep.subr.bf16.mxu1 %v2568_v0 }
  0x24   :  { %297 = vmatpush2.bf16.msra.mxu0 %v2708_v34  ;;  %753 = vmatpush2.bf16.msra.mxu1 %v2708_v34 }
  0x25   :  { %1227 = vmatprep.subr.bf16.mxu0 %v2568_v0  ;;  %1732 = vmatprep.subr.bf16.mxu1 %v2568_v0 }
  0x27   :  { %299 = vmatmul.mubr.bf16.vlgmr.msra.gmra.mxu0 %v140_v42  ;;  %755 = vmatmul.mubr.bf16.vlgmr.msra.gmra.mxu1 %v597_v43  ;;  %v610_v42 = vpack.c.bf16 %v2224_v38, %v2222_v37  ;;  %v66_v43 = vld [vmem:[%s4701_s0 + $0xc0] sm:$0xff] }
  0x28   :  { %1228 = vmatpush1.bf16.msra.mxu0 %v2600_v4  ;;  %1733 = vmatpush1.bf16.msra.mxu1 %v2600_v4  ;;  %v601_v4 = vpack.c.bf16 %v2207_v61, %v2205_v60  ;;  %v2230_v60 = vld [vmem:[%s4701_s0 + $0x418] sm:$0xff]  ;;  %v2232_v61 = vld [vmem:[%s4701_s0 + $0x428] sm:$0xff] }
  0x29   :  { %2173 = vmatprep.mubr.msk.bf16.mxu0 %vm190_vm0, %v143_v44  ;;  %2296 = vmatprep.mubr.msk.bf16.mxu1 %vm190_vm0, %v600_v45  ;;  %v68_v44 = vld [vmem:[%s4701_s0 + $0xd0] sm:$0xff]  ;;  %v2223_v45 = vld [vmem:[%s4701_s0 + $0x3e0] sm:$0xff] }
  0x2a   :  { %1229 = vmatprep.subr.bf16.mxu0 %v2568_v0  ;;  %1734 = vmatprep.subr.bf16.mxu1 %v2568_v0  ;;  %v152_v50 = vpack.c.bf16 %v68_v44, %v66_v43  ;;  %v91_v43 = vld [vmem:[%s4701_s0 + $0x188] sm:$0xff]  ;;  %v93_v44 = vld [vmem:[%s4701_s0 + $0x198] sm:$0xff] }
  0x2b   :  { %v165_v48 = vpack.c.bf16 %v93_v44, %v91_v43 }
  0x2c   :  { %1230 = vmatpush1.bf16.msra.mxu0 %v2607_v6  ;;  %1735 = vmatpush1.bf16.msra.mxu1 %v2607_v6  ;;  %v604_v6 = vpack.c.bf16 %v2212_v2, %v2210_v1  ;;  %v157_v1 = vpack.c.bf16 %v77_v59, %v75_v58  ;;  %v614_v2 = vpack.c.bf16 %v2232_v61, %v2230_v60 }
  0x2d   :  { %1231 = vmatprep.subr.bf16.mxu0 %v2568_v0  ;;  %1736 = vmatprep.subr.bf16.mxu1 %v2568_v0 }
  0x2f   :  { %307 = vmatmul.mubr.bf16.gmra.mxu0 %v142_v54  ;;  %763 = vmatmul.mubr.bf16.gmra.mxu1 %v599_v55  ;;  %v70_v54 = vld [vmem:[%s4701_s0 + $0xe0] sm:$0xff]  ;;  %v72_v55 = vld [vmem:[%s4701_s0 + $0xf0] sm:$0xff] }
  0x30   :  { %2174 = vmatprep.mubr.msk.bf16.mxu0 %vm190_vm0, %v145_v56  ;;  %2297 = vmatprep.mubr.msk.bf16.mxu1 %vm190_vm0, %v602_v57  ;;  %v2225_v56 = vld [vmem:[%s4701_s0 + $0x3f0] sm:$0xff]  ;;  %v2227_v57 = vld [vmem:[%s4701_s0 + $0x400] sm:$0xff]  ;;  %v154_v62 = vpack.c.bf16 %v72_v55, %v70_v54  ;;  %v95_v54 = vld [vmem:[%s4701_s0 + $0x1a8] sm:$0xff] }
  0x31   :  { %1232 = vmatpush1.bf16.msra.mxu0 %v2628_v12  ;;  %1737 = vmatpush1.bf16.msra.mxu1 %v2628_v12  ;;  %v61_v12 = vld [vmem:[%s4701_s0 + $0x98] sm:$0xff]  ;;  %v611_v63 = vpack.c.bf16 %v2227_v57, %v2225_v56  ;;  %v2252_v57 = vld [vmem:[%s4701_s0 + $0x4c8] sm:$0xff] }
  0x32   :  { %1233 = vmatprep.subr.bf16.mxu0 %v2568_v0  ;;  %1738 = vmatprep.subr.bf16.mxu1 %v2568_v0  ;;  %v149_v17 = vpack.c.bf16 %v61_v12, %v59_v11  ;;  %v97_v55 = vld [vmem:[%s4701_s0 + $0x1b8] sm:$0xff] }
  0x33   :  { %v2250_v56 = vld [vmem:[%s4701_s0 + $0x4b8] sm:$0xff]  ;;  %v167_v60 = vpack.c.bf16 %v97_v55, %v95_v54 }
  0x34   :  { %v624_v61 = vpack.c.bf16 %v2252_v57, %v2250_v56 }
  0x35   :  { %1234 = vmatpush1.bf16.msra.mxu0 %v2645_v18  ;;  %1739 = vmatpush1.bf16.msra.mxu1 %v2645_v18  ;;  %v606_v18 = vpack.c.bf16 %v2216_v14, %v2214_v13  ;;  %v159_v13 = vpack.c.bf16 %v81_v8, %v79_v7  ;;  %v616_v14 = vpack.c.bf16 %v2236_v10, %v2234_v9 }
  0x36   :  { %1235 = vmatprep.subr.bf16.mxu0 %v2568_v0  ;;  %1740 = vmatprep.subr.bf16.mxu1 %v2568_v0 }
  0x37   :  { %315 = vmatmul.mubr.bf16.gmra.mxu0 %v144_v3  ;;  %771 = vmatmul.mubr.bf16.gmra.mxu1 %v601_v4  ;;  %v74_v3 = vld [vmem:[%s4701_s0 + $0x100] sm:$0xff]  ;;  %v76_v4 = vld [vmem:[%s4701_s0 + $0x110] sm:$0xff] }
  0x38   :  { %2175 = vmatprep.mubr.msk.bf16.mxu0 %vm190_vm0, %v147_v5  ;;  %2298 = vmatprep.mubr.msk.bf16.mxu1 %vm190_vm0, %v604_v6  ;;  %v2229_v5 = vld [vmem:[%s4701_s0 + $0x410] sm:$0xff]  ;;  %v2231_v6 = vld [vmem:[%s4701_s0 + $0x420] sm:$0xff]  ;;  %v156_v11 = vpack.c.bf16 %v76_v4, %v74_v3  ;;  %v99_v3 = vld [vmem:[%s4701_s0 + $0x1c8] sm:$0xff] }
  0x39   :  { %1236 = vmatpush1.bf16.msra.mxu0 %v2657_v21  ;;  %1741 = vmatpush1.bf16.msra.mxu1 %v2657_v21  ;;  %v2213_v21 = vld [vmem:[%s4701_s0 + $0x390] sm:$0xff]  ;;  %v613_v12 = vpack.c.bf16 %v2231_v6, %v2229_v5  ;;  %v101_v4 = vld [vmem:[%s4701_s0 + $0x1d8] sm:$0xff]  ;;  %v2256_v6 = vld [vmem:[%s4701_s0 + $0x4e8] sm:$0xff] }
  0x3a   :  { %1237 = vmatprep.subr.bf16.mxu0 %v2568_v0  ;;  %1742 = vmatprep.subr.bf16.mxu1 %v2568_v0  ;;  %v605_v29 = vpack.c.bf16 %v2215_v22, %v2213_v21  ;;  %v2238_v21 = vld [vmem:[%s4701_s0 + $0x458] sm:$0xff]  ;;  %v2240_v22 = vld [vmem:[%s4701_s0 + $0x468] sm:$0xff]  ;;  %v169_v9 = vpack.c.bf16 %v101_v4, %v99_v3 }
  0x3b   :  { %v618_v26 = vpack.c.bf16 %v2240_v22, %v2238_v21  ;;  %v2254_v5 = vld [vmem:[%s4701_s0 + $0x4d8] sm:$0xff] }
  0x3c   :  { %v626_v10 = vpack.c.bf16 %v2256_v6, %v2254_v5 }
  0x3d   :  { %1238 = vmatpush1.bf16.msra.mxu0 %v2669_v24  ;;  %1743 = vmatpush1.bf16.msra.mxu1 %v2669_v24  ;;  %v65_v24 = vld [vmem:[%s4701_s0 + $0xb8] sm:$0xff] }
  0x3e   :  { %1239 = vmatprep.subr.bf16.mxu0 %v2568_v0  ;;  %1744 = vmatprep.subr.bf16.mxu1 %v2568_v0  ;;  %v151_v31 = vpack.c.bf16 %v65_v24, %v63_v23 }
  0x3f   :  { %323 = vmatmul.mubr.bf16.gmra.mxu0 %v146_v15  ;;  %779 = vmatmul.mubr.bf16.gmra.mxu1 %v603_v16  ;;  %v78_v15 = vld [vmem:[%s4701_s0 + $0x120] sm:$0xff]  ;;  %v80_v16 = vld [vmem:[%s4701_s0 + $0x130] sm:$0xff] }
  0x40   :  { %2176 = vmatprep.mubr.msk.bf16.mxu0 %vm190_vm0, %v149_v17  ;;  %2299 = vmatprep.mubr.msk.bf16.mxu1 %vm190_vm0, %v606_v18  ;;  %v2233_v17 = vld [vmem:[%s4701_s0 + $0x430] sm:$0xff]  ;;  %v2235_v18 = vld [vmem:[%s4701_s0 + $0x440] sm:$0xff]  ;;  %v158_v23 = vpack.c.bf16 %v80_v16, %v78_v15  ;;  %v103_v15 = vld [vmem:[%s4701_s0 + $0x1e8] sm:$0xff] }
  0x41   :  { %1240 = vmatpush1.bf16.msra.mxu0 %v2681_v27  ;;  %1745 = vmatpush1.bf16.msra.mxu1 %v2681_v27  ;;  %v62_v27 = vld [vmem:[%s4701_s0 + $0xa0] sm:$0xff]  ;;  %v615_v24 = vpack.c.bf16 %v2235_v18, %v2233_v17  ;;  %v105_v16 = vld [vmem:[%s4701_s0 + $0x1f8] sm:$0xff]  ;;  %v2260_v18 = vld [vmem:[%s4701_s0 + $0x508] sm:$0xff] }
  0x42   :  { %1241 = vmatprep.subr.bf16.mxu0 %v2568_v0  ;;  %1746 = vmatprep.subr.bf16.mxu1 %v2568_v0  ;;  %v150_v39 = vpack.c.bf16 %v64_v33, %v62_v27  ;;  %v87_v27 = vld [vmem:[%s4701_s0 + $0x168] sm:$0xff]  ;;  %v89_v33 = vld [vmem:[%s4701_s0 + $0x178] sm:$0xff]  ;;  %v171_v21 = vpack.c.bf16 %v105_v16, %v103_v15 }
  0x43   :  { %v163_v37 = vpack.c.bf16 %v89_v33, %v87_v27  ;;  %v2258_v17 = vld [vmem:[%s4701_s0 + $0x4f8] sm:$0xff] }
  0x44   :  { %v628_v22 = vpack.c.bf16 %v2260_v18, %v2258_v17 }
  0x45   :  { %1242 = vmatpush1.bf16.msra.mxu0 %v2693_v30  ;;  %1747 = vmatpush1.bf16.msra.mxu1 %v2693_v30  ;;  %v2217_v30 = vld [vmem:[%s4701_s0 + $0x3b0] sm:$0xff] }
  0x46   :  { %1257 = vmatprep.subr.bf16.mxu0 %v2568_v0  ;;  %1762 = vmatprep.subr.bf16.mxu1 %v2568_v0  ;;  %v2219_v0 = vld [vmem:[%s4701_s0 + $0x3c0] sm:$0xff] }
  0x47   :  { %331 = vmatmul.mubr.bf16.gmra.mxu0 %v148_v28  ;;  %787 = vmatmul.mubr.bf16.gmra.mxu1 %v605_v29  ;;  %v607_v40 = vpack.c.bf16 %v2219_v0, %v2217_v30  ;;  %v82_v28 = vld [vmem:[%s4701_s0 + $0x140] sm:$0xff]  ;;  %v84_v29 = vld [vmem:[%s4701_s0 + $0x150] sm:$0xff]  ;;  %v2242_v30 = vld [vmem:[%s4701_s0 + $0x478] sm:$0xff] }
  0x48   :  { %2177 = vmatprep.mubr.msk.bf16.mxu0 %vm190_vm0, %v151_v31  ;;  %2300 = vmatprep.mubr.msk.bf16.mxu1 %vm190_vm0, %v608_v32  ;;  %v2237_v31 = vld [vmem:[%s4701_s0 + $0x450] sm:$0xff]  ;;  %v2239_v32 = vld [vmem:[%s4701_s0 + $0x460] sm:$0xff]  ;;  %v2244_v0 = vld [vmem:[%s4701_s0 + $0x488] sm:$0xff]  ;;  %v160_v35 = vpack.c.bf16 %v84_v29, %v82_v28 }
  0x49   :  { %1258 = vmatpush2.bf16.msra.mxu0 %v2708_v34  ;;  %1763 = vmatpush2.bf16.msra.mxu1 %v2708_v34  ;;  %v2221_v34 = vld [vmem:[%s4701_s0 + $0x3d0] sm:$0xff]  ;;  %v617_v36 = vpack.c.bf16 %v2239_v32, %v2237_v31  ;;  %v620_v38 = vpack.c.bf16 %v2244_v0, %v2242_v30  ;;  %v107_v28 = vld [vmem:[%s4701_s0 + $0x208] sm:$0xff]  ;;  %v109_v29 = vld [vmem:[%s4701_s0 + $0x218] sm:$0xff] }
  0x4a   :  { %v609_v51 = vpack.c.bf16 %v2223_v45, %v2221_v34  ;;  %v2246_v34 = vld [vmem:[%s4701_s0 + $0x498] sm:$0xff]  ;;  %v2248_v45 = vld [vmem:[%s4701_s0 + $0x4a8] sm:$0xff]  ;;  %v173_v30 = vpack.c.bf16 %v109_v29, %v107_v28 }
  0x4b   :  { %v622_v49 = vpack.c.bf16 %v2248_v45, %v2246_v34  ;;  %v2262_v31 = vld [vmem:[%s4701_s0 + $0x518] sm:$0xff]  ;;  %v2264_v32 = vld [vmem:[%s4701_s0 + $0x528] sm:$0xff] }
  0x4c   :  { %v630_v0 = vpack.c.bf16 %v2264_v32, %v2262_v31 }
  0x4f   :  { %339 = vmatmul.mubr.bf16.gmra.mxu0 %v150_v39  ;;  %795 = vmatmul.mubr.bf16.gmra.mxu1 %v607_v40  ;;  %v86_v39 = vld [vmem:[%s4701_s0 + $0x160] sm:$0xff]  ;;  %v88_v40 = vld [vmem:[%s4701_s0 + $0x170] sm:$0xff] }
  0x50   :  { %2178 = vmatprep.mubr.msk.bf16.mxu0 %vm190_vm0, %v153_v41  ;;  %2301 = vmatprep.mubr.msk.bf16.mxu1 %vm190_vm0, %v610_v42  ;;  %v2241_v41 = vld [vmem:[%s4701_s0 + $0x470] sm:$0xff]  ;;  %v2243_v42 = vld [vmem:[%s4701_s0 + $0x480] sm:$0xff]  ;;  %v162_v46 = vpack.c.bf16 %v88_v40, %v86_v39  ;;  %v111_v39 = vld [vmem:[%s4701_s0 + $0x228] sm:$0xff] }
  0x51   :  { %v619_v47 = vpack.c.bf16 %v2243_v42, %v2241_v41  ;;  %v113_v40 = vld [vmem:[%s4701_s0 + $0x238] sm:$0xff]  ;;  %v2268_v42 = vld [vmem:[%s4701_s0 + $0x548] sm:$0xff] }
  0x52   :  { %v2266_v41 = vld [vmem:[%s4701_s0 + $0x538] sm:$0xff]  ;;  %v175_v34 = vpack.c.bf16 %v113_v40, %v111_v39 }
  0x53   :  { %v632_v45 = vpack.c.bf16 %v2268_v42, %v2266_v41 }
  0x57   :  { %347 = vmatmul.mubr.bf16.gmra.mxu0 %v152_v50  ;;  %803 = vmatmul.mubr.bf16.gmra.mxu1 %v609_v51  ;;  %v90_v50 = vld [vmem:[%s4701_s0 + $0x180] sm:$0xff]  ;;  %v92_v51 = vld [vmem:[%s4701_s0 + $0x190] sm:$0xff] }
  0x58   :  { %2179 = vmatprep.mubr.msk.bf16.mxu0 %vm190_vm0, %v155_v52  ;;  %2302 = vmatprep.mubr.msk.bf16.mxu1 %vm190_vm0, %v612_v53  ;;  %v2245_v52 = vld [vmem:[%s4701_s0 + $0x490] sm:$0xff]  ;;  %v2247_v53 = vld [vmem:[%s4701_s0 + $0x4a0] sm:$0xff]  ;;  %v164_v58 = vpack.c.bf16 %v92_v51, %v90_v50  ;;  %v115_v50 = vld [vmem:[%s4701_s0 + $0x248] sm:$0xff] }
  0x59   :  { %v621_v59 = vpack.c.bf16 %v2247_v53, %v2245_v52  ;;  %v117_v51 = vld [vmem:[%s4701_s0 + $0x258] sm:$0xff]  ;;  %v2272_v53 = vld [vmem:[%s4701_s0 + $0x568] sm:$0xff] }
  0x5a   :  { %v2270_v52 = vld [vmem:[%s4701_s0 + $0x558] sm:$0xff]  ;;  %v177_v56 = vpack.c.bf16 %v117_v51, %v115_v50 }
  0x5b   :  { %v634_v57 = vpack.c.bf16 %v2272_v53, %v2270_v52 }
  0x5f   :  { %355 = vmatmul.mubr.bf16.gmra.mxu0 %v154_v62  ;;  %811 = vmatmul.mubr.bf16.gmra.mxu1 %v611_v63  ;;  %v94_v62 = vld [vmem:[%s4701_s0 + $0x1a0] sm:$0xff]  ;;  %v96_v63 = vld [vmem:[%s4701_s0 + $0x1b0] sm:$0xff] }
  0x60   :  { %2180 = vmatprep.mubr.msk.bf16.mxu0 %vm190_vm0, %v157_v1  ;;  %2303 = vmatprep.mubr.msk.bf16.mxu1 %vm190_vm0, %v614_v2  ;;  %v2249_v1 = vld [vmem:[%s4701_s0 + $0x4b0] sm:$0xff]  ;;  %v2251_v2 = vld [vmem:[%s4701_s0 + $0x4c0] sm:$0xff]  ;;  %v166_v7 = vpack.c.bf16 %v96_v63, %v94_v62  ;;  %v119_v62 = vld [vmem:[%s4701_s0 + $0x268] sm:$0xff] }
  0x61   :  { %v623_v8 = vpack.c.bf16 %v2251_v2, %v2249_v1  ;;  %v121_v63 = vld [vmem:[%s4701_s0 + $0x278] sm:$0xff]  ;;  %v2276_v2 = vld [vmem:[%s4701_s0 + $0x588] sm:$0xff] }
  0x62   :  { %v2274_v1 = vld [vmem:[%s4701_s0 + $0x578] sm:$0xff]  ;;  %v179_v5 = vpack.c.bf16 %v121_v63, %v119_v62 }
  0x63   :  { %v636_v6 = vpack.c.bf16 %v2276_v2, %v2274_v1  ;;  %v138_v1 = vld [vmem:[%s4701_s0 + $0x300] sm:$0xff]  ;;  %v2293_v2 = vld [vmem:[%s4701_s0 + $0x610] sm:$0xff] }
  0x67   :  { %363 = vmatmul.mubr.bf16.gmra.mxu0 %v156_v11  ;;  %819 = vmatmul.mubr.bf16.gmra.mxu1 %v613_v12  ;;  %v98_v11 = vld [vmem:[%s4701_s0 + $0x1c0] sm:$0xff]  ;;  %v100_v12 = vld [vmem:[%s4701_s0 + $0x1d0] sm:$0xff] }
  0x68   :  { %2181 = vmatprep.mubr.msk.bf16.mxu0 %vm190_vm0, %v159_v13  ;;  %2304 = vmatprep.mubr.msk.bf16.mxu1 %vm190_vm0, %v616_v14  ;;  %v2253_v13 = vld [vmem:[%s4701_s0 + $0x4d0] sm:$0xff]  ;;  %v2255_v14 = vld [vmem:[%s4701_s0 + $0x4e0] sm:$0xff]  ;;  %v168_v19 = vpack.c.bf16 %v100_v12, %v98_v11  ;;  %v123_v11 = vld [vmem:[%s4701_s0 + $0x288] sm:$0xff] }
  0x69   :  { %v625_v20 = vpack.c.bf16 %v2255_v14, %v2253_v13  ;;  %v125_v12 = vld [vmem:[%s4701_s0 + $0x298] sm:$0xff]  ;;  %v2280_v14 = vld [vmem:[%s4701_s0 + $0x5a8] sm:$0xff] }
  0x6a   :  { %v2278_v13 = vld [vmem:[%s4701_s0 + $0x598] sm:$0xff]  ;;  %v181_v17 = vpack.c.bf16 %v125_v12, %v123_v11 }
  0x6b   :  { %v638_v18 = vpack.c.bf16 %v2280_v14, %v2278_v13  ;;  %v2320_v13 = vld [vmem:[%s4701_s0 + $0x620] sm:$0xff]  ;;  %v2322_v14 = vld [vmem:[%s4701_s0 + $0x630] sm:$0xff] }
  0x6f   :  { %371 = vmatmul.mubr.bf16.gmra.mxu0 %v158_v23  ;;  %827 = vmatmul.mubr.bf16.gmra.mxu1 %v615_v24  ;;  %v102_v23 = vld [vmem:[%s4701_s0 + $0x1e0] sm:$0xff]  ;;  %v104_v24 = vld [vmem:[%s4701_s0 + $0x1f0] sm:$0xff] }
  0x70   :  { %2182 = vmatprep.mubr.msk.bf16.mxu0 %vm190_vm0, %v161_v25  ;;  %2305 = vmatprep.mubr.msk.bf16.mxu1 %vm190_vm0, %v618_v26  ;;  %v2257_v25 = vld [vmem:[%s4701_s0 + $0x4f0] sm:$0xff]  ;;  %v2259_v26 = vld [vmem:[%s4701_s0 + $0x500] sm:$0xff]  ;;  %v170_v27 = vpack.c.bf16 %v104_v24, %v102_v23  ;;  %v127_v23 = vld [vmem:[%s4701_s0 + $0x2a8] sm:$0xff] }
  0x71   :  { %v627_v33 = vpack.c.bf16 %v2259_v26, %v2257_v25  ;;  %v129_v24 = vld [vmem:[%s4701_s0 + $0x2b8] sm:$0xff]  ;;  %v2284_v26 = vld [vmem:[%s4701_s0 + $0x5c8] sm:$0xff] }
  0x72   :  { %v2282_v25 = vld [vmem:[%s4701_s0 + $0x5b8] sm:$0xff]  ;;  %v183_v31 = vpack.c.bf16 %v129_v24, %v127_v23  ;;  %v2450_v23 = vld [vmem:[%s4701_s0 + $0x968] sm:$0xff] }
  0x73   :  { %v640_v32 = vpack.c.bf16 %v2284_v26, %v2282_v25  ;;  %v1102_v26 = vpack.c.bf16 %v2322_v14, %v2320_v13 }
  0x77   :  { %379 = vmatmul.mubr.bf16.gmra.mxu0 %v160_v35  ;;  %835 = vmatmul.mubr.bf16.gmra.mxu1 %v617_v36  ;;  %v106_v35 = vld [vmem:[%s4701_s0 + $0x200] sm:$0xff]  ;;  %v108_v36 = vld [vmem:[%s4701_s0 + $0x210] sm:$0xff] }
  0x78   :  { %2183 = vmatprep.mubr.msk.bf16.mxu0 %vm190_vm0, %v163_v37  ;;  %2306 = vmatprep.mubr.msk.bf16.mxu1 %vm190_vm0, %v620_v38  ;;  %v2261_v37 = vld [vmem:[%s4701_s0 + $0x510] sm:$0xff]  ;;  %v2263_v38 = vld [vmem:[%s4701_s0 + $0x520] sm:$0xff]  ;;  %v172_v43 = vpack.c.bf16 %v108_v36, %v106_v35  ;;  %v131_v35 = vld [vmem:[%s4701_s0 + $0x2c8] sm:$0xff] }
  0x79   :  { %v629_v44 = vpack.c.bf16 %v2263_v38, %v2261_v37  ;;  %v133_v36 = vld [vmem:[%s4701_s0 + $0x2d8] sm:$0xff]  ;;  %v2288_v38 = vld [vmem:[%s4701_s0 + $0x5e8] sm:$0xff] }
  0x7a   :  { %v2286_v37 = vld [vmem:[%s4701_s0 + $0x5d8] sm:$0xff]  ;;  %v185_v41 = vpack.c.bf16 %v133_v36, %v131_v35  ;;  %v2324_v35 = vld [vmem:[%s4701_s0 + $0x640] sm:$0xff]  ;;  %v2326_v36 = vld [vmem:[%s4701_s0 + $0x650] sm:$0xff] }
  0x7b   :  { %v642_v42 = vpack.c.bf16 %v2288_v38, %v2286_v37  ;;  %v2447_v38 = vld [vmem:[%s4701_s0 + $0x950] sm:$0xff]  ;;  %v2364_v37 = vld [vmem:[%s4701_s0 + $0x780] sm:$0xff] }
  0x7f   :  { %387 = vmatmul.mubr.bf16.gmra.mxu0 %v162_v46  ;;  %843 = vmatmul.mubr.bf16.gmra.mxu1 %v619_v47  ;;  %v110_v46 = vld [vmem:[%s4701_s0 + $0x220] sm:$0xff]  ;;  %v112_v47 = vld [vmem:[%s4701_s0 + $0x230] sm:$0xff] }
  0x80   :  { %2184 = vmatprep.mubr.msk.bf16.mxu0 %vm190_vm0, %v165_v48  ;;  %2307 = vmatprep.mubr.msk.bf16.mxu1 %vm190_vm0, %v622_v49  ;;  %v2265_v48 = vld [vmem:[%s4701_s0 + $0x530] sm:$0xff]  ;;  %v2267_v49 = vld [vmem:[%s4701_s0 + $0x540] sm:$0xff]  ;;  %v174_v54 = vpack.c.bf16 %v112_v47, %v110_v46  ;;  %v135_v46 = vld [vmem:[%s4701_s0 + $0x2e8] sm:$0xff] }
  0x81   :  { %v631_v55 = vpack.c.bf16 %v2267_v49, %v2265_v48  ;;  %v137_v47 = vld [vmem:[%s4701_s0 + $0x2f8] sm:$0xff]  ;;  %v2292_v49 = vld [vmem:[%s4701_s0 + $0x608] sm:$0xff] }
  0x82   :  { %v2290_v48 = vld [vmem:[%s4701_s0 + $0x5f8] sm:$0xff]  ;;  %v187_v52 = vpack.c.bf16 %v137_v47, %v135_v46  ;;  %v1104_v47 = vpack.c.bf16 %v2326_v36, %v2324_v35 }
  0x83   :  { %v644_v53 = vpack.c.bf16 %v2292_v49, %v2290_v48 }
  0x87   :  { %395 = vmatmul.mubr.bf16.gmra.mxu0 %v164_v58  ;;  %851 = vmatmul.mubr.bf16.gmra.mxu1 %v621_v59  ;;  %v114_v58 = vld [vmem:[%s4701_s0 + $0x240] sm:$0xff]  ;;  %v116_v59 = vld [vmem:[%s4701_s0 + $0x250] sm:$0xff] }
  0x88   :  { %2185 = vmatprep.mubr.msk.bf16.mxu0 %vm190_vm0, %v167_v60  ;;  %2308 = vmatprep.mubr.msk.bf16.mxu1 %vm190_vm0, %v624_v61  ;;  %v2269_v60 = vld [vmem:[%s4701_s0 + $0x550] sm:$0xff]  ;;  %v2271_v61 = vld [vmem:[%s4701_s0 + $0x560] sm:$0xff]  ;;  %v176_v3 = vpack.c.bf16 %v116_v59, %v114_v58  ;;  %v139_v58 = vld [vmem:[%s4701_s0 + $0x308] sm:$0xff] }
  0x89   :  { %v633_v4 = vpack.c.bf16 %v2271_v61, %v2269_v60  ;;  %v2294_v59 = vld [vmem:[%s4701_s0 + $0x618] sm:$0xff]  ;;  %v189_v62 = vpack.c.bf16 %v139_v58, %v139_v58 }
  0x8a   :  { %v646_v63 = vpack.c.bf16 %v2294_v59, %v2294_v59  ;;  %v2451_v59 = vld [vmem:[%s4701_s0 + $0x970] sm:$0xff] }
  0x8f   :  { %403 = vmatmul.mubr.bf16.gmra.mxu0 %v166_v7  ;;  %859 = vmatmul.mubr.bf16.gmra.mxu1 %v623_v8  ;;  %v118_v7 = vld [vmem:[%s4701_s0 + $0x260] sm:$0xff]  ;;  %v120_v8 = vld [vmem:[%s4701_s0 + $0x270] sm:$0xff] }
  0x90   :  { %2186 = vmatprep.mubr.msk.bf16.mxu0 %vm190_vm0, %v169_v9  ;;  %2309 = vmatprep.mubr.msk.bf16.mxu1 %vm190_vm0, %v626_v10  ;;  %v2273_v9 = vld [vmem:[%s4701_s0 + $0x570] sm:$0xff]  ;;  %v2275_v10 = vld [vmem:[%s4701_s0 + $0x580] sm:$0xff]  ;;  %v178_v15 = vpack.c.bf16 %v120_v8, %v118_v7  ;;  %v188_v7 = vpack.c.bf16 %v138_v1, %v138_v1  ;;  %v645_v8 = vpack.c.bf16 %v2293_v2, %v2293_v2  ;;  %v2335_v1 = vld [vmem:[%s4701_s0 + $0x698] sm:$0xff] }
  0x91   :  { %v635_v16 = vpack.c.bf16 %v2275_v10, %v2273_v9  ;;  %v2456_v2 = vld [vmem:[%s4701_s0 + $0x998] sm:$0xff] }
  0x97   :  { %411 = vmatmul.mubr.bf16.gmra.mxu0 %v168_v19  ;;  %867 = vmatmul.mubr.bf16.gmra.mxu1 %v625_v20  ;;  %v122_v19 = vld [vmem:[%s4701_s0 + $0x280] sm:$0xff]  ;;  %v124_v20 = vld [vmem:[%s4701_s0 + $0x290] sm:$0xff] }
  0x98   :  { %2187 = vmatprep.mubr.msk.bf16.mxu0 %vm190_vm0, %v171_v21  ;;  %2310 = vmatprep.mubr.msk.bf16.mxu1 %vm190_vm0, %v628_v22  ;;  %v2277_v21 = vld [vmem:[%s4701_s0 + $0x590] sm:$0xff]  ;;  %v2279_v22 = vld [vmem:[%s4701_s0 + $0x5a0] sm:$0xff]  ;;  %v180_v28 = vpack.c.bf16 %v124_v20, %v122_v19 }
  0x99   :  { %v637_v29 = vpack.c.bf16 %v2279_v22, %v2277_v21  ;;  %v2327_v21 = vld [vmem:[%s4701_s0 + $0x658] sm:$0xff] }
  0x9a   :  { %v2448_v22 = vld [vmem:[%s4701_s0 + $0x958] sm:$0xff] }
  0x9f   :  { %419 = vmatmul.mubr.bf16.gmra.mxu0 %v170_v27  ;;  %875 = vmatmul.mubr.bf16.gmra.mxu1 %v627_v33  ;;  %v126_v27 = vld [vmem:[%s4701_s0 + $0x2a0] sm:$0xff]  ;;  %v128_v33 = vld [vmem:[%s4701_s0 + $0x2b0] sm:$0xff] }
  0xa0   :  { %2188 = vmatprep.mubr.msk.bf16.mxu0 %vm190_vm0, %v173_v30  ;;  %2311 = vmatprep.mubr.msk.bf16.mxu1 %vm190_vm0, %v630_v0  ;;  %v2281_v30 = vld [vmem:[%s4701_s0 + $0x5b0] sm:$0xff]  ;;  %v2283_v0 = vld [vmem:[%s4701_s0 + $0x5c0] sm:$0xff]  ;;  %v182_v39 = vpack.c.bf16 %v128_v33, %v126_v27 }
  0xa1   :  { %v639_v40 = vpack.c.bf16 %v2283_v0, %v2281_v30 }
  0xa7   :  { %427 = vmatmul.mubr.bf16.gmra.mxu0 %v172_v43  ;;  %883 = vmatmul.mubr.bf16.gmra.mxu1 %v629_v44  ;;  %v130_v43 = vld [vmem:[%s4701_s0 + $0x2c0] sm:$0xff]  ;;  %v132_v44 = vld [vmem:[%s4701_s0 + $0x2d0] sm:$0xff] }
  0xa8   :  { %2189 = vmatprep.mubr.msk.bf16.mxu0 %vm190_vm0, %v175_v34  ;;  %2312 = vmatprep.mubr.msk.bf16.mxu1 %vm190_vm0, %v632_v45  ;;  %v2285_v34 = vld [vmem:[%s4701_s0 + $0x5d0] sm:$0xff]  ;;  %v2287_v45 = vld [vmem:[%s4701_s0 + $0x5e0] sm:$0xff]  ;;  %v184_v50 = vpack.c.bf16 %v132_v44, %v130_v43  ;;  %v2331_v43 = vld [vmem:[%s4701_s0 + $0x678] sm:$0xff] }
  0xa9   :  { %v641_v51 = vpack.c.bf16 %v2287_v45, %v2285_v34  ;;  %v2452_v44 = vld [vmem:[%s4701_s0 + $0x978] sm:$0xff]  ;;  %v2454_v34 = vld [vmem:[%s4701_s0 + $0x988] sm:$0xff] }
  0xaf   :  { %435 = vmatmul.mubr.bf16.gmra.mxu0 %v174_v54  ;;  %891 = vmatmul.mubr.bf16.gmra.mxu1 %v631_v55  ;;  %v134_v54 = vld [vmem:[%s4701_s0 + $0x2e0] sm:$0xff]  ;;  %v136_v55 = vld [vmem:[%s4701_s0 + $0x2f0] sm:$0xff] }
  0xb0   :  { %2190 = vmatprep.mubr.msk.bf16.mxu0 %vm190_vm0, %v177_v56  ;;  %2313 = vmatprep.mubr.msk.bf16.mxu1 %vm190_vm0, %v634_v57  ;;  %v2289_v56 = vld [vmem:[%s4701_s0 + $0x5f0] sm:$0xff]  ;;  %v2291_v57 = vld [vmem:[%s4701_s0 + $0x600] sm:$0xff]  ;;  %v186_v60 = vpack.c.bf16 %v136_v55, %v134_v54 }
  0xb1   :  { %v643_v61 = vpack.c.bf16 %v2291_v57, %v2289_v56  ;;  %v2328_v56 = vld [vmem:[%s4701_s0 + $0x660] sm:$0xff]  ;;  %v2330_v57 = vld [vmem:[%s4701_s0 + $0x670] sm:$0xff] }
  0xb7   :  { %443 = vmatmul.mubr.bf16.gmra.mxu0 %v176_v3  ;;  %899 = vmatmul.mubr.bf16.gmra.mxu1 %v633_v4  ;;  %v2321_v3 = vld [vmem:[%s4701_s0 + $0x628] sm:$0xff]  ;;  %v2323_v4 = vld [vmem:[%s4701_s0 + $0x638] sm:$0xff] }
  0xb8   :  { %2191 = vmatprep.mubr.msk.bf16.mxu0 %vm190_vm0, %v179_v5  ;;  %2314 = vmatprep.mubr.msk.bf16.mxu1 %vm190_vm0, %v636_v6  ;;  %v2444_v5 = vld [vmem:[%s4701_s0 + $0x938] sm:$0xff]  ;;  %v2446_v6 = vld [vmem:[%s4701_s0 + $0x948] sm:$0xff]  ;;  %v1103_v9 = vpack.c.bf16 %v2323_v4, %v2321_v3 }
  0xb9   :  { %v1608_v10 = vpack.c.bf16 %v2446_v6, %v2444_v5  ;;  %v2458_v3 = vld [vmem:[%s4701_s0 + $0x9a8] sm:$0xff]  ;;  %v1106_v6 = vpack.c.bf16 %v2330_v57, %v2328_v56 }
  0xbf   :  { %451 = vmatmul.mubr.bf16.gmra.mxu0 %v178_v15  ;;  %907 = vmatmul.mubr.bf16.gmra.mxu1 %v635_v16  ;;  %v2443_v16 = vld [vmem:[%s4701_s0 + $0x930] sm:$0xff] }
  0xc0   :  { %2192 = vmatprep.mubr.msk.bf16.mxu0 %vm190_vm0, %v181_v17  ;;  %2315 = vmatprep.mubr.msk.bf16.mxu1 %vm190_vm0, %v638_v18  ;;  %v2445_v17 = vld [vmem:[%s4701_s0 + $0x940] sm:$0xff]  ;;  %v2325_v18 = vld [vmem:[%s4701_s0 + $0x648] sm:$0xff] }
  0xc7   :  { %459 = vmatmul.mubr.bf16.gmra.mxu0 %v180_v28  ;;  %915 = vmatmul.mubr.bf16.gmra.mxu1 %v637_v29  ;;  %v1607_v28 = vpack.c.bf16 %v2445_v17, %v2443_v16 }
  0xc8   :  { %2193 = vmatprep.mubr.msk.bf16.mxu0 %vm190_vm0, %v183_v31  ;;  %2316 = vmatprep.mubr.msk.bf16.mxu1 %vm190_vm0, %v640_v32  ;;  %v1105_v31 = vpack.c.bf16 %v2327_v21, %v2325_v18  ;;  %v1610_v32 = vpack.c.bf16 %v2450_v23, %v2448_v22  ;;  %v2332_v18 = vld [vmem:[%s4701_s0 + $0x680] sm:$0xff]  ;;  %v2455_v21 = vld [vmem:[%s4701_s0 + $0x990] sm:$0xff]  ;;  %v2337_v23 = vld [vmem:[%s4701_s0 + $0x6a8] sm:$0xff] }
  0xc9   :  { %v2457_v22 = vld [vmem:[%s4701_s0 + $0x9a0] sm:$0xff] }
  0xcf   :  { %467 = vmatmul.mubr.bf16.gmra.mxu0 %v182_v39  ;;  %923 = vmatmul.mubr.bf16.gmra.mxu1 %v639_v40  ;;  %v2449_v39 = vld [vmem:[%s4701_s0 + $0x960] sm:$0xff]  ;;  %v2329_v40 = vld [vmem:[%s4701_s0 + $0x668] sm:$0xff] }
  0xd0   :  { %2194 = vmatprep.mubr.msk.bf16.mxu0 %vm190_vm0, %v185_v41  ;;  %2317 = vmatprep.mubr.msk.bf16.mxu1 %vm190_vm0, %v642_v42  ;;  %v1609_v48 = vpack.c.bf16 %v2449_v39, %v2447_v38  ;;  %v1613_v38 = vpack.c.bf16 %v2457_v22, %v2455_v21  ;;  %v2463_v22 = vld [vmem:[%s4701_s0 + $0x9d0] sm:$0xff]  ;;  %v2356_v21 = vld [vmem:[%s4701_s0 + $0x740] sm:$0xff] }
  0xd7   :  { %475 = vmatmul.mubr.bf16.gmra.mxu0 %v184_v50  ;;  %931 = vmatmul.mubr.bf16.gmra.mxu1 %v641_v51  ;;  %v1107_v50 = vpack.c.bf16 %v2331_v43, %v2329_v40  ;;  %v1612_v51 = vpack.c.bf16 %v2454_v34, %v2452_v44 }
  0xd8   :  { %2195 = vmatprep.mubr.msk.bf16.mxu0 %vm190_vm0, %v187_v52  ;;  %2318 = vmatprep.mubr.msk.bf16.mxu1 %vm190_vm0, %v644_v53 }
  0xdf   :  { %483 = vmatmul.mubr.bf16.gmra.mxu0 %v186_v60  ;;  %939 = vmatmul.mubr.bf16.gmra.mxu1 %v643_v61  ;;  %v2453_v60 = vld [vmem:[%s4701_s0 + $0x980] sm:$0xff]  ;;  %v2333_v61 = vld [vmem:[%s4701_s0 + $0x688] sm:$0xff] }
  0xe0   :  { %2196 = vmatprep.mubr.msk.bf16.mxu0 %vm190_vm0, %v189_v62  ;;  %2319 = vmatprep.mubr.msk.bf16.mxu1 %vm190_vm0, %v646_v63 }
  0xe7   :  { %v3383_v11 = vpop.f32.mrf.mxu0  ;;  %491 = vmatmul.mubr.bf16.gmra.mxu0 %v188_v7  ;;  %v3385_v12 = vpop.f32.mrf.mxu1  ;;  %947 = vmatmul.mubr.bf16.gmra.mxu1 %v645_v8  ;;  %v1611_v7 = vpack.c.bf16 %v2453_v60, %v2451_v59  ;;  %v2343_v59 = vld [vmem:[%s4701_s0 + $0x6d8] sm:$0xff] }
  0xe8   :  { %2418 = vmatprep.mubr.msk.bf16.mxu0 %vm190_vm0, %v1103_v9  ;;  %2541 = vmatprep.mubr.msk.bf16.mxu1 %vm190_vm0, %v1608_v10  ;;  %v1109_v9 = vpack.c.bf16 %v2335_v1, %v2333_v61  ;;  %v1614_v10 = vpack.c.bf16 %v2458_v3, %v2456_v2  ;;  %v2464_v60 = vld [vmem:[%s4701_s0 + $0x9d8] sm:$0xff]  ;;  %v2466_v61 = vld [vmem:[%s4701_s0 + $0x9e8] sm:$0xff] }
  0xe9   :  { %v302_v19 = vpop.f32.mrf.mxu0  ;;  %v758_v20 = vpop.f32.mrf.mxu1 }
  0xea   :  { %v2334_v19 = vld [vmem:[%s4701_s0 + $0x690] sm:$0xff]  ;;  %v2360_v20 = vld [vmem:[%s4701_s0 + $0x760] sm:$0xff] }
  0xeb   :  { %v3415_v24 = vpop.f32.mrf.mxu0  ;;  %v3417_v25 = vpop.f32.mrf.mxu1  ;;  %v1108_v36 = vpack.c.bf16 %v2334_v19, %v2332_v18  ;;  %v2340_v18 = vld [vmem:[%s4701_s0 + $0x6c0] sm:$0xff]  ;;  %v2342_v19 = vld [vmem:[%s4701_s0 + $0x6d0] sm:$0xff] }
  0xed   :  { %v305_v27 = vpop.f32.mrf.mxu0  ;;  %v761_v33 = vpop.f32.mrf.mxu1 }
  0xee   :  { %v2462_v27 = vld [vmem:[%s4701_s0 + $0x9c8] sm:$0xff] }
  0xef   :  { %v3421_v30 = vpop.f32.mrf.mxu0  ;;  %v3423_v0 = vpop.f32.mrf.mxu1  ;;  %1260 = vmatmul.mubr.bf16.vlgmr.msra.gmra.mxu0 %v1102_v26  ;;  %1765 = vmatmul.mubr.bf16.vlgmr.msra.gmra.mxu1 %v1607_v28 }
  0xf0   :  { %2419 = vmatprep.mubr.msk.bf16.mxu0 %vm190_vm0, %v1105_v31  ;;  %2542 = vmatprep.mubr.msk.bf16.mxu1 %vm190_vm0, %v1610_v32  ;;  %v2339_v31 = vld [vmem:[%s4701_s0 + $0x6b8] sm:$0xff] }
  0xf1   :  { %v310_v41 = vpop.f32.mrf.mxu0  ;;  %v766_v42 = vpop.f32.mrf.mxu1  ;;  %v2460_v32 = vld [vmem:[%s4701_s0 + $0x9b8] sm:$0xff]  ;;  %v1111_v40 = vpack.c.bf16 %v2339_v31, %v2337_v23  ;;  %v2465_v23 = vld [vmem:[%s4701_s0 + $0x9e0] sm:$0xff] }
  0xf2   :  { %v1616_v41 = vpack.c.bf16 %v2462_v27, %v2460_v32  ;;  %v2347_v32 = vld [vmem:[%s4701_s0 + $0x6f8] sm:$0xff] }
  0xf3   :  { %v3453_v45 = vpop.f32.mrf.mxu0  ;;  %v3455_v46 = vpop.f32.mrf.mxu1  ;;  %v2468_v27 = vld [vmem:[%s4701_s0 + $0x9f8] sm:$0xff] }
  0xf5   :  { %v313_v52 = vpop.f32.mrf.mxu0  ;;  %v769_v53 = vpop.f32.mrf.mxu1 }
  0xf6   :  { %v2461_v52 = vld [vmem:[%s4701_s0 + $0x9c0] sm:$0xff]  ;;  %v2341_v53 = vld [vmem:[%s4701_s0 + $0x6c8] sm:$0xff] }
  0xf7   :  { %v3459_v54 = vpop.f32.mrf.mxu0  ;;  %v3461_v55 = vpop.f32.mrf.mxu1  ;;  %1268 = vmatmul.mubr.bf16.gmra.mxu0 %v1104_v47  ;;  %1773 = vmatmul.mubr.bf16.gmra.mxu1 %v1609_v48  ;;  %v2336_v47 = vld [vmem:[%s4701_s0 + $0x6a0] sm:$0xff]  ;;  %v2338_v48 = vld [vmem:[%s4701_s0 + $0x6b0] sm:$0xff] }
  0xf8   :  { %2420 = vmatprep.mubr.msk.bf16.mxu0 %vm190_vm0, %v1107_v50  ;;  %2543 = vmatprep.mubr.msk.bf16.mxu1 %vm190_vm0, %v1612_v51  ;;  %v2459_v51 = vld [vmem:[%s4701_s0 + $0x9b0] sm:$0xff]  ;;  %v1110_v1 = vpack.c.bf16 %v2338_v48, %v2336_v47 }
  0xf9   :  { %v318_v62 = vpop.f32.mrf.mxu0  ;;  %v774_v63 = vpop.f32.mrf.mxu1  ;;  %v1615_v2 = vpack.c.bf16 %v2461_v52, %v2459_v51 }
  0xfb   :  { %v3491_v4 = vpop.f32.mrf.mxu0  ;;  %v3493_v5 = vpop.f32.mrf.mxu1 }
  0xfd   :  { %v321_v13 = vpop.f32.mrf.mxu0  ;;  %v777_v14 = vpop.f32.mrf.mxu1 }
  0xff   :  { %v3497_v16 = vpop.f32.mrf.mxu0  ;;  %v3499_v17 = vpop.f32.mrf.mxu1  ;;  %1276 = vmatmul.mubr.bf16.gmra.mxu0 %v1106_v6  ;;  %1781 = vmatmul.mubr.bf16.gmra.mxu1 %v1611_v7  ;;  %v1113_v6 = vpack.c.bf16 %v2343_v59, %v2341_v53  ;;  %v1618_v7 = vpack.c.bf16 %v2466_v61, %v2464_v60  ;;  %v2346_v59 = vld [vmem:[%s4701_s0 + $0x6f0] sm:$0xff] }
 0x100   :  { %2421 = vmatprep.mubr.msk.bf16.mxu0 %vm190_vm0, %v1109_v9  ;;  %2544 = vmatprep.mubr.msk.bf16.mxu1 %vm190_vm0, %v1614_v10  ;;  %v2467_v61 = vld [vmem:[%s4701_s0 + $0x9f0] sm:$0xff] }
 0x101   :  { %v326_v26 = vpop.f32.mrf.mxu0  ;;  %v782_v28 = vpop.f32.mrf.mxu1 }
 0x102   :  { %v2345_v26 = vld [vmem:[%s4701_s0 + $0x6e8] sm:$0xff] }
 0x103   :  { %v3529_v33 = vpop.f32.mrf.mxu0  ;;  %v3531_v35 = vpop.f32.mrf.mxu1  ;;  %v1115_v47 = vpack.c.bf16 %v2347_v32, %v2345_v26 }
 0x105   :  { %v329_v42 = vpop.f32.mrf.mxu0  ;;  %v785_v43 = vpop.f32.mrf.mxu1 }
 0x106   :  { %v1617_v42 = vpack.c.bf16 %v2465_v23, %v2463_v22 }
 0x107   :  { %v3535_v44 = vpop.f32.mrf.mxu0  ;;  %v3537_v34 = vpop.f32.mrf.mxu1  ;;  %1284 = vmatmul.mubr.bf16.gmra.mxu0 %v1108_v36  ;;  %1789 = vmatmul.mubr.bf16.gmra.mxu1 %v1613_v38  ;;  %v2470_v36 = vld [vmem:[%s4701_s0 + $0xa08] sm:$0xff] }
 0x108   :  { %2422 = vmatprep.mubr.msk.bf16.mxu0 %vm190_vm0, %v1111_v40  ;;  %2545 = vmatprep.mubr.msk.bf16.mxu1 %vm190_vm0, %v1616_v41  ;;  %v1112_v41 = vpack.c.bf16 %v2342_v19, %v2340_v18  ;;  %v1620_v48 = vpack.c.bf16 %v2470_v36, %v2468_v27  ;;  %v2474_v18 = vld [vmem:[%s4701_s0 + $0xa28] sm:$0xff] }
 0x109   :  { %v334_v56 = vpop.f32.mrf.mxu0  ;;  %v790_v57 = vpop.f32.mrf.mxu1 }
 0x10a   :  { %v2344_v57 = vld [vmem:[%s4701_s0 + $0x6e0] sm:$0xff] }
 0x10b   :  { %v3567_v62 = vpop.f32.mrf.mxu0  ;;  %v3569_v63 = vpop.f32.mrf.mxu1  ;;  %v1114_v23 = vpack.c.bf16 %v2346_v59, %v2344_v57  ;;  %v2473_v57 = vld [vmem:[%s4701_s0 + $0xa20] sm:$0xff]  ;;  %v2353_v59 = vld [vmem:[%s4701_s0 + $0x728] sm:$0xff] }
 0x10d   :  { %v337_v9 = vpop.f32.mrf.mxu0  ;;  %v793_v10 = vpop.f32.mrf.mxu1 }
 0x10e   :  { %v2351_v9 = vld [vmem:[%s4701_s0 + $0x718] sm:$0xff] }
 0x10f   :  { %v3573_v13 = vpop.f32.mrf.mxu0  ;;  %v3575_v14 = vpop.f32.mrf.mxu1  ;;  %1292 = vmatmul.mubr.bf16.gmra.mxu0 %v1110_v1  ;;  %1797 = vmatmul.mubr.bf16.gmra.mxu1 %v1615_v2  ;;  %v2469_v1 = vld [vmem:[%s4701_s0 + $0xa00] sm:$0xff]  ;;  %v2349_v2 = vld [vmem:[%s4701_s0 + $0x708] sm:$0xff]  ;;  %v2472_v10 = vld [vmem:[%s4701_s0 + $0xa18] sm:$0xff] }
 0x110   :  { %2423 = vmatprep.mubr.msk.bf16.mxu0 %vm190_vm0, %v1113_v6  ;;  %2546 = vmatprep.mubr.msk.bf16.mxu1 %vm190_vm0, %v1618_v7  ;;  %v1619_v26 = vpack.c.bf16 %v2469_v1, %v2467_v61  ;;  %v1622_v32 = vpack.c.bf16 %v2474_v18, %v2472_v10 }
 0x111   :  { %v342_v28 = vpop.f32.mrf.mxu0  ;;  %v798_v31 = vpop.f32.mrf.mxu1 }
 0x112   :  { %v1117_v31 = vpack.c.bf16 %v2351_v9, %v2349_v2  ;;  %v2355_v2 = vld [vmem:[%s4701_s0 + $0x738] sm:$0xff] }
 0x113   :  { %v3605_v38 = vpop.f32.mrf.mxu0  ;;  %v3607_v40 = vpop.f32.mrf.mxu1 }
 0x115   :  { %v345_v51 = vpop.f32.mrf.mxu0  ;;  %v801_v52 = vpop.f32.mrf.mxu1 }
 0x116   :  { %v2471_v52 = vld [vmem:[%s4701_s0 + $0xa10] sm:$0xff]  ;;  %v2352_v51 = vld [vmem:[%s4701_s0 + $0x720] sm:$0xff] }
 0x117   :  { %v3611_v53 = vpop.f32.mrf.mxu0  ;;  %v3613_v56 = vpop.f32.mrf.mxu1  ;;  %1300 = vmatmul.mubr.bf16.gmra.mxu0 %v1112_v41  ;;  %1805 = vmatmul.mubr.bf16.gmra.mxu1 %v1617_v42 }
 0x118   :  { %2424 = vmatprep.mubr.msk.bf16.mxu0 %vm190_vm0, %v1115_v47  ;;  %2547 = vmatprep.mubr.msk.bf16.mxu1 %vm190_vm0, %v1620_v48  ;;  %v2348_v47 = vld [vmem:[%s4701_s0 + $0x700] sm:$0xff]  ;;  %v2350_v48 = vld [vmem:[%s4701_s0 + $0x710] sm:$0xff] }
 0x119   :  { %v350_v6 = vpop.f32.mrf.mxu0  ;;  %v806_v7 = vpop.f32.mrf.mxu1  ;;  %v1116_v18 = vpack.c.bf16 %v2350_v48, %v2348_v47  ;;  %v2354_v47 = vld [vmem:[%s4701_s0 + $0x730] sm:$0xff] }
 0x11a   :  { %v2476_v6 = vld [vmem:[%s4701_s0 + $0xa38] sm:$0xff]  ;;  %v2478_v7 = vld [vmem:[%s4701_s0 + $0xa48] sm:$0xff] }
 0x11b   :  { %v3643_v19 = vpop.f32.mrf.mxu0  ;;  %v3645_v22 = vpop.f32.mrf.mxu1 }
 0x11d   :  { %v353_v27 = vpop.f32.mrf.mxu0  ;;  %v809_v36 = vpop.f32.mrf.mxu1 }
 0x11f   :  { %v3649_v41 = vpop.f32.mrf.mxu0  ;;  %v3651_v42 = vpop.f32.mrf.mxu1  ;;  %1308 = vmatmul.mubr.bf16.gmra.mxu0 %v1114_v23  ;;  %1813 = vmatmul.mubr.bf16.gmra.mxu1 %v1619_v26  ;;  %v1621_v23 = vpack.c.bf16 %v2473_v57, %v2471_v52  ;;  %v2475_v52 = vld [vmem:[%s4701_s0 + $0xa30] sm:$0xff]  ;;  %v2477_v57 = vld [vmem:[%s4701_s0 + $0xa40] sm:$0xff] }
 0x120   :  { %2425 = vmatprep.mubr.msk.bf16.mxu0 %vm190_vm0, %v1117_v31  ;;  %2548 = vmatprep.mubr.msk.bf16.mxu1 %vm190_vm0, %v1622_v32  ;;  %v1119_v31 = vpack.c.bf16 %v2355_v2, %v2353_v59  ;;  %v1624_v32 = vpack.c.bf16 %v2478_v7, %v2476_v6  ;;  %v2357_v59 = vld [vmem:[%s4701_s0 + $0x748] sm:$0xff]  ;;  %v2359_v7 = vld [vmem:[%s4701_s0 + $0x758] sm:$0xff] }
 0x121   :  { %v358_v61 = vpop.f32.mrf.mxu0  ;;  %v814_v1 = vpop.f32.mrf.mxu1 }
 0x123   :  { %v3681_v9 = vpop.f32.mrf.mxu0  ;;  %v3683_v10 = vpop.f32.mrf.mxu1 }
 0x125   :  { %v361_v27 = vpop.f32.mrf.mxu0  ;;  %v817_v36 = vpop.f32.mrf.mxu1 }
 0x126   :  { %v1118_v27 = vpack.c.bf16 %v2354_v47, %v2352_v51  ;;  %v1623_v36 = vpack.c.bf16 %v2477_v57, %v2475_v52  ;;  %v2358_v51 = vld [vmem:[%s4701_s0 + $0x750] sm:$0xff]  ;;  %v2361_v52 = vld [vmem:[%s4701_s0 + $0x768] sm:$0xff] }
 0x127   :  { %v3687_v61 = vpop.f32.mrf.mxu0  ;;  %v3689_v1 = vpop.f32.mrf.mxu1  ;;  %1316 = vmatmul.mubr.bf16.gmra.mxu0 %v1116_v18  ;;  %1821 = vmatmul.mubr.bf16.gmra.mxu1 %v1621_v23  ;;  %v2480_v18 = vld [vmem:[%s4701_s0 + $0xa58] sm:$0xff]  ;;  %v2482_v23 = vld [vmem:[%s4701_s0 + $0xa68] sm:$0xff] }
 0x128   :  { %2426 = vmatprep.mubr.msk.bf16.mxu0 %vm190_vm0, %v1119_v31  ;;  %2549 = vmatprep.mubr.msk.bf16.mxu1 %vm190_vm0, %v1624_v32  ;;  %v1626_v48 = vpack.c.bf16 %v2482_v23, %v2480_v18  ;;  %v2486_v18 = vld [vmem:[%s4701_s0 + $0xa88] sm:$0xff] }
 0x129   :  { %v366_v2 = vpop.f32.mrf.mxu0  ;;  %v822_v6 = vpop.f32.mrf.mxu1 }
 0x12a   :  { %v1121_v6 = vpack.c.bf16 %v2359_v7, %v2357_v59  ;;  %v2363_v7 = vld [vmem:[%s4701_s0 + $0x778] sm:$0xff] }
 0x12b   :  { %v3719_v31 = vpop.f32.mrf.mxu0  ;;  %v3721_v32 = vpop.f32.mrf.mxu1 }
 0x12d   :  { %v369_v26 = vpop.f32.mrf.mxu0  ;;  %v825_v28 = vpop.f32.mrf.mxu1 }
 0x12e   :  { %v2479_v28 = vld [vmem:[%s4701_s0 + $0xa50] sm:$0xff]  ;;  %v2481_v26 = vld [vmem:[%s4701_s0 + $0xa60] sm:$0xff] }
 0x12f   :  { %v3725_v60 = vpop.f32.mrf.mxu0  ;;  %v3727_v43 = vpop.f32.mrf.mxu1  ;;  %1324 = vmatmul.mubr.bf16.gmra.mxu0 %v1118_v27  ;;  %1829 = vmatmul.mubr.bf16.gmra.mxu1 %v1623_v36  ;;  %v1120_v36 = vpack.c.bf16 %v2358_v51, %v2356_v21  ;;  %v2362_v21 = vld [vmem:[%s4701_s0 + $0x770] sm:$0xff] }
 0x130   :  { %2427 = vmatprep.mubr.msk.bf16.mxu0 %vm190_vm0, %v1121_v6  ;;  %2550 = vmatprep.mubr.msk.bf16.mxu1 %vm190_vm0, %v1626_v48  ;;  %v2484_v48 = vld [vmem:[%s4701_s0 + $0xa78] sm:$0xff]  ;;  %v1625_v6 = vpack.c.bf16 %v2481_v26, %v2479_v28  ;;  %v2365_v28 = vld [vmem:[%s4701_s0 + $0x788] sm:$0xff] }
 0x131   :  { %v374_v57 = vpop.f32.mrf.mxu0  ;;  %v830_v59 = vpop.f32.mrf.mxu1  ;;  %v1628_v47 = vpack.c.bf16 %v2486_v18, %v2484_v48  ;;  %v2490_v48 = vld [vmem:[%s4701_s0 + $0xaa8] sm:$0xff] }
 0x132   :  { %v1123_v59 = vpack.c.bf16 %v2363_v7, %v2361_v52  ;;  %v2367_v7 = vld [vmem:[%s4701_s0 + $0x798] sm:$0xff] }
 0x133   :  { %v3757_v23 = vpop.f32.mrf.mxu0  ;;  %v3759_v27 = vpop.f32.mrf.mxu1 }
 0x135   :  { %v377_v2 = vpop.f32.mrf.mxu0  ;;  %v833_v3 = vpop.f32.mrf.mxu1 }
 0x136   :  { %v2483_v3 = vld [vmem:[%s4701_s0 + $0xa70] sm:$0xff]  ;;  %v2485_v2 = vld [vmem:[%s4701_s0 + $0xa80] sm:$0xff] }
 0x137   :  { %v3763_v50 = vpop.f32.mrf.mxu0  ;;  %v3765_v39 = vpop.f32.mrf.mxu1  ;;  %1332 = vmatmul.mubr.bf16.gmra.mxu0 %v1120_v36  ;;  %1837 = vmatmul.mubr.bf16.gmra.mxu1 %v1625_v6  ;;  %v1122_v6 = vpack.c.bf16 %v2362_v21, %v2360_v20  ;;  %v2366_v20 = vld [vmem:[%s4701_s0 + $0x790] sm:$0xff] }
 0x138   :  { %2428 = vmatprep.mubr.msk.bf16.mxu0 %vm190_vm0, %v1123_v59  ;;  %2551 = vmatprep.mubr.msk.bf16.mxu1 %vm190_vm0, %v1628_v47  ;;  %v2488_v47 = vld [vmem:[%s4701_s0 + $0xa98] sm:$0xff]  ;;  %v1627_v59 = vpack.c.bf16 %v2485_v2, %v2483_v3  ;;  %v2369_v3 = vld [vmem:[%s4701_s0 + $0x7a8] sm:$0xff] }
 0x139   :  { %v382_v26 = vpop.f32.mrf.mxu0  ;;  %v838_v52 = vpop.f32.mrf.mxu1  ;;  %v1630_v51 = vpack.c.bf16 %v2490_v48, %v2488_v47  ;;  %v2494_v47 = vld [vmem:[%s4701_s0 + $0xac8] sm:$0xff] }
 0x13a   :  { %v1125_v52 = vpack.c.bf16 %v2367_v7, %v2365_v28  ;;  %v2371_v7 = vld [vmem:[%s4701_s0 + $0x7b8] sm:$0xff] }
 0x13b   :  { %v3795_v18 = vpop.f32.mrf.mxu0  ;;  %v3797_v36 = vpop.f32.mrf.mxu1 }
 0x13d   :  { %v385_v57 = vpop.f32.mrf.mxu0  ;;  %v841_v8 = vpop.f32.mrf.mxu1 }
 0x13e   :  { %v2487_v8 = vld [vmem:[%s4701_s0 + $0xa90] sm:$0xff]  ;;  %v2489_v57 = vld [vmem:[%s4701_s0 + $0xaa0] sm:$0xff] }
 0x13f   :  { %v3801_v58 = vpop.f32.mrf.mxu0  ;;  %v3803_v49 = vpop.f32.mrf.mxu1  ;;  %1340 = vmatmul.mubr.bf16.gmra.mxu0 %v1122_v6  ;;  %1845 = vmatmul.mubr.bf16.gmra.mxu1 %v1627_v59  ;;  %v1124_v59 = vpack.c.bf16 %v2366_v20, %v2364_v37  ;;  %v2370_v37 = vld [vmem:[%s4701_s0 + $0x7b0] sm:$0xff] }
 0x140   :  { %4753 = vst [vmem:[#allocation2_spill] sm:$0xff] %v3801_v58  ;;  %4754 = vst [vmem:[#allocation3_spill] sm:$0xff] %v3803_v49  ;;  %2429 = vmatprep.mubr.msk.bf16.mxu0 %vm190_vm0, %v1125_v52  ;;  %2552 = vmatprep.mubr.msk.bf16.mxu1 %vm190_vm0, %v1630_v51  ;;  %v2492_v51 = vld [vmem:[%s4701_s0 + $0xab8] sm:$0xff]  ;;  %v1629_v52 = vpack.c.bf16 %v2489_v57, %v2487_v8  ;;  %v2368_v58 = vld [vmem:[%s4701_s0 + $0x7a0] sm:$0xff] }
 0x141   :  { %v390_v2 = vpop.f32.mrf.mxu0  ;;  %v846_v28 = vpop.f32.mrf.mxu1  ;;  %v1632_v21 = vpack.c.bf16 %v2494_v47, %v2492_v51  ;;  %v2373_v8 = vld [vmem:[%s4701_s0 + $0x7c8] sm:$0xff] }
 0x142   :  { %v1127_v28 = vpack.c.bf16 %v2371_v7, %v2369_v3  ;;  %v2375_v7 = vld [vmem:[%s4701_s0 + $0x7d8] sm:$0xff]  ;;  %v2498_v51 = vld [vmem:[%s4701_s0 + $0xae8] sm:$0xff] }
 0x143   :  { %v3833_v48 = vpop.f32.mrf.mxu0  ;;  %v3835_v6 = vpop.f32.mrf.mxu1 }
 0x144   :  { %4755 = vst [vmem:[#allocation4_spill] sm:$0xff] %v3833_v48  ;;  %4756 = vst [vmem:[#allocation5_spill] sm:$0xff] %v3835_v6  ;;  %v2372_v48 = vld [vmem:[%s4701_s0 + $0x7c0] sm:$0xff] }
 0x145   :  { %v393_v26 = vpop.f32.mrf.mxu0  ;;  %v849_v29 = vpop.f32.mrf.mxu1 }
 0x146   :  { %v2491_v29 = vld [vmem:[%s4701_s0 + $0xab0] sm:$0xff]  ;;  %v2493_v26 = vld [vmem:[%s4701_s0 + $0xac0] sm:$0xff] }
 0x147   :  { %v3839_v15 = vpop.f32.mrf.mxu0  ;;  %v3841_v49 = vpop.f32.mrf.mxu1  ;;  %1348 = vmatmul.mubr.bf16.gmra.mxu0 %v1124_v59  ;;  %1853 = vmatmul.mubr.bf16.gmra.mxu1 %v1629_v52  ;;  %v1126_v52 = vpack.c.bf16 %v2370_v37, %v2368_v58  ;;  %v2374_v58 = vld [vmem:[%s4701_s0 + $0x7d0] sm:$0xff] }
 0x148   :  { %4757 = vst [vmem:[#allocation6_spill] sm:$0xff] %v3839_v15  ;;  %4758 = vst [vmem:[#allocation7_spill] sm:$0xff] %v3841_v49  ;;  %2430 = vmatprep.mubr.msk.bf16.mxu0 %vm190_vm0, %v1127_v28  ;;  %2553 = vmatprep.mubr.msk.bf16.mxu1 %vm190_vm0, %v1632_v21  ;;  %v2496_v21 = vld [vmem:[%s4701_s0 + $0xad8] sm:$0xff]  ;;  %v1631_v28 = vpack.c.bf16 %v2493_v26, %v2491_v29  ;;  %v2377_v29 = vld [vmem:[%s4701_s0 + $0x7e8] sm:$0xff] }
 0x149   :  { %v398_v57 = vpop.f32.mrf.mxu0  ;;  %v854_v3 = vpop.f32.mrf.mxu1  ;;  %v1634_v20 = vpack.c.bf16 %v2498_v51, %v2496_v21  ;;  %v2502_v21 = vld [vmem:[%s4701_s0 + $0xb08] sm:$0xff] }
 0x14a   :  { %v1129_v3 = vpack.c.bf16 %v2375_v7, %v2373_v8  ;;  %v2379_v7 = vld [vmem:[%s4701_s0 + $0x7f8] sm:$0xff] }
 0x14b   :  { %v3871_v47 = vpop.f32.mrf.mxu0  ;;  %v3873_v59 = vpop.f32.mrf.mxu1 }
 0x14c   :  { %4759 = vst [vmem:[#allocation8_spill] sm:$0xff] %v3871_v47  ;;  %4760 = vst [vmem:[#allocation9_spill] sm:$0xff] %v3873_v59  ;;  %v2376_v47 = vld [vmem:[%s4701_s0 + $0x7e0] sm:$0xff] }
 0x14d   :  { %v401_v2 = vpop.f32.mrf.mxu0  ;;  %v857_v49 = vpop.f32.mrf.mxu1 }
 0x14e   :  { %v2495_v49 = vld [vmem:[%s4701_s0 + $0xad0] sm:$0xff]  ;;  %v2497_v2 = vld [vmem:[%s4701_s0 + $0xae0] sm:$0xff] }
 0x14f   :  { %v3877_v15 = vpop.f32.mrf.mxu0  ;;  %v3879_v6 = vpop.f32.mrf.mxu1  ;;  %1356 = vmatmul.mubr.bf16.gmra.mxu0 %v1126_v52  ;;  %1861 = vmatmul.mubr.bf16.gmra.mxu1 %v1631_v28  ;;  %v1128_v28 = vpack.c.bf16 %v2374_v58, %v2372_v48  ;;  %v2378_v48 = vld [vmem:[%s4701_s0 + $0x7f0] sm:$0xff] }
 0x150   :  { %4761 = vst [vmem:[#allocation10_spill] sm:$0xff] %v3877_v15  ;;  %4762 = vst [vmem:[#allocation11_spill] sm:$0xff] %v3879_v6  ;;  %2431 = vmatprep.mubr.msk.bf16.mxu0 %vm190_vm0, %v1129_v3  ;;  %2554 = vmatprep.mubr.msk.bf16.mxu1 %vm190_vm0, %v1634_v20  ;;  %v2500_v20 = vld [vmem:[%s4701_s0 + $0xaf8] sm:$0xff]  ;;  %v1633_v3 = vpack.c.bf16 %v2497_v2, %v2495_v49  ;;  %v2381_v49 = vld [vmem:[%s4701_s0 + $0x808] sm:$0xff] }
 0x151   :  { %v406_v26 = vpop.f32.mrf.mxu0  ;;  %v862_v8 = vpop.f32.mrf.mxu1  ;;  %v1636_v37 = vpack.c.bf16 %v2502_v21, %v2500_v20  ;;  %v2506_v20 = vld [vmem:[%s4701_s0 + $0xb28] sm:$0xff] }
 0x152   :  { %v1131_v8 = vpack.c.bf16 %v2379_v7, %v2377_v29  ;;  %v2383_v7 = vld [vmem:[%s4701_s0 + $0x818] sm:$0xff] }
 0x153   :  { %v3909_v51 = vpop.f32.mrf.mxu0  ;;  %v3911_v52 = vpop.f32.mrf.mxu1 }
 0x154   :  { %4763 = vst [vmem:[#allocation12_spill] sm:$0xff] %v3909_v51  ;;  %4764 = vst [vmem:[#allocation13_spill] sm:$0xff] %v3911_v52  ;;  %v2380_v51 = vld [vmem:[%s4701_s0 + $0x800] sm:$0xff] }
 0x155   :  { %v409_v57 = vpop.f32.mrf.mxu0  ;;  %v865_v6 = vpop.f32.mrf.mxu1 }
 0x156   :  { %v2499_v6 = vld [vmem:[%s4701_s0 + $0xaf0] sm:$0xff]  ;;  %v2501_v57 = vld [vmem:[%s4701_s0 + $0xb00] sm:$0xff] }
 0x157   :  { %v3915_v15 = vpop.f32.mrf.mxu0  ;;  %v3917_v59 = vpop.f32.mrf.mxu1  ;;  %1364 = vmatmul.mubr.bf16.gmra.mxu0 %v1128_v28  ;;  %1869 = vmatmul.mubr.bf16.gmra.mxu1 %v1633_v3  ;;  %v1130_v3 = vpack.c.bf16 %v2378_v48, %v2376_v47  ;;  %v2382_v47 = vld [vmem:[%s4701_s0 + $0x810] sm:$0xff] }
 0x158   :  { %4765 = vst [vmem:[#allocation14_spill] sm:$0xff] %v3915_v15  ;;  %4766 = vst [vmem:[#allocation15_spill] sm:$0xff] %v3917_v59  ;;  %2432 = vmatprep.mubr.msk.bf16.mxu0 %vm190_vm0, %v1131_v8  ;;  %2555 = vmatprep.mubr.msk.bf16.mxu1 %vm190_vm0, %v1636_v37  ;;  %v2504_v37 = vld [vmem:[%s4701_s0 + $0xb18] sm:$0xff]  ;;  %v1635_v8 = vpack.c.bf16 %v2501_v57, %v2499_v6  ;;  %v2385_v6 = vld [vmem:[%s4701_s0 + $0x828] sm:$0xff] }
 0x159   :  { %v414_v2 = vpop.f32.mrf.mxu0  ;;  %v870_v29 = vpop.f32.mrf.mxu1  ;;  %v1638_v58 = vpack.c.bf16 %v2506_v20, %v2504_v37  ;;  %v2510_v37 = vld [vmem:[%s4701_s0 + $0xb48] sm:$0xff] }
 0x15a   :  { %v1133_v29 = vpack.c.bf16 %v2383_v7, %v2381_v49  ;;  %v2387_v7 = vld [vmem:[%s4701_s0 + $0x838] sm:$0xff] }
 0x15b   :  { %v3947_v21 = vpop.f32.mrf.mxu0  ;;  %v3949_v28 = vpop.f32.mrf.mxu1 }
 0x15c   :  { %4767 = vst [vmem:[#allocation16_spill] sm:$0xff] %v3947_v21  ;;  %4768 = vst [vmem:[#allocation17_spill] sm:$0xff] %v3949_v28  ;;  %v2384_v21 = vld [vmem:[%s4701_s0 + $0x820] sm:$0xff] }
 0x15d   :  { %v417_v26 = vpop.f32.mrf.mxu0  ;;  %v873_v59 = vpop.f32.mrf.mxu1 }
 0x15e   :  { %v2503_v59 = vld [vmem:[%s4701_s0 + $0xb10] sm:$0xff]  ;;  %v2505_v26 = vld [vmem:[%s4701_s0 + $0xb20] sm:$0xff] }
 0x15f   :  { %v3953_v15 = vpop.f32.mrf.mxu0  ;;  %v3955_v52 = vpop.f32.mrf.mxu1  ;;  %1372 = vmatmul.mubr.bf16.gmra.mxu0 %v1130_v3  ;;  %1877 = vmatmul.mubr.bf16.gmra.mxu1 %v1635_v8  ;;  %v1132_v8 = vpack.c.bf16 %v2382_v47, %v2380_v51  ;;  %v2386_v51 = vld [vmem:[%s4701_s0 + $0x830] sm:$0xff] }
 0x160   :  { %4769 = vst [vmem:[#allocation18_spill] sm:$0xff] %v3953_v15  ;;  %4770 = vst [vmem:[#allocation19_spill] sm:$0xff] %v3955_v52  ;;  %2433 = vmatprep.mubr.msk.bf16.mxu0 %vm190_vm0, %v1133_v29  ;;  %2556 = vmatprep.mubr.msk.bf16.mxu1 %vm190_vm0, %v1638_v58  ;;  %v2508_v58 = vld [vmem:[%s4701_s0 + $0xb38] sm:$0xff]  ;;  %v1637_v29 = vpack.c.bf16 %v2505_v26, %v2503_v59  ;;  %v2389_v59 = vld [vmem:[%s4701_s0 + $0x848] sm:$0xff] }
 0x161   :  { %v422_v57 = vpop.f32.mrf.mxu0  ;;  %v878_v49 = vpop.f32.mrf.mxu1  ;;  %v1640_v48 = vpack.c.bf16 %v2510_v37, %v2508_v58  ;;  %v2514_v58 = vld [vmem:[%s4701_s0 + $0xb68] sm:$0xff] }
 0x162   :  { %v1135_v49 = vpack.c.bf16 %v2387_v7, %v2385_v6  ;;  %v2391_v7 = vld [vmem:[%s4701_s0 + $0x858] sm:$0xff] }
 0x163   :  { %v3985_v20 = vpop.f32.mrf.mxu0  ;;  %v3987_v3 = vpop.f32.mrf.mxu1 }
 0x164   :  { %4771 = vst [vmem:[#allocation20_spill] sm:$0xff] %v3985_v20  ;;  %4772 = vst [vmem:[#allocation21_spill] sm:$0xff] %v3987_v3  ;;  %v2388_v20 = vld [vmem:[%s4701_s0 + $0x840] sm:$0xff] }
 0x165   :  { %v425_v2 = vpop.f32.mrf.mxu0  ;;  %v881_v52 = vpop.f32.mrf.mxu1 }
 0x166   :  { %v2507_v52 = vld [vmem:[%s4701_s0 + $0xb30] sm:$0xff]  ;;  %v2509_v2 = vld [vmem:[%s4701_s0 + $0xb40] sm:$0xff] }
 0x167   :  { %v3991_v15 = vpop.f32.mrf.mxu0  ;;  %v3993_v28 = vpop.f32.mrf.mxu1  ;;  %1380 = vmatmul.mubr.bf16.gmra.mxu0 %v1132_v8  ;;  %1885 = vmatmul.mubr.bf16.gmra.mxu1 %v1637_v29  ;;  %v1134_v29 = vpack.c.bf16 %v2386_v51, %v2384_v21  ;;  %v2390_v21 = vld [vmem:[%s4701_s0 + $0x850] sm:$0xff] }
 0x168   :  { %4773 = vst [vmem:[#allocation22_spill] sm:$0xff] %v3991_v15  ;;  %4774 = vst [vmem:[#allocation23_spill] sm:$0xff] %v3993_v28  ;;  %2434 = vmatprep.mubr.msk.bf16.mxu0 %vm190_vm0, %v1135_v49  ;;  %2557 = vmatprep.mubr.msk.bf16.mxu1 %vm190_vm0, %v1640_v48  ;;  %v2512_v48 = vld [vmem:[%s4701_s0 + $0xb58] sm:$0xff]  ;;  %v1639_v49 = vpack.c.bf16 %v2509_v2, %v2507_v52  ;;  %v2393_v52 = vld [vmem:[%s4701_s0 + $0x868] sm:$0xff] }
 0x169   :  { %v430_v26 = vpop.f32.mrf.mxu0  ;;  %v886_v6 = vpop.f32.mrf.mxu1  ;;  %v1642_v47 = vpack.c.bf16 %v2514_v58, %v2512_v48  ;;  %v2518_v48 = vld [vmem:[%s4701_s0 + $0xb88] sm:$0xff] }
 0x16a   :  { %v1137_v6 = vpack.c.bf16 %v2391_v7, %v2389_v59  ;;  %v2395_v7 = vld [vmem:[%s4701_s0 + $0x878] sm:$0xff] }
 0x16b   :  { %v4023_v37 = vpop.f32.mrf.mxu0  ;;  %v4025_v8 = vpop.f32.mrf.mxu1 }
 0x16c   :  { %4775 = vst [vmem:[#allocation24_spill] sm:$0xff] %v4023_v37  ;;  %4776 = vst [vmem:[#allocation25_spill] sm:$0xff] %v4025_v8  ;;  %v2392_v37 = vld [vmem:[%s4701_s0 + $0x860] sm:$0xff] }
 0x16d   :  { %v433_v57 = vpop.f32.mrf.mxu0  ;;  %v889_v28 = vpop.f32.mrf.mxu1 }
 0x16e   :  { %v2511_v28 = vld [vmem:[%s4701_s0 + $0xb50] sm:$0xff]  ;;  %v2513_v57 = vld [vmem:[%s4701_s0 + $0xb60] sm:$0xff] }
 0x16f   :  { %v4029_v15 = vpop.f32.mrf.mxu0  ;;  %v4031_v3 = vpop.f32.mrf.mxu1  ;;  %1388 = vmatmul.mubr.bf16.gmra.mxu0 %v1134_v29  ;;  %1893 = vmatmul.mubr.bf16.gmra.mxu1 %v1639_v49  ;;  %v1136_v49 = vpack.c.bf16 %v2390_v21, %v2388_v20  ;;  %v2394_v20 = vld [vmem:[%s4701_s0 + $0x870] sm:$0xff] }
 0x170   :  { %4777 = vst [vmem:[#allocation26_spill] sm:$0xff] %v4029_v15  ;;  %4778 = vst [vmem:[#allocation27_spill] sm:$0xff] %v4031_v3  ;;  %2435 = vmatprep.mubr.msk.bf16.mxu0 %vm190_vm0, %v1137_v6  ;;  %2558 = vmatprep.mubr.msk.bf16.mxu1 %vm190_vm0, %v1642_v47  ;;  %v2516_v47 = vld [vmem:[%s4701_s0 + $0xb78] sm:$0xff]  ;;  %v1641_v6 = vpack.c.bf16 %v2513_v57, %v2511_v28  ;;  %v2397_v28 = vld [vmem:[%s4701_s0 + $0x888] sm:$0xff] }
 0x171   :  { %v438_v2 = vpop.f32.mrf.mxu0  ;;  %v894_v59 = vpop.f32.mrf.mxu1  ;;  %v1644_v51 = vpack.c.bf16 %v2518_v48, %v2516_v47  ;;  %v2522_v47 = vld [vmem:[%s4701_s0 + $0xba8] sm:$0xff] }
 0x172   :  { %v1139_v59 = vpack.c.bf16 %v2395_v7, %v2393_v52  ;;  %v2399_v7 = vld [vmem:[%s4701_s0 + $0x898] sm:$0xff] }
 0x173   :  { %v4061_v58 = vpop.f32.mrf.mxu0  ;;  %v4063_v29 = vpop.f32.mrf.mxu1 }
 0x174   :  { %4779 = vst [vmem:[#allocation28_spill] sm:$0xff] %v4061_v58  ;;  %4780 = vst [vmem:[#allocation29_spill] sm:$0xff] %v4063_v29  ;;  %v2396_v58 = vld [vmem:[%s4701_s0 + $0x880] sm:$0xff] }
 0x175   :  { %v441_v26 = vpop.f32.mrf.mxu0  ;;  %v897_v3 = vpop.f32.mrf.mxu1 }
 0x176   :  { %v2515_v3 = vld [vmem:[%s4701_s0 + $0xb70] sm:$0xff]  ;;  %v2517_v26 = vld [vmem:[%s4701_s0 + $0xb80] sm:$0xff] }
 0x177   :  { %v4067_v15 = vpop.f32.mrf.mxu0  ;;  %v4069_v8 = vpop.f32.mrf.mxu1  ;;  %1396 = vmatmul.mubr.bf16.gmra.mxu0 %v1136_v49  ;;  %1901 = vmatmul.mubr.bf16.gmra.mxu1 %v1641_v6  ;;  %v1138_v6 = vpack.c.bf16 %v2394_v20, %v2392_v37  ;;  %v2398_v37 = vld [vmem:[%s4701_s0 + $0x890] sm:$0xff] }
 0x178   :  { %4781 = vst [vmem:[#allocation30_spill] sm:$0xff] %v4067_v15  ;;  %4782 = vst [vmem:[#allocation31_spill] sm:$0xff] %v4069_v8  ;;  %2436 = vmatprep.mubr.msk.bf16.mxu0 %vm190_vm0, %v1139_v59  ;;  %2559 = vmatprep.mubr.msk.bf16.mxu1 %vm190_vm0, %v1644_v51  ;;  %v2520_v51 = vld [vmem:[%s4701_s0 + $0xb98] sm:$0xff]  ;;  %v1643_v59 = vpack.c.bf16 %v2517_v26, %v2515_v3  ;;  %v2401_v3 = vld [vmem:[%s4701_s0 + $0x8a8] sm:$0xff] }
 0x179   :  { %v446_v57 = vpop.f32.mrf.mxu0  ;;  %v902_v52 = vpop.f32.mrf.mxu1  ;;  %v1646_v21 = vpack.c.bf16 %v2522_v47, %v2520_v51  ;;  %v2526_v51 = vld [vmem:[%s4701_s0 + $0xbc8] sm:$0xff] }
 0x17a   :  { %v1141_v52 = vpack.c.bf16 %v2399_v7, %v2397_v28  ;;  %v2403_v7 = vld [vmem:[%s4701_s0 + $0x8b8] sm:$0xff] }
 0x17b   :  { %v4099_v48 = vpop.f32.mrf.mxu0  ;;  %v4101_v49 = vpop.f32.mrf.mxu1 }
 0x17c   :  { %4783 = vst [vmem:[#allocation32_spill] sm:$0xff] %v4099_v48  ;;  %4784 = vst [vmem:[#allocation33_spill] sm:$0xff] %v4101_v49  ;;  %v2400_v48 = vld [vmem:[%s4701_s0 + $0x8a0] sm:$0xff] }
 0x17d   :  { %v449_v2 = vpop.f32.mrf.mxu0  ;;  %v905_v8 = vpop.f32.mrf.mxu1 }
 0x17e   :  { %v2519_v8 = vld [vmem:[%s4701_s0 + $0xb90] sm:$0xff]  ;;  %v2521_v2 = vld [vmem:[%s4701_s0 + $0xba0] sm:$0xff] }
 0x17f   :  { %v4105_v15 = vpop.f32.mrf.mxu0  ;;  %v4107_v29 = vpop.f32.mrf.mxu1  ;;  %1404 = vmatmul.mubr.bf16.gmra.mxu0 %v1138_v6  ;;  %1909 = vmatmul.mubr.bf16.gmra.mxu1 %v1643_v59  ;;  %v1140_v59 = vpack.c.bf16 %v2398_v37, %v2396_v58  ;;  %v2402_v58 = vld [vmem:[%s4701_s0 + $0x8b0] sm:$0xff] }
 0x180   :  { %4785 = vst [vmem:[#allocation34_spill] sm:$0xff] %v4105_v15  ;;  %4786 = vst [vmem:[#allocation35_spill] sm:$0xff] %v4107_v29  ;;  %2437 = vmatprep.mubr.msk.bf16.mxu0 %vm190_vm0, %v1141_v52  ;;  %2560 = vmatprep.mubr.msk.bf16.mxu1 %vm190_vm0, %v1646_v21  ;;  %v2524_v21 = vld [vmem:[%s4701_s0 + $0xbb8] sm:$0xff]  ;;  %v1645_v52 = vpack.c.bf16 %v2521_v2, %v2519_v8  ;;  %v2405_v8 = vld [vmem:[%s4701_s0 + $0x8c8] sm:$0xff] }
 0x181   :  { %v454_v26 = vpop.f32.mrf.mxu0  ;;  %v910_v28 = vpop.f32.mrf.mxu1  ;;  %v1648_v20 = vpack.c.bf16 %v2526_v51, %v2524_v21  ;;  %v2530_v21 = vld [vmem:[%s4701_s0 + $0xbe8] sm:$0xff] }
 0x182   :  { %v1143_v28 = vpack.c.bf16 %v2403_v7, %v2401_v3  ;;  %v2407_v7 = vld [vmem:[%s4701_s0 + $0x8d8] sm:$0xff] }
 0x183   :  { %v4137_v47 = vpop.f32.mrf.mxu0  ;;  %v4139_v6 = vpop.f32.mrf.mxu1 }
 0x184   :  { %4787 = vst [vmem:[#allocation36_spill] sm:$0xff] %v4137_v47  ;;  %4788 = vst [vmem:[#allocation37_spill] sm:$0xff] %v4139_v6  ;;  %v2404_v47 = vld [vmem:[%s4701_s0 + $0x8c0] sm:$0xff] }
 0x185   :  { %v457_v57 = vpop.f32.mrf.mxu0  ;;  %v913_v29 = vpop.f32.mrf.mxu1 }
 0x186   :  { %v2523_v29 = vld [vmem:[%s4701_s0 + $0xbb0] sm:$0xff]  ;;  %v2525_v57 = vld [vmem:[%s4701_s0 + $0xbc0] sm:$0xff] }
 0x187   :  { %v4143_v15 = vpop.f32.mrf.mxu0  ;;  %v4145_v49 = vpop.f32.mrf.mxu1  ;;  %1412 = vmatmul.mubr.bf16.gmra.mxu0 %v1140_v59  ;;  %1917 = vmatmul.mubr.bf16.gmra.mxu1 %v1645_v52  ;;  %v1142_v52 = vpack.c.bf16 %v2402_v58, %v2400_v48  ;;  %v2406_v48 = vld [vmem:[%s4701_s0 + $0x8d0] sm:$0xff] }
 0x188   :  { %4789 = vst [vmem:[#allocation38_spill] sm:$0xff] %v4143_v15  ;;  %4790 = vst [vmem:[#allocation39_spill] sm:$0xff] %v4145_v49  ;;  %2438 = vmatprep.mubr.msk.bf16.mxu0 %vm190_vm0, %v1143_v28  ;;  %2561 = vmatprep.mubr.msk.bf16.mxu1 %vm190_vm0, %v1648_v20  ;;  %v2528_v20 = vld [vmem:[%s4701_s0 + $0xbd8] sm:$0xff]  ;;  %v1647_v28 = vpack.c.bf16 %v2525_v57, %v2523_v29  ;;  %v2409_v29 = vld [vmem:[%s4701_s0 + $0x8e8] sm:$0xff] }
 0x189   :  { %v462_v2 = vpop.f32.mrf.mxu0  ;;  %v918_v3 = vpop.f32.mrf.mxu1  ;;  %v1650_v37 = vpack.c.bf16 %v2530_v21, %v2528_v20  ;;  %v2534_v20 = vld [vmem:[%s4701_s0 + $0xc08] sm:$0xff] }
 0x18a   :  { %v1145_v3 = vpack.c.bf16 %v2407_v7, %v2405_v8  ;;  %v2411_v7 = vld [vmem:[%s4701_s0 + $0x8f8] sm:$0xff] }
 0x18b   :  { %v4175_v51 = vpop.f32.mrf.mxu0  ;;  %v4177_v59 = vpop.f32.mrf.mxu1 }
 0x18c   :  { %4791 = vst [vmem:[#allocation40_spill] sm:$0xff] %v4175_v51  ;;  %4792 = vst [vmem:[#allocation41_spill] sm:$0xff] %v4177_v59  ;;  %v2408_v51 = vld [vmem:[%s4701_s0 + $0x8e0] sm:$0xff] }
 0x18d   :  { %v465_v26 = vpop.f32.mrf.mxu0  ;;  %v921_v49 = vpop.f32.mrf.mxu1 }
 0x18e   :  { %v2527_v49 = vld [vmem:[%s4701_s0 + $0xbd0] sm:$0xff]  ;;  %v2529_v26 = vld [vmem:[%s4701_s0 + $0xbe0] sm:$0xff] }
 0x18f   :  { %v4181_v15 = vpop.f32.mrf.mxu0  ;;  %v4183_v6 = vpop.f32.mrf.mxu1  ;;  %1420 = vmatmul.mubr.bf16.gmra.mxu0 %v1142_v52  ;;  %1925 = vmatmul.mubr.bf16.gmra.mxu1 %v1647_v28  ;;  %v1144_v28 = vpack.c.bf16 %v2406_v48, %v2404_v47  ;;  %v2410_v47 = vld [vmem:[%s4701_s0 + $0x8f0] sm:$0xff] }
 0x190   :  { %4793 = vst [vmem:[#allocation42_spill] sm:$0xff] %v4181_v15  ;;  %4794 = vst [vmem:[#allocation43_spill] sm:$0xff] %v4183_v6  ;;  %2439 = vmatprep.mubr.msk.bf16.mxu0 %vm190_vm0, %v1145_v3  ;;  %2562 = vmatprep.mubr.msk.bf16.mxu1 %vm190_vm0, %v1650_v37  ;;  %v2532_v37 = vld [vmem:[%s4701_s0 + $0xbf8] sm:$0xff]  ;;  %v1649_v3 = vpack.c.bf16 %v2529_v26, %v2527_v49  ;;  %v2413_v49 = vld [vmem:[%s4701_s0 + $0x908] sm:$0xff] }
 0x191   :  { %v470_v57 = vpop.f32.mrf.mxu0  ;;  %v926_v8 = vpop.f32.mrf.mxu1  ;;  %v1652_v58 = vpack.c.bf16 %v2534_v20, %v2532_v37  ;;  %v2538_v37 = vld [vmem:[%s4701_s0 + $0xc28] sm:$0xff] }
 0x192   :  { %v1147_v8 = vpack.c.bf16 %v2411_v7, %v2409_v29  ;;  %v2415_v7 = vld [vmem:[%s4701_s0 + $0x918] sm:$0xff] }
 0x193   :  { %v4213_v21 = vpop.f32.mrf.mxu0  ;;  %v4215_v52 = vpop.f32.mrf.mxu1 }
 0x194   :  { %4795 = vst [vmem:[#allocation44_spill] sm:$0xff] %v4213_v21  ;;  %4796 = vst [vmem:[#allocation45_spill] sm:$0xff] %v4215_v52  ;;  %v2412_v21 = vld [vmem:[%s4701_s0 + $0x900] sm:$0xff] }
 0x195   :  { %v473_v2 = vpop.f32.mrf.mxu0  ;;  %v929_v6 = vpop.f32.mrf.mxu1 }
 0x196   :  { %v2531_v6 = vld [vmem:[%s4701_s0 + $0xbf0] sm:$0xff]  ;;  %v2533_v2 = vld [vmem:[%s4701_s0 + $0xc00] sm:$0xff] }
 0x197   :  { %v4219_v15 = vpop.f32.mrf.mxu0  ;;  %v4221_v59 = vpop.f32.mrf.mxu1  ;;  %1428 = vmatmul.mubr.bf16.gmra.mxu0 %v1144_v28  ;;  %1933 = vmatmul.mubr.bf16.gmra.mxu1 %v1649_v3  ;;  %v1146_v3 = vpack.c.bf16 %v2410_v47, %v2408_v51  ;;  %v2537_v47 = vld [vmem:[%s4701_s0 + $0xc20] sm:$0xff] }
 0x198   :  { %4797 = vst [vmem:[#allocation46_spill] sm:$0xff] %v4219_v15  ;;  %4798 = vst [vmem:[#allocation47_spill] sm:$0xff] %v4221_v59  ;;  %2440 = vmatprep.mubr.msk.bf16.mxu0 %vm190_vm0, %v1147_v8  ;;  %2563 = vmatprep.mubr.msk.bf16.mxu1 %vm190_vm0, %v1652_v58  ;;  %v2536_v58 = vld [vmem:[%s4701_s0 + $0xc18] sm:$0xff]  ;;  %v1651_v8 = vpack.c.bf16 %v2533_v2, %v2531_v6 }
 0x199   :  { %v478_v26 = vpop.f32.mrf.mxu0  ;;  %v934_v29 = vpop.f32.mrf.mxu1  ;;  %v1654_v48 = vpack.c.bf16 %v2538_v37, %v2536_v58 }
 0x19a   :  { %v1149_v29 = vpack.c.bf16 %v2415_v7, %v2413_v49  ;;  %v2417_v49 = vld [vmem:[%s4701_s0 + $0x928] sm:$0xff] }
 0x19b   :  { %v4251_v20 = vpop.f32.mrf.mxu0  ;;  %v4253_v28 = vpop.f32.mrf.mxu1 }
 0x19d   :  { %v481_v57 = vpop.f32.mrf.mxu0  ;;  %v937_v59 = vpop.f32.mrf.mxu1 }
 0x19e   :  { %v2414_v59 = vld [vmem:[%s4701_s0 + $0x910] sm:$0xff] }
 0x19f   :  { %v4257_v15 = vpop.f32.mrf.mxu0  ;;  %v4259_v52 = vpop.f32.mrf.mxu1  ;;  %1436 = vmatmul.mubr.bf16.gmra.mxu0 %v1146_v3  ;;  %1941 = vmatmul.mubr.bf16.gmra.mxu1 %v1651_v8  ;;  %v2535_v57 = vld [vmem:[%s4701_s0 + $0xc10] sm:$0xff]  ;;  %v1148_v37 = vpack.c.bf16 %v2414_v59, %v2412_v21  ;;  %v2416_v21 = vld [vmem:[%s4701_s0 + $0x920] sm:$0xff] }
 0x1a0   :  { %4799 = vst [vmem:[#allocation48_spill] sm:$0xff] %v4257_v15  ;;  %4800 = vst [vmem:[#allocation49_spill] sm:$0xff] %v4259_v52  ;;  %2441 = vmatprep.mubr.msk.bf16.mxu0 %vm190_vm0, %v1149_v29  ;;  %2564 = vmatprep.mubr.msk.bf16.mxu1 %vm190_vm0, %v1654_v48  ;;  %v2540_v48 = vld [vmem:[%s4701_s0 + $0xc38] sm:$0xff]  ;;  %v1653_v3 = vpack.c.bf16 %v2537_v47, %v2535_v57  ;;  %v1151_v29 = vpack.c.bf16 %v2417_v49, %v2417_v49 }
 0x1a1   :  { %v486_v6 = vpop.f32.mrf.mxu0  ;;  %v942_v2 = vpop.f32.mrf.mxu1 }
 0x1a2   :  { %v1656_v6 = vpack.c.bf16 %v2540_v48, %v2540_v48  ;;  %v1150_v48 = vpack.c.bf16 %v2416_v21, %v2416_v21 }
 0x1a3   :  { %v4283_v7 = vpop.f32.mrf.mxu0  ;;  %v4285_v58 = vpop.f32.mrf.mxu1 }
 0x1a5   :  { %v489_v2 = vpop.f32.mrf.mxu0  ;;  %v945_v51 = vpop.f32.mrf.mxu1 }
 0x1a6   :  { %v2539_v51 = vld [vmem:[%s4701_s0 + $0xc30] sm:$0xff] }
 0x1a7   :  { %v4289_v26 = vpop.f32.mrf.mxu0  ;;  %v4291_v52 = vpop.f32.mrf.mxu1  ;;  %1444 = vmatmul.mubr.bf16.gmra.mxu0 %v1148_v37  ;;  %1949 = vmatmul.mubr.bf16.gmra.mxu1 %v1653_v3  ;;  %v1655_v37 = vpack.c.bf16 %v2539_v51, %v2539_v51 }
 0x1a8   :  { %4801 = vst [vmem:[#allocation50_spill] sm:$0xff] %v4291_v52  ;;  %2442 = vmatprep.mubr.msk.bf16.mxu0 %vm190_vm0, %v1151_v29  ;;  %2565 = vmatprep.mubr.msk.bf16.mxu1 %vm190_vm0, %v1656_v6  ;;  %v4802_v6 = vmax.f32 %v3383_v11, %v3385_v12  ;;  %v4309_v52 = vld [vmem:[%s4702_s2] ss:$0 sm:$0xff] }
 0x1a9   :  { %v494_v59 = vpop.f32.mrf.mxu0  ;;  %v950_v57 = vpop.f32.mrf.mxu1 }
 0x1ab   :  { %v495_v47 = vpop.f32.mrf.mxu0  ;;  %v951_v49 = vpop.f32.mrf.mxu1 }
 0x1ad   :  { %v496_v3 = vpop.f32.mrf.mxu0  ;;  %v952_v2 = vpop.f32.mrf.mxu1 }
 0x1af   :  { %v1261_v15 = vpop.f32.mrf.mxu0  ;;  %1452 = vmatmul.mubr.bf16.gmra.mxu0 %v1150_v48  ;;  %v1766_v29 = vpop.f32.mrf.mxu1  ;;  %1957 = vmatmul.mubr.bf16.gmra.mxu1 %v1655_v37  ;;  %v4803_v48 = vmax.f32 %v3415_v24, %v3417_v25 }
 0x1b0   :  { %v1459_v8 = vmax.f32 %v4802_v6, %v1261_v15 }
 0x1b1   :  { %v1263_v59 = vpop.f32.mrf.mxu0  ;;  %v1768_v57 = vpop.f32.mrf.mxu1 }
 0x1b2   :  { %v1964_v47 = vmax.f32 %v1459_v8, %v1766_v29  ;;  %v4804_v29 = vmax.f32 %v3421_v30, %v3423_v0 }
 0x1b3   :  { %v1264_v21 = vpop.f32.mrf.mxu0  ;;  %v1769_v51 = vpop.f32.mrf.mxu1 }
 0x1b4   :  { %v2020_v49 = vadd.f32 %v4309_v52, %v1964_v47  ;;  %v1460_v37 = vmax.f32 %v4803_v48, %v1264_v21  ;;  %v4805_v48 = vmax.f32 %v3453_v45, %v3455_v46 }
 0x1b5   :  { %v1266_v3 = vpop.f32.mrf.mxu0  ;;  %v1771_v11 = vpop.f32.mrf.mxu1 }
 0x1b6   :  { %v2069_v12 = vmax.f32 %v2020_v49, 0.0  ;;  %v1965_v15 = vmax.f32 %v1460_v37, %v1769_v51 }
 0x1b7   :  { %v1269_v2 = vpop.f32.mrf.mxu0  ;;  %v1774_v6 = vpop.f32.mrf.mxu1 }
 0x1b8   :  { %2119 = vst.msk [vmem:[%s4703_s3] sm:$0xff] %vm2118_vm1, %v2069_v12  ;;  %v2021_v8 = vadd.f32 %v4309_v52, %v1965_v15  ;;  %v1461_v59 = vmax.f32 %v4804_v29, %v1269_v2 }
 0x1b9   :  { %v1271_v24 = vpop.f32.mrf.mxu0  ;;  %v1776_v25 = vpop.f32.mrf.mxu1 }
 0x1ba   :  { %v2070_v57 = vmax.f32 %v2021_v8, 0.0  ;;  %v1966_v47 = vmax.f32 %v1461_v59, %v1774_v6  ;;  %v4806_v6 = vmax.f32 %v3459_v54, %v3461_v55 }
 0x1bb   :  { %v1272_v21 = vpop.f32.mrf.mxu0  ;;  %v1777_v49 = vpop.f32.mrf.mxu1 }
 0x1bc   :  { %2120 = vst.msk [vmem:[%s4703_s3 + $0x8] sm:$0xff] %vm2118_vm1, %v2070_v57  ;;  %v2022_v51 = vadd.f32 %v4309_v52, %v1966_v47  ;;  %v1462_v37 = vmax.f32 %v4805_v48, %v1272_v21  ;;  %v4807_v47 = vmax.f32 %v3491_v4, %v3493_v5 }
 0x1bd   :  { %v1274_v3 = vpop.f32.mrf.mxu0  ;;  %v1779_v30 = vpop.f32.mrf.mxu1 }
 0x1be   :  { %v2071_v0 = vmax.f32 %v2022_v51, 0.0  ;;  %v1967_v11 = vmax.f32 %v1462_v37, %v1777_v49  ;;  %v4808_v30 = vmax.f32 %v3497_v16, %v3499_v17 }
 0x1bf   :  { %v1277_v12 = vpop.f32.mrf.mxu0  ;;  %v1782_v15 = vpop.f32.mrf.mxu1 }
 0x1c0   :  { %2121 = vst.msk [vmem:[%s4703_s3 + $0x10] sm:$0xff] %vm2118_vm1, %v2071_v0  ;;  %v2023_v2 = vadd.f32 %v4309_v52, %v1967_v11  ;;  %v1463_v8 = vmax.f32 %v4806_v6, %v1277_v12 }
 0x1c1   :  { %v1279_v29 = vpop.f32.mrf.mxu0  ;;  %v1784_v45 = vpop.f32.mrf.mxu1 }
 0x1c2   :  { %v2072_v46 = vmax.f32 %v2023_v2, 0.0  ;;  %v1968_v59 = vmax.f32 %v1463_v8, %v1782_v15  ;;  %v4809_v8 = vmax.f32 %v3529_v33, %v3531_v35 }
 0x1c3   :  { %v1280_v24 = vpop.f32.mrf.mxu0  ;;  %v1785_v25 = vpop.f32.mrf.mxu1 }
 0x1c4   :  { %2122 = vst.msk [vmem:[%s4703_s3 + $0x18] sm:$0xff] %vm2118_vm1, %v2072_v46  ;;  %v2024_v57 = vadd.f32 %v4309_v52, %v1968_v59  ;;  %v1464_v21 = vmax.f32 %v4807_v47, %v1280_v24 }
 0x1c5   :  { %v1282_v49 = vpop.f32.mrf.mxu0  ;;  %v1787_v54 = vpop.f32.mrf.mxu1 }
 0x1c6   :  { %v2073_v55 = vmax.f32 %v2024_v57, 0.0  ;;  %v1969_v51 = vmax.f32 %v1464_v21, %v1785_v25  ;;  %v4810_v57 = vmax.f32 %v3535_v44, %v3537_v34 }
 0x1c7   :  { %v1285_v48 = vpop.f32.mrf.mxu0  ;;  %v1790_v37 = vpop.f32.mrf.mxu1 }
 0x1c8   :  { %2123 = vst.msk [vmem:[%s4703_s3 + $0x20] sm:$0xff] %vm2118_vm1, %v2073_v55  ;;  %v2025_v3 = vadd.f32 %v4309_v52, %v1969_v51  ;;  %v1465_v0 = vmax.f32 %v4808_v30, %v1285_v48  ;;  %v4811_v48 = vmax.f32 %v3567_v62, %v3569_v63 }
 0x1c9   :  { %v1287_v11 = vpop.f32.mrf.mxu0  ;;  %v1792_v4 = vpop.f32.mrf.mxu1 }
 0x1ca   :  { %v2074_v5 = vmax.f32 %v2025_v3, 0.0  ;;  %v1970_v12 = vmax.f32 %v1465_v0, %v1790_v37 }
 0x1cb   :  { %v1288_v15 = vpop.f32.mrf.mxu0  ;;  %v1793_v2 = vpop.f32.mrf.mxu1 }
 0x1cc   :  { %2124 = vst.msk [vmem:[%s4703_s3 + $0x28] sm:$0xff] %vm2118_vm1, %v2074_v5  ;;  %v2026_v6 = vadd.f32 %v4309_v52, %v1970_v12  ;;  %v1466_v29 = vmax.f32 %v4809_v8, %v1288_v15  ;;  %v4812_v5 = vmax.f32 %v3573_v13, %v3575_v14 }
 0x1cd   :  { %v1290_v45 = vpop.f32.mrf.mxu0  ;;  %v1795_v16 = vpop.f32.mrf.mxu1 }
 0x1ce   :  { %v2075_v17 = vmax.f32 %v2026_v6, 0.0  ;;  %v1971_v46 = vmax.f32 %v1466_v29, %v1793_v2  ;;  %v4813_v45 = vmax.f32 %v3605_v38, %v3607_v40 }
 0x1cf   :  { %v1293_v59 = vpop.f32.mrf.mxu0  ;;  %v1798_v24 = vpop.f32.mrf.mxu1 }
 0x1d0   :  { %2125 = vst.msk [vmem:[%s4703_s3 + $0x30] sm:$0xff] %vm2118_vm1, %v2075_v17  ;;  %v2027_v25 = vadd.f32 %v4309_v52, %v1971_v46  ;;  %v1467_v47 = vmax.f32 %v4810_v57, %v1293_v59  ;;  %v4814_v57 = vmax.f32 %v3611_v53, %v3613_v56 }
 0x1d1   :  { %v1295_v21 = vpop.f32.mrf.mxu0  ;;  %v1800_v33 = vpop.f32.mrf.mxu1 }
 0x1d2   :  { %v2076_v35 = vmax.f32 %v2027_v25, 0.0  ;;  %v1972_v49 = vmax.f32 %v1467_v47, %v1798_v24 }
 0x1d3   :  { %v1296_v54 = vpop.f32.mrf.mxu0  ;;  %v1801_v55 = vpop.f32.mrf.mxu1 }
 0x1d4   :  { %2126 = vst.msk [vmem:[%s4703_s3 + $0x38] sm:$0xff] %vm2118_vm1, %v2076_v35  ;;  %v2028_v51 = vadd.f32 %v4309_v52, %v1972_v49  ;;  %v1468_v37 = vmax.f32 %v4811_v48, %v1296_v54 }
 0x1d5   :  { %v1298_v3 = vpop.f32.mrf.mxu0  ;;  %v1803_v44 = vpop.f32.mrf.mxu1 }
 0x1d6   :  { %v2077_v34 = vmax.f32 %v2028_v51, 0.0  ;;  %v1973_v30 = vmax.f32 %v1468_v37, %v1801_v55  ;;  %v4815_v55 = vmax.f32 %v3643_v19, %v3645_v22 }
 0x1d7   :  { %v1301_v0 = vpop.f32.mrf.mxu0  ;;  %v1806_v11 = vpop.f32.mrf.mxu1 }
 0x1d8   :  { %2127 = vst.msk [vmem:[%s4703_s3 + $0x40] sm:$0xff] %vm2118_vm1, %v2077_v34  ;;  %v2029_v4 = vadd.f32 %v4309_v52, %v1973_v30  ;;  %v1469_v12 = vmax.f32 %v4812_v5, %v1301_v0  ;;  %v4816_v30 = vmax.f32 %v3649_v41, %v3651_v42 }
 0x1d9   :  { %v1303_v15 = vpop.f32.mrf.mxu0  ;;  %v1808_v62 = vpop.f32.mrf.mxu1 }
 0x1da   :  { %v2078_v63 = vmax.f32 %v2029_v4, 0.0  ;;  %v1974_v2 = vmax.f32 %v1469_v12, %v1806_v11  ;;  %v4817_v62 = vmax.f32 %v3681_v9, %v3683_v10 }
 0x1db   :  { %v1304_v6 = vpop.f32.mrf.mxu0  ;;  %v1809_v8 = vpop.f32.mrf.mxu1 }
 0x1dc   :  { %2128 = vst.msk [vmem:[%s4703_s3 + $0x48] sm:$0xff] %vm2118_vm1, %v2078_v63  ;;  %v2030_v29 = vadd.f32 %v4309_v52, %v1974_v2  ;;  %v1470_v16 = vmax.f32 %v4813_v45, %v1304_v6 }
 0x1dd   :  { %v1306_v17 = vpop.f32.mrf.mxu0  ;;  %v1811_v13 = vpop.f32.mrf.mxu1 }
 0x1de   :  { %v2079_v14 = vmax.f32 %v2030_v29, 0.0  ;;  %v1975_v46 = vmax.f32 %v1470_v16, %v1809_v8  ;;  %v4818_v16 = vmax.f32 %v3687_v61, %v3689_v1 }
 0x1df   :  { %v1309_v59 = vpop.f32.mrf.mxu0  ;;  %v1814_v24 = vpop.f32.mrf.mxu1 }
 0x1e0   :  { %2129 = vst.msk [vmem:[%s4703_s3 + $0x50] sm:$0xff] %vm2118_vm1, %v2079_v14  ;;  %v2031_v25 = vadd.f32 %v4309_v52, %v1975_v46  ;;  %v1471_v47 = vmax.f32 %v4814_v57, %v1309_v59 }
 0x1e1   :  { %v1311_v21 = vpop.f32.mrf.mxu0  ;;  %v1816_v38 = vpop.f32.mrf.mxu1 }
 0x1e2   :  { %v2080_v40 = vmax.f32 %v2031_v25, 0.0  ;;  %v1976_v33 = vmax.f32 %v1471_v47, %v1814_v24  ;;  %v4819_v25 = vmax.f32 %v3719_v31, %v3721_v32 }
 0x1e3   :  { %v1312_v35 = vpop.f32.mrf.mxu0  ;;  %v1817_v49 = vpop.f32.mrf.mxu1 }
 0x1e4   :  { %2130 = vst.msk [vmem:[%s4703_s3 + $0x58] sm:$0xff] %vm2118_vm1, %v2080_v40  ;;  %v2032_v54 = vadd.f32 %v4309_v52, %v1976_v33  ;;  %v1472_v51 = vmax.f32 %v4815_v55, %v1312_v35  ;;  %v4820_v35 = vmax.f32 %v3725_v60, %v3727_v43 }
 0x1e5   :  { %v1314_v48 = vpop.f32.mrf.mxu0  ;;  %v1819_v53 = vpop.f32.mrf.mxu1 }
 0x1e6   :  { %v2081_v56 = vmax.f32 %v2032_v54, 0.0  ;;  %v1977_v37 = vmax.f32 %v1472_v51, %v1817_v49 }
 0x1e7   :  { %v1317_v3 = vpop.f32.mrf.mxu0  ;;  %v1822_v44 = vpop.f32.mrf.mxu1 }
 0x1e8   :  { %2131 = vst.msk [vmem:[%s4703_s3 + $0x60] sm:$0xff] %vm2118_vm1, %v2081_v56  ;;  %v2033_v34 = vadd.f32 %v4309_v52, %v1977_v37  ;;  %v1473_v0 = vmax.f32 %v4816_v30, %v1317_v3  ;;  %v4821_v56 = vmax.f32 %v3757_v23, %v3759_v27 }
 0x1e9   :  { %v1319_v11 = vpop.f32.mrf.mxu0  ;;  %v1824_v19 = vpop.f32.mrf.mxu1 }
 0x1ea   :  { %v2082_v22 = vmax.f32 %v2033_v34, 0.0  ;;  %v1978_v4 = vmax.f32 %v1473_v0, %v1822_v44  ;;  %v4822_v11 = vmax.f32 %v3763_v50, %v3765_v39 }
 0x1eb   :  { %v1320_v5 = vpop.f32.mrf.mxu0  ;;  %v1825_v12 = vpop.f32.mrf.mxu1 }
 0x1ec   :  { %2132 = vst.msk [vmem:[%s4703_s3 + $0x68] sm:$0xff] %vm2118_vm1, %v2082_v22  ;;  %v2034_v15 = vadd.f32 %v4309_v52, %v1978_v4  ;;  %v1474_v63 = vmax.f32 %v4817_v62, %v1320_v5  ;;  %v4823_v62 = vmax.f32 %v3795_v18, %v3797_v36 }
 0x1ed   :  { %v1322_v2 = vpop.f32.mrf.mxu0  ;;  %v1827_v41 = vpop.f32.mrf.mxu1 }
 0x1ee   :  { %v2083_v42 = vmax.f32 %v2034_v15, 0.0  ;;  %v1979_v6 = vmax.f32 %v1474_v63, %v1825_v12 }
 0x1ef   :  { %v1325_v8 = vpop.f32.mrf.mxu0  ;;  %v1830_v29 = vpop.f32.mrf.mxu1 }
 0x1f0   :  { %2133 = vst.msk [vmem:[%s4703_s3 + $0x70] sm:$0xff] %vm2118_vm1, %v2083_v42  ;;  %v2035_v45 = vadd.f32 %v4309_v52, %v1979_v6  ;;  %v1475_v17 = vmax.f32 %v4818_v16, %v1325_v8 }
 0x1f1   :  { %v1327_v13 = vpop.f32.mrf.mxu0  ;;  %v1832_v9 = vpop.f32.mrf.mxu1 }
 0x1f2   :  { %v2084_v10 = vmax.f32 %v2035_v45, 0.0  ;;  %v1980_v14 = vmax.f32 %v1475_v17, %v1830_v29  ;;  %v4824_v29 = vld [vmem:[#allocation2_spill] sm:$0xff]  ;;  %v4825_v45 = vld [vmem:[#allocation3_spill] sm:$0xff] }
 0x1f3   :  { %v1328_v46 = vpop.f32.mrf.mxu0  ;;  %v1833_v59 = vpop.f32.mrf.mxu1  ;;  %v4826_v16 = vmax.f32 %v4824_v29, %v4825_v45 }
 0x1f4   :  { %2134 = vst.msk [vmem:[%s4703_s3 + $0x78] sm:$0xff] %vm2118_vm1, %v2084_v10  ;;  %v2036_v24 = vadd.f32 %v4309_v52, %v1980_v14  ;;  %v1476_v57 = vmax.f32 %v4819_v25, %v1328_v46 }
 0x1f5   :  { %v1330_v47 = vpop.f32.mrf.mxu0  ;;  %v1835_v61 = vpop.f32.mrf.mxu1 }
 0x1f6   :  { %v2085_v1 = vmax.f32 %v2036_v24, 0.0  ;;  %v1981_v21 = vmax.f32 %v1476_v57, %v1833_v59  ;;  %v4827_v59 = vld [vmem:[#allocation4_spill] sm:$0xff]  ;;  %v4828_v24 = vld [vmem:[#allocation5_spill] sm:$0xff] }
 0x1f7   :  { %v1333_v38 = vpop.f32.mrf.mxu0  ;;  %v1838_v40 = vpop.f32.mrf.mxu1  ;;  %v4829_v25 = vmax.f32 %v4827_v59, %v4828_v24 }
 0x1f8   :  { %2135 = vst.msk [vmem:[%s4703_s3 + $0x80] sm:$0xff] %vm2118_vm1, %v2085_v1  ;;  %v2037_v33 = vadd.f32 %v4309_v52, %v1981_v21  ;;  %v1477_v49 = vmax.f32 %v4820_v35, %v1333_v38  ;;  %v4830_v35 = vld [vmem:[#allocation6_spill] sm:$0xff] }
 0x1f9   :  { %v1335_v54 = vpop.f32.mrf.mxu0  ;;  %v1840_v31 = vpop.f32.mrf.mxu1 }
 0x1fa   :  { %v2086_v32 = vmax.f32 %v2037_v33, 0.0  ;;  %v1982_v55 = vmax.f32 %v1477_v49, %v1838_v40  ;;  %v4831_v49 = vld [vmem:[#allocation7_spill] sm:$0xff] }
 0x1fb   :  { %v1336_v51 = vpop.f32.mrf.mxu0  ;;  %v1841_v48 = vpop.f32.mrf.mxu1  ;;  %v4832_v54 = vmax.f32 %v4830_v35, %v4831_v49 }
 0x1fc   :  { %2136 = vst.msk [vmem:[%s4703_s3 + $0x88] sm:$0xff] %vm2118_vm1, %v2086_v32  ;;  %v2038_v53 = vadd.f32 %v4309_v52, %v1982_v55  ;;  %v1478_v37 = vmax.f32 %v4821_v56, %v1336_v51 }
 0x1fd   :  { %v1338_v3 = vpop.f32.mrf.mxu0  ;;  %v1843_v43 = vpop.f32.mrf.mxu1 }
 0x1fe   :  { %v2087_v60 = vmax.f32 %v2038_v53, 0.0  ;;  %v1983_v44 = vmax.f32 %v1478_v37, %v1841_v48  ;;  %v4833_v3 = vld [vmem:[#allocation8_spill] sm:$0xff]  ;;  %v4834_v43 = vld [vmem:[#allocation9_spill] sm:$0xff] }
 0x1ff   :  { %v1341_v34 = vpop.f32.mrf.mxu0  ;;  %v1846_v30 = vpop.f32.mrf.mxu1 }
 0x200   :  { %2137 = vst.msk [vmem:[%s4703_s3 + $0x90] sm:$0xff] %vm2118_vm1, %v2087_v60  ;;  %v2039_v0 = vadd.f32 %v4309_v52, %v1983_v44  ;;  %v1479_v19 = vmax.f32 %v4822_v11, %v1341_v34  ;;  %v4835_v60 = vmax.f32 %v4833_v3, %v4834_v43 }
 0x201   :  { %v1343_v22 = vpop.f32.mrf.mxu0  ;;  %v1848_v23 = vpop.f32.mrf.mxu1 }
 0x202   :  { %v2088_v27 = vmax.f32 %v2039_v0, 0.0  ;;  %v1984_v4 = vmax.f32 %v1479_v19, %v1846_v30 }
 0x203   :  { %v1344_v5 = vpop.f32.mrf.mxu0  ;;  %v1849_v12 = vpop.f32.mrf.mxu1 }
 0x204   :  { %2138 = vst.msk [vmem:[%s4703_s3 + $0x98] sm:$0xff] %vm2118_vm1, %v2088_v27  ;;  %v2040_v15 = vadd.f32 %v4309_v52, %v1984_v4  ;;  %v1480_v63 = vmax.f32 %v4823_v62, %v1344_v5  ;;  %v4836_v27 = vld [vmem:[#allocation10_spill] sm:$0xff]  ;;  %v4837_v4 = vld [vmem:[#allocation11_spill] sm:$0xff] }
 0x205   :  { %v1346_v2 = vpop.f32.mrf.mxu0  ;;  %v1851_v39 = vpop.f32.mrf.mxu1  ;;  %v4838_v5 = vmax.f32 %v4836_v27, %v4837_v4 }
 0x206   :  { %v2089_v50 = vmax.f32 %v2040_v15, 0.0  ;;  %v1985_v41 = vmax.f32 %v1480_v63, %v1849_v12 }
 0x207   :  { %v1349_v42 = vpop.f32.mrf.mxu0  ;;  %v1854_v6 = vpop.f32.mrf.mxu1 }
 0x208   :  { %2139 = vst.msk [vmem:[%s4703_s3 + $0xa0] sm:$0xff] %vm2118_vm1, %v2089_v50  ;;  %v2041_v8 = vadd.f32 %v4309_v52, %v1985_v41  ;;  %v1481_v17 = vmax.f32 %v4826_v16, %v1349_v42  ;;  %v4839_v42 = vld [vmem:[#allocation12_spill] sm:$0xff] }
 0x209   :  { %v1351_v13 = vpop.f32.mrf.mxu0  ;;  %v1856_v18 = vpop.f32.mrf.mxu1 }
 0x20a   :  { %v2090_v36 = vmax.f32 %v2041_v8, 0.0  ;;  %v1986_v9 = vmax.f32 %v1481_v17, %v1854_v6  ;;  %v4840_v6 = vld [vmem:[#allocation13_spill] sm:$0xff] }
 0x20b   :  { %v1352_v10 = vpop.f32.mrf.mxu0  ;;  %v1857_v14 = vpop.f32.mrf.mxu1  ;;  %v4841_v8 = vmax.f32 %v4839_v42, %v4840_v6 }
 0x20c   :  { %2140 = vst.msk [vmem:[%s4703_s3 + $0xa8] sm:$0xff] %vm2118_vm1, %v2090_v36  ;;  %v2042_v46 = vadd.f32 %v4309_v52, %v1986_v9  ;;  %v1482_v57 = vmax.f32 %v4829_v25, %v1352_v10  ;;  %v4842_v10 = vld [vmem:[#allocation14_spill] sm:$0xff] }
 0x20d   :  { %v1354_v47 = vpop.f32.mrf.mxu0  ;;  %v1859_v61 = vpop.f32.mrf.mxu1 }
 0x20e   :  { %v2091_v1 = vmax.f32 %v2042_v46, 0.0  ;;  %v1987_v21 = vmax.f32 %v1482_v57, %v1857_v14  ;;  %v4843_v14 = vld [vmem:[#allocation15_spill] sm:$0xff] }
 0x20f   :  { %v1357_v38 = vpop.f32.mrf.mxu0  ;;  %v1862_v40 = vpop.f32.mrf.mxu1  ;;  %v4844_v46 = vmax.f32 %v4842_v10, %v4843_v14 }
 0x210   :  { %2141 = vst.msk [vmem:[%s4703_s3 + $0xb0] sm:$0xff] %vm2118_vm1, %v2091_v1  ;;  %v2043_v33 = vadd.f32 %v4309_v52, %v1987_v21  ;;  %v1483_v31 = vmax.f32 %v4832_v54, %v1357_v38  ;;  %v4845_v38 = vld [vmem:[#allocation16_spill] sm:$0xff] }
 0x211   :  { %v1359_v32 = vpop.f32.mrf.mxu0  ;;  %v1864_v55 = vpop.f32.mrf.mxu1 }
 0x212   :  { %v2092_v51 = vmax.f32 %v2043_v33, 0.0  ;;  %v1988_v48 = vmax.f32 %v1483_v31, %v1862_v40  ;;  %v4846_v40 = vld [vmem:[#allocation17_spill] sm:$0xff] }
 0x213   :  { %v1360_v53 = vpop.f32.mrf.mxu0  ;;  %v1865_v56 = vpop.f32.mrf.mxu1  ;;  %v4847_v33 = vmax.f32 %v4845_v38, %v4846_v40 }
 0x214   :  { %2142 = vst.msk [vmem:[%s4703_s3 + $0xb8] sm:$0xff] %vm2118_vm1, %v2092_v51  ;;  %v2044_v37 = vadd.f32 %v4309_v52, %v1988_v48  ;;  %v1484_v44 = vmax.f32 %v4835_v60, %v1360_v53  ;;  %v4848_v53 = vld [vmem:[#allocation18_spill] sm:$0xff] }
 0x215   :  { %v1362_v34 = vpop.f32.mrf.mxu0  ;;  %v1867_v30 = vpop.f32.mrf.mxu1 }
 0x216   :  { %v2093_v0 = vmax.f32 %v2044_v37, 0.0  ;;  %v1989_v11 = vmax.f32 %v1484_v44, %v1865_v56  ;;  %v4849_v56 = vld [vmem:[#allocation19_spill] sm:$0xff] }
 0x217   :  { %v1365_v19 = vpop.f32.mrf.mxu0  ;;  %v1870_v22 = vpop.f32.mrf.mxu1  ;;  %v4850_v37 = vmax.f32 %v4848_v53, %v4849_v56 }
 0x218   :  { %2143 = vst.msk [vmem:[%s4703_s3 + $0xc0] sm:$0xff] %vm2118_vm1, %v2093_v0  ;;  %v2045_v23 = vadd.f32 %v4309_v52, %v1989_v11  ;;  %v1485_v12 = vmax.f32 %v4838_v5, %v1365_v19  ;;  %v4851_v19 = vld [vmem:[#allocation20_spill] sm:$0xff] }
 0x219   :  { %v1367_v15 = vpop.f32.mrf.mxu0  ;;  %v1872_v62 = vpop.f32.mrf.mxu1 }
 0x21a   :  { %v2094_v63 = vmax.f32 %v2045_v23, 0.0  ;;  %v1990_v2 = vmax.f32 %v1485_v12, %v1870_v22  ;;  %v4852_v22 = vld [vmem:[#allocation21_spill] sm:$0xff] }
 0x21b   :  { %v1368_v39 = vpop.f32.mrf.mxu0  ;;  %v1873_v50 = vpop.f32.mrf.mxu1  ;;  %v4853_v23 = vmax.f32 %v4851_v19, %v4852_v22 }
 0x21c   :  { %2144 = vst.msk [vmem:[%s4703_s3 + $0xc8] sm:$0xff] %vm2118_vm1, %v2094_v63  ;;  %v2046_v41 = vadd.f32 %v4309_v52, %v1990_v2  ;;  %v1486_v29 = vmax.f32 %v4841_v8, %v1368_v39  ;;  %v4854_v39 = vld [vmem:[#allocation22_spill] sm:$0xff] }
 0x21d   :  { %v1370_v45 = vpop.f32.mrf.mxu0  ;;  %v1875_v16 = vpop.f32.mrf.mxu1 }
 0x21e   :  { %v2095_v17 = vmax.f32 %v2046_v41, 0.0  ;;  %v1991_v13 = vmax.f32 %v1486_v29, %v1873_v50  ;;  %v4855_v50 = vld [vmem:[#allocation23_spill] sm:$0xff] }
 0x21f   :  { %v1373_v18 = vpop.f32.mrf.mxu0  ;;  %v1878_v36 = vpop.f32.mrf.mxu1  ;;  %v4856_v41 = vmax.f32 %v4854_v39, %v4855_v50 }
 0x220   :  { %2145 = vst.msk [vmem:[%s4703_s3 + $0xd0] sm:$0xff] %vm2118_vm1, %v2095_v17  ;;  %v2047_v9 = vadd.f32 %v4309_v52, %v1991_v13  ;;  %v1487_v59 = vmax.f32 %v4844_v46, %v1373_v18  ;;  %v4857_v18 = vld [vmem:[#allocation24_spill] sm:$0xff] }
 0x221   :  { %v1375_v24 = vpop.f32.mrf.mxu0  ;;  %v1880_v25 = vpop.f32.mrf.mxu1 }
 0x222   :  { %v2096_v57 = vmax.f32 %v2047_v9, 0.0  ;;  %v1992_v47 = vmax.f32 %v1487_v59, %v1878_v36  ;;  %v4858_v36 = vld [vmem:[#allocation25_spill] sm:$0xff] }
 0x223   :  { %v1376_v61 = vpop.f32.mrf.mxu0  ;;  %v1881_v1 = vpop.f32.mrf.mxu1  ;;  %v4859_v9 = vmax.f32 %v4857_v18, %v4858_v36 }
 0x224   :  { %2146 = vst.msk [vmem:[%s4703_s3 + $0xd8] sm:$0xff] %vm2118_vm1, %v2096_v57  ;;  %v2048_v21 = vadd.f32 %v4309_v52, %v1992_v47  ;;  %v1488_v35 = vmax.f32 %v4847_v33, %v1376_v61  ;;  %v4860_v61 = vld [vmem:[#allocation26_spill] sm:$0xff] }
 0x225   :  { %v1378_v49 = vpop.f32.mrf.mxu0  ;;  %v1883_v54 = vpop.f32.mrf.mxu1 }
 0x226   :  { %v2097_v31 = vmax.f32 %v2048_v21, 0.0  ;;  %v1993_v32 = vmax.f32 %v1488_v35, %v1881_v1  ;;  %v4861_v1 = vld [vmem:[#allocation27_spill] sm:$0xff] }
 0x227   :  { %v1381_v55 = vpop.f32.mrf.mxu0  ;;  %v1886_v51 = vpop.f32.mrf.mxu1  ;;  %v4862_v21 = vmax.f32 %v4860_v61, %v4861_v1 }
 0x228   :  { %2147 = vst.msk [vmem:[%s4703_s3 + $0xe0] sm:$0xff] %vm2118_vm1, %v2097_v31  ;;  %v2049_v48 = vadd.f32 %v4309_v52, %v1993_v32  ;;  %v1489_v3 = vmax.f32 %v4850_v37, %v1381_v55  ;;  %v4863_v55 = vld [vmem:[#allocation28_spill] sm:$0xff] }
 0x229   :  { %v1383_v43 = vpop.f32.mrf.mxu0  ;;  %v1888_v60 = vpop.f32.mrf.mxu1 }
 0x22a   :  { %v2098_v44 = vmax.f32 %v2049_v48, 0.0  ;;  %v1994_v34 = vmax.f32 %v1489_v3, %v1886_v51  ;;  %v4864_v51 = vld [vmem:[#allocation29_spill] sm:$0xff] }
 0x22b   :  { %v1384_v30 = vpop.f32.mrf.mxu0  ;;  %v1889_v0 = vpop.f32.mrf.mxu1  ;;  %v4865_v48 = vmax.f32 %v4863_v55, %v4864_v51 }
 0x22c   :  { %2148 = vst.msk [vmem:[%s4703_s3 + $0xe8] sm:$0xff] %vm2118_vm1, %v2098_v44  ;;  %v2050_v11 = vadd.f32 %v4309_v52, %v1994_v34  ;;  %v1490_v27 = vmax.f32 %v4853_v23, %v1384_v30  ;;  %v4866_v30 = vld [vmem:[#allocation30_spill] sm:$0xff] }
 0x22d   :  { %v1386_v4 = vpop.f32.mrf.mxu0  ;;  %v1891_v5 = vpop.f32.mrf.mxu1 }
 0x22e   :  { %v2099_v12 = vmax.f32 %v2050_v11, 0.0  ;;  %v1995_v15 = vmax.f32 %v1490_v27, %v1889_v0  ;;  %v4867_v0 = vld [vmem:[#allocation31_spill] sm:$0xff] }
 0x22f   :  { %v1389_v62 = vpop.f32.mrf.mxu0  ;;  %v1894_v63 = vpop.f32.mrf.mxu1  ;;  %v4868_v11 = vmax.f32 %v4866_v30, %v4867_v0 }
 0x230   :  { %2149 = vst.msk [vmem:[%s4703_s3 + $0xf0] sm:$0xff] %vm2118_vm1, %v2099_v12  ;;  %v2051_v2 = vadd.f32 %v4309_v52, %v1995_v15  ;;  %v1491_v42 = vmax.f32 %v4856_v41, %v1389_v62  ;;  %v4869_v62 = vld [vmem:[#allocation32_spill] sm:$0xff] }
 0x231   :  { %v1391_v6 = vpop.f32.mrf.mxu0  ;;  %v1896_v8 = vpop.f32.mrf.mxu1 }
 0x232   :  { %v2100_v29 = vmax.f32 %v2051_v2, 0.0  ;;  %v1996_v45 = vmax.f32 %v1491_v42, %v1894_v63  ;;  %v4870_v63 = vld [vmem:[#allocation33_spill] sm:$0xff] }
 0x233   :  { %v1392_v16 = vpop.f32.mrf.mxu0  ;;  %v1897_v17 = vpop.f32.mrf.mxu1  ;;  %v4871_v2 = vmax.f32 %v4869_v62, %v4870_v63 }
 0x234   :  { %2150 = vst.msk [vmem:[%s4703_s3 + $0xf8] sm:$0xff] %vm2118_vm1, %v2100_v29  ;;  %v2052_v13 = vadd.f32 %v4309_v52, %v1996_v45  ;;  %v1492_v10 = vmax.f32 %v4859_v9, %v1392_v16  ;;  %v4872_v16 = vld [vmem:[#allocation34_spill] sm:$0xff] }
 0x235   :  { %v1394_v14 = vpop.f32.mrf.mxu0  ;;  %v1899_v46 = vpop.f32.mrf.mxu1 }
 0x236   :  { %v2101_v59 = vmax.f32 %v2052_v13, 0.0  ;;  %v1997_v24 = vmax.f32 %v1492_v10, %v1897_v17  ;;  %v4873_v17 = vld [vmem:[#allocation35_spill] sm:$0xff] }
 0x237   :  { %v1397_v25 = vpop.f32.mrf.mxu0  ;;  %v1902_v57 = vpop.f32.mrf.mxu1  ;;  %v4874_v13 = vmax.f32 %v4872_v16, %v4873_v17 }
 0x238   :  { %2151 = vst.msk [vmem:[%s4703_s3 + $0x100] sm:$0xff] %vm2118_vm1, %v2101_v59  ;;  %v2053_v47 = vadd.f32 %v4309_v52, %v1997_v24  ;;  %v1493_v38 = vmax.f32 %v4862_v21, %v1397_v25  ;;  %v4875_v25 = vld [vmem:[#allocation36_spill] sm:$0xff] }
 0x239   :  { %v1399_v40 = vpop.f32.mrf.mxu0  ;;  %v1904_v33 = vpop.f32.mrf.mxu1 }
 0x23a   :  { %v2102_v35 = vmax.f32 %v2053_v47, 0.0  ;;  %v1998_v49 = vmax.f32 %v1493_v38, %v1902_v57  ;;  %v4876_v57 = vld [vmem:[#allocation37_spill] sm:$0xff] }
 0x23b   :  { %v1400_v54 = vpop.f32.mrf.mxu0  ;;  %v1905_v31 = vpop.f32.mrf.mxu1  ;;  %v4877_v47 = vmax.f32 %v4875_v25, %v4876_v57 }
 0x23c   :  { %2152 = vst.msk [vmem:[%s4703_s3 + $0x108] sm:$0xff] %vm2118_vm1, %v2102_v35  ;;  %v2054_v32 = vadd.f32 %v4309_v52, %v1998_v49  ;;  %v1494_v53 = vmax.f32 %v4865_v48, %v1400_v54  ;;  %v4878_v54 = vld [vmem:[#allocation38_spill] sm:$0xff] }
 0x23d   :  { %v1402_v56 = vpop.f32.mrf.mxu0  ;;  %v1907_v37 = vpop.f32.mrf.mxu1 }
 0x23e   :  { %v2103_v3 = vmax.f32 %v2054_v32, 0.0  ;;  %v1999_v43 = vmax.f32 %v1494_v53, %v1905_v31  ;;  %v4879_v31 = vld [vmem:[#allocation39_spill] sm:$0xff] }
 0x23f   :  { %v1405_v60 = vpop.f32.mrf.mxu0  ;;  %v1910_v44 = vpop.f32.mrf.mxu1  ;;  %v4880_v32 = vmax.f32 %v4878_v54, %v4879_v31 }
 0x240   :  { %2153 = vst.msk [vmem:[%s4703_s3 + $0x110] sm:$0xff] %vm2118_vm1, %v2103_v3  ;;  %v2055_v34 = vadd.f32 %v4309_v52, %v1999_v43  ;;  %v1495_v19 = vmax.f32 %v4868_v11, %v1405_v60  ;;  %v4881_v60 = vld [vmem:[#allocation40_spill] sm:$0xff] }
 0x241   :  { %v1407_v22 = vpop.f32.mrf.mxu0  ;;  %v1912_v23 = vpop.f32.mrf.mxu1 }
 0x242   :  { %v2104_v27 = vmax.f32 %v2055_v34, 0.0  ;;  %v2000_v4 = vmax.f32 %v1495_v19, %v1910_v44  ;;  %v4882_v44 = vld [vmem:[#allocation41_spill] sm:$0xff] }
 0x243   :  { %v1408_v5 = vpop.f32.mrf.mxu0  ;;  %v1913_v12 = vpop.f32.mrf.mxu1  ;;  %v4883_v34 = vmax.f32 %v4881_v60, %v4882_v44 }
 0x244   :  { %2154 = vst.msk [vmem:[%s4703_s3 + $0x118] sm:$0xff] %vm2118_vm1, %v2104_v27  ;;  %v2056_v15 = vadd.f32 %v4309_v52, %v2000_v4  ;;  %v1496_v39 = vmax.f32 %v4871_v2, %v1408_v5  ;;  %v4884_v5 = vld [vmem:[#allocation42_spill] sm:$0xff] }
 0x245   :  { %v1410_v50 = vpop.f32.mrf.mxu0  ;;  %v1915_v41 = vpop.f32.mrf.mxu1 }
 0x246   :  { %v2105_v42 = vmax.f32 %v2056_v15, 0.0  ;;  %v2001_v6 = vmax.f32 %v1496_v39, %v1913_v12  ;;  %v4885_v12 = vld [vmem:[#allocation43_spill] sm:$0xff] }
 0x247   :  { %v1413_v8 = vpop.f32.mrf.mxu0  ;;  %v1918_v29 = vpop.f32.mrf.mxu1  ;;  %v4886_v15 = vmax.f32 %v4884_v5, %v4885_v12 }
 0x248   :  { %2155 = vst.msk [vmem:[%s4703_s3 + $0x120] sm:$0xff] %vm2118_vm1, %v2105_v42  ;;  %v2057_v45 = vadd.f32 %v4309_v52, %v2001_v6  ;;  %v1497_v18 = vmax.f32 %v4874_v13, %v1413_v8  ;;  %v4887_v8 = vld [vmem:[#allocation44_spill] sm:$0xff] }
 0x249   :  { %v1415_v36 = vpop.f32.mrf.mxu0  ;;  %v1920_v9 = vpop.f32.mrf.mxu1 }
 0x24a   :  { %v2106_v10 = vmax.f32 %v2057_v45, 0.0  ;;  %v2002_v14 = vmax.f32 %v1497_v18, %v1918_v29  ;;  %v4888_v29 = vld [vmem:[#allocation45_spill] sm:$0xff] }
 0x24b   :  { %v1416_v46 = vpop.f32.mrf.mxu0  ;;  %v1921_v59 = vpop.f32.mrf.mxu1  ;;  %v4889_v45 = vmax.f32 %v4887_v8, %v4888_v29 }
 0x24c   :  { %2156 = vst.msk [vmem:[%s4703_s3 + $0x128] sm:$0xff] %vm2118_vm1, %v2106_v10  ;;  %v2058_v24 = vadd.f32 %v4309_v52, %v2002_v14  ;;  %v1498_v61 = vmax.f32 %v4877_v47, %v1416_v46  ;;  %v4890_v46 = vld [vmem:[#allocation46_spill] sm:$0xff] }
 0x24d   :  { %v1418_v1 = vpop.f32.mrf.mxu0  ;;  %v1923_v21 = vpop.f32.mrf.mxu1 }
 0x24e   :  { %v2107_v38 = vmax.f32 %v2058_v24, 0.0  ;;  %v2003_v40 = vmax.f32 %v1498_v61, %v1921_v59  ;;  %v4891_v59 = vld [vmem:[#allocation47_spill] sm:$0xff] }
 0x24f   :  { %v1421_v33 = vpop.f32.mrf.mxu0  ;;  %v1926_v35 = vpop.f32.mrf.mxu1  ;;  %v4892_v24 = vmax.f32 %v4890_v46, %v4891_v59 }
 0x250   :  { %2157 = vst.msk [vmem:[%s4703_s3 + $0x130] sm:$0xff] %vm2118_vm1, %v2107_v38  ;;  %v2059_v49 = vadd.f32 %v4309_v52, %v2003_v40  ;;  %v1499_v55 = vmax.f32 %v4880_v32, %v1421_v33  ;;  %v4893_v33 = vmax.f32 %v4251_v20, %v4253_v28 }
 0x251   :  { %v1423_v51 = vpop.f32.mrf.mxu0  ;;  %v1928_v48 = vpop.f32.mrf.mxu1 }
 0x252   :  { %v2108_v53 = vmax.f32 %v2059_v49, 0.0  ;;  %v2004_v56 = vmax.f32 %v1499_v55, %v1926_v35 }
 0x253   :  { %v1424_v37 = vpop.f32.mrf.mxu0  ;;  %v1929_v3 = vpop.f32.mrf.mxu1 }
 0x254   :  { %2158 = vst.msk [vmem:[%s4703_s3 + $0x138] sm:$0xff] %vm2118_vm1, %v2108_v53  ;;  %v2060_v43 = vadd.f32 %v4309_v52, %v2004_v56  ;;  %v1500_v30 = vmax.f32 %v4883_v34, %v1424_v37  ;;  %v4894_v53 = vld [vmem:[#allocation48_spill] sm:$0xff]  ;;  %v4895_v56 = vld [vmem:[#allocation49_spill] sm:$0xff] }
 0x255   :  { %v1426_v0 = vpop.f32.mrf.mxu0  ;;  %v1931_v11 = vpop.f32.mrf.mxu1  ;;  %v4896_v37 = vmax.f32 %v4894_v53, %v4895_v56 }
 0x256   :  { %v2109_v19 = vmax.f32 %v2060_v43, 0.0  ;;  %v2005_v22 = vmax.f32 %v1500_v30, %v1929_v3  ;;  %v4897_v0 = vmax.f32 %v4283_v7, %v4285_v58 }
 0x257   :  { %v1429_v23 = vpop.f32.mrf.mxu0  ;;  %v1934_v27 = vpop.f32.mrf.mxu1 }
 0x258   :  { %2159 = vst.msk [vmem:[%s4703_s3 + $0x140] sm:$0xff] %vm2118_vm1, %v2109_v19  ;;  %v2061_v4 = vadd.f32 %v4309_v52, %v2005_v22  ;;  %v1501_v62 = vmax.f32 %v4886_v15, %v1429_v23  ;;  %v4898_v15 = vld [vmem:[#allocation50_spill] sm:$0xff] }
 0x259   :  { %v1431_v63 = vpop.f32.mrf.mxu0  ;;  %v1936_v2 = vpop.f32.mrf.mxu1 }
 0x25a   :  { %v2110_v39 = vmax.f32 %v2061_v4, 0.0  ;;  %v2006_v50 = vmax.f32 %v1501_v62, %v1934_v27  ;;  %v4899_v62 = vmax.f32 %v4289_v26, %v4898_v15 }
 0x25b   :  { %v1432_v41 = vpop.f32.mrf.mxu0  ;;  %v1937_v42 = vpop.f32.mrf.mxu1 }
 0x25c   :  { %2160 = vst.msk [vmem:[%s4703_s3 + $0x148] sm:$0xff] %vm2118_vm1, %v2110_v39  ;;  %v2062_v6 = vadd.f32 %v4309_v52, %v2006_v50  ;;  %v1502_v16 = vmax.f32 %v4889_v45, %v1432_v41 }
 0x25d   :  { %v1434_v17 = vpop.f32.mrf.mxu0  ;;  %v1939_v13 = vpop.f32.mrf.mxu1 }
 0x25e   :  { %v2111_v18 = vmax.f32 %v2062_v6, 0.0  ;;  %v2007_v36 = vmax.f32 %v1502_v16, %v1937_v42 }
 0x25f   :  { %v1437_v9 = vpop.f32.mrf.mxu0  ;;  %v1942_v10 = vpop.f32.mrf.mxu1 }
 0x260   :  { %2161 = vst.msk [vmem:[%s4703_s3 + $0x150] sm:$0xff] %vm2118_vm1, %v2111_v18  ;;  %v2063_v14 = vadd.f32 %v4309_v52, %v2007_v36  ;;  %v1503_v25 = vmax.f32 %v4892_v24, %v1437_v9 }
 0x261   :  { %v1439_v57 = vpop.f32.mrf.mxu0  ;;  %v1944_v47 = vpop.f32.mrf.mxu1 }
 0x262   :  { %v2112_v61 = vmax.f32 %v2063_v14, 0.0  ;;  %v2008_v1 = vmax.f32 %v1503_v25, %v1942_v10 }
 0x263   :  { %v1440_v21 = vpop.f32.mrf.mxu0  ;;  %v1945_v38 = vpop.f32.mrf.mxu1 }
 0x264   :  { %2162 = vst.msk [vmem:[%s4703_s3 + $0x158] sm:$0xff] %vm2118_vm1, %v2112_v61  ;;  %v2064_v40 = vadd.f32 %v4309_v52, %v2008_v1  ;;  %v1504_v35 = vmax.f32 %v4893_v33, %v1440_v21 }
 0x265   :  { %v1442_v49 = vpop.f32.mrf.mxu0  ;;  %v1947_v54 = vpop.f32.mrf.mxu1 }
 0x266   :  { %v2113_v31 = vmax.f32 %v2064_v40, 0.0  ;;  %v2009_v32 = vmax.f32 %v1504_v35, %v1945_v38 }
 0x267   :  { %v1445_v55 = vpop.f32.mrf.mxu0  ;;  %v1950_v51 = vpop.f32.mrf.mxu1 }
 0x268   :  { %2163 = vst.msk [vmem:[%s4703_s3 + $0x160] sm:$0xff] %vm2118_vm1, %v2113_v31  ;;  %v2065_v48 = vadd.f32 %v4309_v52, %v2009_v32  ;;  %v1505_v3 = vmax.f32 %v4896_v37, %v1445_v55 }
 0x269   :  { %v1447_v43 = vpop.f32.mrf.mxu0  ;;  %v1952_v20 = vpop.f32.mrf.mxu1 }
 0x26a   :  { %v2114_v28 = vmax.f32 %v2065_v48, 0.0  ;;  %v2010_v60 = vmax.f32 %v1505_v3, %v1950_v51 }
 0x26b   :  { %v1448_v44 = vpop.f32.mrf.mxu0  ;;  %v1953_v34 = vpop.f32.mrf.mxu1 }
 0x26c   :  { %2164 = vst.msk [vmem:[%s4703_s3 + $0x168] sm:$0xff] %vm2118_vm1, %v2114_v28  ;;  %v2066_v30 = vadd.f32 %v4309_v52, %v2010_v60  ;;  %v1506_v11 = vmax.f32 %v4897_v0, %v1448_v44 }
 0x26d   :  { %v1450_v19 = vpop.f32.mrf.mxu0  ;;  %v1955_v22 = vpop.f32.mrf.mxu1 }
 0x26e   :  { %v2115_v23 = vmax.f32 %v2066_v30, 0.0  ;;  %v2011_v27 = vmax.f32 %v1506_v11, %v1953_v34 }
 0x26f   :  { %v1453_v4 = vpop.f32.mrf.mxu0  ;;  %v1958_v5 = vpop.f32.mrf.mxu1 }
 0x270   :  { %2165 = vst.msk [vmem:[%s4703_s3 + $0x170] sm:$0xff] %vm2118_vm1, %v2115_v23  ;;  %v2067_v12 = vadd.f32 %v4309_v52, %v2011_v27  ;;  %v1507_v63 = vmax.f32 %v4899_v62, %v1453_v4 }
 0x271   :  { %v1455_v2 = vpop.f32.mrf.mxu0  ;;  %v1960_v7 = vpop.f32.mrf.mxu1 }
 0x272   :  { %v2116_v58 = vmax.f32 %v2067_v12, 0.0  ;;  %v2012_v39 = vmax.f32 %v1507_v63, %v1958_v5 }
 0x273   :  { %v1456_v50 = vpop.f32.mrf.mxu0  ;;  %v1961_v41 = vpop.f32.mrf.mxu1 }
 0x274   :  { %2166 = vst.msk [vmem:[%s4703_s3 + $0x178] sm:$0xff] %vm2118_vm1, %v2116_v58  ;;  %v2068_v42 = vadd.f32 %v4309_v52, %v2012_v39 }
 0x275   :  { %v1457_v6 = vpop.f32.mrf.mxu0  ;;  %v1962_v8 = vpop.f32.mrf.mxu1 }
 0x276   :  { %v2117_v29 = vmax.f32 %v2068_v42, 0.0 }
 0x278   :  { %2167 = vst.msk [vmem:[%s4703_s3 + $0x180] sm:$0xff] %vm2118_vm1, %v2117_v29 }

</bundles_post_ra>
